<compile_context>
chip_gen: v6e
topology: v6e:2x2x1
jax: 0.10.0
libtpu: 0.0.40
codegen_flags: <defaults>
</compile_context>

<pallas_src>
import math
import jax
import jax.numpy as jnp
from jax import lax
from jax.experimental import pallas as pl
from jax.experimental.pallas import tpu as pltpu

BN_EPS = 1e-5
LANE = 128

# (kernel, stride, padding) of each ConvTranspose2d, mirroring the PyTorch module.
LAYER_CFG = ((4, 1, 1), (4, 1, 1), (4, 2, 1), (4, 2, 1), (5, 5, 0))


def _round_up(x, m):
    return ((x + m - 1) // m) * m


def _vspec(shape):
    # Full-array block (legal regardless of (8,128) divisibility), grid=(1,).
    return pl.BlockSpec(shape, lambda i: (0,) * len(shape))


# ---------------- Pallas kernels ----------------

def _fused_convt_bn_relu_kernel(p_ref, w_ref, g_ref, b_ref, o_ref):
    """One whole (small) layer in VMEM: matmul -> batch-stat BN -> ReLU."""
    y = jnp.dot(p_ref[...], w_ref[...], preferred_element_type=jnp.float32)
    m = y.shape[0]
    mean = jnp.sum(y, axis=0, keepdims=True) * (1.0 / m)
    c = y - mean
    var = jnp.sum(c * c, axis=0, keepdims=True) * (1.0 / m)   # biased var (PyTorch fwd)
    inv = lax.rsqrt(var + BN_EPS)
    o_ref[...] = jnp.maximum(c * (inv * g_ref[...]) + b_ref[...], 0.0)


def _fused_tail_kernel(p_ref, w4_ref, g_ref, b_ref, w5_ref, o_ref):
    """Layer 4 (conv-T + BN + ReLU) fused with layer 5 (block-upsample + tanh)."""
    y = jnp.dot(p_ref[...], w4_ref[...], preferred_element_type=jnp.float32)
    m = y.shape[0]
    mean = jnp.sum(y, axis=0, keepdims=True) * (1.0 / m)
    c = y - mean
    var = jnp.sum(c * c, axis=0, keepdims=True) * (1.0 / m)
    inv = lax.rsqrt(var + BN_EPS)
    h = jnp.maximum(c * (inv * g_ref[...]) + b_ref[...], 0.0)
    # k5 == stride5, pad5 == 0  =>  final layer is a per-pixel matmul onto
    # disjoint 5x5 output blocks. w5 is lane-padded to 128 cols (lane-dense vst).
    o_ref[...] = jnp.tanh(jnp.dot(h, w5_ref[...], preferred_element_type=jnp.float32))


# ---------------- Pallas wrappers ----------------

def fused_convt_bn_relu(patches, w_mat, gamma, beta):
    M, K = patches.shape
    C = w_mat.shape[1]
    return pl.pallas_call(
        _fused_convt_bn_relu_kernel,
        out_shape=jax.ShapeDtypeStruct((M, C), jnp.float32),
        grid=(1,),
        in_specs=[_vspec((M, K)), _vspec((K, C)), _vspec((1, C)), _vspec((1, C))],
        out_specs=_vspec((M, C)),
        compiler_params=pltpu.CompilerParams(dimension_semantics=("arbitrary",)),
    )(patches, w_mat, gamma, beta)


def fused_tail(patches4, w4_mat, gamma4, beta4, w5_mat):
    M, K = patches4.shape
    C4 = w4_mat.shape[1]
    C5 = w5_mat.shape[1]
    return pl.pallas_call(
        _fused_tail_kernel,
        out_shape=jax.ShapeDtypeStruct((M, C5), jnp.float32),
        grid=(1,),
        in_specs=[_vspec((M, K)), _vspec((K, C4)), _vspec((1, C4)),
                  _vspec((1, C4)), _vspec((C4, C5))],
        out_specs=_vspec((M, C5)),
        compiler_params=pltpu.CompilerParams(dimension_semantics=("arbitrary",)),
    )(patches4, w4_mat, gamma4, beta4, w5_mat)


# ---------------- JAX glue: transposed-conv -> patch matrix ----------------

def conv_transpose_patches(x_nhwc, k, stride, pad):
    """Zero-dilate + pad, then im2col.  Feature order is (dy, dx, cin)."""
    N, H, W, Cin = x_nhwc.shape
    if stride > 1:
        # NOTE: sub-pixel phase decomposition would avoid the structurally-zero
        # rows created by zero-dilation; negligible at these sizes.
        Hd, Wd = (H - 1) * stride + 1, (W - 1) * stride + 1
        xd = jnp.zeros((N, Hd, Wd, Cin), x_nhwc.dtype)
        xd = xd.at[:, ::stride, ::stride, :].set(x_nhwc)
    else:
        xd = x_nhwc
    pp = k - 1 - pad
    xp = jnp.pad(xd, ((0, 0), (pp, pp), (pp, pp), (0, 0)))
    Hout = (H - 1) * stride - 2 * pad + k
    Wout = (W - 1) * stride - 2 * pad + k
    patches = [xp[:, dy:dy + Hout, dx:dx + Wout, :]
               for dy in range(k) for dx in range(k)]
    patches = jnp.concatenate(patches, axis=-1)           # (N, Ho, Wo, k*k*Cin)
    return patches.reshape(N * Hout * Wout, k * k * Cin), Hout, Wout


# ---------------- Parameter init (deterministic, mirrors weight_init) -------

def init_decoder_params(key, z_size=2, channel=3, num_filters=8):
    chans = [(z_size, num_filters * 8), (num_filters * 8, num_filters * 4),
             (num_filters * 4, num_filters * 2), (num_filters * 2, num_filters),
             (num_filters, channel)]
    params = []
    for li, ((cin, cout), (k, s, p)) in enumerate(zip(chans, LAYER_CFG)):
        key, wk, gk = jax.random.split(key, 3)
        fan_in, fan_out = cout * k * k, cin * k * k          # PyTorch conv-transpose fans
        std = math.sqrt(2.0 / (fan_in + fan_out))            # xavier_normal_
        w = std * jax.random.normal(wk, (cin, cout, k, k), jnp.float32)
        if li < len(chans) - 1:
            gamma = 1.0 + 0.02 * jax.random.normal(gk, (cout,), jnp.float32)
            beta = jnp.zeros((cout,), jnp.float32)
        else:
            gamma, beta = None, None
        params.append(dict(w=w, gamma=gamma, beta=beta))
    return params


# ---------------- Full decoder forward ----------------

def decoder_forward(z_nchw, params):
    x = jnp.transpose(z_nchw, (0, 2, 3, 1)).astype(jnp.float32)   # NCHW -> NHWC

    # Layers 0..2: one fused pallas_call each (matmul + BN(batch stats) + ReLU).
    for li in range(3):
        k, s, pd = LAYER_CFG[li]
        p = params[li]
        N = x.shape[0]
        patches, Ho, Wo = conv_transpose_patches(x, k, s, pd)
        cin, cout = p["w"].shape[0], p["w"].shape[1]
        w_flip = p["w"][:, :, ::-1, ::-1]                         # transposed-conv -> conv
        w_mat = jnp.transpose(w_flip, (2, 3, 0, 1)).reshape(k * k * cin, cout)
        y = fused_convt_bn_relu(patches, w_mat,
                                p["gamma"][None, :], p["beta"][None, :])
        x = y.reshape(N, Ho, Wo, cout)

    # Layer 3 (conv-T + BN + ReLU) fused with layer 4 (k=s=5, p=0 block upsample + tanh).
    k, s, pd = LAYER_CFG[3]
    p4, p5 = params[3], params[4]
    N = x.shape[0]
    patches, Ho, Wo = conv_transpose_patches(x, k, s, pd)
    cin4, cout4 = p4["w"].shape[0], p4["w"].shape[1]
    w4_flip = p4["w"][:, :, ::-1, ::-1]
    w4_mat = jnp.transpose(w4_flip, (2, 3, 0, 1)).reshape(k * k * cin4, cout4)

    k5 = LAYER_CFG[4][0]
    cout5 = p5["w"].shape[1]
    cols5 = k5 * k5 * cout5
    cols5_pad = _round_up(cols5, LANE)
    # W5[cin, cout, dy, dx] -> column index (dy*k5 + dx)*cout5 + cout
    w5_mat = jnp.transpose(p5["w"], (0, 2, 3, 1)).reshape(cout4, cols5)
    w5_mat = jnp.pad(w5_mat, ((0, 0), (0, cols5_pad - cols5)))    # lane-dense output

    y5 = fused_tail(patches, w4_mat,
                    p4["gamma"][None, :], p4["beta"][None, :], w5_mat)
    y5 = y5[:, :cols5].reshape(N, Ho, Wo, k5, k5, cout5)
    out = jnp.transpose(y5, (0, 1, 3, 2, 4, 5)).reshape(N, Ho * k5, Wo * k5, cout5)
    return jnp.transpose(out, (0, 3, 1, 2))                       # NHWC -> NCHW


if __name__ == "__main__":
    key = jax.random.PRNGKey(0)
    pkey, zkey = jax.random.split(key)
    params = init_decoder_params(pkey, z_size=2, channel=3, num_filters=8)
    # latent z: batch=2, z_size=2 channels, 4x4 spatial (NCHW, like PyTorch)
    z = jax.random.normal(zkey, (2, 2, 4, 4), jnp.float32)
    fwd = jax.jit(decoder_forward)
    out = jax.block_until_ready(fwd(z, params))
    assert out.shape == (2, 3, 120, 120), out.shape
    assert bool(jnp.all(jnp.isfinite(out)))
    print("KERNEL_OK")
</pallas_src>

<mosaic_0001>
module attributes {stable_mosaic.version = 11 : i64} {
  func.func @_fused_convt_bn_relu_kernel(%arg0: i32, %arg1: memref<50x32xf32, #tpu.memory_space<vmem>>, %arg2: memref<32x64xf32, #tpu.memory_space<vmem>>, %arg3: memref<1x64xf32, #tpu.memory_space<vmem>>, %arg4: memref<1x64xf32, #tpu.memory_space<vmem>>, %arg5: memref<50x64xf32, #tpu.memory_space<vmem>>) attributes {dimension_semantics = [#tpu.dimension_semantics<arbitrary>], iteration_bounds = array<i64: 1>, scalar_prefetch = 0 : i64, scratch_operands = 0 : i64, tpu.core_type = #tpu.core_type<tc>, window_params = [{pipeline_mode = #tpu.pipeline_mode<synchronous>, transform_indices = @transform_0, window_bounds = array<i64: 50, 32>}, {pipeline_mode = #tpu.pipeline_mode<synchronous>, transform_indices = @transform_1, window_bounds = array<i64: 32, 64>}, {pipeline_mode = #tpu.pipeline_mode<synchronous>, transform_indices = @transform_2, window_bounds = array<i64: 1, 64>}, {pipeline_mode = #tpu.pipeline_mode<synchronous>, transform_indices = @transform_3, window_bounds = array<i64: 1, 64>}, {pipeline_mode = #tpu.pipeline_mode<synchronous>, transform_indices = @transform_4, window_bounds = array<i64: 50, 64>}]} {
    %c0 = arith.constant 0 : index
    %c0_0 = arith.constant 0 : index
    %0 = vector.load %arg1[%c0, %c0_0] : memref<50x32xf32, #tpu.memory_space<vmem>>, vector<50x32xf32>
    %c0_1 = arith.constant 0 : index
    %c0_2 = arith.constant 0 : index
    %1 = vector.load %arg2[%c0_1, %c0_2] : memref<32x64xf32, #tpu.memory_space<vmem>>, vector<32x64xf32>
    %cst = arith.constant dense<0.000000e+00> : vector<50x64xf32>
    %2 = tpu.matmul %0, %1, %cst {dimension_numbers = #tpu.dot_dimension_numbers<[1], [0], [0], [1], [0, 0, 1, 1], [], []>} : vector<50x32xf32>, vector<32x64xf32>, vector<50x64xf32> -> vector<50x64xf32>
    %cst_3 = arith.constant dense<0.000000e+00> : vector<64xf32>
    %3 = vector.multi_reduction <add>, %2, %cst_3 [0] : vector<50x64xf32> to vector<64xf32>
    %4 = vector.shape_cast %3 : vector<64xf32> to vector<1x64xf32>
    %cst_4 = arith.constant 2.000000e-02 : f32
    %5 = vector.broadcast %cst_4 : f32 to vector<1x64xf32>
    %6 = arith.mulf %4, %5 : vector<1x64xf32>
    %7 = vector.broadcast %6 : vector<1x64xf32> to vector<50x64xf32>
    %8 = arith.subf %2, %7 : vector<50x64xf32>
    %9 = arith.mulf %8, %8 : vector<50x64xf32>
    %cst_5 = arith.constant dense<0.000000e+00> : vector<64xf32>
    %10 = vector.multi_reduction <add>, %9, %cst_5 [0] : vector<50x64xf32> to vector<64xf32>
    %11 = vector.shape_cast %10 : vector<64xf32> to vector<1x64xf32>
    %cst_6 = arith.constant 2.000000e-02 : f32
    %12 = vector.broadcast %cst_6 : f32 to vector<1x64xf32>
    %13 = arith.mulf %11, %12 : vector<1x64xf32>
    %cst_7 = arith.constant 9.99999974E-6 : f32
    %14 = vector.broadcast %cst_7 : f32 to vector<1x64xf32>
    %15 = arith.addf %13, %14 : vector<1x64xf32>
    %16 = math.rsqrt %15 : vector<1x64xf32>
    %c0_8 = arith.constant 0 : index
    %c0_9 = arith.constant 0 : index
    %17 = vector.load %arg3[%c0_8, %c0_9] : memref<1x64xf32, #tpu.memory_space<vmem>>, vector<1x64xf32>
    %18 = arith.mulf %16, %17 : vector<1x64xf32>
    %19 = vector.broadcast %18 : vector<1x64xf32> to vector<50x64xf32>
    %20 = arith.mulf %8, %19 : vector<50x64xf32>
    %c0_10 = arith.constant 0 : index
    %c0_11 = arith.constant 0 : index
    %21 = vector.load %arg4[%c0_10, %c0_11] : memref<1x64xf32, #tpu.memory_space<vmem>>, vector<1x64xf32>
    %22 = vector.broadcast %21 : vector<1x64xf32> to vector<50x64xf32>
    %23 = arith.addf %20, %22 : vector<50x64xf32>
    %cst_12 = arith.constant 0.000000e+00 : f32
    %24 = vector.broadcast %cst_12 : f32 to vector<50x64xf32>
    %25 = arith.maximumf %23, %24 : vector<50x64xf32>
    %c0_13 = arith.constant 0 : index
    %c0_14 = arith.constant 0 : index
    %26 = vector.load %arg5[%c0_13, %c0_14] : memref<50x64xf32, #tpu.memory_space<vmem>>, vector<50x64xf32>
    tpu.vector_store %arg5[%c0_13, %c0_14], %25 {strides = array<i32>} : memref<50x64xf32, #tpu.memory_space<vmem>>, vector<50x64xf32>,
    return
  }
  func.func @transform_0(%arg0: i32) -> (i32, i32) {
    %c0_i32 = arith.constant 0 : i32
    %c0_i32_0 = arith.constant 0 : i32
    %c0_i32_1 = arith.constant 0 : i32
    return %c0_i32, %c0_i32_0 : i32, i32
  }
  func.func @transform_1(%arg0: i32) -> (i32, i32) {
    %c0_i32 = arith.constant 0 : i32
    %c0_i32_0 = arith.constant 0 : i32
    %c0_i32_1 = arith.constant 0 : i32
    return %c0_i32, %c0_i32_0 : i32, i32
  }
  func.func @transform_2(%arg0: i32) -> (i32, i32) {
    %c0_i32 = arith.constant 0 : i32
    %c0_i32_0 = arith.constant 0 : i32
    %c0_i32_1 = arith.constant 0 : i32
    return %c0_i32, %c0_i32_0 : i32, i32
  }
  func.func @transform_3(%arg0: i32) -> (i32, i32) {
    %c0_i32 = arith.constant 0 : i32
    %c0_i32_0 = arith.constant 0 : i32
    %c0_i32_1 = arith.constant 0 : i32
    return %c0_i32, %c0_i32_0 : i32, i32
  }
  func.func @transform_4(%arg0: i32) -> (i32, i32) {
    %c0_i32 = arith.constant 0 : i32
    %c0_i32_0 = arith.constant 0 : i32
    %c0_i32_1 = arith.constant 0 : i32
    return %c0_i32, %c0_i32_0 : i32, i32
  }
}

module attributes {stable_mosaic.version = 11 : i64} {
  func.func @_fused_convt_bn_relu_kernel(%arg0: i32, %arg1: memref<72x1024xf32, #tpu.memory_space<vmem>>, %arg2: memref<1024x32xf32, #tpu.memory_space<vmem>>, %arg3: memref<1x32xf32, #tpu.memory_space<vmem>>, %arg4: memref<1x32xf32, #tpu.memory_space<vmem>>, %arg5: memref<72x32xf32, #tpu.memory_space<vmem>>) attributes {dimension_semantics = [#tpu.dimension_semantics<arbitrary>], iteration_bounds = array<i64: 1>, scalar_prefetch = 0 : i64, scratch_operands = 0 : i64, tpu.core_type = #tpu.core_type<tc>, window_params = [{pipeline_mode = #tpu.pipeline_mode<synchronous>, transform_indices = @transform_0, window_bounds = array<i64: 72, 1024>}, {pipeline_mode = #tpu.pipeline_mode<synchronous>, transform_indices = @transform_1, window_bounds = array<i64: 1024, 32>}, {pipeline_mode = #tpu.pipeline_mode<synchronous>, transform_indices = @transform_2, window_bounds = array<i64: 1, 32>}, {pipeline_mode = #tpu.pipeline_mode<synchronous>, transform_indices = @transform_3, window_bounds = array<i64: 1, 32>}, {pipeline_mode = #tpu.pipeline_mode<synchronous>, transform_indices = @transform_4, window_bounds = array<i64: 72, 32>}]} {
    %c0 = arith.constant 0 : index
    %c0_0 = arith.constant 0 : index
    %0 = vector.load %arg1[%c0, %c0_0] : memref<72x1024xf32, #tpu.memory_space<vmem>>, vector<72x1024xf32>
    %c0_1 = arith.constant 0 : index
    %c0_2 = arith.constant 0 : index
    %1 = vector.load %arg2[%c0_1, %c0_2] : memref<1024x32xf32, #tpu.memory_space<vmem>>, vector<1024x32xf32>
    %cst = arith.constant dense<0.000000e+00> : vector<72x32xf32>
    %2 = tpu.matmul %0, %1, %cst {dimension_numbers = #tpu.dot_dimension_numbers<[1], [0], [0], [1], [0, 0, 1, 1], [], []>} : vector<72x1024xf32>, vector<1024x32xf32>, vector<72x32xf32> -> vector<72x32xf32>
    %cst_3 = arith.constant dense<0.000000e+00> : vector<32xf32>
    %3 = vector.multi_reduction <add>, %2, %cst_3 [0] : vector<72x32xf32> to vector<32xf32>
    %4 = vector.shape_cast %3 : vector<32xf32> to vector<1x32xf32>
    %cst_4 = arith.constant 0.013888889 : f32
    %5 = vector.broadcast %cst_4 : f32 to vector<1x32xf32>
    %6 = arith.mulf %4, %5 : vector<1x32xf32>
    %7 = vector.broadcast %6 : vector<1x32xf32> to vector<72x32xf32>
    %8 = arith.subf %2, %7 : vector<72x32xf32>
    %9 = arith.mulf %8, %8 : vector<72x32xf32>
    %cst_5 = arith.constant dense<0.000000e+00> : vector<32xf32>
    %10 = vector.multi_reduction <add>, %9, %cst_5 [0] : vector<72x32xf32> to vector<32xf32>
    %11 = vector.shape_cast %10 : vector<32xf32> to vector<1x32xf32>
    %cst_6 = arith.constant 0.013888889 : f32
    %12 = vector.broadcast %cst_6 : f32 to vector<1x32xf32>
    %13 = arith.mulf %11, %12 : vector<1x32xf32>
    %cst_7 = arith.constant 9.99999974E-6 : f32
    %14 = vector.broadcast %cst_7 : f32 to vector<1x32xf32>
    %15 = arith.addf %13, %14 : vector<1x32xf32>
    %16 = math.rsqrt %15 : vector<1x32xf32>
    %c0_8 = arith.constant 0 : index
    %c0_9 = arith.constant 0 : index
    %17 = vector.load %arg3[%c0_8, %c0_9] : memref<1x32xf32, #tpu.memory_space<vmem>>, vector<1x32xf32>
    %18 = arith.mulf %16, %17 : vector<1x32xf32>
    %19 = vector.broadcast %18 : vector<1x32xf32> to vector<72x32xf32>
    %20 = arith.mulf %8, %19 : vector<72x32xf32>
    %c0_10 = arith.constant 0 : index
    %c0_11 = arith.constant 0 : index
    %21 = vector.load %arg4[%c0_10, %c0_11] : memref<1x32xf32, #tpu.memory_space<vmem>>, vector<1x32xf32>
    %22 = vector.broadcast %21 : vector<1x32xf32> to vector<72x32xf32>
    %23 = arith.addf %20, %22 : vector<72x32xf32>
    %cst_12 = arith.constant 0.000000e+00 : f32
    %24 = vector.broadcast %cst_12 : f32 to vector<72x32xf32>
    %25 = arith.maximumf %23, %24 : vector<72x32xf32>
    %c0_13 = arith.constant 0 : index
    %c0_14 = arith.constant 0 : index
    %26 = vector.load %arg5[%c0_13, %c0_14] : memref<72x32xf32, #tpu.memory_space<vmem>>, vector<72x32xf32>
    tpu.vector_store %arg5[%c0_13, %c0_14], %25 {strides = array<i32>} : memref<72x32xf32, #tpu.memory_space<vmem>>, vector<72x32xf32>,
    return
  }
  func.func @transform_0(%arg0: i32) -> (i32, i32) {
    %c0_i32 = arith.constant 0 : i32
    %c0_i32_0 = arith.constant 0 : i32
    %c0_i32_1 = arith.constant 0 : i32
    return %c0_i32, %c0_i32_0 : i32, i32
  }
  func.func @transform_1(%arg0: i32) -> (i32, i32) {
    %c0_i32 = arith.constant 0 : i32
    %c0_i32_0 = arith.constant 0 : i32
    %c0_i32_1 = arith.constant 0 : i32
    return %c0_i32, %c0_i32_0 : i32, i32
  }
  func.func @transform_2(%arg0: i32) -> (i32, i32) {
    %c0_i32 = arith.constant 0 : i32
    %c0_i32_0 = arith.constant 0 : i32
    %c0_i32_1 = arith.constant 0 : i32
    return %c0_i32, %c0_i32_0 : i32, i32
  }
  func.func @transform_3(%arg0: i32) -> (i32, i32) {
    %c0_i32 = arith.constant 0 : i32
    %c0_i32_0 = arith.constant 0 : i32
    %c0_i32_1 = arith.constant 0 : i32
    return %c0_i32, %c0_i32_0 : i32, i32
  }
  func.func @transform_4(%arg0: i32) -> (i32, i32) {
    %c0_i32 = arith.constant 0 : i32
    %c0_i32_0 = arith.constant 0 : i32
    %c0_i32_1 = arith.constant 0 : i32
    return %c0_i32, %c0_i32_0 : i32, i32
  }
}

module attributes {stable_mosaic.version = 11 : i64} {
  func.func @_fused_convt_bn_relu_kernel(%arg0: i32, %arg1: memref<288x512xf32, #tpu.memory_space<vmem>>, %arg2: memref<512x16xf32, #tpu.memory_space<vmem>>, %arg3: memref<1x16xf32, #tpu.memory_space<vmem>>, %arg4: memref<1x16xf32, #tpu.memory_space<vmem>>, %arg5: memref<288x16xf32, #tpu.memory_space<vmem>>) attributes {dimension_semantics = [#tpu.dimension_semantics<arbitrary>], iteration_bounds = array<i64: 1>, scalar_prefetch = 0 : i64, scratch_operands = 0 : i64, tpu.core_type = #tpu.core_type<tc>, window_params = [{pipeline_mode = #tpu.pipeline_mode<synchronous>, transform_indices = @transform_0, window_bounds = array<i64: 288, 512>}, {pipeline_mode = #tpu.pipeline_mode<synchronous>, transform_indices = @transform_1, window_bounds = array<i64: 512, 16>}, {pipeline_mode = #tpu.pipeline_mode<synchronous>, transform_indices = @transform_2, window_bounds = array<i64: 1, 16>}, {pipeline_mode = #tpu.pipeline_mode<synchronous>, transform_indices = @transform_3, window_bounds = array<i64: 1, 16>}, {pipeline_mode = #tpu.pipeline_mode<synchronous>, transform_indices = @transform_4, window_bounds = array<i64: 288, 16>}]} {
    %c0 = arith.constant 0 : index
    %c0_0 = arith.constant 0 : index
    %0 = vector.load %arg1[%c0, %c0_0] : memref<288x512xf32, #tpu.memory_space<vmem>>, vector<288x512xf32>
    %c0_1 = arith.constant 0 : index
    %c0_2 = arith.constant 0 : index
    %1 = vector.load %arg2[%c0_1, %c0_2] : memref<512x16xf32, #tpu.memory_space<vmem>>, vector<512x16xf32>
    %cst = arith.constant dense<0.000000e+00> : vector<288x16xf32>
    %2 = tpu.matmul %0, %1, %cst {dimension_numbers = #tpu.dot_dimension_numbers<[1], [0], [0], [1], [0, 0, 1, 1], [], []>} : vector<288x512xf32>, vector<512x16xf32>, vector<288x16xf32> -> vector<288x16xf32>
    %cst_3 = arith.constant dense<0.000000e+00> : vector<16xf32>
    %3 = vector.multi_reduction <add>, %2, %cst_3 [0] : vector<288x16xf32> to vector<16xf32>
    %4 = vector.shape_cast %3 : vector<16xf32> to vector<1x16xf32>
    %cst_4 = arith.constant 0.00347222225 : f32
    %5 = vector.broadcast %cst_4 : f32 to vector<1x16xf32>
    %6 = arith.mulf %4, %5 : vector<1x16xf32>
    %7 = vector.broadcast %6 : vector<1x16xf32> to vector<288x16xf32>
    %8 = arith.subf %2, %7 : vector<288x16xf32>
    %9 = arith.mulf %8, %8 : vector<288x16xf32>
    %cst_5 = arith.constant dense<0.000000e+00> : vector<16xf32>
    %10 = vector.multi_reduction <add>, %9, %cst_5 [0] : vector<288x16xf32> to vector<16xf32>
    %11 = vector.shape_cast %10 : vector<16xf32> to vector<1x16xf32>
    %cst_6 = arith.constant 0.00347222225 : f32
    %12 = vector.broadcast %cst_6 : f32 to vector<1x16xf32>
    %13 = arith.mulf %11, %12 : vector<1x16xf32>
    %cst_7 = arith.constant 9.99999974E-6 : f32
    %14 = vector.broadcast %cst_7 : f32 to vector<1x16xf32>
    %15 = arith.addf %13, %14 : vector<1x16xf32>
    %16 = math.rsqrt %15 : vector<1x16xf32>
    %c0_8 = arith.constant 0 : index
    %c0_9 = arith.constant 0 : index
    %17 = vector.load %arg3[%c0_8, %c0_9] : memref<1x16xf32, #tpu.memory_space<vmem>>, vector<1x16xf32>
    %18 = arith.mulf %16, %17 : vector<1x16xf32>
    %19 = vector.broadcast %18 : vector<1x16xf32> to vector<288x16xf32>
    %20 = arith.mulf %8, %19 : vector<288x16xf32>
    %c0_10 = arith.constant 0 : index
    %c0_11 = arith.constant 0 : index
    %21 = vector.load %arg4[%c0_10, %c0_11] : memref<1x16xf32, #tpu.memory_space<vmem>>, vector<1x16xf32>
    %22 = vector.broadcast %21 : vector<1x16xf32> to vector<288x16xf32>
    %23 = arith.addf %20, %22 : vector<288x16xf32>
    %cst_12 = arith.constant 0.000000e+00 : f32
    %24 = vector.broadcast %cst_12 : f32 to vector<288x16xf32>
    %25 = arith.maximumf %23, %24 : vector<288x16xf32>
    %c0_13 = arith.constant 0 : index
    %c0_14 = arith.constant 0 : index
    %26 = vector.load %arg5[%c0_13, %c0_14] : memref<288x16xf32, #tpu.memory_space<vmem>>, vector<288x16xf32>
    tpu.vector_store %arg5[%c0_13, %c0_14], %25 {strides = array<i32>} : memref<288x16xf32, #tpu.memory_space<vmem>>, vector<288x16xf32>,
    return
  }
  func.func @transform_0(%arg0: i32) -> (i32, i32) {
    %c0_i32 = arith.constant 0 : i32
    %c0_i32_0 = arith.constant 0 : i32
    %c0_i32_1 = arith.constant 0 : i32
    return %c0_i32, %c0_i32_0 : i32, i32
  }
  func.func @transform_1(%arg0: i32) -> (i32, i32) {
    %c0_i32 = arith.constant 0 : i32
    %c0_i32_0 = arith.constant 0 : i32
    %c0_i32_1 = arith.constant 0 : i32
    return %c0_i32, %c0_i32_0 : i32, i32
  }
  func.func @transform_2(%arg0: i32) -> (i32, i32) {
    %c0_i32 = arith.constant 0 : i32
    %c0_i32_0 = arith.constant 0 : i32
    %c0_i32_1 = arith.constant 0 : i32
    return %c0_i32, %c0_i32_0 : i32, i32
  }
  func.func @transform_3(%arg0: i32) -> (i32, i32) {
    %c0_i32 = arith.constant 0 : i32
    %c0_i32_0 = arith.constant 0 : i32
    %c0_i32_1 = arith.constant 0 : i32
    return %c0_i32, %c0_i32_0 : i32, i32
  }
  func.func @transform_4(%arg0: i32) -> (i32, i32) {
    %c0_i32 = arith.constant 0 : i32
    %c0_i32_0 = arith.constant 0 : i32
    %c0_i32_1 = arith.constant 0 : i32
    return %c0_i32, %c0_i32_0 : i32, i32
  }
}

module attributes {stable_mosaic.version = 11 : i64} {
  func.func @_fused_tail_kernel(%arg0: i32, %arg1: memref<1152x256xf32, #tpu.memory_space<vmem>>, %arg2: memref<256x8xf32, #tpu.memory_space<vmem>>, %arg3: memref<1x8xf32, #tpu.memory_space<vmem>>, %arg4: memref<1x8xf32, #tpu.memory_space<vmem>>, %arg5: memref<8x128xf32, #tpu.memory_space<vmem>>, %arg6: memref<1152x128xf32, #tpu.memory_space<vmem>>) attributes {dimension_semantics = [#tpu.dimension_semantics<arbitrary>], iteration_bounds = array<i64: 1>, scalar_prefetch = 0 : i64, scratch_operands = 0 : i64, tpu.core_type = #tpu.core_type<tc>, window_params = [{pipeline_mode = #tpu.pipeline_mode<synchronous>, transform_indices = @transform_0, window_bounds = array<i64: 1152, 256>}, {pipeline_mode = #tpu.pipeline_mode<synchronous>, transform_indices = @transform_1, window_bounds = array<i64: 256, 8>}, {pipeline_mode = #tpu.pipeline_mode<synchronous>, transform_indices = @transform_2, window_bounds = array<i64: 1, 8>}, {pipeline_mode = #tpu.pipeline_mode<synchronous>, transform_indices = @transform_3, window_bounds = array<i64: 1, 8>}, {pipeline_mode = #tpu.pipeline_mode<synchronous>, transform_indices = @transform_4, window_bounds = array<i64: 8, 128>}, {pipeline_mode = #tpu.pipeline_mode<synchronous>, transform_indices = @transform_5, window_bounds = array<i64: 1152, 128>}]} {
    %c0 = arith.constant 0 : index
    %c0_0 = arith.constant 0 : index
    %0 = vector.load %arg1[%c0, %c0_0] : memref<1152x256xf32, #tpu.memory_space<vmem>>, vector<1152x256xf32>
    %c0_1 = arith.constant 0 : index
    %c0_2 = arith.constant 0 : index
    %1 = vector.load %arg2[%c0_1, %c0_2] : memref<256x8xf32, #tpu.memory_space<vmem>>, vector<256x8xf32>
    %cst = arith.constant dense<0.000000e+00> : vector<1152x8xf32>
    %2 = tpu.matmul %0, %1, %cst {dimension_numbers = #tpu.dot_dimension_numbers<[1], [0], [0], [1], [0, 0, 1, 1], [], []>} : vector<1152x256xf32>, vector<256x8xf32>, vector<1152x8xf32> -> vector<1152x8xf32>
    %cst_3 = arith.constant dense<0.000000e+00> : vector<8xf32>
    %3 = vector.multi_reduction <add>, %2, %cst_3 [0] : vector<1152x8xf32> to vector<8xf32>
    %4 = vector.shape_cast %3 : vector<8xf32> to vector<1x8xf32>
    %cst_4 = arith.constant 8.68055562E-4 : f32
    %5 = vector.broadcast %cst_4 : f32 to vector<1x8xf32>
    %6 = arith.mulf %4, %5 : vector<1x8xf32>
    %7 = vector.broadcast %6 : vector<1x8xf32> to vector<1152x8xf32>
    %8 = arith.subf %2, %7 : vector<1152x8xf32>
    %9 = arith.mulf %8, %8 : vector<1152x8xf32>
    %cst_5 = arith.constant dense<0.000000e+00> : vector<8xf32>
    %10 = vector.multi_reduction <add>, %9, %cst_5 [0] : vector<1152x8xf32> to vector<8xf32>
    %11 = vector.shape_cast %10 : vector<8xf32> to vector<1x8xf32>
    %cst_6 = arith.constant 8.68055562E-4 : f32
    %12 = vector.broadcast %cst_6 : f32 to vector<1x8xf32>
    %13 = arith.mulf %11, %12 : vector<1x8xf32>
    %cst_7 = arith.constant 9.99999974E-6 : f32
    %14 = vector.broadcast %cst_7 : f32 to vector<1x8xf32>
    %15 = arith.addf %13, %14 : vector<1x8xf32>
    %16 = math.rsqrt %15 : vector<1x8xf32>
    %c0_8 = arith.constant 0 : index
    %c0_9 = arith.constant 0 : index
    %17 = vector.load %arg3[%c0_8, %c0_9] : memref<1x8xf32, #tpu.memory_space<vmem>>, vector<1x8xf32>
    %18 = arith.mulf %16, %17 : vector<1x8xf32>
    %19 = vector.broadcast %18 : vector<1x8xf32> to vector<1152x8xf32>
    %20 = arith.mulf %8, %19 : vector<1152x8xf32>
    %c0_10 = arith.constant 0 : index
    %c0_11 = arith.constant 0 : index
    %21 = vector.load %arg4[%c0_10, %c0_11] : memref<1x8xf32, #tpu.memory_space<vmem>>, vector<1x8xf32>
    %22 = vector.broadcast %21 : vector<1x8xf32> to vector<1152x8xf32>
    %23 = arith.addf %20, %22 : vector<1152x8xf32>
    %cst_12 = arith.constant 0.000000e+00 : f32
    %24 = vector.broadcast %cst_12 : f32 to vector<1152x8xf32>
    %25 = arith.maximumf %23, %24 : vector<1152x8xf32>
    %c0_13 = arith.constant 0 : index
    %c0_14 = arith.constant 0 : index
    %26 = vector.load %arg5[%c0_13, %c0_14] : memref<8x128xf32, #tpu.memory_space<vmem>>, vector<8x128xf32>
    %cst_15 = arith.constant dense<0.000000e+00> : vector<1152x128xf32>
    %27 = tpu.matmul %25, %26, %cst_15 {dimension_numbers = #tpu.dot_dimension_numbers<[1], [0], [0], [1], [0, 0, 1, 1], [], []>} : vector<1152x8xf32>, vector<8x128xf32>, vector<1152x128xf32> -> vector<1152x128xf32>
    %28 = math.tanh %27 : vector<1152x128xf32>
    %c0_16 = arith.constant 0 : index
    %c0_17 = arith.constant 0 : index
    %29 = vector.load %arg6[%c0_16, %c0_17] : memref<1152x128xf32, #tpu.memory_space<vmem>>, vector<1152x128xf32>
    tpu.vector_store %arg6[%c0_16, %c0_17], %28 {strides = array<i32>} : memref<1152x128xf32, #tpu.memory_space<vmem>>, vector<1152x128xf32>,
    return
  }
  func.func @transform_0(%arg0: i32) -> (i32, i32) {
    %c0_i32 = arith.constant 0 : i32
    %c0_i32_0 = arith.constant 0 : i32
    %c0_i32_1 = arith.constant 0 : i32
    return %c0_i32, %c0_i32_0 : i32, i32
  }
  func.func @transform_1(%arg0: i32) -> (i32, i32) {
    %c0_i32 = arith.constant 0 : i32
    %c0_i32_0 = arith.constant 0 : i32
    %c0_i32_1 = arith.constant 0 : i32
    return %c0_i32, %c0_i32_0 : i32, i32
  }
  func.func @transform_2(%arg0: i32) -> (i32, i32) {
    %c0_i32 = arith.constant 0 : i32
    %c0_i32_0 = arith.constant 0 : i32
    %c0_i32_1 = arith.constant 0 : i32
    return %c0_i32, %c0_i32_0 : i32, i32
  }
  func.func @transform_3(%arg0: i32) -> (i32, i32) {
    %c0_i32 = arith.constant 0 : i32
    %c0_i32_0 = arith.constant 0 : i32
    %c0_i32_1 = arith.constant 0 : i32
    return %c0_i32, %c0_i32_0 : i32, i32
  }
  func.func @transform_4(%arg0: i32) -> (i32, i32) {
    %c0_i32 = arith.constant 0 : i32
    %c0_i32_0 = arith.constant 0 : i32
    %c0_i32_1 = arith.constant 0 : i32
    return %c0_i32, %c0_i32_0 : i32, i32
  }
  func.func @transform_5(%arg0: i32) -> (i32, i32) {
    %c0_i32 = arith.constant 0 : i32
    %c0_i32_0 = arith.constant 0 : i32
    %c0_i32_1 = arith.constant 0 : i32
    return %c0_i32, %c0_i32_0 : i32, i32
  }
}

</mosaic_0001>

<bundles_post_ra>
// kernel: decoder_forward.4
= control target key start
LH: loop header
LB: loop body
LE: loop exit
PB: predicated region body
PF: predicated region fallthrough
CT: control target
= control target key end

     0   :  { %9 = vsyncpa [#allocation3], 0  ;;  %s509_s0 = inlined_call_operand.vmem [shape: f32[50,32], index: 0, kind: input, shape index: {}]   ;;  %s510_s1 = inlined_call_operand.vmem [shape: f32[32,64], index: 1, kind: input, shape index: {}]   ;;  %s511_s2 = inlined_call_operand.hbm [shape: f32[1,64], index: 2, kind: input, shape index: {}]   ;;  %s512_s3 = inlined_call_operand.hbm [shape: f32[1,64], index: 3, kind: input, shape index: {}]   ;;  %s513_s4 = inlined_call_operand.vmem [shape: f32[50,64], index: 4, kind: output, shape index: {}]  }
   0x1   :  { %10 = vsyncpa [#allocation5], 0  ;;  %s385_s15 = smov [#allocation2]   ;;  %s386_s17 = smov [#allocation4]  }
   0x2   :  { %s21_s16 = sshll.u32 %s385_s15, 4  ;;  %s31_s18 = sshll.u32 %s386_s17, 4  ;;  %s22_s16 = int_to_ptr.vmem [resolvable:$true] %s21_s16  ;;  %s32_s18 = int_to_ptr.vmem [resolvable:$true] %s31_s18 }
   0x3   :  { %s349_s19 = scalar_lea.vmem %s22_s16, 16  ;;  %s353_s20 = scalar_lea.vmem %s22_s16, 32 }
   0x4   :  { %p350_p0 = scmp.ne.s32.totalorder %s22_s16, %s349_s19  ;;  %p354_p1 = scmp.lt.s32.totalorder %s22_s16, %s22_s16 }
   0x5   :  { %p355_p2 = scmp.lt.s32.totalorder %s353_s20, %s349_s19 }
   0x7   :  { %p356_p3 = por %p355_p2, %p354_p1 }
   0x9   :  { %p357_p4 = pnand %p356_p3, %p350_p0 }
   0xb   :  { %360 = shalt.err (!%p357_p4)
}
   0xc   :  { %24 = dma.hbm_to_vmem [thread:$0]  %s511_s2, 16, %s22_s16, [#allocation3]  }
   0xd   :  { %s369_s23 = scalar_lea.vmem %s32_s18, 16  ;;  %s373_s24 = scalar_lea.vmem %s32_s18, 32 }
   0xe   :  { %p370_p5 = scmp.ne.s32.totalorder %s32_s18, %s369_s23  ;;  %p374_p6 = scmp.lt.s32.totalorder %s32_s18, %s32_s18 }
   0xf   :  { %p375_p7 = scmp.lt.s32.totalorder %s373_s24, %s369_s23 }
  0x11   :  { %p376_p8 = por %p375_p7, %p374_p6 }
  0x13   :  { %p377_p9 = pnand %p376_p8, %p370_p5 }
  0x15   :  { %380 = shalt.err (!%p377_p9)
}
  0x16   :  { %34 = dma.hbm_to_vmem [thread:$0]  %s512_s3, 16, %s32_s18, [#allocation5]  }
  0x17   :  { %381 = dma.done.wait [#allocation3], 16  }
  0x18   :  { %382 = vsyncadd [#allocation3], 4294967280 }
  0x19   :  { %383 = dma.done.wait [#allocation5], 16  }
  0x1a   :  { %384 = vsyncadd [#allocation5], 4294967280  ;;  %v387_v0 = vmov 0.0   ;;  %vm388_vm0 = vmmov 0   ;;  %v51_v1 = vld [vmem:[%s510_s1 + $0x18] sm:$0xff]  ;;  %v50_v2 = vld [vmem:[%s510_s1 + $0x10] sm:$0xff] }
  0x1b   :  { %298 = vmatprep.subr.mxu0 %v387_v0  ;;  %306 = vmatprep.mubr.msk.f32.mxu0 %vm388_vm0, %v387_v0  ;;  %v49_v3 = vld [vmem:[%s510_s1 + $0x8] sm:$0xff]  ;;  %v48_v4 = vld [vmem:[%s510_s1] sm:$0xff]  ;;  %vm52_vm1 = vcmask 261120   ;;  %v43_v9 = vld [vmem:[%s509_s0 + $0x10] sm:$0xff]  ;;  %vm174_vm2 = vcmask 523264   ;;  %vm186_vm3 = vcmask 517120  }
  0x1c   :  { %327 = vmatprep.subr.mxu1 %v387_v0  ;;  %318 = vmatprep.mubr.msk.f32.mxu1 %vm388_vm0, %v387_v0  ;;  %v41_v5 = vld [vmem:[%s509_s0] sm:$0xff]  ;;  %v42_v7 = vld [vmem:[%s509_s0 + $0x8] sm:$0xff]  ;;  %v47_v10 = vld [vmem:[%s509_s0 + $0x30] sm:$0x3] }
  0x1d   :  { %299 = vmatpush3.msra.mxu0 %v51_v1  ;;  %331 = vmatpush3.msra.mxu1 %v51_v1  ;;  %v45_v6 = vld [vmem:[%s509_s0 + $0x20] sm:$0xff]  ;;  %v46_v8 = vld [vmem:[%s509_s0 + $0x28] sm:$0xff]  ;;  %v44_v11 = vld [vmem:[%s509_s0 + $0x18] sm:$0xff] }
  0x1e   :  { %300 = vmatprep.subr.mxu0 %v387_v0  ;;  %328 = vmatprep.subr.mxu1 %v387_v0 }
  0x1f   :  { %301 = vmatpush3.msra.mxu0 %v50_v2  ;;  %332 = vmatpush3.msra.mxu1 %v50_v2 }
  0x20   :  { %302 = vmatprep.subr.mxu0 %v387_v0  ;;  %329 = vmatprep.subr.mxu1 %v387_v0 }
  0x21   :  { %303 = vmatpush3.msra.mxu0 %v49_v3  ;;  %333 = vmatpush3.msra.mxu1 %v49_v3 }
  0x22   :  { %304 = vmatprep.subr.mxu0 %v387_v0  ;;  %330 = vmatprep.subr.mxu1 %v387_v0 }
  0x23   :  { %305 = vmatpush3.msra.mxu0 %v48_v4  ;;  %334 = vmatpush3.msra.mxu1 %v48_v4 }
  0x24   :  { %307 = vmatmul.mubr.msk.f32.vlgmr.msra.gmra.mxu0 %vm52_vm1, %v41_v5  ;;  %319 = vmatmul.mubr.msk.f32.vlgmr.msra.gmra.mxu1 %vm52_vm1, %v45_v6 }
  0x25   :  { %309 = vmatprep.mubr.msk.f32.mxu0 %vm388_vm0, %v387_v0  ;;  %321 = vmatprep.mubr.msk.f32.mxu1 %vm388_vm0, %v387_v0 }
  0x28   :  { %310 = vmatmul.mubr.msk.f32.gmra.mxu0 %vm52_vm1, %v42_v7  ;;  %322 = vmatmul.mubr.msk.f32.gmra.mxu1 %vm52_vm1, %v46_v8 }
  0x29   :  { %312 = vmatprep.mubr.msk.f32.mxu0 %vm388_vm0, %v387_v0  ;;  %324 = vmatprep.mubr.msk.f32.mxu1 %vm388_vm0, %v387_v0 }
  0x2c   :  { %313 = vmatmul.mubr.msk.f32.gmra.mxu0 %vm52_vm1, %v43_v9  ;;  %325 = vmatmul.mubr.msk.f32.gmra.mxu1 %vm52_vm1, %v47_v10 }
  0x2d   :  { %315 = vmatprep.mubr.msk.f32.mxu0 %vm388_vm0, %v387_v0 }
  0x30   :  { %316 = vmatmul.mubr.msk.f32.gmra.mxu0 %vm52_vm1, %v44_v11 }
  0xe4   :  { %v140_v12 = vpop.f32.mrf.mxu0  ;;  %v160_v13 = vpop.f32.mrf.mxu1 }
  0xe5   :  { %v175_v23 = vsel %vm174_vm2, %v140_v12, 0.0  ;;  %v182_v33 = vsel %vm174_vm2, %v160_v13, 0.0 }
  0xe6   :  { %v308_v14 = vpop.f32.mrf.mxu0  ;;  %v320_v15 = vpop.f32.mrf.mxu1 }
  0xe8   :  { %v145_v16 = vpop.f32.mrf.mxu0  ;;  %v165_v17 = vpop.f32.mrf.mxu1 }
  0xe9   :  { %v176_v20 = vsel %vm174_vm2, %v145_v16, 0.0  ;;  %v184_v35 = vsel %vm174_vm2, %v165_v17, 0.0 }
  0xea   :  { %v311_v18 = vpop.f32.mrf.mxu0  ;;  %v323_v19 = vpop.f32.mrf.mxu1  ;;  %v177_v25 = vadd.f32 %v176_v20, %v175_v23 }
  0xeb   :  { %v232_v19 = vld [vmem:[#allocation2] sm:$0x1] }
  0xec   :  { %v150_v21 = vpop.f32.mrf.mxu0  ;;  %v170_v22 = vpop.f32.mrf.mxu1 }
  0xed   :  { %v178_v24 = vsel %vm174_vm2, %v150_v21, 0.0  ;;  %v187_v36 = vsel %vm186_vm3, %v170_v22, 0.0 }
  0xee   :  { %v314_v26 = vpop.f32.mrf.mxu0  ;;  %v326_v27 = vpop.f32.mrf.mxu1  ;;  %v179_v28 = vadd.f32 %v178_v24, %v177_v25  ;;  %v286_v24 = vld [vmem:[#allocation4] ss:$0 sm:$0xff] }
  0xf0   :  { %v155_v29 = vpop.f32.mrf.mxu0 }
  0xf1   :  { %v180_v30 = vsel %vm174_vm2, %v155_v29, 0.0 }
  0xf2   :  { %v181_v31 = vadd.f32 %v180_v30, %v179_v28  ;;  %v317_v32 = vpop.f32.mrf.mxu0 }
  0xf4   :  { %v183_v34 = vadd.f32 %v182_v33, %v181_v31 }
  0xf6   :  { %v185_v37 = vadd.f32 %v184_v35, %v183_v34 }
  0xf8   :  { %v188_v38 = vadd.f32 %v187_v36, %v185_v37 }
  0xfa   :  { %v189_v39 = vrot.slane %v188_v38, 4 }
  0xfc   :  { %v190_v40 = vadd.f32 %v189_v39, %v188_v38 }
  0xfe   :  { %v191_v41 = vrot.slane %v190_v40, 2 }
 0x100   :  { %v192_v42 = vadd.f32 %v191_v41, %v190_v40 }
 0x102   :  { %v193_v43 = vrot.slane %v192_v42, 1 }
 0x104   :  { %v194_v44 = vadd.f32 %v193_v43, %v192_v42 }
 0x106   :  { %v195_v45 = vmul.f32 0.02, %v194_v44 }
 0x108   :  { %v196_v46 = vsub.f32 %v140_v12, %v195_v45  ;;  %v197_v47 = vsub.f32 %v145_v16, %v195_v45  ;;  %v198_v48 = vsub.f32 %v150_v21, %v195_v45  ;;  %v199_v49 = vsub.f32 %v155_v29, %v195_v45 }
 0x109   :  { %v200_v50 = vsub.f32 %v160_v13, %v195_v45  ;;  %v201_v54 = vsub.f32 %v165_v17, %v195_v45  ;;  %v202_v59 = vsub.f32 %v170_v22, %v195_v45  ;;  %v234_v17 = vlaneseq }
 0x10a   :  { %v203_v51 = vmul.f32 %v196_v46, %v196_v46  ;;  %v204_v52 = vmul.f32 %v197_v47, %v197_v47  ;;  %v205_v53 = vmul.f32 %v198_v48, %v198_v48  ;;  %v206_v55 = vmul.f32 %v199_v49, %v199_v49 }
 0x10b   :  { %v207_v60 = vmul.f32 %v200_v50, %v200_v50  ;;  %v208_v63 = vmul.f32 %v201_v54, %v201_v54  ;;  %v209_v2 = vmul.f32 %v202_v59, %v202_v59  ;;  %v235_v18 = vshrl.u32 %v234_v17, 7 }
 0x10c   :  { %v210_v56 = vsel %vm174_vm2, %v203_v51, 0.0  ;;  %v211_v57 = vsel %vm174_vm2, %v204_v52, 0.0  ;;  %v213_v61 = vsel %vm174_vm2, %v205_v53, 0.0  ;;  %v215_v0 = vsel %vm174_vm2, %v206_v55, 0.0 }
 0x10d   :  { %v212_v58 = vadd.f32 %v211_v57, %v210_v56  ;;  %v217_v3 = vsel %vm174_vm2, %v207_v60, 0.0  ;;  %v219_v5 = vsel %vm174_vm2, %v208_v63, 0.0  ;;  %v221_v7 = vsel %vm186_vm3, %v209_v2, 0.0 }
 0x10e   :  { %v236_v20 = vsub.s32 0, %v235_v18 }
 0x10f   :  { %v214_v62 = vadd.f32 %v213_v61, %v212_v58 }
 0x111   :  { %v216_v1 = vadd.f32 %v215_v0, %v214_v62 }
 0x113   :  { %v218_v4 = vadd.f32 %v217_v3, %v216_v1 }
 0x115   :  { %v220_v6 = vadd.f32 %v219_v5, %v218_v4 }
 0x117   :  { %v222_v8 = vadd.f32 %v221_v7, %v220_v6 }
 0x119   :  { %v223_v9 = vrot.slane %v222_v8, 4 }
 0x11b   :  { %v224_v10 = vadd.f32 %v223_v9, %v222_v8 }
 0x11d   :  { %v225_v11 = vrot.slane %v224_v10, 2 }
 0x11f   :  { %v226_v12 = vadd.f32 %v225_v11, %v224_v10 }
 0x121   :  { %v227_v13 = vrot.slane %v226_v12, 1 }
 0x123   :  { %v228_v14 = vadd.f32 %v227_v13, %v226_v12 }
 0x125   :  { %v229_v15 = vmul.f32 0.02, %v228_v14 }
 0x127   :  { %v230_v16 = vadd.f32 1e-05, %v229_v15 }
 0x129   :  { %339 = vrsqrt.f32 %v230_v16 }
 0x136   :  { %v340_v21 = vpop.eup %339 }
 0x137   :  { %v233_v22 = vmul.f32 %v340_v21, %v232_v19 }
 0x139   :  { %v237_v23 = vrot.slane %v233_v22, %v236_v20 }
 0x13b   :  { %v238_v25 = vmul.f32 %v237_v23, %v196_v46  ;;  %v239_v26 = vmul.f32 %v237_v23, %v197_v47  ;;  %v240_v27 = vmul.f32 %v237_v23, %v198_v48  ;;  %v241_v28 = vmul.f32 %v237_v23, %v199_v49 }
 0x13c   :  { %v242_v29 = vmul.f32 %v237_v23, %v200_v50  ;;  %v243_v30 = vmul.f32 %v237_v23, %v201_v54  ;;  %v244_v31 = vmul.f32 %v237_v23, %v202_v59 }
 0x13d   :  { %v252_v32 = vadd.f32 %v286_v24, %v238_v25  ;;  %v253_v33 = vadd.f32 %v286_v24, %v239_v26  ;;  %v254_v34 = vadd.f32 %v286_v24, %v240_v27  ;;  %v255_v35 = vadd.f32 %v286_v24, %v241_v28 }
 0x13e   :  { %v256_v36 = vadd.f32 %v286_v24, %v242_v29  ;;  %v257_v37 = vadd.f32 %v286_v24, %v243_v30  ;;  %v258_v38 = vadd.f32 %v286_v24, %v244_v31 }
 0x13f   :  { %v259_v39 = vmax.f32 %v252_v32, 0.0  ;;  %v260_v40 = vmax.f32 %v253_v33, 0.0  ;;  %v261_v41 = vmax.f32 %v254_v34, 0.0  ;;  %v262_v42 = vmax.f32 %v255_v35, 0.0 }
 0x140   :  { %v263_v43 = vmax.f32 %v256_v36, 0.0  ;;  %v264_v44 = vmax.f32 %v257_v37, 0.0  ;;  %v265_v45 = vmax.f32 %v258_v38, 0.0 }
 0x141   :  { %266 = vst.msk [vmem:[%s513_s4] sm:$0xff] %vm174_vm2, %v259_v39  ;;  %267 = vst.msk [vmem:[%s513_s4 + $0x8] sm:$0xff] %vm174_vm2, %v260_v40 }
 0x142   :  { %268 = vst.msk [vmem:[%s513_s4 + $0x10] sm:$0xff] %vm174_vm2, %v261_v41  ;;  %269 = vst.msk [vmem:[%s513_s4 + $0x18] sm:$0xff] %vm174_vm2, %v262_v42 }
 0x143   :  { %270 = vst.msk [vmem:[%s513_s4 + $0x20] sm:$0xff] %vm174_vm2, %v263_v43  ;;  %271 = vst.msk [vmem:[%s513_s4 + $0x28] sm:$0xff] %vm174_vm2, %v264_v44 }
 0x144   :  { %272 = vst.msk [vmem:[%s513_s4 + $0x30] sm:$0x3] %vm186_vm3, %v265_v45 }
 0x145   :  { %277 = vsyncpa [#allocation3], 1 }
 0x146   :  { %278 = vsyncpa [#allocation5], 1 }

// kernel: decoder_forward.5
= control target key start
LH: loop header
LB: loop body
LE: loop exit
PB: predicated region body
PF: predicated region fallthrough
CT: control target
= control target key end

     0   :  { %vm657_vm0 = vcmask 261120   ;;  %s1751_s1 = inlined_call_operand.vmem [shape: f32[1024,32], index: 1, kind: input, shape index: {}]   ;;  %s1752_s0 = inlined_call_operand.vmem [shape: f32[72,1024], index: 0, kind: input, shape index: {}]   ;;  %s1753_s2 = inlined_call_operand.vmem [shape: f32[1,32], index: 2, kind: input, shape index: {}]   ;;  %s1754_s3 = inlined_call_operand.vmem [shape: f32[1,32], index: 3, kind: input, shape index: {}]   ;;  %s1755_s4 = inlined_call_operand.vmem [shape: f32[72,32], index: 4, kind: output, shape index: {}]  }
   0x1   :  { %v120_v0 = vld [vmem:[%s1751_s1 + $0xf8] sm:$0xff]  ;;  %v119_v4 = vld [vmem:[%s1751_s1 + $0xf0] sm:$0xff]  ;;  %v118_v8 = vld [vmem:[%s1751_s1 + $0xe8] sm:$0xff] }
   0x2   :  { %v152_v1 = vld [vmem:[%s1751_s1 + $0x1f8] sm:$0xff]  ;;  %780 = vmatprep.subr.mxu0 %v120_v0  ;;  %v151_v5 = vld [vmem:[%s1751_s1 + $0x1f0] sm:$0xff]  ;;  %v150_v9 = vld [vmem:[%s1751_s1 + $0x1e8] sm:$0xff] }
   0x3   :  { %v104_v2 = vld [vmem:[%s1751_s1 + $0x78] sm:$0xff]  ;;  %839 = vmatprep.subr.mxu1 %v152_v1  ;;  %v103_v6 = vld [vmem:[%s1751_s1 + $0x70] sm:$0xff]  ;;  %v102_v10 = vld [vmem:[%s1751_s1 + $0x68] sm:$0xff] }
   0x4   :  { %v136_v3 = vld [vmem:[%s1751_s1 + $0x178] sm:$0xff]  ;;  %781 = vmatpush3.msra.mxu0 %v104_v2  ;;  %v135_v7 = vld [vmem:[%s1751_s1 + $0x170] sm:$0xff]  ;;  %v134_v11 = vld [vmem:[%s1751_s1 + $0x168] sm:$0xff] }
   0x5   :  { %840 = vmatpush3.msra.mxu1 %v136_v3  ;;  %782 = vmatprep.subr.mxu0 %v119_v4  ;;  %v117_v12 = vld [vmem:[%s1751_s1 + $0xe0] sm:$0xff]  ;;  %v116_v16 = vld [vmem:[%s1751_s1 + $0xd8] sm:$0xff]  ;;  %v115_v20 = vld [vmem:[%s1751_s1 + $0xd0] sm:$0xff] }
   0x6   :  { %841 = vmatprep.subr.mxu1 %v151_v5  ;;  %783 = vmatpush3.msra.mxu0 %v103_v6  ;;  %v149_v13 = vld [vmem:[%s1751_s1 + $0x1e0] sm:$0xff]  ;;  %v148_v17 = vld [vmem:[%s1751_s1 + $0x1d8] sm:$0xff]  ;;  %v147_v21 = vld [vmem:[%s1751_s1 + $0x1d0] sm:$0xff] }
   0x7   :  { %842 = vmatpush3.msra.mxu1 %v135_v7  ;;  %784 = vmatprep.subr.mxu0 %v118_v8  ;;  %v101_v14 = vld [vmem:[%s1751_s1 + $0x60] sm:$0xff]  ;;  %v100_v18 = vld [vmem:[%s1751_s1 + $0x58] sm:$0xff]  ;;  %v99_v22 = vld [vmem:[%s1751_s1 + $0x50] sm:$0xff] }
   0x8   :  { %843 = vmatprep.subr.mxu1 %v150_v9  ;;  %v133_v15 = vld [vmem:[%s1751_s1 + $0x160] sm:$0xff]  ;;  %785 = vmatpush3.msra.mxu0 %v102_v10  ;;  %v132_v19 = vld [vmem:[%s1751_s1 + $0x158] sm:$0xff]  ;;  %v131_v23 = vld [vmem:[%s1751_s1 + $0x150] sm:$0xff] }
   0x9   :  { %844 = vmatpush3.msra.mxu1 %v134_v11  ;;  %786 = vmatprep.subr.mxu0 %v117_v12  ;;  %v114_v24 = vld [vmem:[%s1751_s1 + $0xc8] sm:$0xff]  ;;  %v113_v28 = vld [vmem:[%s1751_s1 + $0xc0] sm:$0xff]  ;;  %v112_v32 = vld [vmem:[%s1751_s1 + $0xb8] sm:$0xff] }
   0xa   :  { %845 = vmatprep.subr.mxu1 %v149_v13  ;;  %787 = vmatpush3.msra.mxu0 %v101_v14  ;;  %v146_v25 = vld [vmem:[%s1751_s1 + $0x1c8] sm:$0xff]  ;;  %v145_v29 = vld [vmem:[%s1751_s1 + $0x1c0] sm:$0xff]  ;;  %v144_v33 = vld [vmem:[%s1751_s1 + $0x1b8] sm:$0xff] }
   0xb   :  { %846 = vmatpush3.msra.mxu1 %v133_v15  ;;  %788 = vmatprep.subr.mxu0 %v116_v16  ;;  %v98_v26 = vld [vmem:[%s1751_s1 + $0x48] sm:$0xff]  ;;  %v97_v30 = vld [vmem:[%s1751_s1 + $0x40] sm:$0xff]  ;;  %v96_v34 = vld [vmem:[%s1751_s1 + $0x38] sm:$0xff] }
   0xc   :  { %847 = vmatprep.subr.mxu1 %v148_v17  ;;  %789 = vmatpush3.msra.mxu0 %v100_v18  ;;  %v130_v27 = vld [vmem:[%s1751_s1 + $0x148] sm:$0xff]  ;;  %v129_v31 = vld [vmem:[%s1751_s1 + $0x140] sm:$0xff]  ;;  %v128_v35 = vld [vmem:[%s1751_s1 + $0x138] sm:$0xff] }
   0xd   :  { %848 = vmatpush3.msra.mxu1 %v132_v19  ;;  %790 = vmatprep.subr.mxu0 %v115_v20  ;;  %v111_v36 = vld [vmem:[%s1751_s1 + $0xb0] sm:$0xff]  ;;  %v110_v40 = vld [vmem:[%s1751_s1 + $0xa8] sm:$0xff]  ;;  %v109_v44 = vld [vmem:[%s1751_s1 + $0xa0] sm:$0xff] }
   0xe   :  { %849 = vmatprep.subr.mxu1 %v147_v21  ;;  %791 = vmatpush3.msra.mxu0 %v99_v22  ;;  %v143_v37 = vld [vmem:[%s1751_s1 + $0x1b0] sm:$0xff]  ;;  %v142_v41 = vld [vmem:[%s1751_s1 + $0x1a8] sm:$0xff]  ;;  %v141_v45 = vld [vmem:[%s1751_s1 + $0x1a0] sm:$0xff] }
   0xf   :  { %850 = vmatpush3.msra.mxu1 %v131_v23  ;;  %792 = vmatprep.subr.mxu0 %v114_v24  ;;  %v95_v38 = vld [vmem:[%s1751_s1 + $0x30] sm:$0xff]  ;;  %v94_v42 = vld [vmem:[%s1751_s1 + $0x28] sm:$0xff]  ;;  %v93_v46 = vld [vmem:[%s1751_s1 + $0x20] sm:$0xff] }
  0x10   :  { %851 = vmatprep.subr.mxu1 %v146_v25  ;;  %793 = vmatpush3.msra.mxu0 %v98_v26  ;;  %v127_v39 = vld [vmem:[%s1751_s1 + $0x130] sm:$0xff]  ;;  %v126_v43 = vld [vmem:[%s1751_s1 + $0x128] sm:$0xff]  ;;  %v125_v47 = vld [vmem:[%s1751_s1 + $0x120] sm:$0xff] }
  0x11   :  { %852 = vmatpush3.msra.mxu1 %v130_v27  ;;  %794 = vmatprep.subr.mxu0 %v113_v28  ;;  %v108_v48 = vld [vmem:[%s1751_s1 + $0x98] sm:$0xff]  ;;  %v107_v52 = vld [vmem:[%s1751_s1 + $0x90] sm:$0xff]  ;;  %v106_v56 = vld [vmem:[%s1751_s1 + $0x88] sm:$0xff] }
  0x12   :  { %853 = vmatprep.subr.mxu1 %v145_v29  ;;  %795 = vmatpush3.msra.mxu0 %v97_v30  ;;  %v140_v49 = vld [vmem:[%s1751_s1 + $0x198] sm:$0xff]  ;;  %v139_v53 = vld [vmem:[%s1751_s1 + $0x190] sm:$0xff]  ;;  %v138_v57 = vld [vmem:[%s1751_s1 + $0x188] sm:$0xff] }
  0x13   :  { %854 = vmatpush3.msra.mxu1 %v129_v31  ;;  %796 = vmatprep.subr.mxu0 %v112_v32  ;;  %v92_v50 = vld [vmem:[%s1751_s1 + $0x18] sm:$0xff]  ;;  %v91_v54 = vld [vmem:[%s1751_s1 + $0x10] sm:$0xff]  ;;  %v90_v58 = vld [vmem:[%s1751_s1 + $0x8] sm:$0xff] }
  0x14   :  { %855 = vmatprep.subr.mxu1 %v144_v33  ;;  %797 = vmatpush3.msra.mxu0 %v96_v34  ;;  %v124_v51 = vld [vmem:[%s1751_s1 + $0x118] sm:$0xff]  ;;  %v123_v55 = vld [vmem:[%s1751_s1 + $0x110] sm:$0xff]  ;;  %v122_v59 = vld [vmem:[%s1751_s1 + $0x108] sm:$0xff] }
  0x15   :  { %856 = vmatpush3.msra.mxu1 %v128_v35  ;;  %798 = vmatprep.subr.mxu0 %v111_v36  ;;  %v105_v60 = vld [vmem:[%s1751_s1 + $0x80] sm:$0xff]  ;;  %v18_v63 = vld [vmem:[%s1752_s0 + $0x8] sm:$0xff]  ;;  %v20_v1 = vld [vmem:[%s1752_s0 + $0x18] sm:$0xff] }
  0x16   :  { %857 = vmatprep.subr.mxu1 %v143_v37  ;;  %799 = vmatpush3.msra.mxu0 %v95_v38  ;;  %v137_v61 = vld [vmem:[%s1751_s1 + $0x180] sm:$0xff]  ;;  %v19_v3 = vld [vmem:[%s1752_s0 + $0x10] sm:$0xff]  ;;  %v184_v4 = vld [vmem:[%s1751_s1 + $0x2f8] sm:$0xff] }
  0x17   :  { %858 = vmatpush3.msra.mxu1 %v127_v39  ;;  %800 = vmatprep.subr.mxu0 %v110_v40  ;;  %v89_v62 = vld [vmem:[%s1751_s1] sm:$0xff]  ;;  %v216_v5 = vld [vmem:[%s1751_s1 + $0x3f8] sm:$0xff]  ;;  %v26_v7 = vld [vmem:[%s1752_s0 + $0x48] sm:$0xff] }
  0x18   :  { %859 = vmatprep.subr.mxu1 %v142_v41  ;;  %801 = vmatpush3.msra.mxu0 %v94_v42  ;;  %v121_v0 = vld [vmem:[%s1751_s1 + $0x100] sm:$0xff]  ;;  %v168_v6 = vld [vmem:[%s1751_s1 + $0x278] sm:$0xff]  ;;  %v183_v9 = vld [vmem:[%s1751_s1 + $0x2f0] sm:$0xff] }
  0x19   :  { %860 = vmatpush3.msra.mxu1 %v126_v43  ;;  %802 = vmatprep.subr.mxu0 %v109_v44  ;;  %v17_v2 = vld [vmem:[%s1752_s0] sm:$0xff]  ;;  %v28_v8 = vld [vmem:[%s1752_s0 + $0x58] sm:$0xff]  ;;  %v27_v12 = vld [vmem:[%s1752_s0 + $0x50] sm:$0xff] }
  0x1a   :  { %861 = vmatprep.subr.mxu1 %v141_v45  ;;  %803 = vmatpush3.msra.mxu0 %v93_v46  ;;  %v200_v10 = vld [vmem:[%s1751_s1 + $0x378] sm:$0xff]  ;;  %v25_v11 = vld [vmem:[%s1752_s0 + $0x40] sm:$0xff]  ;;  %v167_v13 = vld [vmem:[%s1751_s1 + $0x270] sm:$0xff] }
  0x1b   :  { %862 = vmatpush3.msra.mxu1 %v125_v47  ;;  %804 = vmatprep.subr.mxu0 %v108_v48  ;;  %v182_v14 = vld [vmem:[%s1751_s1 + $0x2e8] sm:$0xff]  ;;  %v215_v15 = vld [vmem:[%s1751_s1 + $0x3f0] sm:$0xff]  ;;  %v36_v19 = vld [vmem:[%s1752_s0 + $0x98] sm:$0xff] }
  0x1c   :  { %863 = vmatprep.subr.mxu1 %v140_v49  ;;  %805 = vmatpush3.msra.mxu0 %v92_v50  ;;  %v166_v16 = vld [vmem:[%s1751_s1 + $0x268] sm:$0xff]  ;;  %v199_v17 = vld [vmem:[%s1751_s1 + $0x370] sm:$0xff]  ;;  %v181_v20 = vld [vmem:[%s1751_s1 + $0x2e0] sm:$0xff] }
  0x1d   :  { %864 = vmatpush3.msra.mxu1 %v124_v51  ;;  %806 = vmatprep.subr.mxu0 %v107_v52  ;;  %v34_v18 = vld [vmem:[%s1752_s0 + $0x88] sm:$0xff]  ;;  %v33_v22 = vld [vmem:[%s1752_s0 + $0x80] sm:$0xff]  ;;  %v35_v23 = vld [vmem:[%s1752_s0 + $0x90] sm:$0xff] }
  0x1e   :  { %865 = vmatprep.subr.mxu1 %v139_v53  ;;  %807 = vmatpush3.msra.mxu0 %v91_v54  ;;  %v214_v21 = vld [vmem:[%s1751_s1 + $0x3e8] sm:$0xff]  ;;  %v165_v24 = vld [vmem:[%s1751_s1 + $0x260] sm:$0xff]  ;;  %v180_v26 = vld [vmem:[%s1751_s1 + $0x2d8] sm:$0xff] }
  0x1f   :  { %866 = vmatpush3.msra.mxu1 %v123_v55  ;;  %808 = vmatprep.subr.mxu0 %v106_v56  ;;  %v198_v25 = vld [vmem:[%s1751_s1 + $0x368] sm:$0xff]  ;;  %v213_v27 = vld [vmem:[%s1751_s1 + $0x3e0] sm:$0xff]  ;;  %v164_v28 = vld [vmem:[%s1751_s1 + $0x258] sm:$0xff] }
  0x20   :  { %867 = vmatprep.subr.mxu1 %v138_v57  ;;  %809 = vmatpush3.msra.mxu0 %v90_v58  ;;  %v197_v29 = vld [vmem:[%s1751_s1 + $0x360] sm:$0xff]  ;;  %v42_v30 = vld [vmem:[%s1752_s0 + $0xc8] sm:$0xff]  ;;  %v44_v31 = vld [vmem:[%s1752_s0 + $0xd8] sm:$0xff] }
  0x21   :  { %868 = vmatpush3.msra.mxu1 %v122_v59  ;;  %810 = vmatprep.subr.mxu0 %v105_v60  ;;  %v212_v32 = vld [vmem:[%s1751_s1 + $0x3d8] sm:$0xff]  ;;  %v41_v33 = vld [vmem:[%s1752_s0 + $0xc0] sm:$0xff]  ;;  %v43_v34 = vld [vmem:[%s1752_s0 + $0xd0] sm:$0xff] }
  0x22   :  { %869 = vmatprep.subr.mxu1 %v137_v61  ;;  %811 = vmatpush3.msra.mxu0 %v89_v62  ;;  %v179_v35 = vld [vmem:[%s1751_s1 + $0x2d0] sm:$0xff]  ;;  %v196_v36 = vld [vmem:[%s1751_s1 + $0x358] sm:$0xff]  ;;  %v178_v38 = vld [vmem:[%s1751_s1 + $0x2c8] sm:$0xff] }
  0x23   :  { %281 = vmatprep.mubr.f32.mxu0 %v18_v63  ;;  %870 = vmatpush3.msra.mxu1 %v121_v0  ;;  %v163_v37 = vld [vmem:[%s1751_s1 + $0x250] sm:$0xff]  ;;  %v50_v40 = vld [vmem:[%s1752_s0 + $0x108] sm:$0xff]  ;;  %v52_v41 = vld [vmem:[%s1752_s0 + $0x118] sm:$0xff] }
  0x24   :  { %391 = vmatprep.mubr.f32.mxu1 %v20_v1  ;;  %282 = vmatmul.mubr.f32.vlgmr.msra.gmra.mxu0 %v17_v2  ;;  %v211_v39 = vld [vmem:[%s1751_s1 + $0x3d0] sm:$0xff]  ;;  %v162_v42 = vld [vmem:[%s1751_s1 + $0x248] sm:$0xff]  ;;  %v49_v44 = vld [vmem:[%s1752_s0 + $0x100] sm:$0xff] }
  0x25   :  { %392 = vmatmul.mubr.f32.vlgmr.msra.gmra.mxu1 %v19_v3  ;;  %898 = vmatprep.subr.mxu0 %v184_v4  ;;  %v195_v43 = vld [vmem:[%s1751_s1 + $0x350] sm:$0xff]  ;;  %v177_v46 = vld [vmem:[%s1751_s1 + $0x2c0] sm:$0xff]  ;;  %v210_v47 = vld [vmem:[%s1751_s1 + $0x3c8] sm:$0xff] }
  0x26   :  { %957 = vmatprep.subr.mxu1 %v216_v5  ;;  %899 = vmatpush3.msra.mxu0 %v168_v6  ;;  %v51_v45 = vld [vmem:[%s1752_s0 + $0x110] sm:$0xff]  ;;  %v161_v48 = vld [vmem:[%s1751_s1 + $0x240] sm:$0xff]  ;;  %v194_v49 = vld [vmem:[%s1751_s1 + $0x348] sm:$0xff] }
  0x27   :  { %286 = vmatprep.mubr.f32.mxu0 %v26_v7  ;;  %396 = vmatprep.mubr.f32.mxu1 %v28_v8  ;;  %v176_v50 = vld [vmem:[%s1751_s1 + $0x2b8] sm:$0xff]  ;;  %v209_v51 = vld [vmem:[%s1751_s1 + $0x3c0] sm:$0xff]  ;;  %v58_v52 = vld [vmem:[%s1752_s0 + $0x148] sm:$0xff] }
  0x28   :  { %900 = vmatprep.subr.mxu0 %v183_v9  ;;  %958 = vmatpush3.msra.mxu1 %v200_v10  ;;  %v60_v53 = vld [vmem:[%s1752_s0 + $0x158] sm:$0xff]  ;;  %v193_v55 = vld [vmem:[%s1751_s1 + $0x340] sm:$0xff]  ;;  %v59_v57 = vld [vmem:[%s1752_s0 + $0x150] sm:$0xff] }
  0x29   :  { %287 = vmatmul.mubr.f32.gmra.mxu0 %v25_v11  ;;  %397 = vmatmul.mubr.f32.gmra.mxu1 %v27_v12  ;;  %v160_v54 = vld [vmem:[%s1751_s1 + $0x238] sm:$0xff]  ;;  %v57_v56 = vld [vmem:[%s1752_s0 + $0x140] sm:$0xff]  ;;  %v175_v59 = vld [vmem:[%s1751_s1 + $0x2b0] sm:$0xff] }
  0x2a   :  { %901 = vmatpush3.msra.mxu0 %v167_v13  ;;  %959 = vmatprep.subr.mxu1 %v215_v15  ;;  %v208_v58 = vld [vmem:[%s1751_s1 + $0x3b8] sm:$0xff]  ;;  %v159_v61 = vld [vmem:[%s1751_s1 + $0x230] sm:$0xff]  ;;  %v66_v62 = vld [vmem:[%s1752_s0 + $0x188] sm:$0xff] }
  0x2b   :  { %902 = vmatprep.subr.mxu0 %v182_v14  ;;  %960 = vmatpush3.msra.mxu1 %v199_v17  ;;  %v192_v60 = vld [vmem:[%s1751_s1 + $0x338] sm:$0xff]  ;;  %v174_v0 = vld [vmem:[%s1751_s1 + $0x2a8] sm:$0xff]  ;;  %v207_v1 = vld [vmem:[%s1751_s1 + $0x3b0] sm:$0xff] }
  0x2c   :  { %903 = vmatpush3.msra.mxu0 %v166_v16  ;;  %291 = vmatprep.mubr.f32.mxu0 %v34_v18  ;;  %v68_v63 = vld [vmem:[%s1752_s0 + $0x198] sm:$0xff]  ;;  %v65_v2 = vld [vmem:[%s1752_s0 + $0x180] sm:$0xff]  ;;  %v67_v3 = vld [vmem:[%s1752_s0 + $0x190] sm:$0xff] }
  0x2d   :  { %401 = vmatprep.mubr.f32.mxu1 %v36_v19  ;;  %904 = vmatprep.subr.mxu0 %v181_v20  ;;  %v158_v4 = vld [vmem:[%s1751_s1 + $0x228] sm:$0xff]  ;;  %v191_v5 = vld [vmem:[%s1751_s1 + $0x330] sm:$0xff]  ;;  %v173_v6 = vld [vmem:[%s1751_s1 + $0x2a0] sm:$0xff] }
  0x2e   :  { %961 = vmatprep.subr.mxu1 %v214_v21  ;;  %292 = vmatmul.mubr.f32.gmra.mxu0 %v33_v22  ;;  %v206_v7 = vld [vmem:[%s1751_s1 + $0x3a8] sm:$0xff]  ;;  %v157_v8 = vld [vmem:[%s1751_s1 + $0x220] sm:$0xff]  ;;  %v76_v11 = vld [vmem:[%s1752_s0 + $0x1d8] sm:$0xff] }
  0x2f   :  { %402 = vmatmul.mubr.f32.gmra.mxu1 %v35_v23  ;;  %905 = vmatpush3.msra.mxu0 %v165_v24  ;;  %v190_v9 = vld [vmem:[%s1751_s1 + $0x328] sm:$0xff]  ;;  %v172_v12 = vld [vmem:[%s1751_s1 + $0x298] sm:$0xff]  ;;  %v205_v13 = vld [vmem:[%s1751_s1 + $0x3a0] sm:$0xff] }
  0x30   :  { %962 = vmatpush3.msra.mxu1 %v198_v25  ;;  %906 = vmatprep.subr.mxu0 %v180_v26  ;;  %v74_v10 = vld [vmem:[%s1752_s0 + $0x1c8] sm:$0xff]  ;;  %v73_v14 = vld [vmem:[%s1752_s0 + $0x1c0] sm:$0xff]  ;;  %v75_v15 = vld [vmem:[%s1752_s0 + $0x1d0] sm:$0xff] }
  0x31   :  { %963 = vmatprep.subr.mxu1 %v213_v27  ;;  %907 = vmatpush3.msra.mxu0 %v164_v28  ;;  %v156_v16 = vld [vmem:[%s1751_s1 + $0x218] sm:$0xff]  ;;  %v189_v17 = vld [vmem:[%s1751_s1 + $0x320] sm:$0xff]  ;;  %v171_v19 = vld [vmem:[%s1751_s1 + $0x290] sm:$0xff] }
  0x32   :  { %964 = vmatpush3.msra.mxu1 %v197_v29  ;;  %296 = vmatprep.mubr.f32.mxu0 %v42_v30  ;;  %v204_v18 = vld [vmem:[%s1751_s1 + $0x398] sm:$0xff]  ;;  %v82_v21 = vld [vmem:[%s1752_s0 + $0x208] sm:$0xff]  ;;  %v155_v23 = vld [vmem:[%s1751_s1 + $0x210] sm:$0xff] }
  0x33   :  { %406 = vmatprep.mubr.f32.mxu1 %v44_v31  ;;  %965 = vmatprep.subr.mxu1 %v212_v32  ;;  %v188_v20 = vld [vmem:[%s1751_s1 + $0x318] sm:$0xff]  ;;  %v203_v24 = vld [vmem:[%s1751_s1 + $0x390] sm:$0xff]  ;;  %v81_v25 = vld [vmem:[%s1752_s0 + $0x200] sm:$0xff] }
  0x34   :  { %297 = vmatmul.mubr.f32.gmra.mxu0 %v41_v33  ;;  %407 = vmatmul.mubr.f32.gmra.mxu1 %v43_v34  ;;  %v84_v22 = vld [vmem:[%s1752_s0 + $0x218] sm:$0xff]  ;;  %v83_v26 = vld [vmem:[%s1752_s0 + $0x210] sm:$0xff]  ;;  %v170_v27 = vld [vmem:[%s1751_s1 + $0x288] sm:$0xff] }
  0x35   :  { %908 = vmatprep.subr.mxu0 %v179_v35  ;;  %966 = vmatpush3.msra.mxu1 %v196_v36  ;;  %v187_v28 = vld [vmem:[%s1751_s1 + $0x310] sm:$0xff]  ;;  %v154_v29 = vld [vmem:[%s1751_s1 + $0x208] sm:$0xff]  ;;  %v169_v31 = vld [vmem:[%s1751_s1 + $0x280] sm:$0xff] }
  0x36   :  { %909 = vmatpush3.msra.mxu0 %v163_v37  ;;  %967 = vmatprep.subr.mxu1 %v211_v39  ;;  %v202_v30 = vld [vmem:[%s1751_s1 + $0x388] sm:$0xff]  ;;  %v153_v33 = vld [vmem:[%s1751_s1 + $0x200] sm:$0xff] }
  0x37   :  { %910 = vmatprep.subr.mxu0 %v178_v38  ;;  %301 = vmatprep.mubr.f32.mxu0 %v50_v40  ;;  %v186_v32 = vld [vmem:[%s1751_s1 + $0x308] sm:$0xff]  ;;  %v201_v35 = vld [vmem:[%s1751_s1 + $0x380] sm:$0xff]  ;;  %v24_v38 = vld [vmem:[%s1752_s0 + $0x38] sm:$0xff] }
  0x38   :  { %411 = vmatprep.mubr.f32.mxu1 %v52_v41  ;;  %911 = vmatpush3.msra.mxu0 %v162_v42  ;;  %v22_v34 = vld [vmem:[%s1752_s0 + $0x28] sm:$0xff]  ;;  %v21_v36 = vld [vmem:[%s1752_s0 + $0x20] sm:$0xff]  ;;  %v23_v40 = vld [vmem:[%s1752_s0 + $0x30] sm:$0xff] }
  0x39   :  { %968 = vmatpush3.msra.mxu1 %v195_v43  ;;  %302 = vmatmul.mubr.f32.gmra.mxu0 %v49_v44  ;;  %v185_v37 = vld [vmem:[%s1751_s1 + $0x300] sm:$0xff]  ;;  %v30_v39 = vld [vmem:[%s1752_s0 + $0x68] sm:$0xff]  ;;  %v32_v41 = vld [vmem:[%s1752_s0 + $0x78] sm:$0xff] }
  0x3a   :  { %412 = vmatmul.mubr.f32.gmra.mxu1 %v51_v45  ;;  %912 = vmatprep.subr.mxu0 %v177_v46  ;;  %v29_v42 = vld [vmem:[%s1752_s0 + $0x60] sm:$0xff]  ;;  %v38_v43 = vld [vmem:[%s1752_s0 + $0xa8] sm:$0xff]  ;;  %v31_v44 = vld [vmem:[%s1752_s0 + $0x70] sm:$0xff] }
  0x3b   :  { %969 = vmatprep.subr.mxu1 %v210_v47  ;;  %913 = vmatpush3.msra.mxu0 %v161_v48  ;;  %v40_v45 = vld [vmem:[%s1752_s0 + $0xb8] sm:$0xff]  ;;  %v37_v46 = vld [vmem:[%s1752_s0 + $0xa0] sm:$0xff]  ;;  %v46_v47 = vld [vmem:[%s1752_s0 + $0xe8] sm:$0xff] }
  0x3c   :  { %970 = vmatpush3.msra.mxu1 %v194_v49  ;;  %914 = vmatprep.subr.mxu0 %v176_v50  ;;  %v39_v48 = vld [vmem:[%s1752_s0 + $0xb0] sm:$0xff]  ;;  %v48_v49 = vld [vmem:[%s1752_s0 + $0xf8] sm:$0xff]  ;;  %v45_v50 = vld [vmem:[%s1752_s0 + $0xe0] sm:$0xff] }
  0x3d   :  { %971 = vmatprep.subr.mxu1 %v209_v51  ;;  %306 = vmatprep.mubr.f32.mxu0 %v58_v52  ;;  %v54_v51 = vld [vmem:[%s1752_s0 + $0x128] sm:$0xff]  ;;  %v47_v52 = vld [vmem:[%s1752_s0 + $0xf0] sm:$0xff] }
  0x3e   :  { %416 = vmatprep.mubr.f32.mxu1 %v60_v53  ;;  %915 = vmatpush3.msra.mxu0 %v160_v54  ;;  %v56_v53 = vld [vmem:[%s1752_s0 + $0x138] sm:$0xff]  ;;  %v53_v54 = vld [vmem:[%s1752_s0 + $0x120] sm:$0xff] }
  0x3f   :  { %972 = vmatpush3.msra.mxu1 %v193_v55  ;;  %307 = vmatmul.mubr.f32.gmra.mxu0 %v57_v56  ;;  %v62_v55 = vld [vmem:[%s1752_s0 + $0x168] sm:$0xff]  ;;  %v55_v56 = vld [vmem:[%s1752_s0 + $0x130] sm:$0xff] }
  0x40   :  { %417 = vmatmul.mubr.f32.gmra.mxu1 %v59_v57  ;;  %973 = vmatprep.subr.mxu1 %v208_v58  ;;  %v64_v57 = vld [vmem:[%s1752_s0 + $0x178] sm:$0xff]  ;;  %v61_v58 = vld [vmem:[%s1752_s0 + $0x160] sm:$0xff] }
  0x41   :  { %916 = vmatprep.subr.mxu0 %v175_v59  ;;  %974 = vmatpush3.msra.mxu1 %v192_v60  ;;  %v70_v59 = vld [vmem:[%s1752_s0 + $0x1a8] sm:$0xff]  ;;  %v63_v60 = vld [vmem:[%s1752_s0 + $0x170] sm:$0xff] }
  0x42   :  { %917 = vmatpush3.msra.mxu0 %v159_v61  ;;  %311 = vmatprep.mubr.f32.mxu0 %v66_v62  ;;  %v72_v61 = vld [vmem:[%s1752_s0 + $0x1b8] sm:$0xff]  ;;  %v69_v62 = vld [vmem:[%s1752_s0 + $0x1a0] sm:$0xff] }
  0x43   :  { %421 = vmatprep.mubr.f32.mxu1 %v68_v63  ;;  %918 = vmatprep.subr.mxu0 %v174_v0  ;;  %v78_v63 = vld [vmem:[%s1752_s0 + $0x1e8] sm:$0xff]  ;;  %v71_v0 = vld [vmem:[%s1752_s0 + $0x1b0] sm:$0xff] }
  0x44   :  { %975 = vmatprep.subr.mxu1 %v207_v1  ;;  %312 = vmatmul.mubr.f32.gmra.mxu0 %v65_v2  ;;  %v80_v1 = vld [vmem:[%s1752_s0 + $0x1f8] sm:$0xff]  ;;  %v77_v2 = vld [vmem:[%s1752_s0 + $0x1e0] sm:$0xff] }
  0x45   :  { %422 = vmatmul.mubr.f32.gmra.mxu1 %v67_v3  ;;  %919 = vmatpush3.msra.mxu0 %v158_v4  ;;  %v86_v3 = vld [vmem:[%s1752_s0 + $0x228] sm:$0xff]  ;;  %v79_v4 = vld [vmem:[%s1752_s0 + $0x1f0] sm:$0xff] }
  0x46   :  { %976 = vmatpush3.msra.mxu1 %v191_v5  ;;  %920 = vmatprep.subr.mxu0 %v173_v6  ;;  %v88_v5 = vld [vmem:[%s1752_s0 + $0x238] sm:$0xff]  ;;  %v85_v6 = vld [vmem:[%s1752_s0 + $0x220] sm:$0xff] }
  0x47   :  { %977 = vmatprep.subr.mxu1 %v206_v7  ;;  %921 = vmatpush3.msra.mxu0 %v157_v8  ;;  %v87_v7 = vld [vmem:[%s1752_s0 + $0x230] sm:$0xff] }
  0x48   :  { %978 = vmatpush3.msra.mxu1 %v190_v9  ;;  %316 = vmatprep.mubr.f32.mxu0 %v74_v10 }
  0x49   :  { %426 = vmatprep.mubr.f32.mxu1 %v76_v11  ;;  %922 = vmatprep.subr.mxu0 %v172_v12 }
  0x4a   :  { %979 = vmatprep.subr.mxu1 %v205_v13  ;;  %317 = vmatmul.mubr.f32.gmra.mxu0 %v73_v14 }
  0x4b   :  { %427 = vmatmul.mubr.f32.gmra.mxu1 %v75_v15  ;;  %923 = vmatpush3.msra.mxu0 %v156_v16 }
  0x4c   :  { %980 = vmatpush3.msra.mxu1 %v189_v17  ;;  %924 = vmatprep.subr.mxu0 %v171_v19 }
  0x4d   :  { %981 = vmatprep.subr.mxu1 %v204_v18  ;;  %321 = vmatprep.mubr.f32.mxu0 %v82_v21 }
  0x4e   :  { %982 = vmatpush3.msra.mxu1 %v188_v20  ;;  %431 = vmatprep.mubr.f32.mxu1 %v84_v22 }
  0x4f   :  { %925 = vmatpush3.msra.mxu0 %v155_v23  ;;  %983 = vmatprep.subr.mxu1 %v203_v24 }
  0x50   :  { %322 = vmatmul.mubr.f32.gmra.mxu0 %v81_v25  ;;  %432 = vmatmul.mubr.f32.gmra.mxu1 %v83_v26 }
  0x51   :  { %926 = vmatprep.subr.mxu0 %v170_v27  ;;  %984 = vmatpush3.msra.mxu1 %v187_v28 }
  0x52   :  { %927 = vmatpush3.msra.mxu0 %v154_v29  ;;  %985 = vmatprep.subr.mxu1 %v202_v30 }
  0x53   :  { %928 = vmatprep.subr.mxu0 %v169_v31  ;;  %986 = vmatpush3.msra.mxu1 %v186_v32 }
  0x54   :  { %929 = vmatpush3.msra.mxu0 %v153_v33  ;;  %501 = vmatprep.mubr.f32.mxu0 %v22_v34 }
  0x55   :  { %987 = vmatprep.subr.mxu1 %v201_v35  ;;  %502 = vmatmul.mubr.f32.vlgmr.msra.gmra.mxu0 %v21_v36 }
  0x56   :  { %988 = vmatpush3.msra.mxu1 %v185_v37  ;;  %611 = vmatprep.mubr.f32.mxu1 %v24_v38 }
  0x57   :  { %506 = vmatprep.mubr.f32.mxu0 %v30_v39  ;;  %612 = vmatmul.mubr.f32.vlgmr.msra.gmra.mxu1 %v23_v40 }
  0x58   :  { %616 = vmatprep.mubr.f32.mxu1 %v32_v41 }
  0x59   :  { %507 = vmatmul.mubr.f32.gmra.mxu0 %v29_v42 }
  0x5a   :  { %511 = vmatprep.mubr.f32.mxu0 %v38_v43 }
  0x5b   :  { %617 = vmatmul.mubr.f32.gmra.mxu1 %v31_v44 }
  0x5c   :  { %621 = vmatprep.mubr.f32.mxu1 %v40_v45 }
  0x5d   :  { %512 = vmatmul.mubr.f32.gmra.mxu0 %v37_v46 }
  0x5e   :  { %516 = vmatprep.mubr.f32.mxu0 %v46_v47 }
  0x5f   :  { %622 = vmatmul.mubr.f32.gmra.mxu1 %v39_v48 }
  0x60   :  { %626 = vmatprep.mubr.f32.mxu1 %v48_v49 }
  0x61   :  { %517 = vmatmul.mubr.f32.gmra.mxu0 %v45_v50 }
  0x62   :  { %521 = vmatprep.mubr.f32.mxu0 %v54_v51 }
  0x63   :  { %627 = vmatmul.mubr.f32.gmra.mxu1 %v47_v52 }
  0x64   :  { %631 = vmatprep.mubr.f32.mxu1 %v56_v53 }
  0x65   :  { %522 = vmatmul.mubr.f32.gmra.mxu0 %v53_v54 }
  0x66   :  { %526 = vmatprep.mubr.f32.mxu0 %v62_v55 }
  0x67   :  { %632 = vmatmul.mubr.f32.gmra.mxu1 %v55_v56 }
  0x68   :  { %636 = vmatprep.mubr.f32.mxu1 %v64_v57 }
  0x69   :  { %527 = vmatmul.mubr.f32.gmra.mxu0 %v61_v58 }
  0x6a   :  { %531 = vmatprep.mubr.f32.mxu0 %v70_v59 }
  0x6b   :  { %637 = vmatmul.mubr.f32.gmra.mxu1 %v63_v60 }
  0x6c   :  { %641 = vmatprep.mubr.f32.mxu1 %v72_v61 }
  0x6d   :  { %532 = vmatmul.mubr.f32.gmra.mxu0 %v69_v62 }
  0x6e   :  { %536 = vmatprep.mubr.f32.mxu0 %v78_v63 }
  0x6f   :  { %642 = vmatmul.mubr.f32.gmra.mxu1 %v71_v0 }
  0x70   :  { %646 = vmatprep.mubr.f32.mxu1 %v80_v1 }
  0x71   :  { %537 = vmatmul.mubr.f32.gmra.mxu0 %v77_v2 }
  0x72   :  { %541 = vmatprep.mubr.f32.mxu0 %v86_v3 }
  0x73   :  { %647 = vmatmul.mubr.f32.gmra.mxu1 %v79_v4 }
  0x74   :  { %651 = vmatprep.mubr.f32.mxu1 %v88_v5 }
  0x75   :  { %542 = vmatmul.mubr.f32.gmra.mxu0 %v85_v6 }
  0x77   :  { %652 = vmatmul.mubr.f32.gmra.mxu1 %v87_v7 }
  0xe4   :  { %v812_v8 = vpop.f32.mrf.mxu0 }
  0xe5   :  { %v871_v9 = vpop.f32.mrf.mxu1 }
  0xe6   :  { %v813_v10 = vpop.f32.mrf.mxu0 }
  0xe7   :  { %v872_v11 = vpop.f32.mrf.mxu1  ;;  %v814_v57 = vadd.f32 %v813_v10, %v812_v8 }
  0xe8   :  { %v873_v58 = vadd.f32 %v872_v11, %v871_v9 }
  0xe9   :  { %v815_v12 = vpop.f32.mrf.mxu0  ;;  %v874_v13 = vpop.f32.mrf.mxu1 }
  0xea   :  { %v394_v7 = vadd.f32 %v873_v58, %v814_v57 }
  0xeb   :  { %v816_v14 = vpop.f32.mrf.mxu0  ;;  %v875_v15 = vpop.f32.mrf.mxu1 }
  0xec   :  { %v817_v55 = vadd.f32 %v816_v14, %v815_v12  ;;  %v876_v56 = vadd.f32 %v875_v15, %v874_v13 }
  0xee   :  { %v818_v16 = vpop.f32.mrf.mxu0  ;;  %v399_v3 = vadd.f32 %v876_v56, %v817_v55 }
  0xef   :  { %v877_v17 = vpop.f32.mrf.mxu1 }
  0xf0   :  { %v819_v18 = vpop.f32.mrf.mxu0 }
  0xf1   :  { %v878_v19 = vpop.f32.mrf.mxu1  ;;  %v820_v59 = vadd.f32 %v819_v18, %v818_v16 }
  0xf2   :  { %v879_v60 = vadd.f32 %v878_v19, %v877_v17 }
  0xf4   :  { %v821_v20 = vpop.f32.mrf.mxu0  ;;  %v880_v21 = vpop.f32.mrf.mxu1 }
  0xf6   :  { %v822_v22 = vpop.f32.mrf.mxu0  ;;  %v881_v23 = vpop.f32.mrf.mxu1 }
  0xf7   :  { %v823_v4 = vadd.f32 %v822_v22, %v821_v20  ;;  %v882_v5 = vadd.f32 %v881_v23, %v880_v21 }
  0xf9   :  { %v824_v24 = vpop.f32.mrf.mxu0  ;;  %v409_v17 = vadd.f32 %v882_v5, %v823_v4 }
  0xfa   :  { %v883_v25 = vpop.f32.mrf.mxu1 }
  0xfb   :  { %v825_v26 = vpop.f32.mrf.mxu0 }
  0xfc   :  { %v884_v27 = vpop.f32.mrf.mxu1  ;;  %v826_v12 = vadd.f32 %v825_v26, %v824_v24 }
  0xfd   :  { %v885_v13 = vadd.f32 %v884_v27, %v883_v25 }
  0xff   :  { %v827_v28 = vpop.f32.mrf.mxu0  ;;  %v414_v23 = vadd.f32 %v885_v13, %v826_v12 }
 0x100   :  { %v886_v29 = vpop.f32.mrf.mxu1 }
 0x101   :  { %v828_v30 = vpop.f32.mrf.mxu0 }
 0x102   :  { %v887_v31 = vpop.f32.mrf.mxu1  ;;  %v829_v10 = vadd.f32 %v828_v30, %v827_v28 }
 0x103   :  { %v888_v11 = vadd.f32 %v887_v31, %v886_v29 }
 0x104   :  { %v1643_v32 = vpop.f32.mrf.mxu0 }
 0x105   :  { %v1645_v33 = vpop.f32.mrf.mxu1  ;;  %v419_v26 = vadd.f32 %v888_v11, %v829_v10 }
 0x106   :  { %v1647_v34 = vpop.f32.mrf.mxu0 }
 0x107   :  { %v1649_v35 = vpop.f32.mrf.mxu1  ;;  %v832_v27 = vadd.f32 %v1647_v34, %v1643_v32 }
 0x108   :  { %v891_v28 = vadd.f32 %v1649_v35, %v1645_v33 }
 0x10a   :  { %v1651_v36 = vpop.f32.mrf.mxu0  ;;  %v424_v34 = vadd.f32 %v891_v28, %v832_v27 }
 0x10b   :  { %v1653_v37 = vpop.f32.mrf.mxu1 }
 0x10c   :  { %v1655_v38 = vpop.f32.mrf.mxu0 }
 0x10d   :  { %v1657_v39 = vpop.f32.mrf.mxu1  ;;  %v835_v33 = vadd.f32 %v1655_v38, %v1651_v36 }
 0x10e   :  { %v894_v35 = vadd.f32 %v1657_v39, %v1653_v37 }
 0x110   :  { %v1659_v40 = vpop.f32.mrf.mxu0  ;;  %v1661_v41 = vpop.f32.mrf.mxu1  ;;  %v429_v37 = vadd.f32 %v894_v35, %v835_v33 }
 0x111   :  { %1756 = vst [vmem:[#allocation2_spill] sm:$0xff] %v1661_v41 }
 0x112   :  { %v1663_v42 = vpop.f32.mrf.mxu0  ;;  %v1665_v43 = vpop.f32.mrf.mxu1 }
 0x113   :  { %1757 = vst [vmem:[#allocation3_spill] sm:$0xff] %v1663_v42  ;;  %1758 = vst [vmem:[#allocation4_spill] sm:$0xff] %v1665_v43  ;;  %v404_v43 = vadd.f32 %v879_v60, %v820_v59 }
 0x115   :  { %v930_v44 = vpop.f32.mrf.mxu0 }
 0x117   :  { %v989_v45 = vpop.f32.mrf.mxu1  ;;  %v931_v46 = vpop.f32.mrf.mxu0 }
 0x118   :  { %v932_v0 = vadd.f32 %v931_v46, %v930_v44  ;;  %v1760_v4 = vld [vmem:[#allocation2_spill] sm:$0xff] }
 0x119   :  { %v990_v47 = vpop.f32.mrf.mxu1  ;;  %v933_v48 = vpop.f32.mrf.mxu0 }
 0x11a   :  { %v504_v14 = vadd.f32 %v932_v0, %v394_v7  ;;  %v991_v20 = vadd.f32 %v990_v47, %v989_v45  ;;  %v1759_v39 = vld [vmem:[#allocation3_spill] sm:$0xff]  ;;  %v1761_v5 = vld [vmem:[#allocation4_spill] sm:$0xff] }
 0x11b   :  { %v992_v49 = vpop.f32.mrf.mxu1  ;;  %v934_v50 = vpop.f32.mrf.mxu0  ;;  %v838_v0 = vadd.f32 %v1759_v39, %v1659_v40 }
 0x11c   :  { %v935_v63 = vadd.f32 %v934_v50, %v933_v48  ;;  %v1673_v29 = vadd.f32 %v991_v20, %v504_v14 }
 0x11d   :  { %v993_v51 = vpop.f32.mrf.mxu1  ;;  %v936_v52 = vpop.f32.mrf.mxu0 }
 0x11e   :  { %v509_v8 = vadd.f32 %v935_v63, %v399_v3  ;;  %v994_v18 = vadd.f32 %v993_v51, %v992_v49 }
 0x11f   :  { %v995_v53 = vpop.f32.mrf.mxu1  ;;  %v937_v54 = vpop.f32.mrf.mxu0 }
 0x120   :  { %v938_v6 = vadd.f32 %v937_v54, %v936_v52  ;;  %v1667_v46 = vadd.f32 %v994_v18, %v509_v8 }
 0x121   :  { %v996_v61 = vpop.f32.mrf.mxu1  ;;  %v939_v62 = vpop.f32.mrf.mxu0 }
 0x122   :  { %v514_v19 = vadd.f32 %v938_v6, %v404_v43  ;;  %v997_v24 = vadd.f32 %v996_v61, %v995_v53  ;;  %v659_v50 = vsel %vm657_vm0, %v1667_v46, 0.0  ;;  %v897_v6 = vadd.f32 %v1761_v5, %v1760_v4 }
 0x123   :  { %v998_v1 = vpop.f32.mrf.mxu1  ;;  %v940_v2 = vpop.f32.mrf.mxu0 }
 0x124   :  { %v941_v9 = vadd.f32 %v940_v2, %v939_v62  ;;  %v434_v18 = vadd.f32 %v897_v6, %v838_v0 }
 0x125   :  { %v999_v41 = vpop.f32.mrf.mxu1  ;;  %v942_v42 = vpop.f32.mrf.mxu0 }
 0x126   :  { %v519_v25 = vadd.f32 %v941_v9, %v409_v17  ;;  %v1000_v43 = vadd.f32 %v999_v41, %v998_v1  ;;  %v658_v41 = vsel %vm657_vm0, %v1673_v29, 0.0 }
 0x127   :  { %v1001_v15 = vpop.f32.mrf.mxu1  ;;  %v943_v16 = vpop.f32.mrf.mxu0  ;;  %v660_v59 = vadd.f32 %v659_v50, %v658_v41 }
 0x128   :  { %v944_v44 = vadd.f32 %v943_v16, %v942_v42  ;;  %v1675_v42 = vadd.f32 %v997_v24, %v514_v19  ;;  %v629_v51 = vadd.f32 %v1000_v43, %v519_v25 }
 0x129   :  { %v1002_v21 = vpop.f32.mrf.mxu1  ;;  %v945_v22 = vpop.f32.mrf.mxu0 }
 0x12a   :  { %v524_v45 = vadd.f32 %v944_v44, %v414_v23  ;;  %v1003_v52 = vadd.f32 %v1002_v21, %v1001_v15  ;;  %v661_v55 = vsel %vm657_vm0, %v1675_v42, 0.0  ;;  %v663_v62 = vsel %vm657_vm0, %v629_v51, 0.0 }
 0x12b   :  { %v1004_v30 = vpop.f32.mrf.mxu1  ;;  %v946_v31 = vpop.f32.mrf.mxu0  ;;  %v662_v1 = vadd.f32 %v661_v55, %v660_v59 }
 0x12c   :  { %v947_v47 = vadd.f32 %v946_v31, %v945_v22  ;;  %v634_v56 = vadd.f32 %v1003_v52, %v524_v45 }
 0x12d   :  { %v1005_v48 = vpop.f32.mrf.mxu1  ;;  %v948_v49 = vpop.f32.mrf.mxu0  ;;  %v664_v8 = vadd.f32 %v663_v62, %v662_v1 }
 0x12e   :  { %v529_v32 = vadd.f32 %v947_v47, %v419_v26  ;;  %v1006_v57 = vadd.f32 %v1005_v48, %v1004_v30  ;;  %v665_v7 = vsel %vm657_vm0, %v634_v56, 0.0 }
 0x12f   :  { %v1007_v53 = vpop.f32.mrf.mxu1  ;;  %v949_v54 = vpop.f32.mrf.mxu0  ;;  %v666_v16 = vadd.f32 %v665_v7, %v664_v8 }
 0x130   :  { %v950_v58 = vadd.f32 %v949_v54, %v948_v49  ;;  %v639_v36 = vadd.f32 %v1006_v57, %v529_v32 }
 0x131   :  { %v1008_v60 = vpop.f32.mrf.mxu1  ;;  %v951_v61 = vpop.f32.mrf.mxu0 }
 0x132   :  { %v534_v38 = vadd.f32 %v950_v58, %v424_v34  ;;  %v1009_v63 = vadd.f32 %v1008_v60, %v1007_v53  ;;  %v667_v11 = vsel %vm657_vm0, %v639_v36, 0.0 }
 0x133   :  { %v1010_v2 = vpop.f32.mrf.mxu1  ;;  %v952_v3 = vpop.f32.mrf.mxu0  ;;  %v668_v21 = vadd.f32 %v667_v11, %v666_v16 }
 0x134   :  { %v644_v12 = vadd.f32 %v1009_v63, %v534_v38  ;;  %v953_v13 = vadd.f32 %v952_v3, %v951_v61 }
 0x135   :  { %v1011_v9 = vpop.f32.mrf.mxu1  ;;  %v954_v10 = vpop.f32.mrf.mxu0 }
 0x136   :  { %v539_v14 = vadd.f32 %v953_v13, %v429_v37  ;;  %v1012_v15 = vadd.f32 %v1011_v9, %v1010_v2  ;;  %v669_v19 = vsel %vm657_vm0, %v644_v12, 0.0 }
 0x137   :  { %v1013_v17 = vpop.f32.mrf.mxu1  ;;  %v955_v40 = vpop.f32.mrf.mxu0  ;;  %v670_v26 = vadd.f32 %v669_v19, %v668_v21 }
 0x138   :  { %v649_v44 = vadd.f32 %v1012_v15, %v539_v14  ;;  %v956_v20 = vadd.f32 %v955_v40, %v954_v10 }
 0x139   :  { %v1014_v22 = vpop.f32.mrf.mxu1 }
 0x13a   :  { %v671_v23 = vsel %vm657_vm0, %v649_v44, 0.0  ;;  %v544_v24 = vadd.f32 %v956_v20, %v434_v18  ;;  %v1015_v25 = vadd.f32 %v1014_v22, %v1013_v17  ;;  %v728_v18 = vlaneseq }
 0x13b   :  { %v672_v28 = vadd.f32 %v671_v23, %v670_v26 }
 0x13c   :  { %v654_v27 = vadd.f32 %v1015_v25, %v544_v24  ;;  %v729_v19 = vshrl.u32 %v728_v18, 7  ;;  %v779_v24 = vld [vmem:[%s1754_s3] ss:$0 sm:$0xff] }
 0x13e   :  { %v673_v30 = vsel %vm657_vm0, %v654_v27, 0.0  ;;  %v730_v20 = vsub.s32 0, %v729_v19 }
 0x13f   :  { %v674_v31 = vadd.f32 %v673_v30, %v672_v28 }
 0x141   :  { %v675_v43 = vrot.slane %v674_v31, 4 }
 0x143   :  { %v676_v45 = vadd.f32 %v675_v43, %v674_v31 }
 0x145   :  { %v677_v47 = vrot.slane %v676_v45, 2 }
 0x147   :  { %v678_v48 = vadd.f32 %v677_v47, %v676_v45 }
 0x149   :  { %v679_v49 = vrot.slane %v678_v48, 1 }
 0x14b   :  { %v680_v50 = vadd.f32 %v679_v49, %v678_v48 }
 0x14d   :  { %v681_v52 = vmul.f32 0.013888889, %v680_v50 }
 0x14f   :  { %v682_v32 = vsub.f32 %v1673_v29, %v681_v52  ;;  %v683_v34 = vsub.f32 %v1667_v46, %v681_v52  ;;  %v684_v33 = vsub.f32 %v1675_v42, %v681_v52  ;;  %v685_v35 = vsub.f32 %v629_v51, %v681_v52 }
 0x150   :  { %v686_v41 = vsub.f32 %v634_v56, %v681_v52  ;;  %v687_v57 = vsub.f32 %v639_v36, %v681_v52  ;;  %v688_v62 = vsub.f32 %v644_v12, %v681_v52  ;;  %v689_v46 = vsub.f32 %v649_v44, %v681_v52  ;;  %v726_v44 = vld [vmem:[%s1753_s2] sm:$0x1] }
 0x151   :  { %v691_v53 = vmul.f32 %v682_v32, %v682_v32  ;;  %v692_v54 = vmul.f32 %v683_v34, %v683_v34  ;;  %v693_v55 = vmul.f32 %v684_v33, %v684_v33  ;;  %v694_v58 = vmul.f32 %v685_v35, %v685_v35 }
 0x152   :  { %v695_v38 = vmul.f32 %v686_v41, %v686_v41  ;;  %v696_v37 = vmul.f32 %v687_v57, %v687_v57  ;;  %v690_v56 = vsub.f32 %v654_v27, %v681_v52  ;;  %v697_v39 = vmul.f32 %v688_v62, %v688_v62 }
 0x153   :  { %v700_v59 = vsel %vm657_vm0, %v691_v53, 0.0  ;;  %v701_v60 = vsel %vm657_vm0, %v692_v54, 0.0  ;;  %v703_v29 = vsel %vm657_vm0, %v693_v55, 0.0  ;;  %v705_v42 = vsel %vm657_vm0, %v694_v58, 0.0 }
 0x154   :  { %v702_v61 = vadd.f32 %v701_v60, %v700_v59  ;;  %v707_v36 = vsel %vm657_vm0, %v695_v38, 0.0  ;;  %v698_v1 = vmul.f32 %v689_v46, %v689_v46  ;;  %v709_v2 = vsel %vm657_vm0, %v696_v37, 0.0 }
 0x155   :  { %v699_v4 = vmul.f32 %v690_v56, %v690_v56  ;;  %v711_v5 = vsel %vm657_vm0, %v697_v39, 0.0 }
 0x156   :  { %v704_v63 = vadd.f32 %v703_v29, %v702_v61  ;;  %v713_v7 = vsel %vm657_vm0, %v698_v1, 0.0 }
 0x157   :  { %v715_v13 = vsel %vm657_vm0, %v699_v4, 0.0 }
 0x158   :  { %v706_v51 = vadd.f32 %v705_v42, %v704_v63 }
 0x15a   :  { %v708_v0 = vadd.f32 %v707_v36, %v706_v51 }
 0x15c   :  { %v710_v3 = vadd.f32 %v709_v2, %v708_v0 }
 0x15e   :  { %v712_v6 = vadd.f32 %v711_v5, %v710_v3 }
 0x160   :  { %v714_v12 = vadd.f32 %v713_v7, %v712_v6 }
 0x162   :  { %v716_v8 = vadd.f32 %v715_v13, %v714_v12 }
 0x164   :  { %v717_v9 = vrot.slane %v716_v8, 4 }
 0x166   :  { %v718_v10 = vadd.f32 %v717_v9, %v716_v8 }
 0x168   :  { %v719_v11 = vrot.slane %v718_v10, 2 }
 0x16a   :  { %v720_v14 = vadd.f32 %v719_v11, %v718_v10 }
 0x16c   :  { %v721_v15 = vrot.slane %v720_v14, 1 }
 0x16e   :  { %v722_v16 = vadd.f32 %v721_v15, %v720_v14 }
 0x170   :  { %v723_v17 = vmul.f32 0.013888889, %v722_v16 }
 0x172   :  { %v724_v40 = vadd.f32 1e-05, %v723_v17 }
 0x174   :  { %1016 = vrsqrt.f32 %v724_v40 }
 0x181   :  { %v1017_v21 = vpop.eup %1016 }
 0x182   :  { %v727_v22 = vmul.f32 %v1017_v21, %v726_v44 }
 0x184   :  { %v731_v23 = vrot.slane %v727_v22, %v730_v20 }
 0x186   :  { %v732_v25 = vmul.f32 %v731_v23, %v682_v32  ;;  %v733_v26 = vmul.f32 %v731_v23, %v683_v34  ;;  %v734_v27 = vmul.f32 %v731_v23, %v684_v33  ;;  %v735_v28 = vmul.f32 %v731_v23, %v685_v35 }
 0x187   :  { %v736_v30 = vmul.f32 %v731_v23, %v686_v41  ;;  %v737_v31 = vmul.f32 %v731_v23, %v687_v57  ;;  %v738_v43 = vmul.f32 %v731_v23, %v688_v62  ;;  %v739_v45 = vmul.f32 %v731_v23, %v689_v46 }
 0x188   :  { %v740_v47 = vmul.f32 %v731_v23, %v690_v56  ;;  %v748_v48 = vadd.f32 %v779_v24, %v732_v25  ;;  %v749_v49 = vadd.f32 %v779_v24, %v733_v26  ;;  %v750_v50 = vadd.f32 %v779_v24, %v734_v27 }
 0x189   :  { %v751_v52 = vadd.f32 %v779_v24, %v735_v28  ;;  %v752_v53 = vadd.f32 %v779_v24, %v736_v30  ;;  %v753_v54 = vadd.f32 %v779_v24, %v737_v31  ;;  %v754_v55 = vadd.f32 %v779_v24, %v738_v43 }
 0x18a   :  { %v755_v58 = vadd.f32 %v779_v24, %v739_v45  ;;  %v756_v59 = vadd.f32 %v779_v24, %v740_v47  ;;  %v757_v60 = vmax.f32 %v748_v48, 0.0  ;;  %v758_v61 = vmax.f32 %v749_v49, 0.0 }
 0x18b   :  { %v759_v32 = vmax.f32 %v750_v50, 0.0  ;;  %v760_v34 = vmax.f32 %v751_v52, 0.0  ;;  %v761_v33 = vmax.f32 %v752_v53, 0.0  ;;  %v762_v35 = vmax.f32 %v753_v54, 0.0 }
 0x18c   :  { %v763_v41 = vmax.f32 %v754_v55, 0.0  ;;  %v764_v57 = vmax.f32 %v755_v58, 0.0  ;;  %v765_v62 = vmax.f32 %v756_v59, 0.0  ;;  %766 = vst.msk [vmem:[%s1755_s4] sm:$0xff] %vm657_vm0, %v757_v60  ;;  %767 = vst.msk [vmem:[%s1755_s4 + $0x8] sm:$0xff] %vm657_vm0, %v758_v61 }
 0x18d   :  { %768 = vst.msk [vmem:[%s1755_s4 + $0x10] sm:$0xff] %vm657_vm0, %v759_v32  ;;  %769 = vst.msk [vmem:[%s1755_s4 + $0x18] sm:$0xff] %vm657_vm0, %v760_v34 }
 0x18e   :  { %770 = vst.msk [vmem:[%s1755_s4 + $0x20] sm:$0xff] %vm657_vm0, %v761_v33  ;;  %771 = vst.msk [vmem:[%s1755_s4 + $0x28] sm:$0xff] %vm657_vm0, %v762_v35 }
 0x18f   :  { %772 = vst.msk [vmem:[%s1755_s4 + $0x30] sm:$0xff] %vm657_vm0, %v763_v41  ;;  %773 = vst.msk [vmem:[%s1755_s4 + $0x38] sm:$0xff] %vm657_vm0, %v764_v57 }
 0x190   :  { %774 = vst.msk [vmem:[%s1755_s4 + $0x40] sm:$0xff] %vm657_vm0, %v765_v62 }

// kernel: decoder_forward.6
= control target key start
LH: loop header
LB: loop body
LE: loop exit
PB: predicated region body
PF: predicated region fallthrough
CT: control target
= control target key end

     0   :  { %v1111_v0 = vmov 0.0   ;;  %vm715_vm0 = vcmask 130048   ;;  %s2460_s1 = inlined_call_operand.vmem [shape: f32[512,16], index: 1, kind: input, shape index: {}]   ;;  %s2461_s0 = inlined_call_operand.vmem [shape: f32[288,512], index: 0, kind: input, shape index: {}]   ;;  %s2462_s2 = inlined_call_operand.vmem [shape: f32[1,16], index: 2, kind: input, shape index: {}]   ;;  %s2463_s3 = inlined_call_operand.vmem [shape: f32[1,16], index: 3, kind: input, shape index: {}]   ;;  %s2464_s4 = inlined_call_operand.vmem [shape: f32[288,16], index: 4, kind: output, shape index: {}]  }
   0x1   :  { %225 = vmatprep.subr.mxu0 %v1111_v0  ;;  %470 = vmatprep.subr.mxu1 %v1111_v0  ;;  %v176_v1 = vld [vmem:[%s2460_s1 + $0x78] sm:$0xff]  ;;  %v175_v3 = vld [vmem:[%s2460_s1 + $0x70] sm:$0xff]  ;;  %v174_v5 = vld [vmem:[%s2460_s1 + $0x68] sm:$0xff] }
   0x2   :  { %v208_v2 = vld [vmem:[%s2460_s1 + $0x178] sm:$0xff]  ;;  %226 = vmatpush1.msra.mxu0 %v176_v1  ;;  %v207_v4 = vld [vmem:[%s2460_s1 + $0x170] sm:$0xff]  ;;  %v206_v6 = vld [vmem:[%s2460_s1 + $0x168] sm:$0xff] }
   0x3   :  { %471 = vmatpush1.msra.mxu1 %v208_v2  ;;  %227 = vmatprep.subr.mxu0 %v1111_v0  ;;  %v173_v7 = vld [vmem:[%s2460_s1 + $0x60] sm:$0xff]  ;;  %v172_v9 = vld [vmem:[%s2460_s1 + $0x58] sm:$0xff]  ;;  %v171_v11 = vld [vmem:[%s2460_s1 + $0x50] sm:$0xff] }
   0x4   :  { %472 = vmatprep.subr.mxu1 %v1111_v0  ;;  %228 = vmatpush1.msra.mxu0 %v175_v3  ;;  %v205_v8 = vld [vmem:[%s2460_s1 + $0x160] sm:$0xff]  ;;  %v204_v10 = vld [vmem:[%s2460_s1 + $0x158] sm:$0xff]  ;;  %v203_v12 = vld [vmem:[%s2460_s1 + $0x150] sm:$0xff] }
   0x5   :  { %473 = vmatpush1.msra.mxu1 %v207_v4  ;;  %229 = vmatprep.subr.mxu0 %v1111_v0  ;;  %v170_v13 = vld [vmem:[%s2460_s1 + $0x48] sm:$0xff]  ;;  %v169_v15 = vld [vmem:[%s2460_s1 + $0x40] sm:$0xff]  ;;  %v168_v17 = vld [vmem:[%s2460_s1 + $0x38] sm:$0xff] }
   0x6   :  { %474 = vmatprep.subr.mxu1 %v1111_v0  ;;  %230 = vmatpush1.msra.mxu0 %v174_v5  ;;  %v202_v14 = vld [vmem:[%s2460_s1 + $0x148] sm:$0xff]  ;;  %v201_v16 = vld [vmem:[%s2460_s1 + $0x140] sm:$0xff]  ;;  %v200_v18 = vld [vmem:[%s2460_s1 + $0x138] sm:$0xff] }
   0x7   :  { %475 = vmatpush1.msra.mxu1 %v206_v6  ;;  %231 = vmatprep.subr.mxu0 %v1111_v0  ;;  %v167_v19 = vld [vmem:[%s2460_s1 + $0x30] sm:$0xff]  ;;  %v166_v21 = vld [vmem:[%s2460_s1 + $0x28] sm:$0xff]  ;;  %v165_v23 = vld [vmem:[%s2460_s1 + $0x20] sm:$0xff] }
   0x8   :  { %476 = vmatprep.subr.mxu1 %v1111_v0  ;;  %232 = vmatpush1.msra.mxu0 %v173_v7  ;;  %v199_v20 = vld [vmem:[%s2460_s1 + $0x130] sm:$0xff]  ;;  %v198_v22 = vld [vmem:[%s2460_s1 + $0x128] sm:$0xff]  ;;  %v197_v24 = vld [vmem:[%s2460_s1 + $0x120] sm:$0xff] }
   0x9   :  { %477 = vmatpush1.msra.mxu1 %v205_v8  ;;  %233 = vmatprep.subr.mxu0 %v1111_v0  ;;  %v164_v25 = vld [vmem:[%s2460_s1 + $0x18] sm:$0xff]  ;;  %v163_v27 = vld [vmem:[%s2460_s1 + $0x10] sm:$0xff]  ;;  %v162_v29 = vld [vmem:[%s2460_s1 + $0x8] sm:$0xff] }
   0xa   :  { %478 = vmatprep.subr.mxu1 %v1111_v0  ;;  %234 = vmatpush1.msra.mxu0 %v172_v9  ;;  %v196_v26 = vld [vmem:[%s2460_s1 + $0x118] sm:$0xff]  ;;  %v195_v28 = vld [vmem:[%s2460_s1 + $0x110] sm:$0xff]  ;;  %v194_v30 = vld [vmem:[%s2460_s1 + $0x108] sm:$0xff] }
   0xb   :  { %479 = vmatpush1.msra.mxu1 %v204_v10  ;;  %235 = vmatprep.subr.mxu0 %v1111_v0  ;;  %v161_v31 = vld [vmem:[%s2460_s1] sm:$0xff]  ;;  %v192_v33 = vld [vmem:[%s2460_s1 + $0xf8] sm:$0xff]  ;;  %v191_v35 = vld [vmem:[%s2460_s1 + $0xf0] sm:$0xff] }
   0xc   :  { %480 = vmatprep.subr.mxu1 %v1111_v0  ;;  %236 = vmatpush1.msra.mxu0 %v171_v11  ;;  %v193_v32 = vld [vmem:[%s2460_s1 + $0x100] sm:$0xff]  ;;  %v224_v34 = vld [vmem:[%s2460_s1 + $0x1f8] sm:$0xff]  ;;  %v223_v36 = vld [vmem:[%s2460_s1 + $0x1f0] sm:$0xff] }
   0xd   :  { %481 = vmatpush1.msra.mxu1 %v203_v12  ;;  %237 = vmatprep.subr.mxu0 %v1111_v0  ;;  %v190_v37 = vld [vmem:[%s2460_s1 + $0xe8] sm:$0xff]  ;;  %v189_v39 = vld [vmem:[%s2460_s1 + $0xe0] sm:$0xff]  ;;  %v188_v41 = vld [vmem:[%s2460_s1 + $0xd8] sm:$0xff] }
   0xe   :  { %482 = vmatprep.subr.mxu1 %v1111_v0  ;;  %238 = vmatpush1.msra.mxu0 %v170_v13  ;;  %v222_v38 = vld [vmem:[%s2460_s1 + $0x1e8] sm:$0xff]  ;;  %v221_v40 = vld [vmem:[%s2460_s1 + $0x1e0] sm:$0xff]  ;;  %v220_v42 = vld [vmem:[%s2460_s1 + $0x1d8] sm:$0xff] }
   0xf   :  { %483 = vmatpush1.msra.mxu1 %v202_v14  ;;  %239 = vmatprep.subr.mxu0 %v1111_v0  ;;  %v187_v43 = vld [vmem:[%s2460_s1 + $0xd0] sm:$0xff]  ;;  %v186_v45 = vld [vmem:[%s2460_s1 + $0xc8] sm:$0xff]  ;;  %v185_v47 = vld [vmem:[%s2460_s1 + $0xc0] sm:$0xff] }
  0x10   :  { %484 = vmatprep.subr.mxu1 %v1111_v0  ;;  %240 = vmatpush1.msra.mxu0 %v169_v15  ;;  %v219_v44 = vld [vmem:[%s2460_s1 + $0x1d0] sm:$0xff]  ;;  %v218_v46 = vld [vmem:[%s2460_s1 + $0x1c8] sm:$0xff]  ;;  %v217_v48 = vld [vmem:[%s2460_s1 + $0x1c0] sm:$0xff] }
  0x11   :  { %485 = vmatpush1.msra.mxu1 %v201_v16  ;;  %241 = vmatprep.subr.mxu0 %v1111_v0  ;;  %v184_v49 = vld [vmem:[%s2460_s1 + $0xb8] sm:$0xff]  ;;  %v183_v51 = vld [vmem:[%s2460_s1 + $0xb0] sm:$0xff]  ;;  %v182_v53 = vld [vmem:[%s2460_s1 + $0xa8] sm:$0xff] }
  0x12   :  { %486 = vmatprep.subr.mxu1 %v1111_v0  ;;  %242 = vmatpush1.msra.mxu0 %v168_v17  ;;  %v216_v50 = vld [vmem:[%s2460_s1 + $0x1b8] sm:$0xff]  ;;  %v215_v52 = vld [vmem:[%s2460_s1 + $0x1b0] sm:$0xff]  ;;  %v214_v54 = vld [vmem:[%s2460_s1 + $0x1a8] sm:$0xff] }
  0x13   :  { %487 = vmatpush1.msra.mxu1 %v200_v18  ;;  %243 = vmatprep.subr.mxu0 %v1111_v0  ;;  %v181_v55 = vld [vmem:[%s2460_s1 + $0xa0] sm:$0xff]  ;;  %v180_v57 = vld [vmem:[%s2460_s1 + $0x98] sm:$0xff]  ;;  %v179_v59 = vld [vmem:[%s2460_s1 + $0x90] sm:$0xff] }
  0x14   :  { %488 = vmatprep.subr.mxu1 %v1111_v0  ;;  %244 = vmatpush1.msra.mxu0 %v167_v19  ;;  %v213_v56 = vld [vmem:[%s2460_s1 + $0x1a0] sm:$0xff]  ;;  %v212_v58 = vld [vmem:[%s2460_s1 + $0x198] sm:$0xff]  ;;  %v211_v60 = vld [vmem:[%s2460_s1 + $0x190] sm:$0xff] }
  0x15   :  { %489 = vmatpush1.msra.mxu1 %v199_v20  ;;  %245 = vmatprep.subr.mxu0 %v1111_v0  ;;  %v178_v61 = vld [vmem:[%s2460_s1 + $0x88] sm:$0xff]  ;;  %v177_v63 = vld [vmem:[%s2460_s1 + $0x80] sm:$0xff]  ;;  %v20_v3 = vld [vmem:[%s2461_s0 + $0x18] sm:$0xff] }
  0x16   :  { %490 = vmatprep.subr.mxu1 %v1111_v0  ;;  %246 = vmatpush1.msra.mxu0 %v166_v21  ;;  %v210_v62 = vld [vmem:[%s2460_s1 + $0x188] sm:$0xff]  ;;  %v209_v2 = vld [vmem:[%s2460_s1 + $0x180] sm:$0xff]  ;;  %v19_v5 = vld [vmem:[%s2461_s0 + $0x10] sm:$0xff] }
  0x17   :  { %491 = vmatpush1.msra.mxu1 %v198_v22  ;;  %247 = vmatprep.subr.mxu0 %v1111_v0  ;;  %v18_v1 = vld [vmem:[%s2461_s0 + $0x8] sm:$0xff]  ;;  %v17_v4 = vld [vmem:[%s2461_s0] sm:$0xff]  ;;  %v24_v7 = vld [vmem:[%s2461_s0 + $0x38] sm:$0xff] }
  0x18   :  { %492 = vmatprep.subr.mxu1 %v1111_v0  ;;  %248 = vmatpush1.msra.mxu0 %v165_v23  ;;  %v22_v6 = vld [vmem:[%s2461_s0 + $0x28] sm:$0xff]  ;;  %v23_v8 = vld [vmem:[%s2461_s0 + $0x30] sm:$0xff]  ;;  %v28_v10 = vld [vmem:[%s2461_s0 + $0x58] sm:$0xff] }
  0x19   :  { %493 = vmatpush1.msra.mxu1 %v197_v24  ;;  %249 = vmatprep.subr.mxu0 %v1111_v0  ;;  %v26_v9 = vld [vmem:[%s2461_s0 + $0x48] sm:$0xff]  ;;  %v25_v11 = vld [vmem:[%s2461_s0 + $0x40] sm:$0xff]  ;;  %v27_v12 = vld [vmem:[%s2461_s0 + $0x50] sm:$0xff] }
  0x1a   :  { %494 = vmatprep.subr.mxu1 %v1111_v0  ;;  %250 = vmatpush1.msra.mxu0 %v164_v25  ;;  %v30_v13 = vld [vmem:[%s2461_s0 + $0x68] sm:$0xff]  ;;  %v32_v14 = vld [vmem:[%s2461_s0 + $0x78] sm:$0xff]  ;;  %v29_v15 = vld [vmem:[%s2461_s0 + $0x60] sm:$0xff] }
  0x1b   :  { %495 = vmatpush1.msra.mxu1 %v196_v26  ;;  %251 = vmatprep.subr.mxu0 %v1111_v0  ;;  %v31_v16 = vld [vmem:[%s2461_s0 + $0x70] sm:$0xff]  ;;  %v34_v17 = vld [vmem:[%s2461_s0 + $0x88] sm:$0xff]  ;;  %v36_v18 = vld [vmem:[%s2461_s0 + $0x98] sm:$0xff] }
  0x1c   :  { %496 = vmatprep.subr.mxu1 %v1111_v0  ;;  %252 = vmatpush1.msra.mxu0 %v163_v27  ;;  %v33_v19 = vld [vmem:[%s2461_s0 + $0x80] sm:$0xff]  ;;  %v35_v20 = vld [vmem:[%s2461_s0 + $0x90] sm:$0xff]  ;;  %v38_v21 = vld [vmem:[%s2461_s0 + $0xa8] sm:$0xff] }
  0x1d   :  { %497 = vmatpush1.msra.mxu1 %v195_v28  ;;  %253 = vmatprep.subr.mxu0 %v1111_v0  ;;  %v40_v22 = vld [vmem:[%s2461_s0 + $0xb8] sm:$0xff]  ;;  %v37_v23 = vld [vmem:[%s2461_s0 + $0xa0] sm:$0xff]  ;;  %v39_v24 = vld [vmem:[%s2461_s0 + $0xb0] sm:$0xff] }
  0x1e   :  { %498 = vmatprep.subr.mxu1 %v1111_v0  ;;  %254 = vmatpush1.msra.mxu0 %v162_v29  ;;  %v42_v25 = vld [vmem:[%s2461_s0 + $0xc8] sm:$0xff]  ;;  %v44_v26 = vld [vmem:[%s2461_s0 + $0xd8] sm:$0xff]  ;;  %v41_v27 = vld [vmem:[%s2461_s0 + $0xc0] sm:$0xff] }
  0x1f   :  { %499 = vmatpush1.msra.mxu1 %v194_v30  ;;  %255 = vmatprep.subr.mxu0 %v1111_v0  ;;  %v43_v28 = vld [vmem:[%s2461_s0 + $0xd0] sm:$0xff]  ;;  %v46_v29 = vld [vmem:[%s2461_s0 + $0xe8] sm:$0xff]  ;;  %v48_v30 = vld [vmem:[%s2461_s0 + $0xf8] sm:$0xff] }
  0x20   :  { %500 = vmatprep.subr.mxu1 %v1111_v0  ;;  %256 = vmatpush1.msra.mxu0 %v161_v31  ;;  %v45_v31 = vld [vmem:[%s2461_s0 + $0xe0] sm:$0xff] }
  0x21   :  { %501 = vmatpush1.msra.mxu1 %v193_v32  ;;  %257 = vmatprep.subr.mxu0 %v1111_v0  ;;  %v47_v32 = vld [vmem:[%s2461_s0 + $0xf0] sm:$0xff] }
  0x22   :  { %502 = vmatprep.subr.mxu1 %v1111_v0  ;;  %258 = vmatpush2.msra.mxu0 %v192_v33  ;;  %v50_v33 = vld [vmem:[%s2461_s0 + $0x108] sm:$0xff] }
  0x23   :  { %503 = vmatpush2.msra.mxu1 %v224_v34  ;;  %259 = vmatprep.subr.mxu0 %v1111_v0  ;;  %v52_v34 = vld [vmem:[%s2461_s0 + $0x118] sm:$0xff] }
  0x24   :  { %504 = vmatprep.subr.mxu1 %v1111_v0  ;;  %260 = vmatpush2.msra.mxu0 %v191_v35  ;;  %v49_v35 = vld [vmem:[%s2461_s0 + $0x100] sm:$0xff] }
  0x25   :  { %505 = vmatpush2.msra.mxu1 %v223_v36  ;;  %261 = vmatprep.subr.mxu0 %v1111_v0  ;;  %v51_v36 = vld [vmem:[%s2461_s0 + $0x110] sm:$0xff] }
  0x26   :  { %506 = vmatprep.subr.mxu1 %v1111_v0  ;;  %262 = vmatpush2.msra.mxu0 %v190_v37  ;;  %v54_v37 = vld [vmem:[%s2461_s0 + $0x128] sm:$0xff] }
  0x27   :  { %507 = vmatpush2.msra.mxu1 %v222_v38  ;;  %263 = vmatprep.subr.mxu0 %v1111_v0  ;;  %v56_v38 = vld [vmem:[%s2461_s0 + $0x138] sm:$0xff] }
  0x28   :  { %508 = vmatprep.subr.mxu1 %v1111_v0  ;;  %264 = vmatpush2.msra.mxu0 %v189_v39  ;;  %v53_v39 = vld [vmem:[%s2461_s0 + $0x120] sm:$0xff] }
  0x29   :  { %509 = vmatpush2.msra.mxu1 %v221_v40  ;;  %265 = vmatprep.subr.mxu0 %v1111_v0  ;;  %v55_v40 = vld [vmem:[%s2461_s0 + $0x130] sm:$0xff] }
  0x2a   :  { %510 = vmatprep.subr.mxu1 %v1111_v0  ;;  %266 = vmatpush2.msra.mxu0 %v188_v41  ;;  %v58_v41 = vld [vmem:[%s2461_s0 + $0x148] sm:$0xff] }
  0x2b   :  { %511 = vmatpush2.msra.mxu1 %v220_v42  ;;  %267 = vmatprep.subr.mxu0 %v1111_v0  ;;  %v60_v42 = vld [vmem:[%s2461_s0 + $0x158] sm:$0xff] }
  0x2c   :  { %512 = vmatprep.subr.mxu1 %v1111_v0  ;;  %268 = vmatpush2.msra.mxu0 %v187_v43  ;;  %v57_v43 = vld [vmem:[%s2461_s0 + $0x140] sm:$0xff] }
  0x2d   :  { %513 = vmatpush2.msra.mxu1 %v219_v44  ;;  %269 = vmatprep.subr.mxu0 %v1111_v0  ;;  %v59_v44 = vld [vmem:[%s2461_s0 + $0x150] sm:$0xff] }
  0x2e   :  { %514 = vmatprep.subr.mxu1 %v1111_v0  ;;  %270 = vmatpush2.msra.mxu0 %v186_v45  ;;  %v62_v45 = vld [vmem:[%s2461_s0 + $0x168] sm:$0xff] }
  0x2f   :  { %515 = vmatpush2.msra.mxu1 %v218_v46  ;;  %271 = vmatprep.subr.mxu0 %v1111_v0  ;;  %v64_v46 = vld [vmem:[%s2461_s0 + $0x178] sm:$0xff] }
  0x30   :  { %516 = vmatprep.subr.mxu1 %v1111_v0  ;;  %272 = vmatpush2.msra.mxu0 %v185_v47  ;;  %v61_v47 = vld [vmem:[%s2461_s0 + $0x160] sm:$0xff] }
  0x31   :  { %517 = vmatpush2.msra.mxu1 %v217_v48  ;;  %273 = vmatprep.subr.mxu0 %v1111_v0  ;;  %v63_v48 = vld [vmem:[%s2461_s0 + $0x170] sm:$0xff] }
  0x32   :  { %518 = vmatprep.subr.mxu1 %v1111_v0  ;;  %274 = vmatpush2.msra.mxu0 %v184_v49  ;;  %v66_v49 = vld [vmem:[%s2461_s0 + $0x188] sm:$0xff] }
  0x33   :  { %519 = vmatpush2.msra.mxu1 %v216_v50  ;;  %275 = vmatprep.subr.mxu0 %v1111_v0  ;;  %v68_v50 = vld [vmem:[%s2461_s0 + $0x198] sm:$0xff] }
  0x34   :  { %520 = vmatprep.subr.mxu1 %v1111_v0  ;;  %276 = vmatpush2.msra.mxu0 %v183_v51  ;;  %v65_v51 = vld [vmem:[%s2461_s0 + $0x180] sm:$0xff] }
  0x35   :  { %521 = vmatpush2.msra.mxu1 %v215_v52  ;;  %277 = vmatprep.subr.mxu0 %v1111_v0  ;;  %v67_v52 = vld [vmem:[%s2461_s0 + $0x190] sm:$0xff] }
  0x36   :  { %522 = vmatprep.subr.mxu1 %v1111_v0  ;;  %278 = vmatpush2.msra.mxu0 %v182_v53  ;;  %v70_v53 = vld [vmem:[%s2461_s0 + $0x1a8] sm:$0xff] }
  0x37   :  { %523 = vmatpush2.msra.mxu1 %v214_v54  ;;  %279 = vmatprep.subr.mxu0 %v1111_v0  ;;  %v72_v54 = vld [vmem:[%s2461_s0 + $0x1b8] sm:$0xff] }
  0x38   :  { %524 = vmatprep.subr.mxu1 %v1111_v0  ;;  %280 = vmatpush2.msra.mxu0 %v181_v55  ;;  %v69_v55 = vld [vmem:[%s2461_s0 + $0x1a0] sm:$0xff] }
  0x39   :  { %525 = vmatpush2.msra.mxu1 %v213_v56  ;;  %281 = vmatprep.subr.mxu0 %v1111_v0  ;;  %v71_v56 = vld [vmem:[%s2461_s0 + $0x1b0] sm:$0xff] }
  0x3a   :  { %526 = vmatprep.subr.mxu1 %v1111_v0  ;;  %282 = vmatpush2.msra.mxu0 %v180_v57  ;;  %v74_v57 = vld [vmem:[%s2461_s0 + $0x1c8] sm:$0xff] }
  0x3b   :  { %527 = vmatpush2.msra.mxu1 %v212_v58  ;;  %283 = vmatprep.subr.mxu0 %v1111_v0  ;;  %v76_v58 = vld [vmem:[%s2461_s0 + $0x1d8] sm:$0xff] }
  0x3c   :  { %528 = vmatprep.subr.mxu1 %v1111_v0  ;;  %284 = vmatpush2.msra.mxu0 %v179_v59  ;;  %v73_v59 = vld [vmem:[%s2461_s0 + $0x1c0] sm:$0xff] }
  0x3d   :  { %529 = vmatpush2.msra.mxu1 %v211_v60  ;;  %285 = vmatprep.subr.mxu0 %v1111_v0  ;;  %v75_v60 = vld [vmem:[%s2461_s0 + $0x1d0] sm:$0xff] }
  0x3e   :  { %530 = vmatprep.subr.mxu1 %v1111_v0  ;;  %286 = vmatpush2.msra.mxu0 %v178_v61  ;;  %v78_v61 = vld [vmem:[%s2461_s0 + $0x1e8] sm:$0xff] }
  0x3f   :  { %531 = vmatpush2.msra.mxu1 %v210_v62  ;;  %287 = vmatprep.subr.mxu0 %v1111_v0  ;;  %v80_v62 = vld [vmem:[%s2461_s0 + $0x1f8] sm:$0xff] }
  0x40   :  { %532 = vmatprep.subr.mxu1 %v1111_v0  ;;  %288 = vmatpush2.msra.mxu0 %v177_v63  ;;  %v21_v0 = vld [vmem:[%s2461_s0 + $0x20] sm:$0xff] }
  0x41   :  { %289 = vmatprep.mubr.f32.mxu0 %v18_v1  ;;  %533 = vmatpush2.msra.mxu1 %v209_v2  ;;  %v77_v63 = vld [vmem:[%s2461_s0 + $0x1e0] sm:$0xff]  ;;  %v79_v1 = vld [vmem:[%s2461_s0 + $0x1f0] sm:$0xff]  ;;  %v82_v2 = vld [vmem:[%s2461_s0 + $0x208] sm:$0xff] }
  0x42   :  { %534 = vmatprep.mubr.f32.mxu1 %v20_v3  ;;  %290 = vmatmul.mubr.f32.vlgmr.msra.gmra.mxu0 %v17_v4  ;;  %v84_v3 = vld [vmem:[%s2461_s0 + $0x218] sm:$0xff]  ;;  %v81_v4 = vld [vmem:[%s2461_s0 + $0x200] sm:$0xff] }
  0x43   :  { %535 = vmatmul.mubr.f32.vlgmr.msra.gmra.mxu1 %v19_v5  ;;  %294 = vmatprep.mubr.f32.mxu0 %v22_v6  ;;  %v83_v5 = vld [vmem:[%s2461_s0 + $0x210] sm:$0xff]  ;;  %v86_v6 = vld [vmem:[%s2461_s0 + $0x228] sm:$0xff] }
  0x44   :  { %539 = vmatprep.mubr.f32.mxu1 %v24_v7  ;;  %v88_v7 = vld [vmem:[%s2461_s0 + $0x238] sm:$0xff] }
  0x46   :  { %295 = vmatmul.mubr.f32.gmra.mxu0 %v21_v0  ;;  %v85_v0 = vld [vmem:[%s2461_s0 + $0x220] sm:$0xff] }
  0x47   :  { %540 = vmatmul.mubr.f32.gmra.mxu1 %v23_v8  ;;  %299 = vmatprep.mubr.f32.mxu0 %v26_v9  ;;  %v87_v8 = vld [vmem:[%s2461_s0 + $0x230] sm:$0xff]  ;;  %v90_v9 = vld [vmem:[%s2461_s0 + $0x248] sm:$0xff] }
  0x48   :  { %544 = vmatprep.mubr.f32.mxu1 %v28_v10  ;;  %v92_v10 = vld [vmem:[%s2461_s0 + $0x258] sm:$0xff] }
  0x4a   :  { %300 = vmatmul.mubr.f32.gmra.mxu0 %v25_v11  ;;  %v89_v11 = vld [vmem:[%s2461_s0 + $0x240] sm:$0xff] }
  0x4b   :  { %545 = vmatmul.mubr.f32.gmra.mxu1 %v27_v12  ;;  %304 = vmatprep.mubr.f32.mxu0 %v30_v13  ;;  %v91_v12 = vld [vmem:[%s2461_s0 + $0x250] sm:$0xff]  ;;  %v94_v13 = vld [vmem:[%s2461_s0 + $0x268] sm:$0xff] }
  0x4c   :  { %549 = vmatprep.mubr.f32.mxu1 %v32_v14  ;;  %v96_v14 = vld [vmem:[%s2461_s0 + $0x278] sm:$0xff] }
  0x4e   :  { %305 = vmatmul.mubr.f32.gmra.mxu0 %v29_v15  ;;  %v93_v15 = vld [vmem:[%s2461_s0 + $0x260] sm:$0xff] }
  0x4f   :  { %550 = vmatmul.mubr.f32.gmra.mxu1 %v31_v16  ;;  %309 = vmatprep.mubr.f32.mxu0 %v34_v17  ;;  %v95_v16 = vld [vmem:[%s2461_s0 + $0x270] sm:$0xff]  ;;  %v98_v17 = vld [vmem:[%s2461_s0 + $0x288] sm:$0xff] }
  0x50   :  { %554 = vmatprep.mubr.f32.mxu1 %v36_v18  ;;  %v100_v18 = vld [vmem:[%s2461_s0 + $0x298] sm:$0xff] }
  0x52   :  { %310 = vmatmul.mubr.f32.gmra.mxu0 %v33_v19  ;;  %v97_v19 = vld [vmem:[%s2461_s0 + $0x280] sm:$0xff] }
  0x53   :  { %555 = vmatmul.mubr.f32.gmra.mxu1 %v35_v20  ;;  %314 = vmatprep.mubr.f32.mxu0 %v38_v21  ;;  %v99_v20 = vld [vmem:[%s2461_s0 + $0x290] sm:$0xff]  ;;  %v102_v21 = vld [vmem:[%s2461_s0 + $0x2a8] sm:$0xff] }
  0x54   :  { %559 = vmatprep.mubr.f32.mxu1 %v40_v22  ;;  %v104_v22 = vld [vmem:[%s2461_s0 + $0x2b8] sm:$0xff] }
  0x56   :  { %315 = vmatmul.mubr.f32.gmra.mxu0 %v37_v23  ;;  %v101_v23 = vld [vmem:[%s2461_s0 + $0x2a0] sm:$0xff] }
  0x57   :  { %560 = vmatmul.mubr.f32.gmra.mxu1 %v39_v24  ;;  %319 = vmatprep.mubr.f32.mxu0 %v42_v25  ;;  %v103_v24 = vld [vmem:[%s2461_s0 + $0x2b0] sm:$0xff]  ;;  %v106_v25 = vld [vmem:[%s2461_s0 + $0x2c8] sm:$0xff] }
  0x58   :  { %564 = vmatprep.mubr.f32.mxu1 %v44_v26  ;;  %v108_v26 = vld [vmem:[%s2461_s0 + $0x2d8] sm:$0xff] }
  0x5a   :  { %320 = vmatmul.mubr.f32.gmra.mxu0 %v41_v27  ;;  %v105_v27 = vld [vmem:[%s2461_s0 + $0x2c0] sm:$0xff] }
  0x5b   :  { %565 = vmatmul.mubr.f32.gmra.mxu1 %v43_v28  ;;  %324 = vmatprep.mubr.f32.mxu0 %v46_v29  ;;  %v107_v28 = vld [vmem:[%s2461_s0 + $0x2d0] sm:$0xff]  ;;  %v110_v29 = vld [vmem:[%s2461_s0 + $0x2e8] sm:$0xff] }
  0x5c   :  { %569 = vmatprep.mubr.f32.mxu1 %v48_v30  ;;  %v112_v30 = vld [vmem:[%s2461_s0 + $0x2f8] sm:$0xff] }
  0x5e   :  { %325 = vmatmul.mubr.f32.gmra.mxu0 %v45_v31  ;;  %v109_v31 = vld [vmem:[%s2461_s0 + $0x2e0] sm:$0xff] }
  0x5f   :  { %570 = vmatmul.mubr.f32.gmra.mxu1 %v47_v32  ;;  %329 = vmatprep.mubr.f32.mxu0 %v50_v33  ;;  %v111_v32 = vld [vmem:[%s2461_s0 + $0x2f0] sm:$0xff]  ;;  %v114_v33 = vld [vmem:[%s2461_s0 + $0x308] sm:$0xff] }
  0x60   :  { %574 = vmatprep.mubr.f32.mxu1 %v52_v34  ;;  %v116_v34 = vld [vmem:[%s2461_s0 + $0x318] sm:$0xff] }
  0x62   :  { %330 = vmatmul.mubr.f32.gmra.mxu0 %v49_v35  ;;  %v113_v35 = vld [vmem:[%s2461_s0 + $0x300] sm:$0xff] }
  0x63   :  { %575 = vmatmul.mubr.f32.gmra.mxu1 %v51_v36  ;;  %334 = vmatprep.mubr.f32.mxu0 %v54_v37  ;;  %v115_v36 = vld [vmem:[%s2461_s0 + $0x310] sm:$0xff]  ;;  %v118_v37 = vld [vmem:[%s2461_s0 + $0x328] sm:$0xff] }
  0x64   :  { %579 = vmatprep.mubr.f32.mxu1 %v56_v38  ;;  %v120_v38 = vld [vmem:[%s2461_s0 + $0x338] sm:$0xff] }
  0x66   :  { %335 = vmatmul.mubr.f32.gmra.mxu0 %v53_v39  ;;  %v117_v39 = vld [vmem:[%s2461_s0 + $0x320] sm:$0xff] }
  0x67   :  { %580 = vmatmul.mubr.f32.gmra.mxu1 %v55_v40  ;;  %339 = vmatprep.mubr.f32.mxu0 %v58_v41  ;;  %v119_v40 = vld [vmem:[%s2461_s0 + $0x330] sm:$0xff]  ;;  %v122_v41 = vld [vmem:[%s2461_s0 + $0x348] sm:$0xff] }
  0x68   :  { %584 = vmatprep.mubr.f32.mxu1 %v60_v42  ;;  %v124_v42 = vld [vmem:[%s2461_s0 + $0x358] sm:$0xff] }
  0x6a   :  { %340 = vmatmul.mubr.f32.gmra.mxu0 %v57_v43  ;;  %v121_v43 = vld [vmem:[%s2461_s0 + $0x340] sm:$0xff] }
  0x6b   :  { %585 = vmatmul.mubr.f32.gmra.mxu1 %v59_v44  ;;  %344 = vmatprep.mubr.f32.mxu0 %v62_v45  ;;  %v123_v44 = vld [vmem:[%s2461_s0 + $0x350] sm:$0xff]  ;;  %v126_v45 = vld [vmem:[%s2461_s0 + $0x368] sm:$0xff] }
  0x6c   :  { %589 = vmatprep.mubr.f32.mxu1 %v64_v46  ;;  %v128_v46 = vld [vmem:[%s2461_s0 + $0x378] sm:$0xff] }
  0x6e   :  { %345 = vmatmul.mubr.f32.gmra.mxu0 %v61_v47  ;;  %v125_v47 = vld [vmem:[%s2461_s0 + $0x360] sm:$0xff] }
  0x6f   :  { %590 = vmatmul.mubr.f32.gmra.mxu1 %v63_v48  ;;  %349 = vmatprep.mubr.f32.mxu0 %v66_v49  ;;  %v127_v48 = vld [vmem:[%s2461_s0 + $0x370] sm:$0xff]  ;;  %v130_v49 = vld [vmem:[%s2461_s0 + $0x388] sm:$0xff] }
  0x70   :  { %594 = vmatprep.mubr.f32.mxu1 %v68_v50  ;;  %v132_v50 = vld [vmem:[%s2461_s0 + $0x398] sm:$0xff] }
  0x72   :  { %350 = vmatmul.mubr.f32.gmra.mxu0 %v65_v51  ;;  %v129_v51 = vld [vmem:[%s2461_s0 + $0x380] sm:$0xff] }
  0x73   :  { %595 = vmatmul.mubr.f32.gmra.mxu1 %v67_v52  ;;  %354 = vmatprep.mubr.f32.mxu0 %v70_v53  ;;  %v131_v52 = vld [vmem:[%s2461_s0 + $0x390] sm:$0xff]  ;;  %v134_v53 = vld [vmem:[%s2461_s0 + $0x3a8] sm:$0xff] }
  0x74   :  { %599 = vmatprep.mubr.f32.mxu1 %v72_v54  ;;  %v136_v54 = vld [vmem:[%s2461_s0 + $0x3b8] sm:$0xff] }
  0x76   :  { %355 = vmatmul.mubr.f32.gmra.mxu0 %v69_v55  ;;  %v133_v55 = vld [vmem:[%s2461_s0 + $0x3a0] sm:$0xff] }
  0x77   :  { %600 = vmatmul.mubr.f32.gmra.mxu1 %v71_v56  ;;  %359 = vmatprep.mubr.f32.mxu0 %v74_v57  ;;  %v135_v56 = vld [vmem:[%s2461_s0 + $0x3b0] sm:$0xff]  ;;  %v138_v57 = vld [vmem:[%s2461_s0 + $0x3c8] sm:$0xff] }
  0x78   :  { %604 = vmatprep.mubr.f32.mxu1 %v76_v58  ;;  %v140_v58 = vld [vmem:[%s2461_s0 + $0x3d8] sm:$0xff] }
  0x7a   :  { %360 = vmatmul.mubr.f32.gmra.mxu0 %v73_v59  ;;  %v137_v59 = vld [vmem:[%s2461_s0 + $0x3c0] sm:$0xff] }
  0x7b   :  { %605 = vmatmul.mubr.f32.gmra.mxu1 %v75_v60  ;;  %364 = vmatprep.mubr.f32.mxu0 %v78_v61  ;;  %v139_v60 = vld [vmem:[%s2461_s0 + $0x3d0] sm:$0xff]  ;;  %v142_v61 = vld [vmem:[%s2461_s0 + $0x3e8] sm:$0xff] }
  0x7c   :  { %609 = vmatprep.mubr.f32.mxu1 %v80_v62  ;;  %v144_v62 = vld [vmem:[%s2461_s0 + $0x3f8] sm:$0xff] }
  0x7e   :  { %365 = vmatmul.mubr.f32.gmra.mxu0 %v77_v63  ;;  %v141_v63 = vld [vmem:[%s2461_s0 + $0x3e0] sm:$0xff] }
  0x7f   :  { %610 = vmatmul.mubr.f32.gmra.mxu1 %v79_v1  ;;  %369 = vmatprep.mubr.f32.mxu0 %v82_v2  ;;  %v143_v1 = vld [vmem:[%s2461_s0 + $0x3f0] sm:$0xff]  ;;  %v146_v2 = vld [vmem:[%s2461_s0 + $0x408] sm:$0xff] }
  0x80   :  { %614 = vmatprep.mubr.f32.mxu1 %v84_v3  ;;  %v148_v3 = vld [vmem:[%s2461_s0 + $0x418] sm:$0xff] }
  0x82   :  { %370 = vmatmul.mubr.f32.gmra.mxu0 %v81_v4  ;;  %v145_v4 = vld [vmem:[%s2461_s0 + $0x400] sm:$0xff] }
  0x83   :  { %615 = vmatmul.mubr.f32.gmra.mxu1 %v83_v5  ;;  %374 = vmatprep.mubr.f32.mxu0 %v86_v6  ;;  %v147_v5 = vld [vmem:[%s2461_s0 + $0x410] sm:$0xff]  ;;  %v150_v6 = vld [vmem:[%s2461_s0 + $0x428] sm:$0xff] }
  0x84   :  { %619 = vmatprep.mubr.f32.mxu1 %v88_v7  ;;  %v152_v7 = vld [vmem:[%s2461_s0 + $0x438] sm:$0xff] }
  0x86   :  { %375 = vmatmul.mubr.f32.gmra.mxu0 %v85_v0  ;;  %v149_v0 = vld [vmem:[%s2461_s0 + $0x420] sm:$0xff] }
  0x87   :  { %620 = vmatmul.mubr.f32.gmra.mxu1 %v87_v8  ;;  %379 = vmatprep.mubr.f32.mxu0 %v90_v9  ;;  %v151_v8 = vld [vmem:[%s2461_s0 + $0x430] sm:$0xff]  ;;  %v154_v9 = vld [vmem:[%s2461_s0 + $0x448] sm:$0xff] }
  0x88   :  { %624 = vmatprep.mubr.f32.mxu1 %v92_v10  ;;  %v156_v10 = vld [vmem:[%s2461_s0 + $0x458] sm:$0xff] }
  0x8a   :  { %380 = vmatmul.mubr.f32.gmra.mxu0 %v89_v11  ;;  %v153_v11 = vld [vmem:[%s2461_s0 + $0x440] sm:$0xff] }
  0x8b   :  { %625 = vmatmul.mubr.f32.gmra.mxu1 %v91_v12  ;;  %384 = vmatprep.mubr.f32.mxu0 %v94_v13  ;;  %v155_v12 = vld [vmem:[%s2461_s0 + $0x450] sm:$0xff]  ;;  %v158_v13 = vld [vmem:[%s2461_s0 + $0x468] sm:$0xff] }
  0x8c   :  { %629 = vmatprep.mubr.f32.mxu1 %v96_v14  ;;  %v160_v14 = vld [vmem:[%s2461_s0 + $0x478] sm:$0xff] }
  0x8e   :  { %385 = vmatmul.mubr.f32.gmra.mxu0 %v93_v15  ;;  %v157_v15 = vld [vmem:[%s2461_s0 + $0x460] sm:$0xff] }
  0x8f   :  { %630 = vmatmul.mubr.f32.gmra.mxu1 %v95_v16  ;;  %389 = vmatprep.mubr.f32.mxu0 %v98_v17  ;;  %v159_v16 = vld [vmem:[%s2461_s0 + $0x470] sm:$0xff] }
  0x90   :  { %634 = vmatprep.mubr.f32.mxu1 %v100_v18 }
  0x92   :  { %390 = vmatmul.mubr.f32.gmra.mxu0 %v97_v19 }
  0x93   :  { %635 = vmatmul.mubr.f32.gmra.mxu1 %v99_v20  ;;  %394 = vmatprep.mubr.f32.mxu0 %v102_v21 }
  0x94   :  { %639 = vmatprep.mubr.f32.mxu1 %v104_v22 }
  0x96   :  { %395 = vmatmul.mubr.f32.gmra.mxu0 %v101_v23 }
  0x97   :  { %640 = vmatmul.mubr.f32.gmra.mxu1 %v103_v24  ;;  %399 = vmatprep.mubr.f32.mxu0 %v106_v25 }
  0x98   :  { %644 = vmatprep.mubr.f32.mxu1 %v108_v26 }
  0x9a   :  { %400 = vmatmul.mubr.f32.gmra.mxu0 %v105_v27 }
  0x9b   :  { %645 = vmatmul.mubr.f32.gmra.mxu1 %v107_v28  ;;  %404 = vmatprep.mubr.f32.mxu0 %v110_v29 }
  0x9c   :  { %649 = vmatprep.mubr.f32.mxu1 %v112_v30 }
  0x9e   :  { %405 = vmatmul.mubr.f32.gmra.mxu0 %v109_v31 }
  0x9f   :  { %650 = vmatmul.mubr.f32.gmra.mxu1 %v111_v32  ;;  %409 = vmatprep.mubr.f32.mxu0 %v114_v33 }
  0xa0   :  { %654 = vmatprep.mubr.f32.mxu1 %v116_v34 }
  0xa2   :  { %410 = vmatmul.mubr.f32.gmra.mxu0 %v113_v35 }
  0xa3   :  { %655 = vmatmul.mubr.f32.gmra.mxu1 %v115_v36  ;;  %414 = vmatprep.mubr.f32.mxu0 %v118_v37 }
  0xa4   :  { %659 = vmatprep.mubr.f32.mxu1 %v120_v38 }
  0xa6   :  { %415 = vmatmul.mubr.f32.gmra.mxu0 %v117_v39 }
  0xa7   :  { %660 = vmatmul.mubr.f32.gmra.mxu1 %v119_v40  ;;  %419 = vmatprep.mubr.f32.mxu0 %v122_v41 }
  0xa8   :  { %664 = vmatprep.mubr.f32.mxu1 %v124_v42 }
  0xaa   :  { %420 = vmatmul.mubr.f32.gmra.mxu0 %v121_v43 }
  0xab   :  { %665 = vmatmul.mubr.f32.gmra.mxu1 %v123_v44  ;;  %424 = vmatprep.mubr.f32.mxu0 %v126_v45 }
  0xac   :  { %669 = vmatprep.mubr.f32.mxu1 %v128_v46 }
  0xae   :  { %425 = vmatmul.mubr.f32.gmra.mxu0 %v125_v47 }
  0xaf   :  { %670 = vmatmul.mubr.f32.gmra.mxu1 %v127_v48  ;;  %429 = vmatprep.mubr.f32.mxu0 %v130_v49 }
  0xb0   :  { %674 = vmatprep.mubr.f32.mxu1 %v132_v50 }
  0xb2   :  { %430 = vmatmul.mubr.f32.gmra.mxu0 %v129_v51 }
  0xb3   :  { %675 = vmatmul.mubr.f32.gmra.mxu1 %v131_v52  ;;  %434 = vmatprep.mubr.f32.mxu0 %v134_v53 }
  0xb4   :  { %679 = vmatprep.mubr.f32.mxu1 %v136_v54 }
  0xb6   :  { %435 = vmatmul.mubr.f32.gmra.mxu0 %v133_v55 }
  0xb7   :  { %680 = vmatmul.mubr.f32.gmra.mxu1 %v135_v56  ;;  %439 = vmatprep.mubr.f32.mxu0 %v138_v57 }
  0xb8   :  { %684 = vmatprep.mubr.f32.mxu1 %v140_v58 }
  0xba   :  { %440 = vmatmul.mubr.f32.gmra.mxu0 %v137_v59 }
  0xbb   :  { %685 = vmatmul.mubr.f32.gmra.mxu1 %v139_v60  ;;  %444 = vmatprep.mubr.f32.mxu0 %v142_v61 }
  0xbc   :  { %689 = vmatprep.mubr.f32.mxu1 %v144_v62 }
  0xbe   :  { %445 = vmatmul.mubr.f32.gmra.mxu0 %v141_v63 }
  0xbf   :  { %690 = vmatmul.mubr.f32.gmra.mxu1 %v143_v1  ;;  %449 = vmatprep.mubr.f32.mxu0 %v146_v2 }
  0xc0   :  { %694 = vmatprep.mubr.f32.mxu1 %v148_v3 }
  0xc2   :  { %450 = vmatmul.mubr.f32.gmra.mxu0 %v145_v4 }
  0xc3   :  { %695 = vmatmul.mubr.f32.gmra.mxu1 %v147_v5  ;;  %454 = vmatprep.mubr.f32.mxu0 %v150_v6 }
  0xc4   :  { %699 = vmatprep.mubr.f32.mxu1 %v152_v7 }
  0xc6   :  { %455 = vmatmul.mubr.f32.gmra.mxu0 %v149_v0 }
  0xc7   :  { %700 = vmatmul.mubr.f32.gmra.mxu1 %v151_v8  ;;  %459 = vmatprep.mubr.f32.mxu0 %v154_v9 }
  0xc8   :  { %704 = vmatprep.mubr.f32.mxu1 %v156_v10 }
  0xca   :  { %460 = vmatmul.mubr.f32.gmra.mxu0 %v153_v11 }
  0xcb   :  { %705 = vmatmul.mubr.f32.gmra.mxu1 %v155_v12  ;;  %464 = vmatprep.mubr.f32.mxu0 %v158_v13 }
  0xcc   :  { %709 = vmatprep.mubr.f32.mxu1 %v160_v14 }
  0xce   :  { %465 = vmatmul.mubr.f32.gmra.mxu0 %v157_v15 }
  0xcf   :  { %710 = vmatmul.mubr.f32.gmra.mxu1 %v159_v16 }
 0x102   :  { %v291_v17 = vpop.f32.mrf.mxu0 }
 0x103   :  { %v536_v18 = vpop.f32.mrf.mxu1 }
 0x104   :  { %v1825_v19 = vadd.f32 %v536_v18, %v291_v17  ;;  %v293_v20 = vpop.f32.mrf.mxu0 }
 0x105   :  { %v538_v21 = vpop.f32.mrf.mxu1 }
 0x106   :  { %v296_v22 = vpop.f32.mrf.mxu0 }
 0x107   :  { %v541_v23 = vpop.f32.mrf.mxu1 }
 0x108   :  { %v1827_v24 = vadd.f32 %v541_v23, %v296_v22  ;;  %v298_v25 = vpop.f32.mrf.mxu0 }
 0x109   :  { %v543_v26 = vpop.f32.mrf.mxu1 }
 0x10a   :  { %v301_v27 = vpop.f32.mrf.mxu0 }
 0x10b   :  { %v546_v28 = vpop.f32.mrf.mxu1 }
 0x10c   :  { %v1829_v29 = vadd.f32 %v546_v28, %v301_v27  ;;  %v303_v30 = vpop.f32.mrf.mxu0 }
 0x10d   :  { %v548_v31 = vpop.f32.mrf.mxu1 }
 0x10e   :  { %v306_v32 = vpop.f32.mrf.mxu0 }
 0x10f   :  { %v551_v33 = vpop.f32.mrf.mxu1 }
 0x110   :  { %v1831_v34 = vadd.f32 %v551_v33, %v306_v32  ;;  %v308_v35 = vpop.f32.mrf.mxu0 }
 0x111   :  { %v553_v36 = vpop.f32.mrf.mxu1 }
 0x112   :  { %v311_v37 = vpop.f32.mrf.mxu0 }
 0x113   :  { %v556_v38 = vpop.f32.mrf.mxu1 }
 0x114   :  { %v1833_v39 = vadd.f32 %v556_v38, %v311_v37  ;;  %v313_v40 = vpop.f32.mrf.mxu0 }
 0x115   :  { %v558_v41 = vpop.f32.mrf.mxu1 }
 0x116   :  { %v316_v42 = vpop.f32.mrf.mxu0 }
 0x117   :  { %v561_v43 = vpop.f32.mrf.mxu1 }
 0x118   :  { %v1835_v44 = vadd.f32 %v561_v43, %v316_v42  ;;  %v318_v45 = vpop.f32.mrf.mxu0 }
 0x119   :  { %v563_v46 = vpop.f32.mrf.mxu1 }
 0x11a   :  { %v321_v47 = vpop.f32.mrf.mxu0 }
 0x11b   :  { %v566_v48 = vpop.f32.mrf.mxu1 }
 0x11c   :  { %v1837_v49 = vadd.f32 %v566_v48, %v321_v47  ;;  %v323_v50 = vpop.f32.mrf.mxu0 }
 0x11d   :  { %v568_v51 = vpop.f32.mrf.mxu1 }
 0x11e   :  { %v326_v52 = vpop.f32.mrf.mxu0 }
 0x11f   :  { %v571_v53 = vpop.f32.mrf.mxu1 }
 0x120   :  { %v1839_v54 = vadd.f32 %v571_v53, %v326_v52  ;;  %v328_v55 = vpop.f32.mrf.mxu0  ;;  %v717_v52 = vsel %vm715_vm0, %v1827_v24, 0.0 }
 0x121   :  { %v573_v56 = vpop.f32.mrf.mxu1 }
 0x122   :  { %v331_v57 = vpop.f32.mrf.mxu0  ;;  %v716_v56 = vsel %vm715_vm0, %v1825_v19, 0.0 }
 0x123   :  { %v576_v58 = vpop.f32.mrf.mxu1 }
 0x124   :  { %v1841_v59 = vadd.f32 %v576_v58, %v331_v57  ;;  %v333_v60 = vpop.f32.mrf.mxu0  ;;  %v719_v57 = vsel %vm715_vm0, %v1829_v29, 0.0  ;;  %v718_v58 = vadd.f32 %v717_v52, %v716_v56 }
 0x125   :  { %v578_v61 = vpop.f32.mrf.mxu1 }
 0x126   :  { %v336_v62 = vpop.f32.mrf.mxu0 }
 0x127   :  { %v581_v63 = vpop.f32.mrf.mxu1 }
 0x128   :  { %v1843_v1 = vadd.f32 %v581_v63, %v336_v62  ;;  %v338_v2 = vpop.f32.mrf.mxu0  ;;  %v721_v62 = vsel %vm715_vm0, %v1831_v34, 0.0  ;;  %v720_v63 = vadd.f32 %v719_v57, %v718_v58 }
 0x129   :  { %v583_v3 = vpop.f32.mrf.mxu1 }
 0x12a   :  { %v341_v4 = vpop.f32.mrf.mxu0 }
 0x12b   :  { %v586_v5 = vpop.f32.mrf.mxu1 }
 0x12c   :  { %v1845_v6 = vadd.f32 %v586_v5, %v341_v4  ;;  %v343_v7 = vpop.f32.mrf.mxu0  ;;  %v723_v4 = vsel %vm715_vm0, %v1833_v39, 0.0  ;;  %v722_v5 = vadd.f32 %v721_v62, %v720_v63 }
 0x12d   :  { %v588_v0 = vpop.f32.mrf.mxu1 }
 0x12e   :  { %v346_v8 = vpop.f32.mrf.mxu0 }
 0x12f   :  { %v591_v9 = vpop.f32.mrf.mxu1 }
 0x130   :  { %v1847_v10 = vadd.f32 %v591_v9, %v346_v8  ;;  %v348_v11 = vpop.f32.mrf.mxu0  ;;  %v725_v8 = vsel %vm715_vm0, %v1835_v44, 0.0  ;;  %v724_v9 = vadd.f32 %v723_v4, %v722_v5 }
 0x131   :  { %v593_v12 = vpop.f32.mrf.mxu1 }
 0x132   :  { %v351_v13 = vpop.f32.mrf.mxu0 }
 0x133   :  { %v596_v14 = vpop.f32.mrf.mxu1 }
 0x134   :  { %v1849_v15 = vadd.f32 %v596_v14, %v351_v13  ;;  %v353_v16 = vpop.f32.mrf.mxu0  ;;  %v727_v13 = vsel %vm715_vm0, %v1837_v49, 0.0  ;;  %v726_v14 = vadd.f32 %v725_v8, %v724_v9 }
 0x135   :  { %v598_v17 = vpop.f32.mrf.mxu1 }
 0x136   :  { %v356_v18 = vpop.f32.mrf.mxu0  ;;  %v739_v52 = vsel %vm715_vm0, %v1849_v15, 0.0 }
 0x137   :  { %v601_v20 = vpop.f32.mrf.mxu1 }
 0x138   :  { %v1851_v21 = vadd.f32 %v601_v20, %v356_v18  ;;  %v358_v22 = vpop.f32.mrf.mxu0  ;;  %v729_v18 = vsel %vm715_vm0, %v1839_v54, 0.0  ;;  %v728_v20 = vadd.f32 %v727_v13, %v726_v14 }
 0x139   :  { %v603_v23 = vpop.f32.mrf.mxu1 }
 0x13a   :  { %v361_v25 = vpop.f32.mrf.mxu0  ;;  %v741_v57 = vsel %vm715_vm0, %v1851_v21, 0.0 }
 0x13b   :  { %v606_v26 = vpop.f32.mrf.mxu1 }
 0x13c   :  { %v1853_v27 = vadd.f32 %v606_v26, %v361_v25  ;;  %v363_v28 = vpop.f32.mrf.mxu0  ;;  %v731_v25 = vsel %vm715_vm0, %v1841_v59, 0.0  ;;  %v730_v26 = vadd.f32 %v729_v18, %v728_v20 }
 0x13d   :  { %v608_v30 = vpop.f32.mrf.mxu1 }
 0x13e   :  { %v366_v31 = vpop.f32.mrf.mxu0 }
 0x13f   :  { %v611_v32 = vpop.f32.mrf.mxu1 }
 0x140   :  { %v1855_v33 = vadd.f32 %v611_v32, %v366_v31  ;;  %v368_v35 = vpop.f32.mrf.mxu0  ;;  %v733_v31 = vsel %vm715_vm0, %v1843_v1, 0.0  ;;  %v732_v32 = vadd.f32 %v731_v25, %v730_v26 }
 0x141   :  { %v613_v36 = vpop.f32.mrf.mxu1 }
 0x142   :  { %v371_v37 = vpop.f32.mrf.mxu0  ;;  %v745_v8 = vsel %vm715_vm0, %v1855_v33, 0.0 }
 0x143   :  { %v616_v38 = vpop.f32.mrf.mxu1 }
 0x144   :  { %v1857_v40 = vadd.f32 %v616_v38, %v371_v37  ;;  %v373_v41 = vpop.f32.mrf.mxu0  ;;  %v735_v37 = vsel %vm715_vm0, %v1845_v6, 0.0  ;;  %v734_v38 = vadd.f32 %v733_v31, %v732_v32 }
 0x145   :  { %v618_v42 = vpop.f32.mrf.mxu1 }
 0x146   :  { %v376_v43 = vpop.f32.mrf.mxu0  ;;  %v747_v13 = vsel %vm715_vm0, %v1857_v40, 0.0 }
 0x147   :  { %v621_v45 = vpop.f32.mrf.mxu1 }
 0x148   :  { %v1859_v46 = vadd.f32 %v621_v45, %v376_v43  ;;  %v378_v47 = vpop.f32.mrf.mxu0  ;;  %v737_v43 = vsel %vm715_vm0, %v1847_v10, 0.0  ;;  %v736_v45 = vadd.f32 %v735_v37, %v734_v38 }
 0x149   :  { %v623_v48 = vpop.f32.mrf.mxu1 }
 0x14a   :  { %v1861_v50 = vpop.f32.mrf.mxu0 }
 0x14b   :  { %v626_v51 = vpop.f32.mrf.mxu1 }
 0x14c   :  { %v383_v53 = vpop.f32.mrf.mxu0  ;;  %v1898_v14 = vadd.f32 %v626_v51, %v1861_v50 }
 0x14d   :  { %v628_v55 = vpop.f32.mrf.mxu1  ;;  %v738_v53 = vadd.f32 %v737_v43, %v736_v45 }
 0x14e   :  { %v386_v60 = vpop.f32.mrf.mxu0 }
 0x14f   :  { %v631_v61 = vpop.f32.mrf.mxu1  ;;  %v740_v58 = vadd.f32 %v739_v52, %v738_v53 }
 0x150   :  { %v388_v2 = vpop.f32.mrf.mxu0  ;;  %v1902_v25 = vadd.f32 %v631_v61, %v386_v60 }
 0x151   :  { %v633_v3 = vpop.f32.mrf.mxu1  ;;  %v743_v2 = vsel %vm715_vm0, %v1853_v27, 0.0 }
 0x152   :  { %v391_v7 = vpop.f32.mrf.mxu0  ;;  %v742_v3 = vadd.f32 %v741_v57, %v740_v58  ;;  %v753_v51 = vsel %vm715_vm0, %v1902_v25, 0.0 }
 0x153   :  { %v636_v0 = vpop.f32.mrf.mxu1 }
 0x154   :  { %v393_v11 = vpop.f32.mrf.mxu0  ;;  %v744_v9 = vadd.f32 %v743_v2, %v742_v3 }
 0x155   :  { %v638_v12 = vpop.f32.mrf.mxu1 }
 0x156   :  { %v396_v16 = vpop.f32.mrf.mxu0  ;;  %v746_v18 = vadd.f32 %v745_v8, %v744_v9 }
 0x157   :  { %v641_v17 = vpop.f32.mrf.mxu1 }
 0x158   :  { %v398_v22 = vpop.f32.mrf.mxu0  ;;  %v748_v26 = vadd.f32 %v747_v13, %v746_v18  ;;  %v1910_v43 = vadd.f32 %v641_v17, %v396_v16 }
 0x159   :  { %v643_v23 = vpop.f32.mrf.mxu1 }
 0x15a   :  { %v401_v28 = vpop.f32.mrf.mxu0  ;;  %v749_v23 = vsel %vm715_vm0, %v1859_v46, 0.0 }
 0x15b   :  { %v646_v30 = vpop.f32.mrf.mxu1  ;;  %v750_v37 = vadd.f32 %v749_v23, %v748_v26 }
 0x15c   :  { %v403_v35 = vpop.f32.mrf.mxu0 }
 0x15d   :  { %v648_v36 = vpop.f32.mrf.mxu1  ;;  %v751_v35 = vsel %vm715_vm0, %v1898_v14, 0.0 }
 0x15e   :  { %v406_v41 = vpop.f32.mrf.mxu0  ;;  %v1906_v36 = vadd.f32 %v636_v0, %v391_v7  ;;  %v752_v45 = vadd.f32 %v751_v35, %v750_v37  ;;  %v757_v0 = vsel %vm715_vm0, %v1910_v43, 0.0 }
 0x15f   :  { %v651_v42 = vpop.f32.mrf.mxu1 }
 0x160   :  { %v408_v47 = vpop.f32.mrf.mxu0  ;;  %v755_v61 = vsel %vm715_vm0, %v1906_v36, 0.0  ;;  %v754_v52 = vadd.f32 %v753_v51, %v752_v45  ;;  %v1918_v57 = vadd.f32 %v651_v42, %v406_v41 }
 0x161   :  { %v653_v48 = vpop.f32.mrf.mxu1 }
 0x162   :  { %v411_v55 = vpop.f32.mrf.mxu0  ;;  %v1914_v48 = vadd.f32 %v646_v30, %v401_v28  ;;  %v756_v58 = vadd.f32 %v755_v61, %v754_v52  ;;  %v761_v30 = vsel %vm715_vm0, %v1918_v57, 0.0 }
 0x163   :  { %v656_v56 = vpop.f32.mrf.mxu1 }
 0x164   :  { %v413_v62 = vpop.f32.mrf.mxu0  ;;  %v759_v17 = vsel %vm715_vm0, %v1914_v48, 0.0  ;;  %v758_v2 = vadd.f32 %v757_v0, %v756_v58 }
 0x165   :  { %v658_v63 = vpop.f32.mrf.mxu1 }
 0x166   :  { %v416_v4 = vpop.f32.mrf.mxu0  ;;  %v1922_v63 = vadd.f32 %v656_v56, %v411_v55  ;;  %v760_v9 = vadd.f32 %v759_v17, %v758_v2 }
 0x167   :  { %v661_v5 = vpop.f32.mrf.mxu1 }
 0x168   :  { %v418_v11 = vpop.f32.mrf.mxu0  ;;  %v1926_v8 = vadd.f32 %v661_v5, %v416_v4  ;;  %v763_v42 = vsel %vm715_vm0, %v1922_v63, 0.0  ;;  %v762_v13 = vadd.f32 %v761_v30, %v760_v9 }
 0x169   :  { %v663_v12 = vpop.f32.mrf.mxu1 }
 0x16a   :  { %v421_v20 = vpop.f32.mrf.mxu0  ;;  %v765_v56 = vsel %vm715_vm0, %v1926_v8, 0.0  ;;  %v764_v26 = vadd.f32 %v763_v42, %v762_v13 }
 0x16b   :  { %v666_v22 = vpop.f32.mrf.mxu1 }
 0x16c   :  { %v423_v31 = vpop.f32.mrf.mxu0  ;;  %v1930_v12 = vadd.f32 %v666_v22, %v421_v20  ;;  %v766_v35 = vadd.f32 %v765_v56, %v764_v26 }
 0x16d   :  { %v668_v32 = vpop.f32.mrf.mxu1 }
 0x16e   :  { %v426_v38 = vpop.f32.mrf.mxu0  ;;  %v767_v5 = vsel %vm715_vm0, %v1930_v12, 0.0 }
 0x16f   :  { %v671_v50 = vpop.f32.mrf.mxu1  ;;  %v768_v45 = vadd.f32 %v767_v5, %v766_v35 }
 0x170   :  { %v428_v47 = vpop.f32.mrf.mxu0  ;;  %v1934_v23 = vadd.f32 %v671_v50, %v426_v38 }
 0x171   :  { %v673_v60 = vpop.f32.mrf.mxu1 }
 0x172   :  { %v431_v53 = vpop.f32.mrf.mxu0  ;;  %v769_v22 = vsel %vm715_vm0, %v1934_v23, 0.0 }
 0x173   :  { %v676_v7 = vpop.f32.mrf.mxu1  ;;  %v770_v61 = vadd.f32 %v769_v22, %v768_v45 }
 0x174   :  { %v433_v62 = vpop.f32.mrf.mxu0  ;;  %v1938_v32 = vadd.f32 %v676_v7, %v431_v53 }
 0x175   :  { %v678_v16 = vpop.f32.mrf.mxu1 }
 0x176   :  { %v436_v3 = vpop.f32.mrf.mxu0  ;;  %v771_v50 = vsel %vm715_vm0, %v1938_v32, 0.0 }
 0x177   :  { %v681_v28 = vpop.f32.mrf.mxu1  ;;  %v772_v58 = vadd.f32 %v771_v50, %v770_v61 }
 0x178   :  { %v438_v11 = vpop.f32.mrf.mxu0  ;;  %v1942_v51 = vadd.f32 %v681_v28, %v436_v3 }
 0x179   :  { %v683_v41 = vpop.f32.mrf.mxu1 }
 0x17a   :  { %v441_v18 = vpop.f32.mrf.mxu0  ;;  %v773_v7 = vsel %vm715_vm0, %v1942_v51, 0.0 }
 0x17b   :  { %v686_v55 = vpop.f32.mrf.mxu1  ;;  %v774_v3 = vadd.f32 %v773_v7, %v772_v58 }
 0x17c   :  { %v443_v31 = vpop.f32.mrf.mxu0  ;;  %v1946_v60 = vadd.f32 %v686_v55, %v441_v18 }
 0x17d   :  { %v688_v4 = vpop.f32.mrf.mxu1 }
 0x17e   :  { %v446_v37 = vpop.f32.mrf.mxu0  ;;  %v775_v17 = vsel %vm715_vm0, %v1946_v60, 0.0 }
 0x17f   :  { %v691_v20 = vpop.f32.mrf.mxu1  ;;  %v776_v41 = vadd.f32 %v775_v17, %v774_v3 }
 0x180   :  { %v448_v47 = vpop.f32.mrf.mxu0  ;;  %v1950_v0 = vadd.f32 %v691_v20, %v446_v37 }
 0x181   :  { %v693_v38 = vpop.f32.mrf.mxu1 }
 0x182   :  { %v451_v52 = vpop.f32.mrf.mxu0  ;;  %v777_v9 = vsel %vm715_vm0, %v1950_v0, 0.0 }
 0x183   :  { %v696_v53 = vpop.f32.mrf.mxu1  ;;  %v778_v55 = vadd.f32 %v777_v9, %v776_v41 }
 0x184   :  { %v453_v62 = vpop.f32.mrf.mxu0  ;;  %v1954_v2 = vadd.f32 %v696_v53, %v451_v52 }
 0x185   :  { %v698_v16 = vpop.f32.mrf.mxu1 }
 0x186   :  { %v456_v28 = vpop.f32.mrf.mxu0  ;;  %v779_v18 = vsel %vm715_vm0, %v1954_v2, 0.0 }
 0x187   :  { %v701_v30 = vpop.f32.mrf.mxu1  ;;  %v780_v5 = vadd.f32 %v779_v18, %v778_v55 }
 0x188   :  { %v702_v11 = vadd.f32 %v701_v30, %v456_v28  ;;  %v458_v42 = vpop.f32.mrf.mxu0 }
 0x189   :  { %v703_v13 = vpop.f32.mrf.mxu1 }
 0x18a   :  { %v461_v56 = vpop.f32.mrf.mxu0  ;;  %v781_v31 = vsel %vm715_vm0, %v702_v11, 0.0 }
 0x18b   :  { %v706_v26 = vpop.f32.mrf.mxu1  ;;  %v782_v22 = vadd.f32 %v781_v31, %v780_v5 }
 0x18c   :  { %v707_v4 = vadd.f32 %v706_v26, %v461_v56  ;;  %v463_v35 = vpop.f32.mrf.mxu0 }
 0x18d   :  { %v708_v37 = vpop.f32.mrf.mxu1 }
 0x18e   :  { %v783_v20 = vsel %vm715_vm0, %v707_v4, 0.0  ;;  %v466_v45 = vpop.f32.mrf.mxu0 }
 0x18f   :  { %v711_v47 = vpop.f32.mrf.mxu1  ;;  %v784_v50 = vadd.f32 %v783_v20, %v782_v22 }
 0x190   :  { %v712_v38 = vadd.f32 %v711_v47, %v466_v45  ;;  %v468_v61 = vpop.f32.mrf.mxu0 }
 0x191   :  { %v713_v52 = vpop.f32.mrf.mxu1 }
 0x192   :  { %v785_v53 = vsel %vm715_vm0, %v712_v38, 0.0 }
 0x193   :  { %v786_v7 = vadd.f32 %v785_v53, %v784_v50 }
 0x195   :  { %v787_v58 = vrot.slane %v786_v7, 4 }
 0x197   :  { %v788_v62 = vadd.f32 %v787_v58, %v786_v7 }
 0x199   :  { %v789_v16 = vrot.slane %v788_v62, 2 }
 0x19b   :  { %v790_v17 = vadd.f32 %v789_v16, %v788_v62 }
 0x19d   :  { %v791_v3 = vrot.slane %v790_v17, 1 }
 0x19f   :  { %v792_v28 = vadd.f32 %v791_v3, %v790_v17 }
 0x1a1   :  { %v1963_v30 = vmul.f32 0.0034722222, %v792_v28 }
 0x1a3   :  { %v1966_v9 = vsub.f32 %v702_v11, %v1963_v30  ;;  %v1969_v41 = vsub.f32 %v707_v4, %v1963_v30  ;;  %v1972_v42 = vsub.f32 %v712_v38, %v1963_v30  ;;  %v1976_v13 = vsub.f32 %v1825_v19, %v1963_v30 }
 0x1a4   :  { %v1980_v18 = vsub.f32 %v1827_v24, %v1963_v30  ;;  %v1984_v55 = vsub.f32 %v1829_v29, %v1963_v30  ;;  %v1988_v11 = vsub.f32 %v1831_v34, %v1963_v30  ;;  %v1996_v19 = vsub.f32 %v1833_v39, %v1963_v30 }
 0x1a5   :  { %v830_v56 = vmul.f32 %v1976_v13, %v1976_v13  ;;  %v2002_v29 = vsub.f32 %v1835_v44, %v1963_v30  ;;  %v2010_v35 = vsub.f32 %v1837_v49, %v1963_v30  ;;  %v2017_v44 = vsub.f32 %v1839_v54, %v1963_v30 }
 0x1a6   :  { %v831_v26 = vmul.f32 %v1980_v18, %v1980_v18  ;;  %v832_v24 = vmul.f32 %v1984_v55, %v1984_v55  ;;  %v833_v34 = vmul.f32 %v1988_v11, %v1988_v11  ;;  %v834_v39 = vmul.f32 %v1996_v19, %v1996_v19 }
 0x1a7   :  { %v866_v31 = vsel %vm715_vm0, %v830_v56, 0.0  ;;  %v835_v22 = vmul.f32 %v2002_v29, %v2002_v29  ;;  %v2024_v49 = vsub.f32 %v1841_v59, %v1963_v30  ;;  %v836_v38 = vmul.f32 %v2010_v35, %v2010_v35 }
 0x1a8   :  { %v867_v4 = vsel %vm715_vm0, %v831_v26, 0.0  ;;  %v869_v37 = vsel %vm715_vm0, %v832_v24, 0.0  ;;  %v871_v45 = vsel %vm715_vm0, %v833_v34, 0.0  ;;  %v873_v50 = vsel %vm715_vm0, %v834_v39, 0.0 }
 0x1a9   :  { %v868_v5 = vadd.f32 %v867_v4, %v866_v31  ;;  %v2031_v54 = vsub.f32 %v1843_v1, %v1963_v30  ;;  %v837_v52 = vmul.f32 %v2017_v44, %v2017_v44  ;;  %v875_v53 = vsel %vm715_vm0, %v835_v22, 0.0 }
 0x1aa   :  { %v2038_v59 = vsub.f32 %v1845_v6, %v1963_v30  ;;  %v838_v58 = vmul.f32 %v2024_v49, %v2024_v49  ;;  %v877_v62 = vsel %vm715_vm0, %v836_v38, 0.0  ;;  %v2045_v1 = vsub.f32 %v1847_v10, %v1963_v30 }
 0x1ab   :  { %v870_v20 = vadd.f32 %v869_v37, %v868_v5  ;;  %v839_v17 = vmul.f32 %v2031_v54, %v2031_v54  ;;  %v879_v3 = vsel %vm715_vm0, %v837_v52, 0.0  ;;  %v2052_v6 = vsub.f32 %v1849_v15, %v1963_v30 }
 0x1ac   :  { %v840_v56 = vmul.f32 %v2038_v59, %v2038_v59  ;;  %v881_v26 = vsel %vm715_vm0, %v838_v58, 0.0  ;;  %v2059_v10 = vsub.f32 %v1851_v21, %v1963_v30  ;;  %v841_v34 = vmul.f32 %v2045_v1, %v2045_v1 }
 0x1ad   :  { %v872_v47 = vadd.f32 %v871_v45, %v870_v20  ;;  %v883_v31 = vsel %vm715_vm0, %v839_v17, 0.0  ;;  %v2066_v15 = vsub.f32 %v1853_v27, %v1963_v30  ;;  %v842_v5 = vmul.f32 %v2052_v6, %v2052_v6 }
 0x1ae   :  { %v885_v39 = vsel %vm715_vm0, %v840_v56, 0.0  ;;  %v2073_v21 = vsub.f32 %v1855_v33, %v1963_v30  ;;  %v843_v20 = vmul.f32 %v2059_v10, %v2059_v10  ;;  %v887_v22 = vsel %vm715_vm0, %v841_v34, 0.0 }
 0x1af   :  { %v874_v61 = vadd.f32 %v873_v50, %v872_v47  ;;  %v2080_v27 = vsub.f32 %v1857_v40, %v1963_v30  ;;  %v844_v47 = vmul.f32 %v2066_v15, %v2066_v15  ;;  %v889_v38 = vsel %vm715_vm0, %v842_v5, 0.0 }
 0x1b0   :  { %v2087_v33 = vsub.f32 %v1859_v46, %v1963_v30  ;;  %v891_v52 = vsel %vm715_vm0, %v843_v20, 0.0  ;;  %v2094_v40 = vsub.f32 %v1898_v14, %v1963_v30  ;;  %v2101_v46 = vsub.f32 %v1902_v25, %v1963_v30 }
 0x1b1   :  { %v876_v7 = vadd.f32 %v875_v53, %v874_v61  ;;  %v845_v61 = vmul.f32 %v2073_v21, %v2073_v21  ;;  %v893_v58 = vsel %vm715_vm0, %v844_v47, 0.0  ;;  %v2108_v14 = vsub.f32 %v1906_v36, %v1963_v30 }
 0x1b2   :  { %v2115_v25 = vsub.f32 %v1910_v43, %v1963_v30  ;;  %v2122_v36 = vsub.f32 %v1914_v48, %v1963_v30  ;;  %v2129_v43 = vsub.f32 %v1918_v57, %v1963_v30  ;;  %v2136_v48 = vsub.f32 %v1922_v63, %v1963_v30 }
 0x1b3   :  { %v878_v16 = vadd.f32 %v877_v62, %v876_v7  ;;  %v846_v7 = vmul.f32 %v2080_v27, %v2080_v27  ;;  %v895_v17 = vsel %vm715_vm0, %v845_v61, 0.0  ;;  %v2143_v57 = vsub.f32 %v1926_v8, %v1963_v30 }
 0x1b4   :  { %v2150_v63 = vsub.f32 %v1930_v12, %v1963_v30  ;;  %v2157_v8 = vsub.f32 %v1934_v23, %v1963_v30  ;;  %v2164_v12 = vsub.f32 %v1938_v32, %v1963_v30  ;;  %v2171_v23 = vsub.f32 %v1942_v51, %v1963_v30 }
 0x1b5   :  { %v880_v28 = vadd.f32 %v879_v3, %v878_v16  ;;  %v847_v16 = vmul.f32 %v2087_v33, %v2087_v33  ;;  %v897_v56 = vsel %vm715_vm0, %v846_v7, 0.0  ;;  %v2178_v32 = vsub.f32 %v1946_v60, %v1963_v30 }
 0x1b6   :  { %v2185_v51 = vsub.f32 %v1950_v0, %v1963_v30  ;;  %v2192_v60 = vsub.f32 %v1954_v2, %v1963_v30  ;;  %v863_v2 = vmul.f32 %v1966_v9, %v1966_v9 }
 0x1b7   :  { %v882_v24 = vadd.f32 %v881_v26, %v880_v28  ;;  %v848_v28 = vmul.f32 %v2094_v40, %v2094_v40  ;;  %v899_v34 = vsel %vm715_vm0, %v847_v16, 0.0 }
 0x1b8   :  { %v861_v0 = vmul.f32 %v2185_v51, %v2185_v51 }
 0x1b9   :  { %v884_v4 = vadd.f32 %v883_v31, %v882_v24  ;;  %v849_v24 = vmul.f32 %v2101_v46, %v2101_v46  ;;  %v901_v5 = vsel %vm715_vm0, %v848_v28, 0.0 }
 0x1ba   :  { %v927_v30 = vsel %vm715_vm0, %v861_v0, 0.0 }
 0x1bb   :  { %v886_v37 = vadd.f32 %v885_v39, %v884_v4  ;;  %v850_v4 = vmul.f32 %v2108_v14, %v2108_v14  ;;  %v903_v20 = vsel %vm715_vm0, %v849_v24, 0.0 }
 0x1bd   :  { %v888_v45 = vadd.f32 %v887_v22, %v886_v37  ;;  %v851_v37 = vmul.f32 %v2115_v25, %v2115_v25  ;;  %v905_v47 = vsel %vm715_vm0, %v850_v4, 0.0 }
 0x1bf   :  { %v890_v50 = vadd.f32 %v889_v38, %v888_v45  ;;  %v852_v45 = vmul.f32 %v2122_v36, %v2122_v36  ;;  %v907_v61 = vsel %vm715_vm0, %v851_v37, 0.0 }
 0x1c1   :  { %v892_v53 = vadd.f32 %v891_v52, %v890_v50  ;;  %v853_v50 = vmul.f32 %v2129_v43, %v2129_v43  ;;  %v909_v7 = vsel %vm715_vm0, %v852_v45, 0.0 }
 0x1c3   :  { %v894_v62 = vadd.f32 %v893_v58, %v892_v53  ;;  %v854_v53 = vmul.f32 %v2136_v48, %v2136_v48  ;;  %v911_v16 = vsel %vm715_vm0, %v853_v50, 0.0 }
 0x1c5   :  { %v896_v3 = vadd.f32 %v895_v17, %v894_v62  ;;  %v855_v62 = vmul.f32 %v2143_v57, %v2143_v57  ;;  %v913_v28 = vsel %vm715_vm0, %v854_v53, 0.0 }
 0x1c7   :  { %v898_v26 = vadd.f32 %v897_v56, %v896_v3  ;;  %v856_v3 = vmul.f32 %v2150_v63, %v2150_v63  ;;  %v915_v24 = vsel %vm715_vm0, %v855_v62, 0.0 }
 0x1c9   :  { %v900_v31 = vadd.f32 %v899_v34, %v898_v26  ;;  %v857_v26 = vmul.f32 %v2157_v8, %v2157_v8  ;;  %v917_v4 = vsel %vm715_vm0, %v856_v3, 0.0  ;;  %v931_v3 = vsel %vm715_vm0, %v863_v2, 0.0 }
 0x1cb   :  { %v902_v39 = vadd.f32 %v901_v5, %v900_v31  ;;  %v858_v31 = vmul.f32 %v2164_v12, %v2164_v12  ;;  %v919_v37 = vsel %vm715_vm0, %v857_v26, 0.0 }
 0x1cd   :  { %v904_v22 = vadd.f32 %v903_v20, %v902_v39  ;;  %v859_v39 = vmul.f32 %v2171_v23, %v2171_v23  ;;  %v921_v45 = vsel %vm715_vm0, %v858_v31, 0.0 }
 0x1cf   :  { %v906_v38 = vadd.f32 %v905_v47, %v904_v22  ;;  %v860_v22 = vmul.f32 %v2178_v32, %v2178_v32 }
 0x1d1   :  { %v908_v52 = vadd.f32 %v907_v61, %v906_v38  ;;  %v923_v38 = vsel %vm715_vm0, %v859_v39, 0.0  ;;  %v862_v61 = vmul.f32 %v2192_v60, %v2192_v60 }
 0x1d3   :  { %v910_v58 = vadd.f32 %v909_v7, %v908_v52  ;;  %v925_v52 = vsel %vm715_vm0, %v860_v22, 0.0  ;;  %v929_v62 = vsel %vm715_vm0, %v862_v61, 0.0 }
 0x1d5   :  { %v912_v17 = vadd.f32 %v911_v16, %v910_v58  ;;  %v864_v58 = vmul.f32 %v1969_v41, %v1969_v41 }
 0x1d7   :  { %v914_v56 = vadd.f32 %v913_v28, %v912_v17  ;;  %v865_v17 = vmul.f32 %v1972_v42, %v1972_v42 }
 0x1d9   :  { %v916_v34 = vadd.f32 %v915_v24, %v914_v56  ;;  %v933_v56 = vsel %vm715_vm0, %v864_v58, 0.0  ;;  %v935_v24 = vsel %vm715_vm0, %v865_v17, 0.0 }
 0x1db   :  { %v918_v5 = vadd.f32 %v917_v4, %v916_v34 }
 0x1dd   :  { %v920_v20 = vadd.f32 %v919_v37, %v918_v5 }
 0x1df   :  { %v922_v47 = vadd.f32 %v921_v45, %v920_v20 }
 0x1e1   :  { %v924_v50 = vadd.f32 %v923_v38, %v922_v47  ;;  %v948_v47 = vlaneseq  ;;  %v946_v38 = vld [vmem:[%s2462_s2] sm:$0x1] }
 0x1e3   :  { %v926_v53 = vadd.f32 %v925_v52, %v924_v50  ;;  %v949_v0 = vshrl.u32 %v948_v47, 7 }
 0x1e5   :  { %v928_v7 = vadd.f32 %v927_v30, %v926_v53  ;;  %v950_v50 = vsub.s32 0, %v949_v0 }
 0x1e7   :  { %v930_v16 = vadd.f32 %v929_v62, %v928_v7 }
 0x1e9   :  { %v932_v28 = vadd.f32 %v931_v3, %v930_v16 }
 0x1eb   :  { %v934_v26 = vadd.f32 %v933_v56, %v932_v28 }
 0x1ed   :  { %v936_v34 = vadd.f32 %v935_v24, %v934_v26 }
 0x1ef   :  { %v937_v31 = vrot.slane %v936_v34, 4 }
 0x1f1   :  { %v938_v4 = vadd.f32 %v937_v31, %v936_v34 }
 0x1f3   :  { %v939_v5 = vrot.slane %v938_v4, 2 }
 0x1f5   :  { %v940_v39 = vadd.f32 %v939_v5, %v938_v4 }
 0x1f7   :  { %v941_v37 = vrot.slane %v940_v39, 1 }
 0x1f9   :  { %v942_v20 = vadd.f32 %v941_v37, %v940_v39 }
 0x1fb   :  { %v943_v22 = vmul.f32 0.0034722222, %v942_v20 }
 0x1fd   :  { %v944_v45 = vadd.f32 1e-05, %v943_v22 }
 0x1ff   :  { %1109 = vrsqrt.f32 %v944_v45 }
 0x20c   :  { %v1110_v61 = vpop.eup %1109 }
 0x20d   :  { %v947_v52 = vmul.f32 %v1110_v61, %v946_v38 }
 0x20f   :  { %v951_v53 = vrot.slane %v947_v52, %v950_v50 }
 0x211   :  { %v952_v2 = vmul.f32 %v951_v53, %v1976_v13  ;;  %v953_v30 = vmul.f32 %v951_v53, %v1980_v18  ;;  %v954_v7 = vmul.f32 %v951_v53, %v1984_v55  ;;  %v955_v58 = vmul.f32 %v951_v53, %v1988_v11 }
 0x212   :  { %v956_v62 = vmul.f32 %v951_v53, %v1996_v19  ;;  %v957_v16 = vmul.f32 %v951_v53, %v2002_v29  ;;  %v958_v17 = vmul.f32 %v951_v53, %v2010_v35  ;;  %v959_v3 = vmul.f32 %v951_v53, %v2017_v44 }
 0x213   :  { %v960_v28 = vmul.f32 %v951_v53, %v2024_v49  ;;  %v961_v56 = vmul.f32 %v951_v53, %v2031_v54  ;;  %v962_v13 = vmul.f32 %v951_v53, %v2038_v59  ;;  %v963_v18 = vmul.f32 %v951_v53, %v2045_v1 }
 0x214   :  { %v964_v55 = vmul.f32 %v951_v53, %v2052_v6  ;;  %v965_v11 = vmul.f32 %v951_v53, %v2059_v10  ;;  %v966_v19 = vmul.f32 %v951_v53, %v2066_v15  ;;  %v967_v29 = vmul.f32 %v951_v53, %v2073_v21 }
 0x215   :  { %v968_v35 = vmul.f32 %v951_v53, %v2080_v27  ;;  %v969_v44 = vmul.f32 %v951_v53, %v2087_v33  ;;  %v970_v49 = vmul.f32 %v951_v53, %v2094_v40  ;;  %v971_v54 = vmul.f32 %v951_v53, %v2101_v46  ;;  %v1107_v40 = vld [vmem:[%s2463_s3] ss:$0 sm:$0xff] }
 0x216   :  { %v972_v59 = vmul.f32 %v951_v53, %v2108_v14  ;;  %v973_v1 = vmul.f32 %v951_v53, %v2115_v25  ;;  %v974_v6 = vmul.f32 %v951_v53, %v2122_v36  ;;  %v975_v10 = vmul.f32 %v951_v53, %v2129_v43 }
 0x217   :  { %v976_v15 = vmul.f32 %v951_v53, %v2136_v48  ;;  %v977_v21 = vmul.f32 %v951_v53, %v2143_v57  ;;  %v978_v27 = vmul.f32 %v951_v53, %v2150_v63  ;;  %v979_v33 = vmul.f32 %v951_v53, %v2157_v8 }
 0x218   :  { %v980_v46 = vmul.f32 %v951_v53, %v2164_v12  ;;  %v981_v14 = vmul.f32 %v951_v53, %v2171_v23  ;;  %v982_v25 = vmul.f32 %v951_v53, %v2178_v32  ;;  %v983_v36 = vmul.f32 %v951_v53, %v2185_v51 }
 0x219   :  { %v984_v43 = vmul.f32 %v951_v53, %v2192_v60  ;;  %v985_v48 = vmul.f32 %v951_v53, %v1966_v9  ;;  %v986_v57 = vmul.f32 %v951_v53, %v1969_v41  ;;  %v987_v63 = vmul.f32 %v951_v53, %v1972_v42 }
 0x21a   :  { %v995_v8 = vadd.f32 %v1107_v40, %v952_v2  ;;  %v996_v26 = vadd.f32 %v1107_v40, %v953_v30  ;;  %v997_v24 = vadd.f32 %v1107_v40, %v954_v7  ;;  %v998_v34 = vadd.f32 %v1107_v40, %v955_v58 }
 0x21b   :  { %v999_v31 = vadd.f32 %v1107_v40, %v956_v62  ;;  %v1000_v12 = vadd.f32 %v1107_v40, %v957_v16  ;;  %v1001_v4 = vadd.f32 %v1107_v40, %v958_v17  ;;  %v1002_v23 = vadd.f32 %v1107_v40, %v959_v3 }
 0x21c   :  { %v1003_v5 = vadd.f32 %v1107_v40, %v960_v28  ;;  %v1004_v32 = vadd.f32 %v1107_v40, %v961_v56  ;;  %v1005_v39 = vadd.f32 %v1107_v40, %v962_v13  ;;  %v1006_v51 = vadd.f32 %v1107_v40, %v963_v18 }
 0x21d   :  { %v1007_v37 = vadd.f32 %v1107_v40, %v964_v55  ;;  %v1008_v60 = vadd.f32 %v1107_v40, %v965_v11  ;;  %v1009_v20 = vadd.f32 %v1107_v40, %v966_v19  ;;  %v1010_v9 = vadd.f32 %v1107_v40, %v967_v29 }
 0x21e   :  { %v2256_v22 = vadd.f32 %v1107_v40, %v968_v35  ;;  %v2258_v41 = vadd.f32 %v1107_v40, %v969_v44  ;;  %v2260_v42 = vadd.f32 %v1107_v40, %v970_v49  ;;  %v2262_v45 = vadd.f32 %v1107_v40, %v971_v54 }
 0x21f   :  { %v2264_v47 = vadd.f32 %v1107_v40, %v972_v59  ;;  %v2266_v0 = vadd.f32 %v1107_v40, %v973_v1  ;;  %v2268_v38 = vadd.f32 %v1107_v40, %v974_v6  ;;  %v2270_v50 = vadd.f32 %v1107_v40, %v975_v10 }
 0x220   :  { %v2272_v61 = vadd.f32 %v1107_v40, %v976_v15  ;;  %v2274_v52 = vadd.f32 %v1107_v40, %v977_v21  ;;  %v2276_v53 = vadd.f32 %v1107_v40, %v978_v27  ;;  %v2278_v2 = vadd.f32 %v1107_v40, %v979_v33 }
 0x221   :  { %v2280_v30 = vadd.f32 %v1107_v40, %v980_v46  ;;  %v2282_v7 = vadd.f32 %v1107_v40, %v981_v14  ;;  %v2284_v58 = vadd.f32 %v1107_v40, %v982_v25  ;;  %v2286_v62 = vadd.f32 %v1107_v40, %v983_v36 }
 0x222   :  { %v2288_v16 = vadd.f32 %v1107_v40, %v984_v43  ;;  %v2290_v17 = vadd.f32 %v1107_v40, %v985_v48  ;;  %v2292_v3 = vadd.f32 %v1107_v40, %v986_v57  ;;  %v2294_v28 = vadd.f32 %v1107_v40, %v987_v63 }
 0x223   :  { %v1031_v56 = vmax.f32 %v995_v8, 0.0  ;;  %v1032_v13 = vmax.f32 %v996_v26, 0.0  ;;  %v1033_v18 = vmax.f32 %v997_v24, 0.0  ;;  %v1034_v55 = vmax.f32 %v998_v34, 0.0 }
 0x224   :  { %v1035_v11 = vmax.f32 %v999_v31, 0.0  ;;  %v1036_v19 = vmax.f32 %v1000_v12, 0.0  ;;  %v1037_v29 = vmax.f32 %v1001_v4, 0.0  ;;  %v1038_v35 = vmax.f32 %v1002_v23, 0.0 }
 0x225   :  { %v1039_v44 = vmax.f32 %v1003_v5, 0.0  ;;  %v1040_v49 = vmax.f32 %v1004_v32, 0.0  ;;  %v1041_v54 = vmax.f32 %v1005_v39, 0.0  ;;  %v1042_v59 = vmax.f32 %v1006_v51, 0.0  ;;  %1067 = vst.msk [vmem:[%s2464_s4] sm:$0xff] %vm715_vm0, %v1031_v56  ;;  %1068 = vst.msk [vmem:[%s2464_s4 + $0x8] sm:$0xff] %vm715_vm0, %v1032_v13 }
 0x226   :  { %1069 = vst.msk [vmem:[%s2464_s4 + $0x10] sm:$0xff] %vm715_vm0, %v1033_v18  ;;  %1070 = vst.msk [vmem:[%s2464_s4 + $0x18] sm:$0xff] %vm715_vm0, %v1034_v55  ;;  %v1043_v1 = vmax.f32 %v1007_v37, 0.0  ;;  %v1044_v6 = vmax.f32 %v1008_v60, 0.0  ;;  %v1045_v10 = vmax.f32 %v1009_v20, 0.0  ;;  %v1046_v15 = vmax.f32 %v1010_v9, 0.0 }
 0x227   :  { %1071 = vst.msk [vmem:[%s2464_s4 + $0x20] sm:$0xff] %vm715_vm0, %v1035_v11  ;;  %1072 = vst.msk [vmem:[%s2464_s4 + $0x28] sm:$0xff] %vm715_vm0, %v1036_v19  ;;  %v1047_v21 = vmax.f32 %v2256_v22, 0.0  ;;  %v1048_v27 = vmax.f32 %v2258_v41, 0.0  ;;  %v1049_v33 = vmax.f32 %v2260_v42, 0.0  ;;  %v1050_v40 = vmax.f32 %v2262_v45, 0.0 }
 0x228   :  { %1073 = vst.msk [vmem:[%s2464_s4 + $0x30] sm:$0xff] %vm715_vm0, %v1037_v29  ;;  %1074 = vst.msk [vmem:[%s2464_s4 + $0x38] sm:$0xff] %vm715_vm0, %v1038_v35  ;;  %v1051_v46 = vmax.f32 %v2264_v47, 0.0  ;;  %v1052_v14 = vmax.f32 %v2266_v0, 0.0  ;;  %v1053_v25 = vmax.f32 %v2268_v38, 0.0  ;;  %v1054_v36 = vmax.f32 %v2270_v50, 0.0 }
 0x229   :  { %1075 = vst.msk [vmem:[%s2464_s4 + $0x40] sm:$0xff] %vm715_vm0, %v1039_v44  ;;  %1076 = vst.msk [vmem:[%s2464_s4 + $0x48] sm:$0xff] %vm715_vm0, %v1040_v49  ;;  %v1055_v43 = vmax.f32 %v2272_v61, 0.0  ;;  %v1056_v48 = vmax.f32 %v2274_v52, 0.0  ;;  %v1057_v57 = vmax.f32 %v2276_v53, 0.0  ;;  %v1058_v63 = vmax.f32 %v2278_v2, 0.0 }
 0x22a   :  { %1077 = vst.msk [vmem:[%s2464_s4 + $0x50] sm:$0xff] %vm715_vm0, %v1041_v54  ;;  %1078 = vst.msk [vmem:[%s2464_s4 + $0x58] sm:$0xff] %vm715_vm0, %v1042_v59  ;;  %v1059_v8 = vmax.f32 %v2280_v30, 0.0  ;;  %v1060_v26 = vmax.f32 %v2282_v7, 0.0  ;;  %v1061_v24 = vmax.f32 %v2284_v58, 0.0  ;;  %v1062_v34 = vmax.f32 %v2286_v62, 0.0 }
 0x22b   :  { %1079 = vst.msk [vmem:[%s2464_s4 + $0x60] sm:$0xff] %vm715_vm0, %v1043_v1  ;;  %1080 = vst.msk [vmem:[%s2464_s4 + $0x68] sm:$0xff] %vm715_vm0, %v1044_v6  ;;  %v1063_v31 = vmax.f32 %v2288_v16, 0.0  ;;  %v1064_v12 = vmax.f32 %v2290_v17, 0.0  ;;  %v1065_v4 = vmax.f32 %v2292_v3, 0.0  ;;  %v1066_v23 = vmax.f32 %v2294_v28, 0.0 }
 0x22c   :  { %1081 = vst.msk [vmem:[%s2464_s4 + $0x70] sm:$0xff] %vm715_vm0, %v1045_v10  ;;  %1082 = vst.msk [vmem:[%s2464_s4 + $0x78] sm:$0xff] %vm715_vm0, %v1046_v15 }
 0x22d   :  { %1083 = vst.msk [vmem:[%s2464_s4 + $0x80] sm:$0xff] %vm715_vm0, %v1047_v21  ;;  %1084 = vst.msk [vmem:[%s2464_s4 + $0x88] sm:$0xff] %vm715_vm0, %v1048_v27 }
 0x22e   :  { %1085 = vst.msk [vmem:[%s2464_s4 + $0x90] sm:$0xff] %vm715_vm0, %v1049_v33  ;;  %1086 = vst.msk [vmem:[%s2464_s4 + $0x98] sm:$0xff] %vm715_vm0, %v1050_v40 }
 0x22f   :  { %1087 = vst.msk [vmem:[%s2464_s4 + $0xa0] sm:$0xff] %vm715_vm0, %v1051_v46  ;;  %1088 = vst.msk [vmem:[%s2464_s4 + $0xa8] sm:$0xff] %vm715_vm0, %v1052_v14 }
 0x230   :  { %1089 = vst.msk [vmem:[%s2464_s4 + $0xb0] sm:$0xff] %vm715_vm0, %v1053_v25  ;;  %1090 = vst.msk [vmem:[%s2464_s4 + $0xb8] sm:$0xff] %vm715_vm0, %v1054_v36 }
 0x231   :  { %1091 = vst.msk [vmem:[%s2464_s4 + $0xc0] sm:$0xff] %vm715_vm0, %v1055_v43  ;;  %1092 = vst.msk [vmem:[%s2464_s4 + $0xc8] sm:$0xff] %vm715_vm0, %v1056_v48 }
 0x232   :  { %1093 = vst.msk [vmem:[%s2464_s4 + $0xd0] sm:$0xff] %vm715_vm0, %v1057_v57  ;;  %1094 = vst.msk [vmem:[%s2464_s4 + $0xd8] sm:$0xff] %vm715_vm0, %v1058_v63 }
 0x233   :  { %1095 = vst.msk [vmem:[%s2464_s4 + $0xe0] sm:$0xff] %vm715_vm0, %v1059_v8  ;;  %1096 = vst.msk [vmem:[%s2464_s4 + $0xe8] sm:$0xff] %vm715_vm0, %v1060_v26 }
 0x234   :  { %1097 = vst.msk [vmem:[%s2464_s4 + $0xf0] sm:$0xff] %vm715_vm0, %v1061_v24  ;;  %1098 = vst.msk [vmem:[%s2464_s4 + $0xf8] sm:$0xff] %vm715_vm0, %v1062_v34 }
 0x235   :  { %1099 = vst.msk [vmem:[%s2464_s4 + $0x100] sm:$0xff] %vm715_vm0, %v1063_v31  ;;  %1100 = vst.msk [vmem:[%s2464_s4 + $0x108] sm:$0xff] %vm715_vm0, %v1064_v12 }
 0x236   :  { %1101 = vst.msk [vmem:[%s2464_s4 + $0x110] sm:$0xff] %vm715_vm0, %v1065_v4  ;;  %1102 = vst.msk [vmem:[%s2464_s4 + $0x118] sm:$0xff] %vm715_vm0, %v1066_v23 }

// kernel: decoder_forward.7
= control target key start
LH: loop header
LB: loop body
LE: loop exit
PB: predicated region body
PF: predicated region fallthrough
CT: control target
= control target key end

     0   :  { %v4823_v0 = vmov 0.0   ;;  %vm1125_vm0 = vcmask 64512   ;;  %s8490_s1 = inlined_call_operand.vmem [shape: f32[256,8], index: 1, kind: input, shape index: {}]   ;;  %s8491_s0 = inlined_call_operand.vmem [shape: f32[1152,256], index: 0, kind: input, shape index: {}]   ;;  %s8492_s4 = inlined_call_operand.vmem [shape: f32[8,128], index: 4, kind: input, shape index: {}]   ;;  %s8493_s2 = inlined_call_operand.vmem [shape: f32[1,8], index: 2, kind: input, shape index: {}]   ;;  %s8494_s3 = inlined_call_operand.vmem [shape: f32[1,8], index: 3, kind: input, shape index: {}]   ;;  %s8495_s5 = inlined_call_operand.vmem [shape: f32[1152,128], index: 5, kind: output, shape index: {}]  }
   0x1   :  { %340 = vmatprep.subr.mxu0 %v4823_v0  ;;  %v323_v1 = vld [vmem:[%s8490_s1 + $0x78] sm:$0xff]  ;;  %v322_v2 = vld [vmem:[%s8490_s1 + $0x70] sm:$0xff]  ;;  %4467 = vmatprep.subr.mxu1 %v4823_v0  ;;  %v321_v3 = vld [vmem:[%s8490_s1 + $0x68] sm:$0xff] }
   0x2   :  { %341 = vmatpush1.msra.mxu0 %v323_v1  ;;  %4499 = vmatpush1.msra.mxu1 %v323_v1  ;;  %v320_v4 = vld [vmem:[%s8490_s1 + $0x60] sm:$0xff]  ;;  %v319_v5 = vld [vmem:[%s8490_s1 + $0x58] sm:$0xff]  ;;  %v318_v6 = vld [vmem:[%s8490_s1 + $0x50] sm:$0xff] }
   0x3   :  { %342 = vmatprep.subr.mxu0 %v4823_v0  ;;  %4468 = vmatprep.subr.mxu1 %v4823_v0  ;;  %v317_v7 = vld [vmem:[%s8490_s1 + $0x48] sm:$0xff]  ;;  %v316_v9 = vld [vmem:[%s8490_s1 + $0x40] sm:$0xff]  ;;  %v315_v10 = vld [vmem:[%s8490_s1 + $0x38] sm:$0xff] }
   0x4   :  { %343 = vmatpush1.msra.mxu0 %v322_v2  ;;  %4500 = vmatpush1.msra.mxu1 %v322_v2  ;;  %v21_v8 = vld [vmem:[%s8491_s0 + $0x8] sm:$0xff]  ;;  %v314_v11 = vld [vmem:[%s8490_s1 + $0x30] sm:$0xff]  ;;  %v312_v13 = vld [vmem:[%s8490_s1 + $0x20] sm:$0xff] }
   0x5   :  { %344 = vmatprep.subr.mxu0 %v4823_v0  ;;  %4469 = vmatprep.subr.mxu1 %v4823_v0  ;;  %v313_v12 = vld [vmem:[%s8490_s1 + $0x28] sm:$0xff]  ;;  %v311_v14 = vld [vmem:[%s8490_s1 + $0x18] sm:$0xff]  ;;  %v310_v15 = vld [vmem:[%s8490_s1 + $0x10] sm:$0xff] }
   0x6   :  { %345 = vmatpush1.msra.mxu0 %v321_v3  ;;  %4501 = vmatpush1.msra.mxu1 %v321_v3  ;;  %v309_v16 = vld [vmem:[%s8490_s1 + $0x8] sm:$0xff]  ;;  %v308_v17 = vld [vmem:[%s8490_s1] sm:$0xff]  ;;  %v339_v18 = vld [vmem:[%s8490_s1 + $0xf8] sm:$0xff] }
   0x7   :  { %346 = vmatprep.subr.mxu0 %v4823_v0  ;;  %4470 = vmatprep.subr.mxu1 %v4823_v0  ;;  %v338_v19 = vld [vmem:[%s8490_s1 + $0xf0] sm:$0xff]  ;;  %v337_v20 = vld [vmem:[%s8490_s1 + $0xe8] sm:$0xff]  ;;  %v336_v21 = vld [vmem:[%s8490_s1 + $0xe0] sm:$0xff] }
   0x8   :  { %347 = vmatpush1.msra.mxu0 %v320_v4  ;;  %4502 = vmatpush1.msra.mxu1 %v320_v4  ;;  %v335_v22 = vld [vmem:[%s8490_s1 + $0xd8] sm:$0xff]  ;;  %v334_v23 = vld [vmem:[%s8490_s1 + $0xd0] sm:$0xff]  ;;  %v333_v24 = vld [vmem:[%s8490_s1 + $0xc8] sm:$0xff] }
   0x9   :  { %348 = vmatprep.subr.mxu0 %v4823_v0  ;;  %4471 = vmatprep.subr.mxu1 %v4823_v0  ;;  %v332_v25 = vld [vmem:[%s8490_s1 + $0xc0] sm:$0xff]  ;;  %v331_v26 = vld [vmem:[%s8490_s1 + $0xb8] sm:$0xff]  ;;  %v330_v27 = vld [vmem:[%s8490_s1 + $0xb0] sm:$0xff] }
   0xa   :  { %349 = vmatpush1.msra.mxu0 %v319_v5  ;;  %4503 = vmatpush1.msra.mxu1 %v319_v5  ;;  %v329_v28 = vld [vmem:[%s8490_s1 + $0xa8] sm:$0xff]  ;;  %v328_v29 = vld [vmem:[%s8490_s1 + $0xa0] sm:$0xff]  ;;  %v327_v30 = vld [vmem:[%s8490_s1 + $0x98] sm:$0xff] }
   0xb   :  { %350 = vmatprep.subr.mxu0 %v4823_v0  ;;  %4472 = vmatprep.subr.mxu1 %v4823_v0  ;;  %v326_v31 = vld [vmem:[%s8490_s1 + $0x90] sm:$0xff]  ;;  %v325_v32 = vld [vmem:[%s8490_s1 + $0x88] sm:$0xff]  ;;  %v324_v33 = vld [vmem:[%s8490_s1 + $0x80] sm:$0xff] }
   0xc   :  { %351 = vmatpush1.msra.mxu0 %v318_v6  ;;  %404 = vmatprep.mubr.f32.mxu0 %v21_v8  ;;  %v20_v34 = vld [vmem:[%s8491_s0] sm:$0xff]  ;;  %v23_v35 = vld [vmem:[%s8491_s0 + $0x18] sm:$0xff]  ;;  %v22_v36 = vld [vmem:[%s8491_s0 + $0x10] sm:$0xff] }
   0xd   :  { %352 = vmatprep.subr.mxu0 %v4823_v0  ;;  %4504 = vmatpush1.msra.mxu1 %v318_v6  ;;  %v25_v37 = vld [vmem:[%s8491_s0 + $0x28] sm:$0xff]  ;;  %v24_v38 = vld [vmem:[%s8491_s0 + $0x20] sm:$0xff]  ;;  %v27_v39 = vld [vmem:[%s8491_s0 + $0x38] sm:$0xff] }
   0xe   :  { %353 = vmatpush1.msra.mxu0 %v317_v7  ;;  %4473 = vmatprep.subr.mxu1 %v4823_v0  ;;  %v26_v40 = vld [vmem:[%s8491_s0 + $0x30] sm:$0xff]  ;;  %v29_v41 = vld [vmem:[%s8491_s0 + $0x48] sm:$0xff]  ;;  %v28_v42 = vld [vmem:[%s8491_s0 + $0x40] sm:$0xff] }
   0xf   :  { %354 = vmatprep.subr.mxu0 %v4823_v0  ;;  %4505 = vmatpush1.msra.mxu1 %v317_v7  ;;  %v31_v43 = vld [vmem:[%s8491_s0 + $0x58] sm:$0xff]  ;;  %v30_v44 = vld [vmem:[%s8491_s0 + $0x50] sm:$0xff]  ;;  %v33_v45 = vld [vmem:[%s8491_s0 + $0x68] sm:$0xff] }
  0x10   :  { %355 = vmatpush1.msra.mxu0 %v316_v9  ;;  %4474 = vmatprep.subr.mxu1 %v4823_v0  ;;  %v32_v46 = vld [vmem:[%s8491_s0 + $0x60] sm:$0xff]  ;;  %v35_v47 = vld [vmem:[%s8491_s0 + $0x78] sm:$0xff]  ;;  %v34_v48 = vld [vmem:[%s8491_s0 + $0x70] sm:$0xff] }
  0x11   :  { %356 = vmatprep.subr.mxu0 %v4823_v0  ;;  %4506 = vmatpush1.msra.mxu1 %v316_v9  ;;  %v37_v49 = vld [vmem:[%s8491_s0 + $0x88] sm:$0xff]  ;;  %v36_v50 = vld [vmem:[%s8491_s0 + $0x80] sm:$0xff]  ;;  %v39_v51 = vld [vmem:[%s8491_s0 + $0x98] sm:$0xff] }
  0x12   :  { %357 = vmatpush1.msra.mxu0 %v315_v10  ;;  %4475 = vmatprep.subr.mxu1 %v4823_v0  ;;  %v38_v52 = vld [vmem:[%s8491_s0 + $0x90] sm:$0xff]  ;;  %v41_v53 = vld [vmem:[%s8491_s0 + $0xa8] sm:$0xff]  ;;  %v40_v54 = vld [vmem:[%s8491_s0 + $0xa0] sm:$0xff] }
  0x13   :  { %358 = vmatprep.subr.mxu0 %v4823_v0  ;;  %4507 = vmatpush1.msra.mxu1 %v315_v10  ;;  %v43_v55 = vld [vmem:[%s8491_s0 + $0xb8] sm:$0xff]  ;;  %v42_v56 = vld [vmem:[%s8491_s0 + $0xb0] sm:$0xff]  ;;  %v45_v57 = vld [vmem:[%s8491_s0 + $0xc8] sm:$0xff] }
  0x14   :  { %359 = vmatpush1.msra.mxu0 %v314_v11  ;;  %4476 = vmatprep.subr.mxu1 %v4823_v0  ;;  %v44_v58 = vld [vmem:[%s8491_s0 + $0xc0] sm:$0xff]  ;;  %v47_v59 = vld [vmem:[%s8491_s0 + $0xd8] sm:$0xff]  ;;  %v46_v60 = vld [vmem:[%s8491_s0 + $0xd0] sm:$0xff] }
  0x15   :  { %360 = vmatprep.subr.mxu0 %v4823_v0  ;;  %4508 = vmatpush1.msra.mxu1 %v314_v11  ;;  %v49_v61 = vld [vmem:[%s8491_s0 + $0xe8] sm:$0xff]  ;;  %v48_v62 = vld [vmem:[%s8491_s0 + $0xe0] sm:$0xff]  ;;  %v51_v63 = vld [vmem:[%s8491_s0 + $0xf8] sm:$0xff] }
  0x16   :  { %361 = vmatpush1.msra.mxu0 %v313_v12  ;;  %4477 = vmatprep.subr.mxu1 %v4823_v0  ;;  %v53_v1 = vld [vmem:[%s8491_s0 + $0x108] sm:$0xff]  ;;  %v52_v2 = vld [vmem:[%s8491_s0 + $0x100] sm:$0xff]  ;;  %v55_v3 = vld [vmem:[%s8491_s0 + $0x118] sm:$0xff] }
  0x17   :  { %362 = vmatprep.subr.mxu0 %v4823_v0  ;;  %4509 = vmatpush1.msra.mxu1 %v313_v12  ;;  %v54_v4 = vld [vmem:[%s8491_s0 + $0x110] sm:$0xff]  ;;  %v57_v5 = vld [vmem:[%s8491_s0 + $0x128] sm:$0xff]  ;;  %v56_v6 = vld [vmem:[%s8491_s0 + $0x120] sm:$0xff] }
  0x18   :  { %363 = vmatpush1.msra.mxu0 %v312_v13  ;;  %4478 = vmatprep.subr.mxu1 %v4823_v0  ;;  %v59_v7 = vld [vmem:[%s8491_s0 + $0x138] sm:$0xff]  ;;  %v58_v8 = vld [vmem:[%s8491_s0 + $0x130] sm:$0xff]  ;;  %v61_v9 = vld [vmem:[%s8491_s0 + $0x148] sm:$0xff] }
  0x19   :  { %364 = vmatprep.subr.mxu0 %v4823_v0  ;;  %4510 = vmatpush1.msra.mxu1 %v312_v13  ;;  %v60_v10 = vld [vmem:[%s8491_s0 + $0x140] sm:$0xff]  ;;  %v63_v11 = vld [vmem:[%s8491_s0 + $0x158] sm:$0xff]  ;;  %v62_v12 = vld [vmem:[%s8491_s0 + $0x150] sm:$0xff] }
  0x1a   :  { %365 = vmatpush1.msra.mxu0 %v311_v14  ;;  %4479 = vmatprep.subr.mxu1 %v4823_v0  ;;  %v65_v13 = vld [vmem:[%s8491_s0 + $0x168] sm:$0xff] }
  0x1b   :  { %366 = vmatprep.subr.mxu0 %v4823_v0  ;;  %4511 = vmatpush1.msra.mxu1 %v311_v14  ;;  %v64_v14 = vld [vmem:[%s8491_s0 + $0x160] sm:$0xff] }
  0x1c   :  { %367 = vmatpush1.msra.mxu0 %v310_v15  ;;  %4480 = vmatprep.subr.mxu1 %v4823_v0 }
  0x1d   :  { %368 = vmatprep.subr.mxu0 %v4823_v0  ;;  %4512 = vmatpush1.msra.mxu1 %v310_v15  ;;  %v67_v15 = vld [vmem:[%s8491_s0 + $0x178] sm:$0xff] }
  0x1e   :  { %369 = vmatpush1.msra.mxu0 %v309_v16  ;;  %4481 = vmatprep.subr.mxu1 %v4823_v0 }
  0x1f   :  { %370 = vmatprep.subr.mxu0 %v4823_v0  ;;  %4513 = vmatpush1.msra.mxu1 %v309_v16  ;;  %v66_v16 = vld [vmem:[%s8491_s0 + $0x170] sm:$0xff] }
  0x20   :  { %371 = vmatpush1.msra.mxu0 %v308_v17  ;;  %4482 = vmatprep.subr.mxu1 %v4823_v0 }
  0x21   :  { %372 = vmatprep.subr.mxu0 %v4823_v0  ;;  %4514 = vmatpush1.msra.mxu1 %v308_v17  ;;  %v69_v17 = vld [vmem:[%s8491_s0 + $0x188] sm:$0xff] }
  0x22   :  { %373 = vmatpush2.msra.mxu0 %v339_v18  ;;  %4483 = vmatprep.subr.mxu1 %v4823_v0 }
  0x23   :  { %374 = vmatprep.subr.mxu0 %v4823_v0  ;;  %4515 = vmatpush2.msra.mxu1 %v339_v18  ;;  %v68_v18 = vld [vmem:[%s8491_s0 + $0x180] sm:$0xff] }
  0x24   :  { %375 = vmatpush2.msra.mxu0 %v338_v19  ;;  %4484 = vmatprep.subr.mxu1 %v4823_v0 }
  0x25   :  { %376 = vmatprep.subr.mxu0 %v4823_v0  ;;  %4516 = vmatpush2.msra.mxu1 %v338_v19  ;;  %v71_v19 = vld [vmem:[%s8491_s0 + $0x198] sm:$0xff] }
  0x26   :  { %377 = vmatpush2.msra.mxu0 %v337_v20  ;;  %4485 = vmatprep.subr.mxu1 %v4823_v0 }
  0x27   :  { %378 = vmatprep.subr.mxu0 %v4823_v0  ;;  %4517 = vmatpush2.msra.mxu1 %v337_v20  ;;  %v70_v20 = vld [vmem:[%s8491_s0 + $0x190] sm:$0xff] }
  0x28   :  { %379 = vmatpush2.msra.mxu0 %v336_v21  ;;  %4486 = vmatprep.subr.mxu1 %v4823_v0 }
  0x29   :  { %380 = vmatprep.subr.mxu0 %v4823_v0  ;;  %4518 = vmatpush2.msra.mxu1 %v336_v21  ;;  %v73_v21 = vld [vmem:[%s8491_s0 + $0x1a8] sm:$0xff] }
  0x2a   :  { %381 = vmatpush2.msra.mxu0 %v335_v22  ;;  %4487 = vmatprep.subr.mxu1 %v4823_v0 }
  0x2b   :  { %382 = vmatprep.subr.mxu0 %v4823_v0  ;;  %4519 = vmatpush2.msra.mxu1 %v335_v22  ;;  %v72_v22 = vld [vmem:[%s8491_s0 + $0x1a0] sm:$0xff] }
  0x2c   :  { %383 = vmatpush2.msra.mxu0 %v334_v23  ;;  %4488 = vmatprep.subr.mxu1 %v4823_v0 }
  0x2d   :  { %384 = vmatprep.subr.mxu0 %v4823_v0  ;;  %4520 = vmatpush2.msra.mxu1 %v334_v23  ;;  %v75_v23 = vld [vmem:[%s8491_s0 + $0x1b8] sm:$0xff] }
  0x2e   :  { %385 = vmatpush2.msra.mxu0 %v333_v24  ;;  %4489 = vmatprep.subr.mxu1 %v4823_v0 }
  0x2f   :  { %386 = vmatprep.subr.mxu0 %v4823_v0  ;;  %4521 = vmatpush2.msra.mxu1 %v333_v24  ;;  %v74_v24 = vld [vmem:[%s8491_s0 + $0x1b0] sm:$0xff] }
  0x30   :  { %387 = vmatpush2.msra.mxu0 %v332_v25  ;;  %4490 = vmatprep.subr.mxu1 %v4823_v0 }
  0x31   :  { %388 = vmatprep.subr.mxu0 %v4823_v0  ;;  %4522 = vmatpush2.msra.mxu1 %v332_v25  ;;  %v77_v25 = vld [vmem:[%s8491_s0 + $0x1c8] sm:$0xff] }
  0x32   :  { %389 = vmatpush2.msra.mxu0 %v331_v26  ;;  %4491 = vmatprep.subr.mxu1 %v4823_v0 }
  0x33   :  { %390 = vmatprep.subr.mxu0 %v4823_v0  ;;  %4523 = vmatpush2.msra.mxu1 %v331_v26  ;;  %v76_v26 = vld [vmem:[%s8491_s0 + $0x1c0] sm:$0xff] }
  0x34   :  { %391 = vmatpush2.msra.mxu0 %v330_v27  ;;  %4492 = vmatprep.subr.mxu1 %v4823_v0 }
  0x35   :  { %392 = vmatprep.subr.mxu0 %v4823_v0  ;;  %4524 = vmatpush2.msra.mxu1 %v330_v27  ;;  %v79_v27 = vld [vmem:[%s8491_s0 + $0x1d8] sm:$0xff] }
  0x36   :  { %393 = vmatpush2.msra.mxu0 %v329_v28  ;;  %4493 = vmatprep.subr.mxu1 %v4823_v0 }
  0x37   :  { %394 = vmatprep.subr.mxu0 %v4823_v0  ;;  %4525 = vmatpush2.msra.mxu1 %v329_v28  ;;  %v78_v28 = vld [vmem:[%s8491_s0 + $0x1d0] sm:$0xff] }
  0x38   :  { %395 = vmatpush2.msra.mxu0 %v328_v29  ;;  %4494 = vmatprep.subr.mxu1 %v4823_v0 }
  0x39   :  { %396 = vmatprep.subr.mxu0 %v4823_v0  ;;  %4526 = vmatpush2.msra.mxu1 %v328_v29  ;;  %v81_v29 = vld [vmem:[%s8491_s0 + $0x1e8] sm:$0xff] }
  0x3a   :  { %397 = vmatpush2.msra.mxu0 %v327_v30  ;;  %4495 = vmatprep.subr.mxu1 %v4823_v0 }
  0x3b   :  { %398 = vmatprep.subr.mxu0 %v4823_v0  ;;  %4527 = vmatpush2.msra.mxu1 %v327_v30  ;;  %v80_v30 = vld [vmem:[%s8491_s0 + $0x1e0] sm:$0xff] }
  0x3c   :  { %399 = vmatpush2.msra.mxu0 %v326_v31  ;;  %4496 = vmatprep.subr.mxu1 %v4823_v0 }
  0x3d   :  { %400 = vmatprep.subr.mxu0 %v4823_v0  ;;  %4528 = vmatpush2.msra.mxu1 %v326_v31  ;;  %v83_v31 = vld [vmem:[%s8491_s0 + $0x1f8] sm:$0xff] }
  0x3e   :  { %401 = vmatpush2.msra.mxu0 %v325_v32  ;;  %4497 = vmatprep.subr.mxu1 %v4823_v0 }
  0x3f   :  { %402 = vmatprep.subr.mxu0 %v4823_v0  ;;  %4529 = vmatpush2.msra.mxu1 %v325_v32  ;;  %v82_v32 = vld [vmem:[%s8491_s0 + $0x1f0] sm:$0xff] }
  0x40   :  { %403 = vmatpush2.msra.mxu0 %v324_v33  ;;  %4498 = vmatprep.subr.mxu1 %v4823_v0  ;;  %v50_v0 = vld [vmem:[%s8491_s0 + $0xf0] sm:$0xff] }
  0x41   :  { %405 = vmatmul.mubr.f32.vlgmr.msra.gmra.mxu0 %v20_v34  ;;  %4530 = vmatpush2.msra.mxu1 %v324_v33  ;;  %v85_v33 = vld [vmem:[%s8491_s0 + $0x208] sm:$0xff]  ;;  %v84_v34 = vld [vmem:[%s8491_s0 + $0x200] sm:$0xff] }
  0x42   :  { %409 = vmatprep.mubr.f32.mxu0 %v23_v35  ;;  %v87_v35 = vld [vmem:[%s8491_s0 + $0x218] sm:$0xff] }
  0x45   :  { %410 = vmatmul.mubr.f32.gmra.mxu0 %v22_v36  ;;  %v86_v36 = vld [vmem:[%s8491_s0 + $0x210] sm:$0xff] }
  0x46   :  { %414 = vmatprep.mubr.f32.mxu0 %v25_v37  ;;  %v89_v37 = vld [vmem:[%s8491_s0 + $0x228] sm:$0xff] }
  0x49   :  { %415 = vmatmul.mubr.f32.gmra.mxu0 %v24_v38  ;;  %v88_v38 = vld [vmem:[%s8491_s0 + $0x220] sm:$0xff] }
  0x4a   :  { %419 = vmatprep.mubr.f32.mxu0 %v27_v39  ;;  %v91_v39 = vld [vmem:[%s8491_s0 + $0x238] sm:$0xff] }
  0x4d   :  { %420 = vmatmul.mubr.f32.gmra.mxu0 %v26_v40  ;;  %v90_v40 = vld [vmem:[%s8491_s0 + $0x230] sm:$0xff] }
  0x4e   :  { %424 = vmatprep.mubr.f32.mxu0 %v29_v41  ;;  %v93_v41 = vld [vmem:[%s8491_s0 + $0x248] sm:$0xff] }
  0x51   :  { %425 = vmatmul.mubr.f32.gmra.mxu0 %v28_v42  ;;  %v92_v42 = vld [vmem:[%s8491_s0 + $0x240] sm:$0xff] }
  0x52   :  { %429 = vmatprep.mubr.f32.mxu0 %v31_v43  ;;  %v95_v43 = vld [vmem:[%s8491_s0 + $0x258] sm:$0xff] }
  0x55   :  { %430 = vmatmul.mubr.f32.gmra.mxu0 %v30_v44  ;;  %v94_v44 = vld [vmem:[%s8491_s0 + $0x250] sm:$0xff] }
  0x56   :  { %434 = vmatprep.mubr.f32.mxu0 %v33_v45  ;;  %v97_v45 = vld [vmem:[%s8491_s0 + $0x268] sm:$0xff] }
  0x59   :  { %435 = vmatmul.mubr.f32.gmra.mxu0 %v32_v46  ;;  %v96_v46 = vld [vmem:[%s8491_s0 + $0x260] sm:$0xff] }
  0x5a   :  { %439 = vmatprep.mubr.f32.mxu0 %v35_v47  ;;  %v99_v47 = vld [vmem:[%s8491_s0 + $0x278] sm:$0xff] }
  0x5d   :  { %440 = vmatmul.mubr.f32.gmra.mxu0 %v34_v48  ;;  %v98_v48 = vld [vmem:[%s8491_s0 + $0x270] sm:$0xff] }
  0x5e   :  { %444 = vmatprep.mubr.f32.mxu0 %v37_v49  ;;  %v101_v49 = vld [vmem:[%s8491_s0 + $0x288] sm:$0xff] }
  0x61   :  { %445 = vmatmul.mubr.f32.gmra.mxu0 %v36_v50  ;;  %v100_v50 = vld [vmem:[%s8491_s0 + $0x280] sm:$0xff] }
  0x62   :  { %449 = vmatprep.mubr.f32.mxu0 %v39_v51  ;;  %v103_v51 = vld [vmem:[%s8491_s0 + $0x298] sm:$0xff] }
  0x65   :  { %450 = vmatmul.mubr.f32.gmra.mxu0 %v38_v52  ;;  %v102_v52 = vld [vmem:[%s8491_s0 + $0x290] sm:$0xff] }
  0x66   :  { %454 = vmatprep.mubr.f32.mxu0 %v41_v53  ;;  %v105_v53 = vld [vmem:[%s8491_s0 + $0x2a8] sm:$0xff] }
  0x69   :  { %455 = vmatmul.mubr.f32.gmra.mxu0 %v40_v54  ;;  %v104_v54 = vld [vmem:[%s8491_s0 + $0x2a0] sm:$0xff] }
  0x6a   :  { %459 = vmatprep.mubr.f32.mxu0 %v43_v55  ;;  %v107_v55 = vld [vmem:[%s8491_s0 + $0x2b8] sm:$0xff] }
  0x6d   :  { %460 = vmatmul.mubr.f32.gmra.mxu0 %v42_v56  ;;  %v106_v56 = vld [vmem:[%s8491_s0 + $0x2b0] sm:$0xff] }
  0x6e   :  { %464 = vmatprep.mubr.f32.mxu0 %v45_v57  ;;  %v109_v57 = vld [vmem:[%s8491_s0 + $0x2c8] sm:$0xff] }
  0x71   :  { %465 = vmatmul.mubr.f32.gmra.mxu0 %v44_v58  ;;  %v108_v58 = vld [vmem:[%s8491_s0 + $0x2c0] sm:$0xff] }
  0x72   :  { %469 = vmatprep.mubr.f32.mxu0 %v47_v59  ;;  %v111_v59 = vld [vmem:[%s8491_s0 + $0x2d8] sm:$0xff] }
  0x75   :  { %470 = vmatmul.mubr.f32.gmra.mxu0 %v46_v60  ;;  %v110_v60 = vld [vmem:[%s8491_s0 + $0x2d0] sm:$0xff] }
  0x76   :  { %474 = vmatprep.mubr.f32.mxu0 %v49_v61  ;;  %v113_v61 = vld [vmem:[%s8491_s0 + $0x2e8] sm:$0xff] }
  0x79   :  { %475 = vmatmul.mubr.f32.gmra.mxu0 %v48_v62  ;;  %v112_v62 = vld [vmem:[%s8491_s0 + $0x2e0] sm:$0xff] }
  0x7a   :  { %479 = vmatprep.mubr.f32.mxu0 %v51_v63  ;;  %v115_v63 = vld [vmem:[%s8491_s0 + $0x2f8] sm:$0xff] }
  0x7d   :  { %480 = vmatmul.mubr.f32.gmra.mxu0 %v50_v0  ;;  %v114_v0 = vld [vmem:[%s8491_s0 + $0x2f0] sm:$0xff] }
  0x7e   :  { %484 = vmatprep.mubr.f32.mxu0 %v53_v1  ;;  %v117_v1 = vld [vmem:[%s8491_s0 + $0x308] sm:$0xff] }
  0x81   :  { %485 = vmatmul.mubr.f32.gmra.mxu0 %v52_v2  ;;  %v116_v2 = vld [vmem:[%s8491_s0 + $0x300] sm:$0xff] }
  0x82   :  { %489 = vmatprep.mubr.f32.mxu0 %v55_v3  ;;  %v119_v3 = vld [vmem:[%s8491_s0 + $0x318] sm:$0xff] }
  0x85   :  { %490 = vmatmul.mubr.f32.gmra.mxu0 %v54_v4 }
  0x86   :  { %494 = vmatprep.mubr.f32.mxu0 %v57_v5  ;;  %v118_v5 = vld [vmem:[%s8491_s0 + $0x310] sm:$0xff] }
  0x89   :  { %495 = vmatmul.mubr.f32.gmra.mxu0 %v56_v6 }
  0x8a   :  { %499 = vmatprep.mubr.f32.mxu0 %v59_v7  ;;  %v121_v7 = vld [vmem:[%s8491_s0 + $0x328] sm:$0xff] }
  0x8d   :  { %500 = vmatmul.mubr.f32.gmra.mxu0 %v58_v8 }
  0x8e   :  { %504 = vmatprep.mubr.f32.mxu0 %v61_v9  ;;  %v120_v9 = vld [vmem:[%s8491_s0 + $0x320] sm:$0xff] }
  0x91   :  { %505 = vmatmul.mubr.f32.gmra.mxu0 %v60_v10 }
  0x92   :  { %509 = vmatprep.mubr.f32.mxu0 %v63_v11  ;;  %v123_v11 = vld [vmem:[%s8491_s0 + $0x338] sm:$0xff] }
  0x95   :  { %510 = vmatmul.mubr.f32.gmra.mxu0 %v62_v12 }
  0x96   :  { %514 = vmatprep.mubr.f32.mxu0 %v65_v13  ;;  %v122_v13 = vld [vmem:[%s8491_s0 + $0x330] sm:$0xff] }
  0x99   :  { %515 = vmatmul.mubr.f32.gmra.mxu0 %v64_v14 }
  0x9a   :  { %519 = vmatprep.mubr.f32.mxu0 %v67_v15  ;;  %v125_v15 = vld [vmem:[%s8491_s0 + $0x348] sm:$0xff] }
  0x9d   :  { %520 = vmatmul.mubr.f32.gmra.mxu0 %v66_v16 }
  0x9e   :  { %524 = vmatprep.mubr.f32.mxu0 %v69_v17  ;;  %v124_v17 = vld [vmem:[%s8491_s0 + $0x340] sm:$0xff] }
  0xa1   :  { %525 = vmatmul.mubr.f32.gmra.mxu0 %v68_v18 }
  0xa2   :  { %529 = vmatprep.mubr.f32.mxu0 %v71_v19  ;;  %v127_v19 = vld [vmem:[%s8491_s0 + $0x358] sm:$0xff] }
  0xa5   :  { %530 = vmatmul.mubr.f32.gmra.mxu0 %v70_v20 }
  0xa6   :  { %534 = vmatprep.mubr.f32.mxu0 %v73_v21  ;;  %v126_v21 = vld [vmem:[%s8491_s0 + $0x350] sm:$0xff] }
  0xa9   :  { %535 = vmatmul.mubr.f32.gmra.mxu0 %v72_v22 }
  0xaa   :  { %539 = vmatprep.mubr.f32.mxu0 %v75_v23  ;;  %v129_v23 = vld [vmem:[%s8491_s0 + $0x368] sm:$0xff] }
  0xad   :  { %540 = vmatmul.mubr.f32.gmra.mxu0 %v74_v24 }
  0xae   :  { %544 = vmatprep.mubr.f32.mxu0 %v77_v25  ;;  %v128_v25 = vld [vmem:[%s8491_s0 + $0x360] sm:$0xff] }
  0xb1   :  { %545 = vmatmul.mubr.f32.gmra.mxu0 %v76_v26 }
  0xb2   :  { %549 = vmatprep.mubr.f32.mxu0 %v79_v27  ;;  %v131_v27 = vld [vmem:[%s8491_s0 + $0x378] sm:$0xff] }
  0xb5   :  { %550 = vmatmul.mubr.f32.gmra.mxu0 %v78_v28 }
  0xb6   :  { %554 = vmatprep.mubr.f32.mxu0 %v81_v29  ;;  %v130_v29 = vld [vmem:[%s8491_s0 + $0x370] sm:$0xff] }
  0xb9   :  { %555 = vmatmul.mubr.f32.gmra.mxu0 %v80_v30 }
  0xba   :  { %559 = vmatprep.mubr.f32.mxu0 %v83_v31  ;;  %v133_v31 = vld [vmem:[%s8491_s0 + $0x388] sm:$0xff] }
  0xbd   :  { %560 = vmatmul.mubr.f32.gmra.mxu0 %v82_v32 }
  0xbe   :  { %564 = vmatprep.mubr.f32.mxu0 %v85_v33  ;;  %v132_v33 = vld [vmem:[%s8491_s0 + $0x380] sm:$0xff] }
  0xc1   :  { %565 = vmatmul.mubr.f32.gmra.mxu0 %v84_v34 }
  0xc2   :  { %569 = vmatprep.mubr.f32.mxu0 %v87_v35  ;;  %v135_v35 = vld [vmem:[%s8491_s0 + $0x398] sm:$0xff] }
  0xc5   :  { %570 = vmatmul.mubr.f32.gmra.mxu0 %v86_v36 }
  0xc6   :  { %574 = vmatprep.mubr.f32.mxu0 %v89_v37  ;;  %v134_v37 = vld [vmem:[%s8491_s0 + $0x390] sm:$0xff] }
  0xc9   :  { %575 = vmatmul.mubr.f32.gmra.mxu0 %v88_v38 }
  0xca   :  { %579 = vmatprep.mubr.f32.mxu0 %v91_v39  ;;  %v137_v39 = vld [vmem:[%s8491_s0 + $0x3a8] sm:$0xff] }
  0xcd   :  { %580 = vmatmul.mubr.f32.gmra.mxu0 %v90_v40 }
  0xce   :  { %584 = vmatprep.mubr.f32.mxu0 %v93_v41  ;;  %v237_v41 = vld [vmem:[%s8491_s0 + $0x6c8] sm:$0xff] }
  0xcf   :  { %944 = vmatprep.mubr.f32.mxu1 %v237_v41  ;;  %v255_v41 = vld [vmem:[%s8491_s0 + $0x758] sm:$0xff] }
  0xd1   :  { %585 = vmatmul.mubr.f32.gmra.mxu0 %v92_v42  ;;  %v136_v42 = vld [vmem:[%s8491_s0 + $0x3a0] sm:$0xff] }
  0xd2   :  { %589 = vmatprep.mubr.f32.mxu0 %v95_v43  ;;  %v236_v43 = vld [vmem:[%s8491_s0 + $0x6c0] sm:$0xff] }
  0xd3   :  { %945 = vmatmul.mubr.f32.vlgmr.msra.gmra.mxu1 %v236_v43  ;;  %v254_v43 = vld [vmem:[%s8491_s0 + $0x750] sm:$0xff] }
  0xd5   :  { %590 = vmatmul.mubr.f32.gmra.mxu0 %v94_v44 }
  0xd6   :  { %594 = vmatprep.mubr.f32.mxu0 %v97_v45  ;;  %v139_v45 = vld [vmem:[%s8491_s0 + $0x3b8] sm:$0xff] }
  0xd9   :  { %595 = vmatmul.mubr.f32.gmra.mxu0 %v96_v46 }
  0xda   :  { %599 = vmatprep.mubr.f32.mxu0 %v99_v47  ;;  %v239_v47 = vld [vmem:[%s8491_s0 + $0x6d8] sm:$0xff] }
  0xdb   :  { %949 = vmatprep.mubr.f32.mxu1 %v239_v47 }
  0xdd   :  { %600 = vmatmul.mubr.f32.gmra.mxu0 %v98_v48  ;;  %v138_v48 = vld [vmem:[%s8491_s0 + $0x3b0] sm:$0xff] }
  0xde   :  { %604 = vmatprep.mubr.f32.mxu0 %v101_v49  ;;  %v238_v49 = vld [vmem:[%s8491_s0 + $0x6d0] sm:$0xff] }
  0xdf   :  { %950 = vmatmul.mubr.f32.gmra.mxu1 %v238_v49  ;;  %v156_v49 = vld [vmem:[%s8491_s0 + $0x440] sm:$0xff] }
  0xe1   :  { %605 = vmatmul.mubr.f32.gmra.mxu0 %v100_v50 }
  0xe2   :  { %609 = vmatprep.mubr.f32.mxu0 %v103_v51  ;;  %v141_v51 = vld [vmem:[%s8491_s0 + $0x3c8] sm:$0xff] }
  0xe5   :  { %610 = vmatmul.mubr.f32.gmra.mxu0 %v102_v52 }
  0xe6   :  { %614 = vmatprep.mubr.f32.mxu0 %v105_v53  ;;  %v241_v53 = vld [vmem:[%s8491_s0 + $0x6e8] sm:$0xff] }
  0xe7   :  { %954 = vmatprep.mubr.f32.mxu1 %v241_v53  ;;  %v159_v53 = vld [vmem:[%s8491_s0 + $0x458] sm:$0xff] }
  0xe9   :  { %615 = vmatmul.mubr.f32.gmra.mxu0 %v104_v54  ;;  %v140_v54 = vld [vmem:[%s8491_s0 + $0x3c0] sm:$0xff] }
  0xea   :  { %619 = vmatprep.mubr.f32.mxu0 %v107_v55  ;;  %v240_v55 = vld [vmem:[%s8491_s0 + $0x6e0] sm:$0xff] }
  0xeb   :  { %955 = vmatmul.mubr.f32.gmra.mxu1 %v240_v55  ;;  %v259_v55 = vld [vmem:[%s8491_s0 + $0x778] sm:$0xff] }
  0xed   :  { %620 = vmatmul.mubr.f32.gmra.mxu0 %v106_v56 }
  0xee   :  { %624 = vmatprep.mubr.f32.mxu0 %v109_v57  ;;  %v143_v57 = vld [vmem:[%s8491_s0 + $0x3d8] sm:$0xff] }
  0xf1   :  { %625 = vmatmul.mubr.f32.gmra.mxu0 %v108_v58 }
  0xf2   :  { %629 = vmatprep.mubr.f32.mxu0 %v111_v59  ;;  %v243_v59 = vld [vmem:[%s8491_s0 + $0x6f8] sm:$0xff] }
  0xf3   :  { %959 = vmatprep.mubr.f32.mxu1 %v243_v59 }
  0xf5   :  { %630 = vmatmul.mubr.f32.gmra.mxu0 %v110_v60  ;;  %v142_v60 = vld [vmem:[%s8491_s0 + $0x3d0] sm:$0xff] }
  0xf6   :  { %634 = vmatprep.mubr.f32.mxu0 %v113_v61  ;;  %v242_v61 = vld [vmem:[%s8491_s0 + $0x6f0] sm:$0xff] }
  0xf7   :  { %960 = vmatmul.mubr.f32.gmra.mxu1 %v242_v61 }
  0xf9   :  { %635 = vmatmul.mubr.f32.gmra.mxu0 %v112_v62 }
  0xfa   :  { %639 = vmatprep.mubr.f32.mxu0 %v115_v63  ;;  %v145_v63 = vld [vmem:[%s8491_s0 + $0x3e8] sm:$0xff] }
  0xfd   :  { %640 = vmatmul.mubr.f32.gmra.mxu0 %v114_v0 }
  0xfe   :  { %644 = vmatprep.mubr.f32.mxu0 %v117_v1  ;;  %v245_v1 = vld [vmem:[%s8491_s0 + $0x708] sm:$0xff] }
  0xff   :  { %964 = vmatprep.mubr.f32.mxu1 %v245_v1  ;;  %v260_v1 = vld [vmem:[%s8491_s0 + $0x780] sm:$0xff] }
 0x101   :  { %v5311_v4 = vpop.f32.mrf.mxu0  ;;  %645 = vmatmul.mubr.f32.gmra.mxu0 %v116_v2  ;;  %v144_v2 = vld [vmem:[%s8491_s0 + $0x3e0] sm:$0xff] }
 0x102   :  { %8692 = vst [vmem:[#allocation2_spill] sm:$0xff] %v5311_v4  ;;  %649 = vmatprep.mubr.f32.mxu0 %v119_v3  ;;  %v244_v3 = vld [vmem:[%s8491_s0 + $0x700] sm:$0xff] }
 0x103   :  { %v408_v6 = vpop.f32.mrf.mxu0  ;;  %965 = vmatmul.mubr.f32.gmra.mxu1 %v244_v3  ;;  %v163_v3 = vld [vmem:[%s8491_s0 + $0x478] sm:$0xff] }
 0x104   :  { %v147_v6 = vld [vmem:[%s8491_s0 + $0x3f8] sm:$0xff] }
 0x105   :  { %v5319_v8 = vpop.f32.mrf.mxu0  ;;  %650 = vmatmul.mubr.f32.gmra.mxu0 %v118_v5 }
 0x106   :  { %8693 = vst [vmem:[#allocation3_spill] sm:$0xff] %v5319_v8  ;;  %654 = vmatprep.mubr.f32.mxu0 %v121_v7 }
 0x107   :  { %v413_v10 = vpop.f32.mrf.mxu0 }
 0x108   :  { %v146_v10 = vld [vmem:[%s8491_s0 + $0x3f0] sm:$0xff] }
 0x109   :  { %v5327_v12 = vpop.f32.mrf.mxu0  ;;  %655 = vmatmul.mubr.f32.gmra.mxu0 %v120_v9  ;;  %v247_v9 = vld [vmem:[%s8491_s0 + $0x718] sm:$0xff] }
 0x10a   :  { %8694 = vst [vmem:[#allocation4_spill] sm:$0xff] %v5327_v12  ;;  %659 = vmatprep.mubr.f32.mxu0 %v123_v11  ;;  %969 = vmatprep.mubr.f32.mxu1 %v247_v9  ;;  %v246_v11 = vld [vmem:[%s8491_s0 + $0x710] sm:$0xff] }
 0x10b   :  { %v418_v14 = vpop.f32.mrf.mxu0  ;;  %970 = vmatmul.mubr.f32.gmra.mxu1 %v246_v11  ;;  %v162_v9 = vld [vmem:[%s8491_s0 + $0x470] sm:$0xff] }
 0x10c   :  { %v149_v14 = vld [vmem:[%s8491_s0 + $0x408] sm:$0xff] }
 0x10d   :  { %v5335_v16 = vpop.f32.mrf.mxu0  ;;  %660 = vmatmul.mubr.f32.gmra.mxu0 %v122_v13 }
 0x10e   :  { %8695 = vst [vmem:[#allocation5_spill] sm:$0xff] %v5335_v16  ;;  %664 = vmatprep.mubr.f32.mxu0 %v125_v15 }
 0x10f   :  { %v423_v18 = vpop.f32.mrf.mxu0 }
 0x110   :  { %v148_v18 = vld [vmem:[%s8491_s0 + $0x400] sm:$0xff] }
 0x111   :  { %v5343_v20 = vpop.f32.mrf.mxu0  ;;  %665 = vmatmul.mubr.f32.gmra.mxu0 %v124_v17  ;;  %v249_v17 = vld [vmem:[%s8491_s0 + $0x728] sm:$0xff] }
 0x112   :  { %8696 = vst [vmem:[#allocation6_spill] sm:$0xff] %v5343_v20  ;;  %669 = vmatprep.mubr.f32.mxu0 %v127_v19  ;;  %974 = vmatprep.mubr.f32.mxu1 %v249_v17  ;;  %v248_v19 = vld [vmem:[%s8491_s0 + $0x720] sm:$0xff]  ;;  %v265_v17 = vld [vmem:[%s8491_s0 + $0x7a8] sm:$0xff] }
 0x113   :  { %v428_v22 = vpop.f32.mrf.mxu0  ;;  %975 = vmatmul.mubr.f32.gmra.mxu1 %v248_v19  ;;  %v264_v19 = vld [vmem:[%s8491_s0 + $0x7a0] sm:$0xff] }
 0x114   :  { %v151_v22 = vld [vmem:[%s8491_s0 + $0x418] sm:$0xff] }
 0x115   :  { %v5351_v24 = vpop.f32.mrf.mxu0  ;;  %670 = vmatmul.mubr.f32.gmra.mxu0 %v126_v21 }
 0x116   :  { %8697 = vst [vmem:[#allocation7_spill] sm:$0xff] %v5351_v24  ;;  %674 = vmatprep.mubr.f32.mxu0 %v129_v23 }
 0x117   :  { %v433_v26 = vpop.f32.mrf.mxu0 }
 0x118   :  { %v150_v26 = vld [vmem:[%s8491_s0 + $0x410] sm:$0xff] }
 0x119   :  { %v5359_v28 = vpop.f32.mrf.mxu0  ;;  %675 = vmatmul.mubr.f32.gmra.mxu0 %v128_v25  ;;  %v251_v25 = vld [vmem:[%s8491_s0 + $0x738] sm:$0xff] }
 0x11a   :  { %8698 = vst [vmem:[#allocation8_spill] sm:$0xff] %v5359_v28  ;;  %679 = vmatprep.mubr.f32.mxu0 %v131_v27  ;;  %979 = vmatprep.mubr.f32.mxu1 %v251_v25  ;;  %v250_v27 = vld [vmem:[%s8491_s0 + $0x730] sm:$0xff] }
 0x11b   :  { %v438_v30 = vpop.f32.mrf.mxu0  ;;  %980 = vmatmul.mubr.f32.gmra.mxu1 %v250_v27  ;;  %v166_v27 = vld [vmem:[%s8491_s0 + $0x490] sm:$0xff] }
 0x11c   :  { %v153_v30 = vld [vmem:[%s8491_s0 + $0x428] sm:$0xff] }
 0x11d   :  { %v5367_v32 = vpop.f32.mrf.mxu0  ;;  %680 = vmatmul.mubr.f32.gmra.mxu0 %v130_v29 }
 0x11e   :  { %8699 = vst [vmem:[#allocation9_spill] sm:$0xff] %v5367_v32  ;;  %684 = vmatprep.mubr.f32.mxu0 %v133_v31 }
 0x11f   :  { %v443_v34 = vpop.f32.mrf.mxu0 }
 0x120   :  { %v152_v34 = vld [vmem:[%s8491_s0 + $0x420] sm:$0xff] }
 0x121   :  { %v5375_v36 = vpop.f32.mrf.mxu0  ;;  %685 = vmatmul.mubr.f32.gmra.mxu0 %v132_v33  ;;  %v253_v33 = vld [vmem:[%s8491_s0 + $0x748] sm:$0xff] }
 0x122   :  { %8700 = vst [vmem:[#allocation10_spill] sm:$0xff] %v5375_v36  ;;  %689 = vmatprep.mubr.f32.mxu0 %v135_v35  ;;  %984 = vmatprep.mubr.f32.mxu1 %v253_v33  ;;  %v252_v35 = vld [vmem:[%s8491_s0 + $0x740] sm:$0xff]  ;;  %v169_v33 = vld [vmem:[%s8491_s0 + $0x4a8] sm:$0xff] }
 0x123   :  { %v448_v38 = vpop.f32.mrf.mxu0  ;;  %985 = vmatmul.mubr.f32.gmra.mxu1 %v252_v35  ;;  %v269_v35 = vld [vmem:[%s8491_s0 + $0x7c8] sm:$0xff] }
 0x124   :  { %v155_v38 = vld [vmem:[%s8491_s0 + $0x438] sm:$0xff]  ;;  %989 = vmatprep.mubr.f32.mxu1 %v255_v41 }
 0x125   :  { %v5383_v40 = vpop.f32.mrf.mxu0  ;;  %690 = vmatmul.mubr.f32.gmra.mxu0 %v134_v37 }
 0x126   :  { %8701 = vst [vmem:[#allocation11_spill] sm:$0xff] %v5383_v40  ;;  %694 = vmatprep.mubr.f32.mxu0 %v137_v39 }
 0x127   :  { %v453_v44 = vpop.f32.mrf.mxu0  ;;  %990 = vmatmul.mubr.f32.gmra.mxu1 %v254_v43 }
 0x129   :  { %v5397_v46 = vpop.f32.mrf.mxu0  ;;  %695 = vmatmul.mubr.f32.gmra.mxu0 %v136_v42  ;;  %v154_v42 = vld [vmem:[%s8491_s0 + $0x430] sm:$0xff] }
 0x12a   :  { %8702 = vst [vmem:[#allocation12_spill] sm:$0xff] %v5397_v46  ;;  %699 = vmatprep.mubr.f32.mxu0 %v139_v45  ;;  %v157_v45 = vld [vmem:[%s8491_s0 + $0x448] sm:$0xff] }
 0x12b   :  { %v458_v50 = vpop.f32.mrf.mxu0 }
 0x12c   :  { %v256_v50 = vld [vmem:[%s8491_s0 + $0x760] sm:$0xff] }
 0x12d   :  { %v5411_v52 = vpop.f32.mrf.mxu0  ;;  %700 = vmatmul.mubr.f32.gmra.mxu0 %v138_v48  ;;  %v257_v48 = vld [vmem:[%s8491_s0 + $0x768] sm:$0xff] }
 0x12e   :  { %8703 = vst [vmem:[#allocation13_spill] sm:$0xff] %v5411_v52  ;;  %704 = vmatprep.mubr.f32.mxu0 %v141_v51  ;;  %994 = vmatprep.mubr.f32.mxu1 %v257_v48  ;;  %v270_v48 = vld [vmem:[%s8491_s0 + $0x7d0] sm:$0xff] }
 0x12f   :  { %v463_v56 = vpop.f32.mrf.mxu0  ;;  %995 = vmatmul.mubr.f32.gmra.mxu1 %v256_v50  ;;  %v173_v50 = vld [vmem:[%s8491_s0 + $0x4c8] sm:$0xff] }
 0x130   :  { %v158_v56 = vld [vmem:[%s8491_s0 + $0x450] sm:$0xff]  ;;  %999 = vmatprep.mubr.f32.mxu1 %v259_v55  ;;  %v172_v55 = vld [vmem:[%s8491_s0 + $0x4c0] sm:$0xff] }
 0x131   :  { %v5425_v58 = vpop.f32.mrf.mxu0  ;;  %705 = vmatmul.mubr.f32.gmra.mxu0 %v140_v54 }
 0x132   :  { %8704 = vst [vmem:[#allocation14_spill] sm:$0xff] %v5425_v58  ;;  %709 = vmatprep.mubr.f32.mxu0 %v143_v57  ;;  %v258_v57 = vld [vmem:[%s8491_s0 + $0x770] sm:$0xff] }
 0x133   :  { %v468_v62 = vpop.f32.mrf.mxu0  ;;  %1000 = vmatmul.mubr.f32.gmra.mxu1 %v258_v57 }
 0x134   :  { %v261_v62 = vld [vmem:[%s8491_s0 + $0x788] sm:$0xff] }
 0x135   :  { %v5439_v0 = vpop.f32.mrf.mxu0  ;;  %710 = vmatmul.mubr.f32.gmra.mxu0 %v142_v60  ;;  %v161_v60 = vld [vmem:[%s8491_s0 + $0x468] sm:$0xff]  ;;  %1004 = vmatprep.mubr.f32.mxu1 %v261_v62  ;;  %v275_v62 = vld [vmem:[%s8491_s0 + $0x7f8] sm:$0xff] }
 0x136   :  { %8705 = vst [vmem:[#allocation15_spill] sm:$0xff] %v5439_v0  ;;  %714 = vmatprep.mubr.f32.mxu0 %v145_v63  ;;  %v160_v63 = vld [vmem:[%s8491_s0 + $0x460] sm:$0xff] }
 0x137   :  { %v473_v5 = vpop.f32.mrf.mxu0  ;;  %1005 = vmatmul.mubr.f32.gmra.mxu1 %v260_v1  ;;  %v274_v1 = vld [vmem:[%s8491_s0 + $0x7f0] sm:$0xff] }
 0x139   :  { %v5453_v7 = vpop.f32.mrf.mxu0  ;;  %715 = vmatmul.mubr.f32.gmra.mxu0 %v144_v2 }
 0x13a   :  { %8706 = vst [vmem:[#allocation16_spill] sm:$0xff] %v5453_v7  ;;  %719 = vmatprep.mubr.f32.mxu0 %v147_v6  ;;  %v263_v6 = vld [vmem:[%s8491_s0 + $0x798] sm:$0xff] }
 0x13b   :  { %v478_v13 = vpop.f32.mrf.mxu0  ;;  %1009 = vmatprep.mubr.f32.mxu1 %v263_v6 }
 0x13c   :  { %v165_v13 = vld [vmem:[%s8491_s0 + $0x488] sm:$0xff] }
 0x13d   :  { %v5467_v15 = vpop.f32.mrf.mxu0  ;;  %720 = vmatmul.mubr.f32.gmra.mxu0 %v146_v10  ;;  %v262_v10 = vld [vmem:[%s8491_s0 + $0x790] sm:$0xff] }
 0x13e   :  { %8707 = vst [vmem:[#allocation17_spill] sm:$0xff] %v5467_v15  ;;  %724 = vmatprep.mubr.f32.mxu0 %v149_v14  ;;  %1010 = vmatmul.mubr.f32.gmra.mxu1 %v262_v10  ;;  %v176_v10 = vld [vmem:[%s8491_s0 + $0x4e0] sm:$0xff] }
 0x13f   :  { %v483_v21 = vpop.f32.mrf.mxu0  ;;  %1014 = vmatprep.mubr.f32.mxu1 %v265_v17  ;;  %v179_v17 = vld [vmem:[%s8491_s0 + $0x4f8] sm:$0xff] }
 0x141   :  { %v5481_v23 = vpop.f32.mrf.mxu0  ;;  %725 = vmatmul.mubr.f32.gmra.mxu0 %v148_v18  ;;  %v164_v18 = vld [vmem:[%s8491_s0 + $0x480] sm:$0xff] }
 0x142   :  { %8708 = vst [vmem:[#allocation18_spill] sm:$0xff] %v5481_v23  ;;  %729 = vmatprep.mubr.f32.mxu0 %v151_v22  ;;  %v167_v22 = vld [vmem:[%s8491_s0 + $0x498] sm:$0xff]  ;;  %1015 = vmatmul.mubr.f32.gmra.mxu1 %v264_v19 }
 0x143   :  { %v488_v29 = vpop.f32.mrf.mxu0  ;;  %v279_v19 = vld [vmem:[%s8491_s0 + $0x818] sm:$0xff] }
 0x144   :  { %v266_v29 = vld [vmem:[%s8491_s0 + $0x7b0] sm:$0xff] }
 0x145   :  { %v5495_v31 = vpop.f32.mrf.mxu0  ;;  %730 = vmatmul.mubr.f32.gmra.mxu0 %v150_v26  ;;  %v267_v26 = vld [vmem:[%s8491_s0 + $0x7b8] sm:$0xff] }
 0x146   :  { %8709 = vst [vmem:[#allocation19_spill] sm:$0xff] %v5495_v31  ;;  %734 = vmatprep.mubr.f32.mxu0 %v153_v30  ;;  %1019 = vmatprep.mubr.f32.mxu1 %v267_v26 }
 0x147   :  { %v493_v37 = vpop.f32.mrf.mxu0  ;;  %1020 = vmatmul.mubr.f32.gmra.mxu1 %v266_v29 }
 0x148   :  { %v168_v37 = vld [vmem:[%s8491_s0 + $0x4a0] sm:$0xff]  ;;  %1024 = vmatprep.mubr.f32.mxu1 %v269_v35 }
 0x149   :  { %v5509_v39 = vpop.f32.mrf.mxu0  ;;  %735 = vmatmul.mubr.f32.gmra.mxu0 %v152_v34  ;;  %v280_v35 = vld [vmem:[%s8491_s0 + $0x820] sm:$0xff] }
 0x14a   :  { %8710 = vst [vmem:[#allocation20_spill] sm:$0xff] %v5509_v39  ;;  %739 = vmatprep.mubr.f32.mxu0 %v155_v38  ;;  %v268_v38 = vld [vmem:[%s8491_s0 + $0x7c0] sm:$0xff] }
 0x14b   :  { %v498_v44 = vpop.f32.mrf.mxu0  ;;  %1025 = vmatmul.mubr.f32.gmra.mxu1 %v268_v38  ;;  %v183_v38 = vld [vmem:[%s8491_s0 + $0x518] sm:$0xff] }
 0x14c   :  { %v271_v44 = vld [vmem:[%s8491_s0 + $0x7d8] sm:$0xff] }
 0x14d   :  { %v5523_v47 = vpop.f32.mrf.mxu0  ;;  %740 = vmatmul.mubr.f32.gmra.mxu0 %v154_v42  ;;  %v171_v42 = vld [vmem:[%s8491_s0 + $0x4b8] sm:$0xff]  ;;  %1029 = vmatprep.mubr.f32.mxu1 %v271_v44  ;;  %v182_v44 = vld [vmem:[%s8491_s0 + $0x510] sm:$0xff] }
 0x14e   :  { %8711 = vst [vmem:[#allocation21_spill] sm:$0xff] %v5523_v47  ;;  %744 = vmatprep.mubr.f32.mxu0 %v157_v45  ;;  %v170_v45 = vld [vmem:[%s8491_s0 + $0x4b0] sm:$0xff] }
 0x14f   :  { %v503_v51 = vpop.f32.mrf.mxu0  ;;  %1030 = vmatmul.mubr.f32.gmra.mxu1 %v270_v48 }
 0x151   :  { %v5537_v54 = vpop.f32.mrf.mxu0  ;;  %745 = vmatmul.mubr.f32.gmra.mxu0 %v156_v49 }
 0x152   :  { %8712 = vst [vmem:[#allocation22_spill] sm:$0xff] %v5537_v54  ;;  %749 = vmatprep.mubr.f32.mxu0 %v159_v53  ;;  %v273_v53 = vld [vmem:[%s8491_s0 + $0x7e8] sm:$0xff] }
 0x153   :  { %v508_v59 = vpop.f32.mrf.mxu0  ;;  %1034 = vmatprep.mubr.f32.mxu1 %v273_v53  ;;  %v285_v53 = vld [vmem:[%s8491_s0 + $0x848] sm:$0xff] }
 0x154   :  { %v175_v59 = vld [vmem:[%s8491_s0 + $0x4d8] sm:$0xff] }
 0x155   :  { %v5551_v61 = vpop.f32.mrf.mxu0  ;;  %750 = vmatmul.mubr.f32.gmra.mxu0 %v158_v56  ;;  %v272_v56 = vld [vmem:[%s8491_s0 + $0x7e0] sm:$0xff] }
 0x156   :  { %8713 = vst [vmem:[#allocation23_spill] sm:$0xff] %v5551_v61  ;;  %754 = vmatprep.mubr.f32.mxu0 %v161_v60  ;;  %1035 = vmatmul.mubr.f32.gmra.mxu1 %v272_v56  ;;  %v284_v56 = vld [vmem:[%s8491_s0 + $0x840] sm:$0xff] }
 0x157   :  { %v513_v2 = vpop.f32.mrf.mxu0  ;;  %1039 = vmatprep.mubr.f32.mxu1 %v275_v62 }
 0x159   :  { %v5565_v5 = vpop.f32.mrf.mxu0  ;;  %755 = vmatmul.mubr.f32.gmra.mxu0 %v160_v63  ;;  %v174_v63 = vld [vmem:[%s8491_s0 + $0x4d0] sm:$0xff] }
 0x15a   :  { %8714 = vst [vmem:[#allocation24_spill] sm:$0xff] %v5565_v5  ;;  %759 = vmatprep.mubr.f32.mxu0 %v163_v3  ;;  %v177_v3 = vld [vmem:[%s8491_s0 + $0x4e8] sm:$0xff]  ;;  %1040 = vmatmul.mubr.f32.gmra.mxu1 %v274_v1  ;;  %v186_v1 = vld [vmem:[%s8491_s0 + $0x530] sm:$0xff] }
 0x15b   :  { %v518_v11 = vpop.f32.mrf.mxu0 }
 0x15c   :  { %v276_v11 = vld [vmem:[%s8491_s0 + $0x800] sm:$0xff] }
 0x15d   :  { %v5579_v14 = vpop.f32.mrf.mxu0  ;;  %760 = vmatmul.mubr.f32.gmra.mxu0 %v162_v9  ;;  %v277_v9 = vld [vmem:[%s8491_s0 + $0x808] sm:$0xff] }
 0x15e   :  { %8715 = vst [vmem:[#allocation25_spill] sm:$0xff] %v5579_v14  ;;  %764 = vmatprep.mubr.f32.mxu0 %v165_v13  ;;  %1044 = vmatprep.mubr.f32.mxu1 %v277_v9  ;;  %v189_v9 = vld [vmem:[%s8491_s0 + $0x548] sm:$0xff] }
 0x15f   :  { %v523_v21 = vpop.f32.mrf.mxu0  ;;  %1045 = vmatmul.mubr.f32.gmra.mxu1 %v276_v11  ;;  %v289_v11 = vld [vmem:[%s8491_s0 + $0x868] sm:$0xff] }
 0x160   :  { %v178_v21 = vld [vmem:[%s8491_s0 + $0x4f0] sm:$0xff]  ;;  %1049 = vmatprep.mubr.f32.mxu1 %v279_v19 }
 0x161   :  { %v5593_v25 = vpop.f32.mrf.mxu0  ;;  %765 = vmatmul.mubr.f32.gmra.mxu0 %v164_v18 }
 0x162   :  { %8716 = vst [vmem:[#allocation26_spill] sm:$0xff] %v5593_v25  ;;  %769 = vmatprep.mubr.f32.mxu0 %v167_v22  ;;  %v278_v22 = vld [vmem:[%s8491_s0 + $0x810] sm:$0xff] }
 0x163   :  { %v528_v30 = vpop.f32.mrf.mxu0  ;;  %1050 = vmatmul.mubr.f32.gmra.mxu1 %v278_v22 }
 0x164   :  { %v281_v30 = vld [vmem:[%s8491_s0 + $0x828] sm:$0xff] }
 0x165   :  { %v5607_v34 = vpop.f32.mrf.mxu0  ;;  %770 = vmatmul.mubr.f32.gmra.mxu0 %v166_v27  ;;  %v181_v27 = vld [vmem:[%s8491_s0 + $0x508] sm:$0xff]  ;;  %1054 = vmatprep.mubr.f32.mxu1 %v281_v30  ;;  %v290_v30 = vld [vmem:[%s8491_s0 + $0x870] sm:$0xff] }
 0x166   :  { %8717 = vst [vmem:[#allocation27_spill] sm:$0xff] %v5607_v34  ;;  %774 = vmatprep.mubr.f32.mxu0 %v169_v33  ;;  %v180_v33 = vld [vmem:[%s8491_s0 + $0x500] sm:$0xff] }
 0x167   :  { %v533_v41 = vpop.f32.mrf.mxu0  ;;  %1055 = vmatmul.mubr.f32.gmra.mxu1 %v280_v35  ;;  %v193_v35 = vld [vmem:[%s8491_s0 + $0x568] sm:$0xff] }
 0x169   :  { %v5621_v43 = vpop.f32.mrf.mxu0  ;;  %775 = vmatmul.mubr.f32.gmra.mxu0 %v168_v37 }
 0x16a   :  { %8718 = vst [vmem:[#allocation28_spill] sm:$0xff] %v5621_v43  ;;  %779 = vmatprep.mubr.f32.mxu0 %v171_v42  ;;  %v283_v42 = vld [vmem:[%s8491_s0 + $0x838] sm:$0xff] }
 0x16b   :  { %v538_v49 = vpop.f32.mrf.mxu0  ;;  %1059 = vmatprep.mubr.f32.mxu1 %v283_v42  ;;  %v192_v42 = vld [vmem:[%s8491_s0 + $0x560] sm:$0xff] }
 0x16c   :  { %v185_v49 = vld [vmem:[%s8491_s0 + $0x528] sm:$0xff] }
 0x16d   :  { %v5635_v51 = vpop.f32.mrf.mxu0  ;;  %780 = vmatmul.mubr.f32.gmra.mxu0 %v170_v45  ;;  %v282_v45 = vld [vmem:[%s8491_s0 + $0x830] sm:$0xff] }
 0x16e   :  { %8719 = vst [vmem:[#allocation29_spill] sm:$0xff] %v5635_v51  ;;  %784 = vmatprep.mubr.f32.mxu0 %v173_v50  ;;  %1060 = vmatmul.mubr.f32.gmra.mxu1 %v282_v45 }
 0x16f   :  { %v543_v57 = vpop.f32.mrf.mxu0  ;;  %1064 = vmatprep.mubr.f32.mxu1 %v285_v53  ;;  %v295_v53 = vld [vmem:[%s8491_s0 + $0x898] sm:$0xff] }
 0x171   :  { %v5649_v60 = vpop.f32.mrf.mxu0  ;;  %785 = vmatmul.mubr.f32.gmra.mxu0 %v172_v55  ;;  %v184_v55 = vld [vmem:[%s8491_s0 + $0x520] sm:$0xff] }
 0x172   :  { %8720 = vst [vmem:[#allocation30_spill] sm:$0xff] %v5649_v60  ;;  %789 = vmatprep.mubr.f32.mxu0 %v175_v59  ;;  %v187_v59 = vld [vmem:[%s8491_s0 + $0x538] sm:$0xff]  ;;  %1065 = vmatmul.mubr.f32.gmra.mxu1 %v284_v56  ;;  %v294_v56 = vld [vmem:[%s8491_s0 + $0x890] sm:$0xff] }
 0x173   :  { %v548_v2 = vpop.f32.mrf.mxu0 }
 0x174   :  { %v286_v2 = vld [vmem:[%s8491_s0 + $0x850] sm:$0xff] }
 0x175   :  { %v5663_v6 = vpop.f32.mrf.mxu0  ;;  %790 = vmatmul.mubr.f32.gmra.mxu0 %v174_v63  ;;  %v287_v63 = vld [vmem:[%s8491_s0 + $0x858] sm:$0xff] }
 0x176   :  { %8721 = vst [vmem:[#allocation31_spill] sm:$0xff] %v5663_v6  ;;  %794 = vmatprep.mubr.f32.mxu0 %v177_v3  ;;  %1069 = vmatprep.mubr.f32.mxu1 %v287_v63 }
 0x177   :  { %v553_v13 = vpop.f32.mrf.mxu0  ;;  %1070 = vmatmul.mubr.f32.gmra.mxu1 %v286_v2  ;;  %v196_v2 = vld [vmem:[%s8491_s0 + $0x580] sm:$0xff] }
 0x178   :  { %v188_v13 = vld [vmem:[%s8491_s0 + $0x540] sm:$0xff]  ;;  %1074 = vmatprep.mubr.f32.mxu1 %v289_v11  ;;  %v199_v11 = vld [vmem:[%s8491_s0 + $0x598] sm:$0xff] }
 0x179   :  { %v5677_v18 = vpop.f32.mrf.mxu0  ;;  %795 = vmatmul.mubr.f32.gmra.mxu0 %v176_v10 }
 0x17a   :  { %8722 = vst [vmem:[#allocation32_spill] sm:$0xff] %v5677_v18  ;;  %799 = vmatprep.mubr.f32.mxu0 %v179_v17  ;;  %v288_v17 = vld [vmem:[%s8491_s0 + $0x860] sm:$0xff] }
 0x17b   :  { %v558_v26 = vpop.f32.mrf.mxu0  ;;  %1075 = vmatmul.mubr.f32.gmra.mxu1 %v288_v17  ;;  %v299_v17 = vld [vmem:[%s8491_s0 + $0x8b8] sm:$0xff] }
 0x17c   :  { %v291_v26 = vld [vmem:[%s8491_s0 + $0x878] sm:$0xff] }
 0x17d   :  { %v5691_v29 = vpop.f32.mrf.mxu0  ;;  %800 = vmatmul.mubr.f32.gmra.mxu0 %v178_v21  ;;  %v191_v21 = vld [vmem:[%s8491_s0 + $0x558] sm:$0xff]  ;;  %1079 = vmatprep.mubr.f32.mxu1 %v291_v26 }
 0x17e   :  { %8723 = vst [vmem:[#allocation33_spill] sm:$0xff] %v5691_v29  ;;  %804 = vmatprep.mubr.f32.mxu0 %v181_v27  ;;  %v190_v27 = vld [vmem:[%s8491_s0 + $0x550] sm:$0xff] }
 0x17f   :  { %v563_v37 = vpop.f32.mrf.mxu0  ;;  %1080 = vmatmul.mubr.f32.gmra.mxu1 %v290_v30 }
 0x181   :  { %v5705_v41 = vpop.f32.mrf.mxu0  ;;  %805 = vmatmul.mubr.f32.gmra.mxu0 %v180_v33 }
 0x182   :  { %8724 = vst [vmem:[#allocation34_spill] sm:$0xff] %v5705_v41  ;;  %809 = vmatprep.mubr.f32.mxu0 %v183_v38  ;;  %v293_v38 = vld [vmem:[%s8491_s0 + $0x888] sm:$0xff] }
 0x183   :  { %v568_v48 = vpop.f32.mrf.mxu0  ;;  %1084 = vmatprep.mubr.f32.mxu1 %v293_v38  ;;  %v300_v38 = vld [vmem:[%s8491_s0 + $0x8c0] sm:$0xff] }
 0x184   :  { %v195_v48 = vld [vmem:[%s8491_s0 + $0x578] sm:$0xff] }
 0x185   :  { %v5719_v50 = vpop.f32.mrf.mxu0  ;;  %810 = vmatmul.mubr.f32.gmra.mxu0 %v182_v44  ;;  %v292_v44 = vld [vmem:[%s8491_s0 + $0x880] sm:$0xff] }
 0x186   :  { %8725 = vst [vmem:[#allocation35_spill] sm:$0xff] %v5719_v50  ;;  %814 = vmatprep.mubr.f32.mxu0 %v185_v49  ;;  %1085 = vmatmul.mubr.f32.gmra.mxu1 %v292_v44  ;;  %v203_v44 = vld [vmem:[%s8491_s0 + $0x5b8] sm:$0xff] }
 0x187   :  { %v573_v57 = vpop.f32.mrf.mxu0  ;;  %1089 = vmatprep.mubr.f32.mxu1 %v295_v53  ;;  %v202_v53 = vld [vmem:[%s8491_s0 + $0x5b0] sm:$0xff] }
 0x189   :  { %v5733_v62 = vpop.f32.mrf.mxu0  ;;  %815 = vmatmul.mubr.f32.gmra.mxu0 %v184_v55  ;;  %v194_v55 = vld [vmem:[%s8491_s0 + $0x570] sm:$0xff] }
 0x18a   :  { %8726 = vst [vmem:[#allocation36_spill] sm:$0xff] %v5733_v62  ;;  %819 = vmatprep.mubr.f32.mxu0 %v187_v59  ;;  %v197_v59 = vld [vmem:[%s8491_s0 + $0x588] sm:$0xff]  ;;  %1090 = vmatmul.mubr.f32.gmra.mxu1 %v294_v56 }
 0x18b   :  { %v578_v3 = vpop.f32.mrf.mxu0 }
 0x18c   :  { %v296_v3 = vld [vmem:[%s8491_s0 + $0x8a0] sm:$0xff] }
 0x18d   :  { %v5747_v10 = vpop.f32.mrf.mxu0  ;;  %820 = vmatmul.mubr.f32.gmra.mxu0 %v186_v1  ;;  %v297_v1 = vld [vmem:[%s8491_s0 + $0x8a8] sm:$0xff] }
 0x18e   :  { %8727 = vst [vmem:[#allocation37_spill] sm:$0xff] %v5747_v10  ;;  %824 = vmatprep.mubr.f32.mxu0 %v189_v9  ;;  %1094 = vmatprep.mubr.f32.mxu1 %v297_v1  ;;  %v305_v1 = vld [vmem:[%s8491_s0 + $0x8e8] sm:$0xff] }
 0x18f   :  { %v583_v19 = vpop.f32.mrf.mxu0  ;;  %1095 = vmatmul.mubr.f32.gmra.mxu1 %v296_v3  ;;  %v304_v3 = vld [vmem:[%s8491_s0 + $0x8e0] sm:$0xff] }
 0x190   :  { %v198_v19 = vld [vmem:[%s8491_s0 + $0x590] sm:$0xff]  ;;  %1099 = vmatprep.mubr.f32.mxu1 %v299_v17 }
 0x191   :  { %v5761_v22 = vpop.f32.mrf.mxu0  ;;  %825 = vmatmul.mubr.f32.gmra.mxu0 %v188_v13 }
 0x192   :  { %8728 = vst [vmem:[#allocation38_spill] sm:$0xff] %v5761_v22  ;;  %829 = vmatprep.mubr.f32.mxu0 %v191_v21  ;;  %v298_v21 = vld [vmem:[%s8491_s0 + $0x8b0] sm:$0xff] }
 0x193   :  { %v588_v33 = vpop.f32.mrf.mxu0  ;;  %1100 = vmatmul.mubr.f32.gmra.mxu1 %v298_v21  ;;  %v206_v21 = vld [vmem:[%s8491_s0 + $0x5d0] sm:$0xff] }
 0x194   :  { %v301_v33 = vld [vmem:[%s8491_s0 + $0x8c8] sm:$0xff] }
 0x195   :  { %v5775_v37 = vpop.f32.mrf.mxu0  ;;  %830 = vmatmul.mubr.f32.gmra.mxu0 %v190_v27  ;;  %v201_v27 = vld [vmem:[%s8491_s0 + $0x5a8] sm:$0xff]  ;;  %1104 = vmatprep.mubr.f32.mxu1 %v301_v33 }
 0x196   :  { %8729 = vst [vmem:[#allocation39_spill] sm:$0xff] %v5775_v37  ;;  %834 = vmatprep.mubr.f32.mxu0 %v193_v35  ;;  %v200_v35 = vld [vmem:[%s8491_s0 + $0x5a0] sm:$0xff]  ;;  %v209_v33 = vld [vmem:[%s8491_s0 + $0x5e8] sm:$0xff] }
 0x197   :  { %v593_v45 = vpop.f32.mrf.mxu0  ;;  %1105 = vmatmul.mubr.f32.gmra.mxu1 %v300_v38  ;;  %v208_v38 = vld [vmem:[%s8491_s0 + $0x5e0] sm:$0xff] }
 0x199   :  { %v5789_v49 = vpop.f32.mrf.mxu0  ;;  %835 = vmatmul.mubr.f32.gmra.mxu0 %v192_v42 }
 0x19a   :  { %8730 = vst [vmem:[#allocation40_spill] sm:$0xff] %v5789_v49  ;;  %839 = vmatprep.mubr.f32.mxu0 %v195_v48  ;;  %v303_v48 = vld [vmem:[%s8491_s0 + $0x8d8] sm:$0xff] }
 0x19b   :  { %v598_v57 = vpop.f32.mrf.mxu0  ;;  %1109 = vmatprep.mubr.f32.mxu1 %v303_v48 }
 0x19c   :  { %v205_v57 = vld [vmem:[%s8491_s0 + $0x5c8] sm:$0xff] }
 0x19d   :  { %v5803_v63 = vpop.f32.mrf.mxu0  ;;  %840 = vmatmul.mubr.f32.gmra.mxu0 %v194_v55  ;;  %v302_v55 = vld [vmem:[%s8491_s0 + $0x8d0] sm:$0xff] }
 0x19e   :  { %8731 = vst [vmem:[#allocation41_spill] sm:$0xff] %v5803_v63  ;;  %844 = vmatprep.mubr.f32.mxu0 %v197_v59  ;;  %1110 = vmatmul.mubr.f32.gmra.mxu1 %v302_v55 }
 0x19f   :  { %v603_v9 = vpop.f32.mrf.mxu0  ;;  %1114 = vmatprep.mubr.f32.mxu1 %v305_v1  ;;  %v212_v1 = vld [vmem:[%s8491_s0 + $0x600] sm:$0xff] }
 0x1a1   :  { %v5817_v13 = vpop.f32.mrf.mxu0  ;;  %845 = vmatmul.mubr.f32.gmra.mxu0 %v196_v2  ;;  %v204_v2 = vld [vmem:[%s8491_s0 + $0x5c0] sm:$0xff] }
 0x1a2   :  { %8732 = vst [vmem:[#allocation42_spill] sm:$0xff] %v5817_v13  ;;  %849 = vmatprep.mubr.f32.mxu0 %v199_v11  ;;  %v207_v11 = vld [vmem:[%s8491_s0 + $0x5d8] sm:$0xff]  ;;  %1115 = vmatmul.mubr.f32.gmra.mxu1 %v304_v3 }
 0x1a3   :  { %v608_v26 = vpop.f32.mrf.mxu0  ;;  %v215_v3 = vld [vmem:[%s8491_s0 + $0x618] sm:$0xff] }
 0x1a4   :  { %v306_v26 = vld [vmem:[%s8491_s0 + $0x8f0] sm:$0xff] }
 0x1a5   :  { %v5831_v30 = vpop.f32.mrf.mxu0  ;;  %850 = vmatmul.mubr.f32.gmra.mxu0 %v198_v19  ;;  %v307_v19 = vld [vmem:[%s8491_s0 + $0x8f8] sm:$0xff] }
 0x1a6   :  { %8733 = vst [vmem:[#allocation43_spill] sm:$0xff] %v5831_v30  ;;  %854 = vmatprep.mubr.f32.mxu0 %v201_v27  ;;  %1119 = vmatprep.mubr.f32.mxu1 %v307_v19 }
 0x1a7   :  { %v613_v42 = vpop.f32.mrf.mxu0  ;;  %1120 = vmatmul.mubr.f32.gmra.mxu1 %v306_v26 }
 0x1a9   :  { %v5845_v45 = vpop.f32.mrf.mxu0  ;;  %855 = vmatmul.mubr.f32.gmra.mxu0 %v200_v35 }
 0x1aa   :  { %8734 = vst [vmem:[#allocation44_spill] sm:$0xff] %v5845_v45  ;;  %859 = vmatprep.mubr.f32.mxu0 %v203_v44  ;;  %v211_v44 = vld [vmem:[%s8491_s0 + $0x5f8] sm:$0xff] }
 0x1ab   :  { %v618_v56 = vpop.f32.mrf.mxu0 }
 0x1ac   :  { %v213_v56 = vld [vmem:[%s8491_s0 + $0x608] sm:$0xff] }
 0x1ad   :  { %v5859_v59 = vpop.f32.mrf.mxu0  ;;  %860 = vmatmul.mubr.f32.gmra.mxu0 %v202_v53  ;;  %v210_v53 = vld [vmem:[%s8491_s0 + $0x5f0] sm:$0xff] }
 0x1ae   :  { %8735 = vst [vmem:[#allocation45_spill] sm:$0xff] %v5859_v59  ;;  %864 = vmatprep.mubr.f32.mxu0 %v205_v57 }
 0x1af   :  { %v623_v9 = vpop.f32.mrf.mxu0 }
 0x1b1   :  { %v5873_v17 = vpop.f32.mrf.mxu0  ;;  %865 = vmatmul.mubr.f32.gmra.mxu0 %v204_v2 }
 0x1b2   :  { %8736 = vst [vmem:[#allocation46_spill] sm:$0xff] %v5873_v17  ;;  %869 = vmatprep.mubr.f32.mxu0 %v207_v11  ;;  %v214_v11 = vld [vmem:[%s8491_s0 + $0x610] sm:$0xff] }
 0x1b3   :  { %v628_v27 = vpop.f32.mrf.mxu0 }
 0x1b4   :  { %v216_v27 = vld [vmem:[%s8491_s0 + $0x620] sm:$0xff] }
 0x1b5   :  { %v5887_v35 = vpop.f32.mrf.mxu0  ;;  %870 = vmatmul.mubr.f32.gmra.mxu0 %v206_v21  ;;  %v217_v21 = vld [vmem:[%s8491_s0 + $0x628] sm:$0xff] }
 0x1b6   :  { %8737 = vst [vmem:[#allocation47_spill] sm:$0xff] %v5887_v35  ;;  %874 = vmatprep.mubr.f32.mxu0 %v209_v33 }
 0x1b7   :  { %v633_v42 = vpop.f32.mrf.mxu0 }
 0x1b9   :  { %v5895_v48 = vpop.f32.mrf.mxu0  ;;  %875 = vmatmul.mubr.f32.gmra.mxu0 %v208_v38  ;;  %v219_v38 = vld [vmem:[%s8491_s0 + $0x638] sm:$0xff] }
 0x1ba   :  { %8738 = vst [vmem:[#allocation48_spill] sm:$0xff] %v5895_v48  ;;  %879 = vmatprep.mubr.f32.mxu0 %v211_v44  ;;  %v218_v44 = vld [vmem:[%s8491_s0 + $0x630] sm:$0xff] }
 0x1bb   :  { %v638_v55 = vpop.f32.mrf.mxu0 }
 0x1bc   :  { %v221_v55 = vld [vmem:[%s8491_s0 + $0x648] sm:$0xff] }
 0x1bd   :  { %v5903_v57 = vpop.f32.mrf.mxu0  ;;  %880 = vmatmul.mubr.f32.gmra.mxu0 %v210_v53 }
 0x1be   :  { %8739 = vst [vmem:[#allocation49_spill] sm:$0xff] %v5903_v57  ;;  %884 = vmatprep.mubr.f32.mxu0 %v213_v56 }
 0x1bf   :  { %v643_v2 = vpop.f32.mrf.mxu0 }
 0x1c1   :  { %v5911_v9 = vpop.f32.mrf.mxu0  ;;  %885 = vmatmul.mubr.f32.gmra.mxu0 %v212_v1  ;;  %v220_v1 = vld [vmem:[%s8491_s0 + $0x640] sm:$0xff] }
 0x1c2   :  { %8740 = vst [vmem:[#allocation50_spill] sm:$0xff] %v5911_v9  ;;  %889 = vmatprep.mubr.f32.mxu0 %v215_v3  ;;  %v223_v3 = vld [vmem:[%s8491_s0 + $0x658] sm:$0xff] }
 0x1c3   :  { %v648_v19 = vpop.f32.mrf.mxu0 }
 0x1c4   :  { %v222_v19 = vld [vmem:[%s8491_s0 + $0x650] sm:$0xff] }
 0x1c5   :  { %v5919_v26 = vpop.f32.mrf.mxu0  ;;  %890 = vmatmul.mubr.f32.gmra.mxu0 %v214_v11 }
 0x1c6   :  { %8741 = vst [vmem:[#allocation51_spill] sm:$0xff] %v5919_v26  ;;  %894 = vmatprep.mubr.f32.mxu0 %v217_v21 }
 0x1c7   :  { %v653_v33 = vpop.f32.mrf.mxu0 }
 0x1c9   :  { %v5927_v42 = vpop.f32.mrf.mxu0  ;;  %895 = vmatmul.mubr.f32.gmra.mxu0 %v216_v27  ;;  %v225_v27 = vld [vmem:[%s8491_s0 + $0x668] sm:$0xff] }
 0x1ca   :  { %8742 = vst [vmem:[#allocation52_spill] sm:$0xff] %v5927_v42  ;;  %899 = vmatprep.mubr.f32.mxu0 %v219_v38  ;;  %v224_v38 = vld [vmem:[%s8491_s0 + $0x660] sm:$0xff] }
 0x1cb   :  { %v658_v53 = vpop.f32.mrf.mxu0 }
 0x1cc   :  { %v227_v53 = vld [vmem:[%s8491_s0 + $0x678] sm:$0xff] }
 0x1cd   :  { %v5935_v56 = vpop.f32.mrf.mxu0  ;;  %900 = vmatmul.mubr.f32.gmra.mxu0 %v218_v44 }
 0x1ce   :  { %8743 = vst [vmem:[#allocation53_spill] sm:$0xff] %v5935_v56  ;;  %904 = vmatprep.mubr.f32.mxu0 %v221_v55  ;;  %v1127_v55 = vsel %vm1125_vm0, %v5319_v8, 0.0 }
 0x1cf   :  { %v663_v2 = vpop.f32.mrf.mxu0 }
 0x1d0   :  { %v1126_v2 = vsel %vm1125_vm0, %v5311_v4, 0.0 }
 0x1d1   :  { %v5943_v11 = vpop.f32.mrf.mxu0  ;;  %905 = vmatmul.mubr.f32.gmra.mxu0 %v220_v1 }
 0x1d2   :  { %8744 = vst [vmem:[#allocation54_spill] sm:$0xff] %v5943_v11  ;;  %909 = vmatprep.mubr.f32.mxu0 %v223_v3  ;;  %v1129_v3 = vsel %vm1125_vm0, %v5327_v12, 0.0  ;;  %v231_v12 = vld [vmem:[%s8491_s0 + $0x698] sm:$0xff] }
 0x1d3   :  { %v668_v21 = vpop.f32.mrf.mxu0 }
 0x1d4   :  { %v1128_v21 = vadd.f32 %v1127_v55, %v1126_v2  ;;  %v228_v55 = vld [vmem:[%s8491_s0 + $0x680] sm:$0xff] }
 0x1d5   :  { %v5951_v33 = vpop.f32.mrf.mxu0  ;;  %910 = vmatmul.mubr.f32.gmra.mxu0 %v222_v19  ;;  %v226_v19 = vld [vmem:[%s8491_s0 + $0x670] sm:$0xff] }
 0x1d6   :  { %8745 = vst [vmem:[#allocation55_spill] sm:$0xff] %v5951_v33  ;;  %914 = vmatprep.mubr.f32.mxu0 %v225_v27  ;;  %v1130_v8 = vadd.f32 %v1129_v3, %v1128_v21  ;;  %v1135_v3 = vsel %vm1125_vm0, %v5351_v24, 0.0 }
 0x1d7   :  { %v673_v44 = vpop.f32.mrf.mxu0 }
 0x1d8   :  { %v229_v44 = vld [vmem:[%s8491_s0 + $0x688] sm:$0xff] }
 0x1d9   :  { %v5961_v1 = vpop.f32.mrf.mxu0  ;;  %915 = vmatmul.mubr.f32.gmra.mxu0 %v224_v38  ;;  %v1131_v38 = vsel %vm1125_vm0, %v5335_v16, 0.0 }
 0x1da   :  { %8746 = vst [vmem:[#allocation56_spill] sm:$0xff] %v5961_v1  ;;  %919 = vmatprep.mubr.f32.mxu0 %v227_v53  ;;  %v1133_v53 = vsel %vm1125_vm0, %v5343_v20, 0.0  ;;  %v1132_v2 = vadd.f32 %v1131_v38, %v1130_v8  ;;  %v230_v8 = vld [vmem:[%s8491_s0 + $0x690] sm:$0xff] }
 0x1db   :  { %v678_v27 = vpop.f32.mrf.mxu0 }
 0x1dc   :  { %v1134_v21 = vadd.f32 %v1133_v53, %v1132_v2  ;;  %v1139_v53 = vsel %vm1125_vm0, %v5367_v32, 0.0 }
 0x1dd   :  { %v5975_v1 = vpop.f32.mrf.mxu0  ;;  %920 = vmatmul.mubr.f32.gmra.mxu0 %v226_v19  ;;  %v1137_v19 = vsel %vm1125_vm0, %v5359_v28, 0.0  ;;  %v6009_v28 = vpop.f32.mrf.mxu1 }
 0x1de   :  { %8747 = vst [vmem:[#allocation57_spill] sm:$0xff] %v5975_v1  ;;  %924 = vmatprep.mubr.f32.mxu0 %v229_v44  ;;  %v1136_v44 = vadd.f32 %v1135_v3, %v1134_v21 }
 0x1df   :  { %v683_v27 = vpop.f32.mrf.mxu0 }
 0x1e0   :  { %v233_v27 = vld [vmem:[%s8491_s0 + $0x6a8] sm:$0xff]  ;;  %v1138_v2 = vadd.f32 %v1137_v19, %v1136_v44  ;;  %v1143_v19 = vsel %vm1125_vm0, %v5383_v40, 0.0  ;;  %v1147_v40 = vsel %vm1125_vm0, %v5411_v52, 0.0 }
 0x1e1   :  { %v5987_v16 = vpop.f32.mrf.mxu0  ;;  %925 = vmatmul.mubr.f32.gmra.mxu0 %v228_v55  ;;  %v232_v55 = vld [vmem:[%s8491_s0 + $0x6a0] sm:$0xff]  ;;  %v8772_v52 = vld [vmem:[#allocation56_spill] sm:$0xff] }
 0x1e2   :  { %8748 = vst [vmem:[#allocation58_spill] sm:$0xff] %v5987_v16  ;;  %929 = vmatprep.mubr.f32.mxu0 %v231_v12  ;;  %v1141_v12 = vsel %vm1125_vm0, %v5375_v36, 0.0  ;;  %v1140_v3 = vadd.f32 %v1139_v53, %v1138_v2  ;;  %v1145_v36 = vsel %vm1125_vm0, %v5397_v46, 0.0  ;;  %v234_v53 = vld [vmem:[%s8491_s0 + $0x6b0] sm:$0xff] }
 0x1e3   :  { %v688_v38 = vpop.f32.mrf.mxu0 }
 0x1e4   :  { %v235_v38 = vld [vmem:[%s8491_s0 + $0x6b8] sm:$0xff] }
 0x1e5   :  { %v5999_v24 = vpop.f32.mrf.mxu0  ;;  %930 = vmatmul.mubr.f32.gmra.mxu0 %v230_v8  ;;  %v1142_v8 = vadd.f32 %v1141_v12, %v1140_v3 }
 0x1e6   :  { %8749 = vst [vmem:[#allocation59_spill] sm:$0xff] %v5999_v24  ;;  %934 = vmatprep.mubr.f32.mxu0 %v233_v27  ;;  %v948_v27 = vpop.f32.mrf.mxu1 }
 0x1e7   :  { %v693_v21 = vpop.f32.mrf.mxu0  ;;  %v1144_v2 = vadd.f32 %v1143_v19, %v1142_v8  ;;  %v1149_v27 = vsel %vm1125_vm0, %v5425_v58, 0.0  ;;  %v1151_v19 = vsel %vm1125_vm0, %v5439_v0, 0.0 }
 0x1e8   :  { %v6020_v32 = vpop.f32.mrf.mxu1 }
 0x1e9   :  { %v6013_v44 = vpop.f32.mrf.mxu0  ;;  %935 = vmatmul.mubr.f32.gmra.mxu0 %v232_v55  ;;  %v1146_v12 = vadd.f32 %v1145_v36, %v1144_v2  ;;  %v1153_v36 = vsel %vm1125_vm0, %v5453_v7, 0.0 }
 0x1ea   :  { %8750 = vst [vmem:[#allocation60_spill] sm:$0xff] %v6013_v44  ;;  %939 = vmatprep.mubr.f32.mxu0 %v235_v38  ;;  %v953_v55 = vpop.f32.mrf.mxu1 }
 0x1eb   :  { %v698_v21 = vpop.f32.mrf.mxu0  ;;  %v1148_v38 = vadd.f32 %v1147_v40, %v1146_v12  ;;  %v1155_v40 = vsel %vm1125_vm0, %v5467_v15, 0.0 }
 0x1ec   :  { %v6028_v20 = vpop.f32.mrf.mxu1 }
 0x1ed   :  { %v6024_v3 = vpop.f32.mrf.mxu0  ;;  %940 = vmatmul.mubr.f32.gmra.mxu0 %v234_v53  ;;  %v1150_v8 = vadd.f32 %v1149_v27, %v1148_v38  ;;  %v1157_v27 = vsel %vm1125_vm0, %v5481_v23, 0.0 }
 0x1ee   :  { %8751 = vst [vmem:[#allocation61_spill] sm:$0xff] %v6024_v3  ;;  %v958_v4 = vpop.f32.mrf.mxu1 }
 0x1ef   :  { %v703_v46 = vpop.f32.mrf.mxu0  ;;  %v1152_v2 = vadd.f32 %v1151_v19, %v1150_v8  ;;  %v1159_v19 = vsel %vm1125_vm0, %v5495_v31, 0.0 }
 0x1f0   :  { %v6036_v55 = vpop.f32.mrf.mxu1 }
 0x1f1   :  { %v6032_v21 = vpop.f32.mrf.mxu0  ;;  %v1154_v46 = vadd.f32 %v1153_v36, %v1152_v2  ;;  %v1161_v36 = vsel %vm1125_vm0, %v5509_v39, 0.0 }
 0x1f2   :  { %8752 = vst [vmem:[#allocation62_spill] sm:$0xff] %v6032_v21  ;;  %v963_v58 = vpop.f32.mrf.mxu1 }
 0x1f3   :  { %v708_v53 = vpop.f32.mrf.mxu0  ;;  %v1156_v38 = vadd.f32 %v1155_v40, %v1154_v46  ;;  %v1163_v40 = vsel %vm1125_vm0, %v5523_v47, 0.0 }
 0x1f4   :  { %v6044_v4 = vpop.f32.mrf.mxu1 }
 0x1f5   :  { %v6040_v12 = vpop.f32.mrf.mxu0  ;;  %v1158_v8 = vadd.f32 %v1157_v27, %v1156_v38  ;;  %v1165_v27 = vsel %vm1125_vm0, %v5537_v54, 0.0 }
 0x1f6   :  { %8753 = vst [vmem:[#allocation63_spill] sm:$0xff] %v6040_v12  ;;  %v968_v7 = vpop.f32.mrf.mxu1 }
 0x1f7   :  { %v713_v0 = vpop.f32.mrf.mxu0  ;;  %v1160_v2 = vadd.f32 %v1159_v19, %v1158_v8  ;;  %v1167_v19 = vsel %vm1125_vm0, %v5551_v61, 0.0 }
 0x1f8   :  { %v6052_v58 = vpop.f32.mrf.mxu1 }
 0x1f9   :  { %v6048_v53 = vpop.f32.mrf.mxu0  ;;  %v1162_v0 = vadd.f32 %v1161_v36, %v1160_v2  ;;  %v1169_v36 = vsel %vm1125_vm0, %v5565_v5, 0.0 }
 0x1fa   :  { %8754 = vst [vmem:[#allocation64_spill] sm:$0xff] %v6048_v53  ;;  %v973_v23 = vpop.f32.mrf.mxu1 }
 0x1fb   :  { %v718_v15 = vpop.f32.mrf.mxu0  ;;  %v1164_v38 = vadd.f32 %v1163_v40, %v1162_v0  ;;  %v1171_v40 = vsel %vm1125_vm0, %v5579_v14, 0.0 }
 0x1fc   :  { %v6060_v7 = vpop.f32.mrf.mxu1 }
 0x1fd   :  { %v6056_v46 = vpop.f32.mrf.mxu0  ;;  %v1166_v15 = vadd.f32 %v1165_v27, %v1164_v38  ;;  %v1173_v27 = vsel %vm1125_vm0, %v5593_v25, 0.0 }
 0x1fe   :  { %8755 = vst [vmem:[#allocation65_spill] sm:$0xff] %v6056_v46  ;;  %v978_v39 = vpop.f32.mrf.mxu1 }
 0x1ff   :  { %v723_v31 = vpop.f32.mrf.mxu0  ;;  %v1168_v2 = vadd.f32 %v1167_v19, %v1166_v15  ;;  %v1175_v19 = vsel %vm1125_vm0, %v5607_v34, 0.0 }
 0x200   :  { %v6068_v23 = vpop.f32.mrf.mxu1 }
 0x201   :  { %v6064_v8 = vpop.f32.mrf.mxu0  ;;  %v1170_v31 = vadd.f32 %v1169_v36, %v1168_v2  ;;  %v1177_v36 = vsel %vm1125_vm0, %v5621_v43, 0.0 }
 0x202   :  { %8756 = vst [vmem:[#allocation66_spill] sm:$0xff] %v6064_v8  ;;  %v983_v54 = vpop.f32.mrf.mxu1 }
 0x203   :  { %v728_v47 = vpop.f32.mrf.mxu0  ;;  %v1172_v38 = vadd.f32 %v1171_v40, %v1170_v31  ;;  %v1179_v40 = vsel %vm1125_vm0, %v5635_v51, 0.0 }
 0x204   :  { %v6076_v39 = vpop.f32.mrf.mxu1 }
 0x205   :  { %v6072_v0 = vpop.f32.mrf.mxu0  ;;  %v1174_v47 = vadd.f32 %v1173_v27, %v1172_v38  ;;  %v1181_v27 = vsel %vm1125_vm0, %v5649_v60, 0.0 }
 0x206   :  { %8757 = vst [vmem:[#allocation67_spill] sm:$0xff] %v6072_v0  ;;  %v988_v5 = vpop.f32.mrf.mxu1 }
 0x207   :  { %v733_v61 = vpop.f32.mrf.mxu0  ;;  %v1176_v2 = vadd.f32 %v1175_v19, %v1174_v47  ;;  %v1183_v19 = vsel %vm1125_vm0, %v5663_v6, 0.0 }
 0x208   :  { %v6084_v54 = vpop.f32.mrf.mxu1 }
 0x209   :  { %v6080_v15 = vpop.f32.mrf.mxu0  ;;  %v1178_v61 = vadd.f32 %v1177_v36, %v1176_v2  ;;  %v1185_v36 = vsel %vm1125_vm0, %v5677_v18, 0.0 }
 0x20a   :  { %8758 = vst [vmem:[#allocation68_spill] sm:$0xff] %v6080_v15  ;;  %v993_v25 = vpop.f32.mrf.mxu1 }
 0x20b   :  { %v738_v14 = vpop.f32.mrf.mxu0  ;;  %v1180_v38 = vadd.f32 %v1179_v40, %v1178_v61  ;;  %v1187_v40 = vsel %vm1125_vm0, %v5691_v29, 0.0 }
 0x20c   :  { %v6092_v5 = vpop.f32.mrf.mxu1 }
 0x20d   :  { %v6088_v31 = vpop.f32.mrf.mxu0  ;;  %v1182_v14 = vadd.f32 %v1181_v27, %v1180_v38  ;;  %v1189_v27 = vsel %vm1125_vm0, %v5705_v41, 0.0 }
 0x20e   :  { %8759 = vst [vmem:[#allocation69_spill] sm:$0xff] %v6088_v31  ;;  %v998_v43 = vpop.f32.mrf.mxu1 }
 0x20f   :  { %v743_v34 = vpop.f32.mrf.mxu0  ;;  %v1184_v2 = vadd.f32 %v1183_v19, %v1182_v14  ;;  %v1191_v19 = vsel %vm1125_vm0, %v5719_v50, 0.0 }
 0x210   :  { %v6100_v25 = vpop.f32.mrf.mxu1 }
 0x211   :  { %v6096_v47 = vpop.f32.mrf.mxu0  ;;  %v1186_v34 = vadd.f32 %v1185_v36, %v1184_v2  ;;  %v1193_v36 = vsel %vm1125_vm0, %v5733_v62, 0.0 }
 0x212   :  { %8760 = vst [vmem:[#allocation70_spill] sm:$0xff] %v6096_v47  ;;  %v1003_v60 = vpop.f32.mrf.mxu1 }
 0x213   :  { %v748_v51 = vpop.f32.mrf.mxu0  ;;  %v1188_v38 = vadd.f32 %v1187_v40, %v1186_v34  ;;  %v1195_v40 = vsel %vm1125_vm0, %v5747_v10, 0.0 }
 0x214   :  { %v6108_v43 = vpop.f32.mrf.mxu1 }
 0x215   :  { %v6104_v61 = vpop.f32.mrf.mxu0  ;;  %v1190_v51 = vadd.f32 %v1189_v27, %v1188_v38  ;;  %v1197_v27 = vsel %vm1125_vm0, %v5761_v22, 0.0 }
 0x216   :  { %8761 = vst [vmem:[#allocation71_spill] sm:$0xff] %v6104_v61  ;;  %v1008_v18 = vpop.f32.mrf.mxu1 }
 0x217   :  { %v753_v6 = vpop.f32.mrf.mxu0  ;;  %v1192_v2 = vadd.f32 %v1191_v19, %v1190_v51  ;;  %v1199_v19 = vsel %vm1125_vm0, %v5775_v37, 0.0 }
 0x218   :  { %v6116_v60 = vpop.f32.mrf.mxu1 }
 0x219   :  { %v6112_v14 = vpop.f32.mrf.mxu0  ;;  %v1194_v6 = vadd.f32 %v1193_v36, %v1192_v2  ;;  %v1201_v36 = vsel %vm1125_vm0, %v5789_v49, 0.0 }
 0x21a   :  { %8762 = vst [vmem:[#allocation72_spill] sm:$0xff] %v6112_v14  ;;  %v1013_v41 = vpop.f32.mrf.mxu1 }
 0x21b   :  { %v758_v29 = vpop.f32.mrf.mxu0  ;;  %v1196_v38 = vadd.f32 %v1195_v40, %v1194_v6  ;;  %v1203_v40 = vsel %vm1125_vm0, %v5803_v63, 0.0 }
 0x21c   :  { %v6124_v18 = vpop.f32.mrf.mxu1 }
 0x21d   :  { %v6120_v34 = vpop.f32.mrf.mxu0  ;;  %v1198_v29 = vadd.f32 %v1197_v27, %v1196_v38  ;;  %v1205_v27 = vsel %vm1125_vm0, %v5817_v13, 0.0 }
 0x21e   :  { %8763 = vst [vmem:[#allocation73_spill] sm:$0xff] %v6120_v34  ;;  %v1018_v62 = vpop.f32.mrf.mxu1 }
 0x21f   :  { %v763_v50 = vpop.f32.mrf.mxu0  ;;  %v1200_v2 = vadd.f32 %v1199_v19, %v1198_v29  ;;  %v1207_v19 = vsel %vm1125_vm0, %v5831_v30, 0.0 }
 0x220   :  { %v6132_v41 = vpop.f32.mrf.mxu1 }
 0x221   :  { %v6128_v51 = vpop.f32.mrf.mxu0  ;;  %v1202_v50 = vadd.f32 %v1201_v36, %v1200_v2  ;;  %v1209_v36 = vsel %vm1125_vm0, %v5845_v45, 0.0 }
 0x222   :  { %8764 = vst [vmem:[#allocation74_spill] sm:$0xff] %v6128_v51  ;;  %v1023_v22 = vpop.f32.mrf.mxu1 }
 0x223   :  { %v768_v10 = vpop.f32.mrf.mxu0  ;;  %v1204_v38 = vadd.f32 %v1203_v40, %v1202_v50  ;;  %v1211_v40 = vsel %vm1125_vm0, %v5859_v59, 0.0 }
 0x224   :  { %v6140_v62 = vpop.f32.mrf.mxu1 }
 0x225   :  { %v6136_v6 = vpop.f32.mrf.mxu0  ;;  %v1206_v10 = vadd.f32 %v1205_v27, %v1204_v38  ;;  %v1213_v27 = vsel %vm1125_vm0, %v5873_v17, 0.0 }
 0x226   :  { %8765 = vst [vmem:[#allocation75_spill] sm:$0xff] %v6136_v6  ;;  %v1028_v49 = vpop.f32.mrf.mxu1 }
 0x227   :  { %v773_v37 = vpop.f32.mrf.mxu0  ;;  %v1208_v2 = vadd.f32 %v1207_v19, %v1206_v10  ;;  %v1215_v19 = vsel %vm1125_vm0, %v5887_v35, 0.0 }
 0x228   :  { %v6148_v22 = vpop.f32.mrf.mxu1 }
 0x229   :  { %v6144_v29 = vpop.f32.mrf.mxu0  ;;  %v1210_v37 = vadd.f32 %v1209_v36, %v1208_v2  ;;  %v1217_v36 = vsel %vm1125_vm0, %v5895_v48, 0.0 }
 0x22a   :  { %8766 = vst [vmem:[#allocation76_spill] sm:$0xff] %v6144_v29  ;;  %v1033_v13 = vpop.f32.mrf.mxu1 }
 0x22b   :  { %v778_v63 = vpop.f32.mrf.mxu0  ;;  %v1212_v38 = vadd.f32 %v1211_v40, %v1210_v37  ;;  %v1219_v40 = vsel %vm1125_vm0, %v5903_v57, 0.0 }
 0x22c   :  { %v6156_v49 = vpop.f32.mrf.mxu1 }
 0x22d   :  { %v6152_v50 = vpop.f32.mrf.mxu0  ;;  %v1214_v63 = vadd.f32 %v1213_v27, %v1212_v38  ;;  %v1221_v27 = vsel %vm1125_vm0, %v5911_v9, 0.0 }
 0x22e   :  { %8767 = vst [vmem:[#allocation77_spill] sm:$0xff] %v6152_v50  ;;  %v1038_v45 = vpop.f32.mrf.mxu1 }
 0x22f   :  { %v783_v30 = vpop.f32.mrf.mxu0  ;;  %v1216_v2 = vadd.f32 %v1215_v19, %v1214_v63  ;;  %v1223_v19 = vsel %vm1125_vm0, %v5919_v26, 0.0 }
 0x230   :  { %v6164_v13 = vpop.f32.mrf.mxu1 }
 0x231   :  { %v6160_v10 = vpop.f32.mrf.mxu0  ;;  %v1218_v30 = vadd.f32 %v1217_v36, %v1216_v2  ;;  %v1225_v36 = vsel %vm1125_vm0, %v5927_v42, 0.0 }
 0x232   :  { %8768 = vst [vmem:[#allocation78_spill] sm:$0xff] %v6160_v10  ;;  %v1043_v17 = vpop.f32.mrf.mxu1 }
 0x233   :  { %v788_v59 = vpop.f32.mrf.mxu0  ;;  %v1220_v38 = vadd.f32 %v1219_v40, %v1218_v30  ;;  %v1227_v40 = vsel %vm1125_vm0, %v5935_v56, 0.0 }
 0x234   :  { %v6172_v45 = vpop.f32.mrf.mxu1 }
 0x235   :  { %v6168_v37 = vpop.f32.mrf.mxu0  ;;  %v1222_v59 = vadd.f32 %v1221_v27, %v1220_v38  ;;  %v1229_v27 = vsel %vm1125_vm0, %v5943_v11, 0.0 }
 0x236   :  { %8769 = vst [vmem:[#allocation79_spill] sm:$0xff] %v6168_v37  ;;  %v1048_v48 = vpop.f32.mrf.mxu1 }
 0x237   :  { %v793_v35 = vpop.f32.mrf.mxu0  ;;  %v1224_v2 = vadd.f32 %v1223_v19, %v1222_v59  ;;  %v1231_v19 = vsel %vm1125_vm0, %v5951_v33, 0.0 }
 0x238   :  { %v6180_v17 = vpop.f32.mrf.mxu1 }
 0x239   :  { %v6176_v63 = vpop.f32.mrf.mxu0  ;;  %v1226_v35 = vadd.f32 %v1225_v36, %v1224_v2  ;;  %v1233_v36 = vsel %vm1125_vm0, %v8772_v52, 0.0 }
 0x23a   :  { %8770 = vst [vmem:[#allocation80_spill] sm:$0xff] %v6176_v63  ;;  %v1053_v9 = vpop.f32.mrf.mxu1 }
 0x23b   :  { %v798_v57 = vpop.f32.mrf.mxu0  ;;  %v1228_v38 = vadd.f32 %v1227_v40, %v1226_v35  ;;  %v1235_v40 = vsel %vm1125_vm0, %v5975_v1, 0.0 }
 0x23c   :  { %v6188_v48 = vpop.f32.mrf.mxu1 }
 0x23d   :  { %v6184_v30 = vpop.f32.mrf.mxu0  ;;  %v1230_v57 = vadd.f32 %v1229_v27, %v1228_v38  ;;  %v1237_v27 = vsel %vm1125_vm0, %v5987_v16, 0.0 }
 0x23e   :  { %8771 = vst [vmem:[#allocation81_spill] sm:$0xff] %v6184_v30  ;;  %v1058_v42 = vpop.f32.mrf.mxu1 }
 0x23f   :  { %v803_v26 = vpop.f32.mrf.mxu0  ;;  %v1232_v2 = vadd.f32 %v1231_v19, %v1230_v57  ;;  %v1239_v19 = vsel %vm1125_vm0, %v5999_v24, 0.0 }
 0x240   :  { %v6196_v9 = vpop.f32.mrf.mxu1 }
 0x241   :  { %v6192_v59 = vpop.f32.mrf.mxu0  ;;  %v1234_v26 = vadd.f32 %v1233_v36, %v1232_v2  ;;  %v1241_v36 = vsel %vm1125_vm0, %v6013_v44, 0.0 }
 0x242   :  { %v1063_v11 = vpop.f32.mrf.mxu1 }
 0x243   :  { %v808_v56 = vpop.f32.mrf.mxu0  ;;  %v1236_v38 = vadd.f32 %v1235_v40, %v1234_v26  ;;  %v1243_v40 = vsel %vm1125_vm0, %v6024_v3, 0.0 }
 0x244   :  { %v6204_v42 = vpop.f32.mrf.mxu1 }
 0x245   :  { %v6200_v35 = vpop.f32.mrf.mxu0  ;;  %v1238_v56 = vadd.f32 %v1237_v27, %v1236_v38  ;;  %v1245_v27 = vsel %vm1125_vm0, %v6032_v21, 0.0 }
 0x246   :  { %8773 = vst [vmem:[#allocation82_spill] sm:$0xff] %v6200_v35  ;;  %v1068_v52 = vpop.f32.mrf.mxu1 }
 0x247   :  { %v813_v33 = vpop.f32.mrf.mxu0  ;;  %v1240_v2 = vadd.f32 %v1239_v19, %v1238_v56  ;;  %v1247_v19 = vsel %vm1125_vm0, %v6040_v12, 0.0 }
 0x248   :  { %v6212_v11 = vpop.f32.mrf.mxu1 }
 0x249   :  { %v6208_v57 = vpop.f32.mrf.mxu0  ;;  %v1242_v33 = vadd.f32 %v1241_v36, %v1240_v2  ;;  %v1249_v36 = vsel %vm1125_vm0, %v6048_v53, 0.0 }
 0x24a   :  { %v1073_v16 = vpop.f32.mrf.mxu1 }
 0x24b   :  { %v818_v1 = vpop.f32.mrf.mxu0  ;;  %v1244_v38 = vadd.f32 %v1243_v40, %v1242_v33  ;;  %v1251_v40 = vsel %vm1125_vm0, %v6056_v46, 0.0 }
 0x24c   :  { %v6220_v52 = vpop.f32.mrf.mxu1 }
 0x24d   :  { %v6216_v26 = vpop.f32.mrf.mxu0  ;;  %v1246_v1 = vadd.f32 %v1245_v27, %v1244_v38  ;;  %v1253_v27 = vsel %vm1125_vm0, %v6064_v8, 0.0 }
 0x24e   :  { %8774 = vst [vmem:[#allocation83_spill] sm:$0xff] %v6216_v26  ;;  %v1078_v44 = vpop.f32.mrf.mxu1 }
 0x24f   :  { %v823_v24 = vpop.f32.mrf.mxu0  ;;  %v1248_v2 = vadd.f32 %v1247_v19, %v1246_v1  ;;  %v1255_v19 = vsel %vm1125_vm0, %v6072_v0, 0.0 }
 0x250   :  { %v6228_v16 = vpop.f32.mrf.mxu1 }
 0x251   :  { %v6224_v56 = vpop.f32.mrf.mxu0  ;;  %v1250_v24 = vadd.f32 %v1249_v36, %v1248_v2  ;;  %v1257_v36 = vsel %vm1125_vm0, %v6080_v15, 0.0 }
 0x252   :  { %v1083_v21 = vpop.f32.mrf.mxu1 }
 0x253   :  { %v828_v3 = vpop.f32.mrf.mxu0  ;;  %v1252_v38 = vadd.f32 %v1251_v40, %v1250_v24  ;;  %v1259_v40 = vsel %vm1125_vm0, %v6088_v31, 0.0 }
 0x254   :  { %v6236_v44 = vpop.f32.mrf.mxu1 }
 0x255   :  { %v6232_v33 = vpop.f32.mrf.mxu0  ;;  %v1254_v3 = vadd.f32 %v1253_v27, %v1252_v38  ;;  %v1261_v27 = vsel %vm1125_vm0, %v6096_v47, 0.0 }
 0x256   :  { %8775 = vst [vmem:[#allocation84_spill] sm:$0xff] %v6232_v33  ;;  %v1088_v53 = vpop.f32.mrf.mxu1 }
 0x257   :  { %v833_v12 = vpop.f32.mrf.mxu0  ;;  %v1256_v2 = vadd.f32 %v1255_v19, %v1254_v3  ;;  %v1263_v19 = vsel %vm1125_vm0, %v6104_v61, 0.0 }
 0x258   :  { %v6244_v21 = vpop.f32.mrf.mxu1 }
 0x259   :  { %v6240_v1 = vpop.f32.mrf.mxu0  ;;  %v1258_v12 = vadd.f32 %v1257_v36, %v1256_v2  ;;  %v1265_v36 = vsel %vm1125_vm0, %v6112_v14, 0.0 }
 0x25a   :  { %v1093_v8 = vpop.f32.mrf.mxu1 }
 0x25b   :  { %v838_v46 = vpop.f32.mrf.mxu0  ;;  %v1260_v38 = vadd.f32 %v1259_v40, %v1258_v12  ;;  %v1267_v40 = vsel %vm1125_vm0, %v6120_v34, 0.0 }
 0x25c   :  { %v6252_v53 = vpop.f32.mrf.mxu1 }
 0x25d   :  { %v6248_v24 = vpop.f32.mrf.mxu0  ;;  %8777 = vst [vmem:[#allocation86_spill] sm:$0xff] %v6252_v53  ;;  %v1262_v46 = vadd.f32 %v1261_v27, %v1260_v38  ;;  %v1269_v27 = vsel %vm1125_vm0, %v6128_v51, 0.0 }
 0x25e   :  { %8776 = vst [vmem:[#allocation85_spill] sm:$0xff] %v6248_v24  ;;  %v1098_v15 = vpop.f32.mrf.mxu1 }
 0x25f   :  { %v843_v0 = vpop.f32.mrf.mxu0  ;;  %v1264_v2 = vadd.f32 %v1263_v19, %v1262_v46  ;;  %v1271_v19 = vsel %vm1125_vm0, %v6136_v6, 0.0 }
 0x260   :  { %v6260_v8 = vpop.f32.mrf.mxu1 }
 0x261   :  { %v6256_v3 = vpop.f32.mrf.mxu0  ;;  %8778 = vst [vmem:[#allocation87_spill] sm:$0xff] %v6260_v8  ;;  %v1266_v0 = vadd.f32 %v1265_v36, %v1264_v2  ;;  %v1273_v36 = vsel %vm1125_vm0, %v6144_v29, 0.0 }
 0x262   :  { %v1103_v47 = vpop.f32.mrf.mxu1 }
 0x263   :  { %v848_v31 = vpop.f32.mrf.mxu0  ;;  %v1268_v38 = vadd.f32 %v1267_v40, %v1266_v0  ;;  %v1275_v40 = vsel %vm1125_vm0, %v6152_v50, 0.0 }
 0x264   :  { %v6268_v15 = vpop.f32.mrf.mxu1 }
 0x265   :  { %v6264_v12 = vpop.f32.mrf.mxu0  ;;  %8780 = vst [vmem:[#allocation89_spill] sm:$0xff] %v6268_v15  ;;  %v1270_v31 = vadd.f32 %v1269_v27, %v1268_v38  ;;  %v1277_v27 = vsel %vm1125_vm0, %v6160_v10, 0.0 }
 0x266   :  { %8779 = vst [vmem:[#allocation88_spill] sm:$0xff] %v6264_v12  ;;  %v1108_v14 = vpop.f32.mrf.mxu1 }
 0x267   :  { %v853_v61 = vpop.f32.mrf.mxu0  ;;  %v1272_v2 = vadd.f32 %v1271_v19, %v1270_v31  ;;  %v1279_v19 = vsel %vm1125_vm0, %v6168_v37, 0.0 }
 0x268   :  { %v6276_v47 = vpop.f32.mrf.mxu1 }
 0x269   :  { %v6272_v46 = vpop.f32.mrf.mxu0  ;;  %v1274_v61 = vadd.f32 %v1273_v36, %v1272_v2  ;;  %v1281_v36 = vsel %vm1125_vm0, %v6176_v63, 0.0 }
 0x26a   :  { %v1113_v51 = vpop.f32.mrf.mxu1 }
 0x26b   :  { %v858_v34 = vpop.f32.mrf.mxu0  ;;  %v1276_v38 = vadd.f32 %v1275_v40, %v1274_v61  ;;  %v1283_v40 = vsel %vm1125_vm0, %v6184_v30, 0.0 }
 0x26c   :  { %v6284_v14 = vpop.f32.mrf.mxu1 }
 0x26d   :  { %v6280_v0 = vpop.f32.mrf.mxu0  ;;  %8782 = vst [vmem:[#allocation91_spill] sm:$0xff] %v6284_v14  ;;  %v1278_v34 = vadd.f32 %v1277_v27, %v1276_v38  ;;  %v1285_v27 = vsel %vm1125_vm0, %v6192_v59, 0.0 }
 0x26e   :  { %8781 = vst [vmem:[#allocation90_spill] sm:$0xff] %v6280_v0  ;;  %v1118_v29 = vpop.f32.mrf.mxu1 }
 0x26f   :  { %v863_v6 = vpop.f32.mrf.mxu0  ;;  %v1280_v2 = vadd.f32 %v1279_v19, %v1278_v34  ;;  %v1287_v29 = vsel %vm1125_vm0, %v6200_v35, 0.0 }
 0x270   :  { %v6292_v51 = vpop.f32.mrf.mxu1 }
 0x271   :  { %v6288_v31 = vpop.f32.mrf.mxu0  ;;  %8783 = vst [vmem:[#allocation92_spill] sm:$0xff] %v6292_v51  ;;  %v1282_v6 = vadd.f32 %v1281_v36, %v1280_v2  ;;  %v1291_v36 = vsel %vm1125_vm0, %v6216_v26, 0.0 }
 0x272   :  { %v1123_v10 = vpop.f32.mrf.mxu1 }
 0x273   :  { %v868_v50 = vpop.f32.mrf.mxu0  ;;  %v1284_v38 = vadd.f32 %v1283_v40, %v1282_v6 }
 0x274   :  { %v1289_v50 = vsel %vm1125_vm0, %v6208_v57, 0.0 }
 0x275   :  { %v6296_v61 = vpop.f32.mrf.mxu0  ;;  %v1286_v63 = vadd.f32 %v1285_v27, %v1284_v38  ;;  %v1295_v27 = vsel %vm1125_vm0, %v6232_v33, 0.0 }
 0x276   :  { %8784 = vst [vmem:[#allocation93_spill] sm:$0xff] %v6296_v61 }
 0x277   :  { %v873_v37 = vpop.f32.mrf.mxu0  ;;  %v1288_v34 = vadd.f32 %v1287_v29, %v1286_v63  ;;  %v1297_v63 = vsel %vm1125_vm0, %v6240_v1, 0.0 }
 0x278   :  { %v1293_v37 = vsel %vm1125_vm0, %v6224_v56, 0.0 }
 0x279   :  { %v6302_v19 = vpop.f32.mrf.mxu0  ;;  %v1290_v10 = vadd.f32 %v1289_v50, %v1288_v34  ;;  %v1299_v50 = vsel %vm1125_vm0, %v6248_v24, 0.0 }
 0x27b   :  { %v878_v30 = vpop.f32.mrf.mxu0  ;;  %v1292_v40 = vadd.f32 %v1291_v36, %v1290_v10  ;;  %v1301_v36 = vsel %vm1125_vm0, %v6256_v3, 0.0 }
 0x27d   :  { %v6308_v2 = vpop.f32.mrf.mxu0  ;;  %v1294_v38 = vadd.f32 %v1293_v37, %v1292_v40  ;;  %v1303_v37 = vsel %vm1125_vm0, %v6264_v12, 0.0 }
 0x27e   :  { %8785 = vst [vmem:[#allocation94_spill] sm:$0xff] %v6308_v2 }
 0x27f   :  { %v883_v6 = vpop.f32.mrf.mxu0  ;;  %v1296_v30 = vadd.f32 %v1295_v27, %v1294_v38  ;;  %v1305_v27 = vsel %vm1125_vm0, %v6272_v46, 0.0 }
 0x281   :  { %v6314_v35 = vpop.f32.mrf.mxu0  ;;  %v1298_v34 = vadd.f32 %v1297_v63, %v1296_v30  ;;  %v1307_v63 = vsel %vm1125_vm0, %v6280_v0, 0.0 }
 0x283   :  { %v888_v29 = vpop.f32.mrf.mxu0  ;;  %v1300_v10 = vadd.f32 %v1299_v50, %v1298_v34  ;;  %v1309_v50 = vsel %vm1125_vm0, %v6288_v31, 0.0 }
 0x285   :  { %v6320_v26 = vpop.f32.mrf.mxu0  ;;  %v1302_v40 = vadd.f32 %v1301_v36, %v1300_v10  ;;  %v1311_v36 = vsel %vm1125_vm0, %v6296_v61, 0.0 }
 0x286   :  { %8786 = vst [vmem:[#allocation95_spill] sm:$0xff] %v6320_v26 }
 0x287   :  { %v893_v6 = vpop.f32.mrf.mxu0  ;;  %v1304_v38 = vadd.f32 %v1303_v37, %v1302_v40  ;;  %v1313_v37 = vsel %vm1125_vm0, %v6302_v19, 0.0 }
 0x289   :  { %v6326_v33 = vpop.f32.mrf.mxu0  ;;  %v1306_v30 = vadd.f32 %v1305_v27, %v1304_v38  ;;  %v1315_v27 = vsel %vm1125_vm0, %v6308_v2, 0.0 }
 0x28b   :  { %v898_v29 = vpop.f32.mrf.mxu0  ;;  %v1308_v34 = vadd.f32 %v1307_v63, %v1306_v30  ;;  %v1317_v63 = vsel %vm1125_vm0, %v6314_v35, 0.0 }
 0x28d   :  { %v6332_v24 = vpop.f32.mrf.mxu0  ;;  %v1310_v10 = vadd.f32 %v1309_v50, %v1308_v34  ;;  %v1319_v50 = vsel %vm1125_vm0, %v6320_v26, 0.0 }
 0x28e   :  { %8787 = vst [vmem:[#allocation96_spill] sm:$0xff] %v6332_v24 }
 0x28f   :  { %v903_v6 = vpop.f32.mrf.mxu0  ;;  %v1312_v40 = vadd.f32 %v1311_v36, %v1310_v10  ;;  %v1321_v36 = vsel %vm1125_vm0, %v6326_v33, 0.0 }
 0x291   :  { %v6338_v12 = vpop.f32.mrf.mxu0  ;;  %v1314_v38 = vadd.f32 %v1313_v37, %v1312_v40  ;;  %v1323_v37 = vsel %vm1125_vm0, %v6332_v24, 0.0 }
 0x293   :  { %v908_v29 = vpop.f32.mrf.mxu0  ;;  %v1316_v30 = vadd.f32 %v1315_v27, %v1314_v38  ;;  %v1325_v27 = vsel %vm1125_vm0, %v6338_v12, 0.0 }
 0x295   :  { %v6344_v0 = vpop.f32.mrf.mxu0  ;;  %v1318_v34 = vadd.f32 %v1317_v63, %v1316_v30 }
 0x296   :  { %8788 = vst [vmem:[#allocation97_spill] sm:$0xff] %v6344_v0  ;;  %v1327_v63 = vsel %vm1125_vm0, %v6344_v0, 0.0 }
 0x297   :  { %v913_v6 = vpop.f32.mrf.mxu0  ;;  %v1320_v10 = vadd.f32 %v1319_v50, %v1318_v34 }
 0x299   :  { %v6350_v61 = vpop.f32.mrf.mxu0  ;;  %v1322_v40 = vadd.f32 %v1321_v36, %v1320_v10 }
 0x29a   :  { %v1329_v50 = vsel %vm1125_vm0, %v6350_v61, 0.0 }
 0x29b   :  { %v918_v29 = vpop.f32.mrf.mxu0  ;;  %v1324_v38 = vadd.f32 %v1323_v37, %v1322_v40 }
 0x29d   :  { %v6356_v2 = vpop.f32.mrf.mxu0  ;;  %v1326_v30 = vadd.f32 %v1325_v27, %v1324_v38 }
 0x29e   :  { %8789 = vst [vmem:[#allocation98_spill] sm:$0xff] %v6356_v2  ;;  %v1331_v36 = vsel %vm1125_vm0, %v6356_v2, 0.0 }
 0x29f   :  { %v923_v6 = vpop.f32.mrf.mxu0  ;;  %v1328_v34 = vadd.f32 %v1327_v63, %v1326_v30 }
 0x2a1   :  { %v6362_v26 = vpop.f32.mrf.mxu0  ;;  %v1330_v10 = vadd.f32 %v1329_v50, %v1328_v34 }
 0x2a2   :  { %8790 = vst [vmem:[#allocation99_spill] sm:$0xff] %v6362_v26  ;;  %v1333_v37 = vsel %vm1125_vm0, %v6362_v26, 0.0 }
 0x2a3   :  { %v928_v29 = vpop.f32.mrf.mxu0  ;;  %v1332_v40 = vadd.f32 %v1331_v36, %v1330_v10  ;;  %v1341_v10 = vsel %vm1125_vm0, %v6009_v28, 0.0 }
 0x2a5   :  { %v6368_v24 = vpop.f32.mrf.mxu0  ;;  %v1334_v38 = vadd.f32 %v1333_v37, %v1332_v40  ;;  %v1343_v37 = vsel %vm1125_vm0, %v6020_v32, 0.0 }
 0x2a6   :  { %v1335_v27 = vsel %vm1125_vm0, %v6368_v24, 0.0 }
 0x2a7   :  { %v933_v6 = vpop.f32.mrf.mxu0  ;;  %v1336_v30 = vadd.f32 %v1335_v27, %v1334_v38  ;;  %v1345_v27 = vsel %vm1125_vm0, %v6028_v20, 0.0 }
 0x2a9   :  { %v6374_v0 = vpop.f32.mrf.mxu0 }
 0x2aa   :  { %v1337_v63 = vsel %vm1125_vm0, %v6374_v0, 0.0 }
 0x2ab   :  { %v938_v29 = vpop.f32.mrf.mxu0  ;;  %v1338_v2 = vadd.f32 %v1337_v63, %v1336_v30  ;;  %v1347_v63 = vsel %vm1125_vm0, %v6036_v55, 0.0 }
 0x2ad   :  { %v6378_v50 = vpop.f32.mrf.mxu0 }
 0x2ae   :  { %v1339_v34 = vsel %vm1125_vm0, %v6378_v50, 0.0 }
 0x2af   :  { %v1340_v26 = vadd.f32 %v1339_v34, %v1338_v2  ;;  %v943_v36 = vpop.f32.mrf.mxu0  ;;  %v1349_v2 = vsel %vm1125_vm0, %v6044_v4, 0.0  ;;  %v1351_v34 = vsel %vm1125_vm0, %v6052_v58, 0.0 }
 0x2b0   :  { %v1353_v36 = vsel %vm1125_vm0, %v6060_v7, 0.0 }
 0x2b1   :  { %v1342_v6 = vadd.f32 %v1341_v10, %v1340_v26 }
 0x2b3   :  { %v1344_v40 = vadd.f32 %v1343_v37, %v1342_v6  ;;  %v1355_v6 = vsel %vm1125_vm0, %v6068_v23, 0.0 }
 0x2b5   :  { %v1346_v38 = vadd.f32 %v1345_v27, %v1344_v40  ;;  %v1357_v40 = vsel %vm1125_vm0, %v6076_v39, 0.0 }
 0x2b7   :  { %v1348_v30 = vadd.f32 %v1347_v63, %v1346_v38  ;;  %v1359_v38 = vsel %vm1125_vm0, %v6084_v54, 0.0 }
 0x2b9   :  { %v1350_v29 = vadd.f32 %v1349_v2, %v1348_v30  ;;  %v1361_v30 = vsel %vm1125_vm0, %v6092_v5, 0.0 }
 0x2bb   :  { %v1352_v26 = vadd.f32 %v1351_v34, %v1350_v29  ;;  %v1363_v29 = vsel %vm1125_vm0, %v6100_v25, 0.0 }
 0x2bd   :  { %v1354_v10 = vadd.f32 %v1353_v36, %v1352_v26  ;;  %v1365_v26 = vsel %vm1125_vm0, %v6108_v43, 0.0 }
 0x2bf   :  { %v1356_v37 = vadd.f32 %v1355_v6, %v1354_v10  ;;  %v1367_v10 = vsel %vm1125_vm0, %v6116_v60, 0.0 }
 0x2c1   :  { %v1358_v27 = vadd.f32 %v1357_v40, %v1356_v37  ;;  %v1369_v37 = vsel %vm1125_vm0, %v6124_v18, 0.0 }
 0x2c3   :  { %v1360_v63 = vadd.f32 %v1359_v38, %v1358_v27  ;;  %v1371_v27 = vsel %vm1125_vm0, %v6132_v41, 0.0 }
 0x2c5   :  { %v1362_v2 = vadd.f32 %v1361_v30, %v1360_v63  ;;  %v1373_v63 = vsel %vm1125_vm0, %v6140_v62, 0.0 }
 0x2c7   :  { %v1364_v34 = vadd.f32 %v1363_v29, %v1362_v2  ;;  %v1375_v2 = vsel %vm1125_vm0, %v6148_v22, 0.0 }
 0x2c9   :  { %v1366_v36 = vadd.f32 %v1365_v26, %v1364_v34  ;;  %v1377_v34 = vsel %vm1125_vm0, %v6156_v49, 0.0 }
 0x2cb   :  { %v1368_v6 = vadd.f32 %v1367_v10, %v1366_v36  ;;  %v1379_v36 = vsel %vm1125_vm0, %v6164_v13, 0.0 }
 0x2cd   :  { %v1370_v40 = vadd.f32 %v1369_v37, %v1368_v6  ;;  %v1381_v6 = vsel %vm1125_vm0, %v6172_v45, 0.0 }
 0x2cf   :  { %v1372_v38 = vadd.f32 %v1371_v27, %v1370_v40  ;;  %v1383_v40 = vsel %vm1125_vm0, %v6180_v17, 0.0 }
 0x2d1   :  { %v1374_v30 = vadd.f32 %v1373_v63, %v1372_v38  ;;  %v1385_v38 = vsel %vm1125_vm0, %v6188_v48, 0.0 }
 0x2d3   :  { %v1376_v29 = vadd.f32 %v1375_v2, %v1374_v30  ;;  %v1387_v30 = vsel %vm1125_vm0, %v6196_v9, 0.0 }
 0x2d5   :  { %v1378_v26 = vadd.f32 %v1377_v34, %v1376_v29  ;;  %v1389_v29 = vsel %vm1125_vm0, %v6204_v42, 0.0 }
 0x2d7   :  { %v1380_v10 = vadd.f32 %v1379_v36, %v1378_v26  ;;  %v1391_v26 = vsel %vm1125_vm0, %v6212_v11, 0.0 }
 0x2d9   :  { %v1382_v37 = vadd.f32 %v1381_v6, %v1380_v10  ;;  %v1393_v10 = vsel %vm1125_vm0, %v6220_v52, 0.0 }
 0x2db   :  { %v1384_v27 = vadd.f32 %v1383_v40, %v1382_v37  ;;  %v1395_v37 = vsel %vm1125_vm0, %v6228_v16, 0.0 }
 0x2dd   :  { %v1386_v63 = vadd.f32 %v1385_v38, %v1384_v27  ;;  %v1397_v27 = vsel %vm1125_vm0, %v6236_v44, 0.0 }
 0x2df   :  { %v1388_v2 = vadd.f32 %v1387_v30, %v1386_v63  ;;  %v1399_v63 = vsel %vm1125_vm0, %v6244_v21, 0.0 }
 0x2e1   :  { %v1390_v34 = vadd.f32 %v1389_v29, %v1388_v2  ;;  %v1401_v2 = vsel %vm1125_vm0, %v6252_v53, 0.0 }
 0x2e3   :  { %v1392_v36 = vadd.f32 %v1391_v26, %v1390_v34  ;;  %v1403_v34 = vsel %vm1125_vm0, %v6260_v8, 0.0 }
 0x2e5   :  { %v1394_v6 = vadd.f32 %v1393_v10, %v1392_v36  ;;  %v1405_v36 = vsel %vm1125_vm0, %v6268_v15, 0.0 }
 0x2e7   :  { %v1396_v40 = vadd.f32 %v1395_v37, %v1394_v6  ;;  %v1407_v6 = vsel %vm1125_vm0, %v6276_v47, 0.0 }
 0x2e9   :  { %v1398_v38 = vadd.f32 %v1397_v27, %v1396_v40  ;;  %v1409_v40 = vsel %vm1125_vm0, %v6284_v14, 0.0 }
 0x2eb   :  { %v1400_v30 = vadd.f32 %v1399_v63, %v1398_v38  ;;  %v1411_v38 = vsel %vm1125_vm0, %v6292_v51, 0.0 }
 0x2ed   :  { %v1402_v29 = vadd.f32 %v1401_v2, %v1400_v30 }
 0x2ef   :  { %v1404_v26 = vadd.f32 %v1403_v34, %v1402_v29 }
 0x2f1   :  { %v1406_v10 = vadd.f32 %v1405_v36, %v1404_v26  ;;  %v8791_v26 = vld [vmem:[#allocation2_spill] sm:$0xff] }
 0x2f3   :  { %v1408_v37 = vadd.f32 %v1407_v6, %v1406_v10  ;;  %v8793_v10 = vld [vmem:[#allocation3_spill] sm:$0xff] }
 0x2f5   :  { %v1410_v27 = vadd.f32 %v1409_v40, %v1408_v37  ;;  %v8795_v37 = vld [vmem:[#allocation4_spill] sm:$0xff] }
 0x2f7   :  { %v1412_v63 = vadd.f32 %v1411_v38, %v1410_v27  ;;  %v8797_v27 = vld [vmem:[#allocation5_spill] sm:$0xff] }
 0x2f9   :  { %v1413_v30 = vrot.slane %v1412_v63, 4 }
 0x2fb   :  { %v1414_v2 = vadd.f32 %v1413_v30, %v1412_v63  ;;  %v8798_v63 = vld [vmem:[#allocation6_spill] sm:$0xff] }
 0x2fd   :  { %v1415_v8 = vrot.slane %v1414_v2, 2 }
 0x2ff   :  { %v1416_v29 = vadd.f32 %v1415_v8, %v1414_v2 }
 0x301   :  { %v1417_v34 = vrot.slane %v1416_v29, 1 }
 0x303   :  { %v1418_v53 = vadd.f32 %v1417_v34, %v1416_v29  ;;  %v8800_v29 = vld [vmem:[#allocation7_spill] sm:$0xff] }
 0x305   :  { %v6454_v15 = vmul.f32 0.00086805556, %v1418_v53 }
 0x307   :  { %v6458_v36 = vsub.f32 %v8791_v26, %v6454_v15  ;;  %v6462_v6 = vsub.f32 %v8793_v10, %v6454_v15  ;;  %v6466_v40 = vsub.f32 %v8795_v37, %v6454_v15  ;;  %v6470_v38 = vsub.f32 %v8797_v27, %v6454_v15 }
 0x308   :  { %v6478_v30 = vsub.f32 %v8798_v63, %v6454_v15  ;;  %v6484_v34 = vsub.f32 %v8800_v29, %v6454_v15  ;;  %v8804_v29 = vld [vmem:[#allocation9_spill] sm:$0xff] }
 0x309   :  { %8792 = vst [vmem:[#allocation2_spill] sm:$0xff] %v6458_v36  ;;  %8794 = vst [vmem:[#allocation3_spill] sm:$0xff] %v6462_v6  ;;  %v1564_v53 = vmul.f32 %v6458_v36, %v6458_v36  ;;  %v1565_v8 = vmul.f32 %v6462_v6, %v6462_v6  ;;  %v1566_v2 = vmul.f32 %v6466_v40, %v6466_v40  ;;  %v8802_v6 = vld [vmem:[#allocation8_spill] sm:$0xff] }
 0x30a   :  { %8796 = vst [vmem:[#allocation4_spill] sm:$0xff] %v6466_v40  ;;  %8799 = vst [vmem:[#allocation5_spill] sm:$0xff] %v6478_v30  ;;  %v1567_v26 = vmul.f32 %v6470_v38, %v6470_v38  ;;  %v6492_v36 = vsub.f32 %v8802_v6, %v6454_v15  ;;  %v1568_v63 = vmul.f32 %v6478_v30, %v6478_v30 }
 0x30b   :  { %8801 = vst [vmem:[#allocation6_spill] sm:$0xff] %v6484_v34  ;;  %v1708_v10 = vsel %vm1125_vm0, %v1564_v53, 0.0  ;;  %v1709_v37 = vsel %vm1125_vm0, %v1565_v8, 0.0  ;;  %v1711_v40 = vsel %vm1125_vm0, %v1566_v2, 0.0  ;;  %v6499_v14 = vsub.f32 %v8804_v29, %v6454_v15 }
 0x30c   :  { %v1710_v27 = vadd.f32 %v1709_v37, %v1708_v10  ;;  %8803 = vst [vmem:[#allocation7_spill] sm:$0xff] %v6492_v36  ;;  %v1569_v53 = vmul.f32 %v6484_v34, %v6484_v34  ;;  %v1713_v8 = vsel %vm1125_vm0, %v1567_v26, 0.0  ;;  %v8806_v37 = vld [vmem:[#allocation10_spill] sm:$0xff]  ;;  %v1570_v30 = vmul.f32 %v6492_v36, %v6492_v36 }
 0x30d   :  { %8805 = vst [vmem:[#allocation8_spill] sm:$0xff] %v6499_v14  ;;  %v6506_v6 = vsub.f32 %v8806_v37, %v6454_v15  ;;  %v1715_v2 = vsel %vm1125_vm0, %v1568_v63, 0.0  ;;  %v1571_v34 = vmul.f32 %v6499_v14, %v6499_v14 }
 0x30e   :  { %v1712_v51 = vadd.f32 %v1711_v40, %v1710_v27  ;;  %v8808_v27 = vld [vmem:[#allocation11_spill] sm:$0xff]  ;;  %v1717_v26 = vsel %vm1125_vm0, %v1569_v53, 0.0  ;;  %v1719_v63 = vsel %vm1125_vm0, %v1570_v30, 0.0 }
 0x30f   :  { %8807 = vst [vmem:[#allocation9_spill] sm:$0xff] %v6506_v6  ;;  %v6513_v29 = vsub.f32 %v8808_v27, %v6454_v15  ;;  %v1572_v36 = vmul.f32 %v6506_v6, %v6506_v6  ;;  %v1721_v53 = vsel %vm1125_vm0, %v1571_v34, 0.0 }
 0x310   :  { %v1714_v10 = vadd.f32 %v1713_v8, %v1712_v51  ;;  %v8810_v8 = vld [vmem:[#allocation12_spill] sm:$0xff] }
 0x311   :  { %8809 = vst [vmem:[#allocation10_spill] sm:$0xff] %v6513_v29  ;;  %v6520_v37 = vsub.f32 %v8810_v8, %v6454_v15  ;;  %v1573_v14 = vmul.f32 %v6513_v29, %v6513_v29  ;;  %v1723_v30 = vsel %vm1125_vm0, %v1572_v36, 0.0 }
 0x312   :  { %v1716_v40 = vadd.f32 %v1715_v2, %v1714_v10  ;;  %v8812_v2 = vld [vmem:[#allocation13_spill] sm:$0xff] }
 0x313   :  { %8811 = vst [vmem:[#allocation11_spill] sm:$0xff] %v6520_v37  ;;  %v6527_v27 = vsub.f32 %v8812_v2, %v6454_v15  ;;  %v1574_v6 = vmul.f32 %v6520_v37, %v6520_v37  ;;  %v1725_v34 = vsel %vm1125_vm0, %v1573_v14, 0.0 }
 0x314   :  { %v1718_v51 = vadd.f32 %v1717_v26, %v1716_v40  ;;  %v8814_v26 = vld [vmem:[#allocation14_spill] sm:$0xff] }
 0x315   :  { %8813 = vst [vmem:[#allocation12_spill] sm:$0xff] %v6527_v27  ;;  %v6534_v8 = vsub.f32 %v8814_v26, %v6454_v15  ;;  %v1575_v29 = vmul.f32 %v6527_v27, %v6527_v27  ;;  %v1727_v36 = vsel %vm1125_vm0, %v1574_v6, 0.0 }
 0x316   :  { %v1720_v10 = vadd.f32 %v1719_v63, %v1718_v51  ;;  %v8816_v63 = vld [vmem:[#allocation15_spill] sm:$0xff] }
 0x317   :  { %8815 = vst [vmem:[#allocation13_spill] sm:$0xff] %v6534_v8  ;;  %v6541_v2 = vsub.f32 %v8816_v63, %v6454_v15  ;;  %v1576_v37 = vmul.f32 %v6534_v8, %v6534_v8  ;;  %v1729_v14 = vsel %vm1125_vm0, %v1575_v29, 0.0 }
 0x318   :  { %v1722_v40 = vadd.f32 %v1721_v53, %v1720_v10  ;;  %v8818_v53 = vld [vmem:[#allocation16_spill] sm:$0xff] }
 0x319   :  { %8817 = vst [vmem:[#allocation14_spill] sm:$0xff] %v6541_v2  ;;  %v6548_v26 = vsub.f32 %v8818_v53, %v6454_v15  ;;  %v1577_v27 = vmul.f32 %v6541_v2, %v6541_v2  ;;  %v1731_v6 = vsel %vm1125_vm0, %v1576_v37, 0.0 }
 0x31a   :  { %v1724_v51 = vadd.f32 %v1723_v30, %v1722_v40  ;;  %v8820_v30 = vld [vmem:[#allocation17_spill] sm:$0xff] }
 0x31b   :  { %8819 = vst [vmem:[#allocation15_spill] sm:$0xff] %v6548_v26  ;;  %v6555_v63 = vsub.f32 %v8820_v30, %v6454_v15  ;;  %v1578_v8 = vmul.f32 %v6548_v26, %v6548_v26  ;;  %v1733_v29 = vsel %vm1125_vm0, %v1577_v27, 0.0 }
 0x31c   :  { %v1726_v10 = vadd.f32 %v1725_v34, %v1724_v51  ;;  %v8822_v34 = vld [vmem:[#allocation18_spill] sm:$0xff] }
 0x31d   :  { %8821 = vst [vmem:[#allocation16_spill] sm:$0xff] %v6555_v63  ;;  %v6562_v53 = vsub.f32 %v8822_v34, %v6454_v15  ;;  %v1579_v2 = vmul.f32 %v6555_v63, %v6555_v63  ;;  %v1735_v37 = vsel %vm1125_vm0, %v1578_v8, 0.0 }
 0x31e   :  { %v1728_v40 = vadd.f32 %v1727_v36, %v1726_v10  ;;  %v8824_v36 = vld [vmem:[#allocation19_spill] sm:$0xff] }
 0x31f   :  { %8823 = vst [vmem:[#allocation17_spill] sm:$0xff] %v6562_v53  ;;  %v6569_v30 = vsub.f32 %v8824_v36, %v6454_v15  ;;  %v1580_v26 = vmul.f32 %v6562_v53, %v6562_v53  ;;  %v1737_v27 = vsel %vm1125_vm0, %v1579_v2, 0.0 }
 0x320   :  { %v1730_v51 = vadd.f32 %v1729_v14, %v1728_v40  ;;  %v8826_v14 = vld [vmem:[#allocation20_spill] sm:$0xff] }
 0x321   :  { %8825 = vst [vmem:[#allocation18_spill] sm:$0xff] %v6569_v30  ;;  %v6576_v34 = vsub.f32 %v8826_v14, %v6454_v15  ;;  %v1581_v63 = vmul.f32 %v6569_v30, %v6569_v30  ;;  %v1739_v8 = vsel %vm1125_vm0, %v1580_v26, 0.0 }
 0x322   :  { %v1732_v10 = vadd.f32 %v1731_v6, %v1730_v51  ;;  %v8828_v6 = vld [vmem:[#allocation21_spill] sm:$0xff] }
 0x323   :  { %8827 = vst [vmem:[#allocation19_spill] sm:$0xff] %v6576_v34  ;;  %v6583_v36 = vsub.f32 %v8828_v6, %v6454_v15  ;;  %v1582_v53 = vmul.f32 %v6576_v34, %v6576_v34  ;;  %v1741_v2 = vsel %vm1125_vm0, %v1581_v63, 0.0 }
 0x324   :  { %v1734_v40 = vadd.f32 %v1733_v29, %v1732_v10  ;;  %v8830_v29 = vld [vmem:[#allocation22_spill] sm:$0xff] }
 0x325   :  { %8829 = vst [vmem:[#allocation20_spill] sm:$0xff] %v6583_v36  ;;  %v6590_v14 = vsub.f32 %v8830_v29, %v6454_v15  ;;  %v1583_v30 = vmul.f32 %v6583_v36, %v6583_v36  ;;  %v1743_v26 = vsel %vm1125_vm0, %v1582_v53, 0.0 }
 0x326   :  { %v1736_v51 = vadd.f32 %v1735_v37, %v1734_v40  ;;  %v8832_v37 = vld [vmem:[#allocation23_spill] sm:$0xff] }
 0x327   :  { %8831 = vst [vmem:[#allocation21_spill] sm:$0xff] %v6590_v14  ;;  %v6597_v6 = vsub.f32 %v8832_v37, %v6454_v15  ;;  %v1584_v34 = vmul.f32 %v6590_v14, %v6590_v14  ;;  %v1745_v63 = vsel %vm1125_vm0, %v1583_v30, 0.0 }
 0x328   :  { %v1738_v10 = vadd.f32 %v1737_v27, %v1736_v51  ;;  %v8834_v27 = vld [vmem:[#allocation24_spill] sm:$0xff] }
 0x329   :  { %8833 = vst [vmem:[#allocation22_spill] sm:$0xff] %v6597_v6  ;;  %v6604_v29 = vsub.f32 %v8834_v27, %v6454_v15  ;;  %v1585_v36 = vmul.f32 %v6597_v6, %v6597_v6  ;;  %v1747_v53 = vsel %vm1125_vm0, %v1584_v34, 0.0 }
 0x32a   :  { %v1740_v40 = vadd.f32 %v1739_v8, %v1738_v10  ;;  %v8836_v8 = vld [vmem:[#allocation25_spill] sm:$0xff] }
 0x32b   :  { %8835 = vst [vmem:[#allocation23_spill] sm:$0xff] %v6604_v29  ;;  %v6611_v37 = vsub.f32 %v8836_v8, %v6454_v15  ;;  %v1586_v14 = vmul.f32 %v6604_v29, %v6604_v29  ;;  %v1749_v30 = vsel %vm1125_vm0, %v1585_v36, 0.0 }
 0x32c   :  { %v1742_v51 = vadd.f32 %v1741_v2, %v1740_v40  ;;  %v8838_v2 = vld [vmem:[#allocation26_spill] sm:$0xff] }
 0x32d   :  { %8837 = vst [vmem:[#allocation24_spill] sm:$0xff] %v6611_v37  ;;  %v6618_v27 = vsub.f32 %v8838_v2, %v6454_v15  ;;  %v1587_v6 = vmul.f32 %v6611_v37, %v6611_v37  ;;  %v1751_v34 = vsel %vm1125_vm0, %v1586_v14, 0.0 }
 0x32e   :  { %v1744_v10 = vadd.f32 %v1743_v26, %v1742_v51  ;;  %v8840_v26 = vld [vmem:[#allocation27_spill] sm:$0xff] }
 0x32f   :  { %8839 = vst [vmem:[#allocation25_spill] sm:$0xff] %v6618_v27  ;;  %v6625_v8 = vsub.f32 %v8840_v26, %v6454_v15  ;;  %v1588_v29 = vmul.f32 %v6618_v27, %v6618_v27  ;;  %v1753_v36 = vsel %vm1125_vm0, %v1587_v6, 0.0 }
 0x330   :  { %v1746_v40 = vadd.f32 %v1745_v63, %v1744_v10  ;;  %v8842_v63 = vld [vmem:[#allocation28_spill] sm:$0xff] }
 0x331   :  { %8841 = vst [vmem:[#allocation26_spill] sm:$0xff] %v6625_v8  ;;  %v6632_v2 = vsub.f32 %v8842_v63, %v6454_v15  ;;  %v1589_v37 = vmul.f32 %v6625_v8, %v6625_v8  ;;  %v1755_v14 = vsel %vm1125_vm0, %v1588_v29, 0.0 }
 0x332   :  { %v1748_v51 = vadd.f32 %v1747_v53, %v1746_v40  ;;  %v8844_v53 = vld [vmem:[#allocation29_spill] sm:$0xff] }
 0x333   :  { %8843 = vst [vmem:[#allocation27_spill] sm:$0xff] %v6632_v2  ;;  %v6639_v26 = vsub.f32 %v8844_v53, %v6454_v15  ;;  %v1590_v27 = vmul.f32 %v6632_v2, %v6632_v2  ;;  %v1757_v6 = vsel %vm1125_vm0, %v1589_v37, 0.0 }
 0x334   :  { %v1750_v10 = vadd.f32 %v1749_v30, %v1748_v51  ;;  %v8846_v30 = vld [vmem:[#allocation30_spill] sm:$0xff] }
 0x335   :  { %8845 = vst [vmem:[#allocation28_spill] sm:$0xff] %v6639_v26  ;;  %v6646_v63 = vsub.f32 %v8846_v30, %v6454_v15  ;;  %v1591_v8 = vmul.f32 %v6639_v26, %v6639_v26  ;;  %v1759_v29 = vsel %vm1125_vm0, %v1590_v27, 0.0 }
 0x336   :  { %v1752_v40 = vadd.f32 %v1751_v34, %v1750_v10  ;;  %v8848_v34 = vld [vmem:[#allocation31_spill] sm:$0xff] }
 0x337   :  { %8847 = vst [vmem:[#allocation29_spill] sm:$0xff] %v6646_v63  ;;  %v6653_v53 = vsub.f32 %v8848_v34, %v6454_v15  ;;  %v1592_v2 = vmul.f32 %v6646_v63, %v6646_v63  ;;  %v1761_v37 = vsel %vm1125_vm0, %v1591_v8, 0.0 }
 0x338   :  { %v1754_v51 = vadd.f32 %v1753_v36, %v1752_v40  ;;  %v8850_v36 = vld [vmem:[#allocation32_spill] sm:$0xff] }
 0x339   :  { %8849 = vst [vmem:[#allocation30_spill] sm:$0xff] %v6653_v53  ;;  %v6660_v30 = vsub.f32 %v8850_v36, %v6454_v15  ;;  %v1593_v26 = vmul.f32 %v6653_v53, %v6653_v53  ;;  %v1763_v27 = vsel %vm1125_vm0, %v1592_v2, 0.0 }
 0x33a   :  { %v1756_v10 = vadd.f32 %v1755_v14, %v1754_v51  ;;  %v8852_v14 = vld [vmem:[#allocation33_spill] sm:$0xff] }
 0x33b   :  { %8851 = vst [vmem:[#allocation31_spill] sm:$0xff] %v6660_v30  ;;  %v6667_v34 = vsub.f32 %v8852_v14, %v6454_v15  ;;  %v1594_v63 = vmul.f32 %v6660_v30, %v6660_v30  ;;  %v1765_v8 = vsel %vm1125_vm0, %v1593_v26, 0.0 }
 0x33c   :  { %v1758_v40 = vadd.f32 %v1757_v6, %v1756_v10  ;;  %v8854_v6 = vld [vmem:[#allocation34_spill] sm:$0xff] }
 0x33d   :  { %8853 = vst [vmem:[#allocation32_spill] sm:$0xff] %v6667_v34  ;;  %v6674_v36 = vsub.f32 %v8854_v6, %v6454_v15  ;;  %v1595_v53 = vmul.f32 %v6667_v34, %v6667_v34  ;;  %v1767_v2 = vsel %vm1125_vm0, %v1594_v63, 0.0 }
 0x33e   :  { %v1760_v51 = vadd.f32 %v1759_v29, %v1758_v40  ;;  %v8856_v29 = vld [vmem:[#allocation35_spill] sm:$0xff] }
 0x33f   :  { %8855 = vst [vmem:[#allocation33_spill] sm:$0xff] %v6674_v36  ;;  %v6681_v14 = vsub.f32 %v8856_v29, %v6454_v15  ;;  %v1596_v30 = vmul.f32 %v6674_v36, %v6674_v36  ;;  %v1769_v26 = vsel %vm1125_vm0, %v1595_v53, 0.0 }
 0x340   :  { %v1762_v10 = vadd.f32 %v1761_v37, %v1760_v51  ;;  %v8858_v37 = vld [vmem:[#allocation36_spill] sm:$0xff] }
 0x341   :  { %8857 = vst [vmem:[#allocation34_spill] sm:$0xff] %v6681_v14  ;;  %v6688_v6 = vsub.f32 %v8858_v37, %v6454_v15  ;;  %v1597_v34 = vmul.f32 %v6681_v14, %v6681_v14  ;;  %v1771_v63 = vsel %vm1125_vm0, %v1596_v30, 0.0 }
 0x342   :  { %v1764_v40 = vadd.f32 %v1763_v27, %v1762_v10  ;;  %v8860_v27 = vld [vmem:[#allocation37_spill] sm:$0xff] }
 0x343   :  { %8859 = vst [vmem:[#allocation35_spill] sm:$0xff] %v6688_v6  ;;  %v6695_v29 = vsub.f32 %v8860_v27, %v6454_v15  ;;  %v1598_v36 = vmul.f32 %v6688_v6, %v6688_v6  ;;  %v1773_v53 = vsel %vm1125_vm0, %v1597_v34, 0.0 }
 0x344   :  { %v1766_v51 = vadd.f32 %v1765_v8, %v1764_v40  ;;  %v8862_v8 = vld [vmem:[#allocation38_spill] sm:$0xff] }
 0x345   :  { %8861 = vst [vmem:[#allocation36_spill] sm:$0xff] %v6695_v29  ;;  %v6702_v37 = vsub.f32 %v8862_v8, %v6454_v15  ;;  %v1599_v14 = vmul.f32 %v6695_v29, %v6695_v29  ;;  %v1775_v30 = vsel %vm1125_vm0, %v1598_v36, 0.0 }
 0x346   :  { %v1768_v10 = vadd.f32 %v1767_v2, %v1766_v51  ;;  %v8864_v2 = vld [vmem:[#allocation39_spill] sm:$0xff] }
 0x347   :  { %8863 = vst [vmem:[#allocation37_spill] sm:$0xff] %v6702_v37  ;;  %v6709_v27 = vsub.f32 %v8864_v2, %v6454_v15  ;;  %v1600_v6 = vmul.f32 %v6702_v37, %v6702_v37  ;;  %v1777_v34 = vsel %vm1125_vm0, %v1599_v14, 0.0 }
 0x348   :  { %v1770_v40 = vadd.f32 %v1769_v26, %v1768_v10  ;;  %v8866_v26 = vld [vmem:[#allocation40_spill] sm:$0xff] }
 0x349   :  { %8865 = vst [vmem:[#allocation38_spill] sm:$0xff] %v6709_v27  ;;  %v6716_v8 = vsub.f32 %v8866_v26, %v6454_v15  ;;  %v1601_v29 = vmul.f32 %v6709_v27, %v6709_v27  ;;  %v1779_v36 = vsel %vm1125_vm0, %v1600_v6, 0.0 }
 0x34a   :  { %v1772_v51 = vadd.f32 %v1771_v63, %v1770_v40  ;;  %v8868_v63 = vld [vmem:[#allocation41_spill] sm:$0xff] }
 0x34b   :  { %8867 = vst [vmem:[#allocation39_spill] sm:$0xff] %v6716_v8  ;;  %v6723_v2 = vsub.f32 %v8868_v63, %v6454_v15  ;;  %v1602_v37 = vmul.f32 %v6716_v8, %v6716_v8  ;;  %v1781_v14 = vsel %vm1125_vm0, %v1601_v29, 0.0 }
 0x34c   :  { %v1774_v10 = vadd.f32 %v1773_v53, %v1772_v51  ;;  %v8870_v53 = vld [vmem:[#allocation42_spill] sm:$0xff] }
 0x34d   :  { %8869 = vst [vmem:[#allocation40_spill] sm:$0xff] %v6723_v2  ;;  %v6730_v26 = vsub.f32 %v8870_v53, %v6454_v15  ;;  %v1603_v27 = vmul.f32 %v6723_v2, %v6723_v2  ;;  %v1783_v6 = vsel %vm1125_vm0, %v1602_v37, 0.0 }
 0x34e   :  { %v1776_v40 = vadd.f32 %v1775_v30, %v1774_v10  ;;  %v8872_v30 = vld [vmem:[#allocation43_spill] sm:$0xff] }
 0x34f   :  { %8871 = vst [vmem:[#allocation41_spill] sm:$0xff] %v6730_v26  ;;  %v6737_v63 = vsub.f32 %v8872_v30, %v6454_v15  ;;  %v1604_v8 = vmul.f32 %v6730_v26, %v6730_v26  ;;  %v1785_v29 = vsel %vm1125_vm0, %v1603_v27, 0.0 }
 0x350   :  { %v1778_v51 = vadd.f32 %v1777_v34, %v1776_v40  ;;  %v8874_v34 = vld [vmem:[#allocation44_spill] sm:$0xff] }
 0x351   :  { %8873 = vst [vmem:[#allocation42_spill] sm:$0xff] %v6737_v63  ;;  %v6744_v53 = vsub.f32 %v8874_v34, %v6454_v15  ;;  %v1605_v2 = vmul.f32 %v6737_v63, %v6737_v63  ;;  %v1787_v37 = vsel %vm1125_vm0, %v1604_v8, 0.0 }
 0x352   :  { %v1780_v10 = vadd.f32 %v1779_v36, %v1778_v51  ;;  %v8876_v36 = vld [vmem:[#allocation45_spill] sm:$0xff] }
 0x353   :  { %8875 = vst [vmem:[#allocation43_spill] sm:$0xff] %v6744_v53  ;;  %v6751_v30 = vsub.f32 %v8876_v36, %v6454_v15  ;;  %v1606_v26 = vmul.f32 %v6744_v53, %v6744_v53  ;;  %v1789_v27 = vsel %vm1125_vm0, %v1605_v2, 0.0 }
 0x354   :  { %v1782_v40 = vadd.f32 %v1781_v14, %v1780_v10  ;;  %v8878_v14 = vld [vmem:[#allocation46_spill] sm:$0xff] }
 0x355   :  { %8877 = vst [vmem:[#allocation44_spill] sm:$0xff] %v6751_v30  ;;  %v6758_v34 = vsub.f32 %v8878_v14, %v6454_v15  ;;  %v1607_v63 = vmul.f32 %v6751_v30, %v6751_v30  ;;  %v1791_v8 = vsel %vm1125_vm0, %v1606_v26, 0.0 }
 0x356   :  { %v1784_v51 = vadd.f32 %v1783_v6, %v1782_v40  ;;  %v8880_v6 = vld [vmem:[#allocation47_spill] sm:$0xff] }
 0x357   :  { %8879 = vst [vmem:[#allocation45_spill] sm:$0xff] %v6758_v34  ;;  %v6765_v36 = vsub.f32 %v8880_v6, %v6454_v15  ;;  %v1608_v53 = vmul.f32 %v6758_v34, %v6758_v34  ;;  %v1793_v2 = vsel %vm1125_vm0, %v1607_v63, 0.0 }
 0x358   :  { %v1786_v10 = vadd.f32 %v1785_v29, %v1784_v51  ;;  %v8882_v29 = vld [vmem:[#allocation48_spill] sm:$0xff] }
 0x359   :  { %8881 = vst [vmem:[#allocation46_spill] sm:$0xff] %v6765_v36  ;;  %v6772_v14 = vsub.f32 %v8882_v29, %v6454_v15  ;;  %v1609_v30 = vmul.f32 %v6765_v36, %v6765_v36  ;;  %v1795_v26 = vsel %vm1125_vm0, %v1608_v53, 0.0 }
 0x35a   :  { %v1788_v40 = vadd.f32 %v1787_v37, %v1786_v10  ;;  %v8884_v37 = vld [vmem:[#allocation49_spill] sm:$0xff] }
 0x35b   :  { %8883 = vst [vmem:[#allocation47_spill] sm:$0xff] %v6772_v14  ;;  %v6779_v6 = vsub.f32 %v8884_v37, %v6454_v15  ;;  %v1610_v34 = vmul.f32 %v6772_v14, %v6772_v14  ;;  %v1797_v63 = vsel %vm1125_vm0, %v1609_v30, 0.0 }
 0x35c   :  { %v1790_v51 = vadd.f32 %v1789_v27, %v1788_v40  ;;  %v8886_v27 = vld [vmem:[#allocation50_spill] sm:$0xff] }
 0x35d   :  { %8885 = vst [vmem:[#allocation48_spill] sm:$0xff] %v6779_v6  ;;  %v6786_v29 = vsub.f32 %v8886_v27, %v6454_v15  ;;  %v1611_v36 = vmul.f32 %v6779_v6, %v6779_v6  ;;  %v1799_v53 = vsel %vm1125_vm0, %v1610_v34, 0.0 }
 0x35e   :  { %v1792_v10 = vadd.f32 %v1791_v8, %v1790_v51  ;;  %v8888_v8 = vld [vmem:[#allocation51_spill] sm:$0xff] }
 0x35f   :  { %8887 = vst [vmem:[#allocation49_spill] sm:$0xff] %v6786_v29  ;;  %v6793_v37 = vsub.f32 %v8888_v8, %v6454_v15  ;;  %v1612_v14 = vmul.f32 %v6786_v29, %v6786_v29  ;;  %v1801_v30 = vsel %vm1125_vm0, %v1611_v36, 0.0 }
 0x360   :  { %v1794_v40 = vadd.f32 %v1793_v2, %v1792_v10  ;;  %v8890_v2 = vld [vmem:[#allocation52_spill] sm:$0xff] }
 0x361   :  { %8889 = vst [vmem:[#allocation50_spill] sm:$0xff] %v6793_v37  ;;  %v6800_v27 = vsub.f32 %v8890_v2, %v6454_v15  ;;  %v1613_v6 = vmul.f32 %v6793_v37, %v6793_v37  ;;  %v1803_v34 = vsel %vm1125_vm0, %v1612_v14, 0.0 }
 0x362   :  { %v1796_v51 = vadd.f32 %v1795_v26, %v1794_v40  ;;  %v8892_v26 = vld [vmem:[#allocation53_spill] sm:$0xff] }
 0x363   :  { %8891 = vst [vmem:[#allocation51_spill] sm:$0xff] %v6800_v27  ;;  %v6807_v8 = vsub.f32 %v8892_v26, %v6454_v15  ;;  %v1614_v29 = vmul.f32 %v6800_v27, %v6800_v27  ;;  %v1805_v36 = vsel %vm1125_vm0, %v1613_v6, 0.0 }
 0x364   :  { %v1798_v10 = vadd.f32 %v1797_v63, %v1796_v51  ;;  %v8894_v63 = vld [vmem:[#allocation54_spill] sm:$0xff] }
 0x365   :  { %8893 = vst [vmem:[#allocation52_spill] sm:$0xff] %v6807_v8  ;;  %v6814_v2 = vsub.f32 %v8894_v63, %v6454_v15  ;;  %v1615_v37 = vmul.f32 %v6807_v8, %v6807_v8  ;;  %v1807_v14 = vsel %vm1125_vm0, %v1614_v29, 0.0 }
 0x366   :  { %v1800_v40 = vadd.f32 %v1799_v53, %v1798_v10  ;;  %v8896_v53 = vld [vmem:[#allocation55_spill] sm:$0xff] }
 0x367   :  { %8895 = vst [vmem:[#allocation53_spill] sm:$0xff] %v6814_v2  ;;  %v6821_v26 = vsub.f32 %v8896_v53, %v6454_v15  ;;  %v1616_v27 = vmul.f32 %v6814_v2, %v6814_v2  ;;  %v1809_v6 = vsel %vm1125_vm0, %v1615_v37, 0.0 }
 0x368   :  { %v1802_v51 = vadd.f32 %v1801_v30, %v1800_v40  ;;  %v8898_v30 = vld [vmem:[#allocation56_spill] sm:$0xff] }
 0x369   :  { %8897 = vst [vmem:[#allocation54_spill] sm:$0xff] %v6821_v26  ;;  %v6828_v63 = vsub.f32 %v8898_v30, %v6454_v15  ;;  %v1617_v8 = vmul.f32 %v6821_v26, %v6821_v26  ;;  %v1811_v29 = vsel %vm1125_vm0, %v1616_v27, 0.0 }
 0x36a   :  { %v1804_v10 = vadd.f32 %v1803_v34, %v1802_v51  ;;  %v8900_v34 = vld [vmem:[#allocation57_spill] sm:$0xff] }
 0x36b   :  { %8899 = vst [vmem:[#allocation55_spill] sm:$0xff] %v6828_v63  ;;  %v6835_v53 = vsub.f32 %v8900_v34, %v6454_v15  ;;  %v1618_v2 = vmul.f32 %v6828_v63, %v6828_v63  ;;  %v1813_v37 = vsel %vm1125_vm0, %v1617_v8, 0.0 }
 0x36c   :  { %v1806_v40 = vadd.f32 %v1805_v36, %v1804_v10  ;;  %v8902_v36 = vld [vmem:[#allocation58_spill] sm:$0xff] }
 0x36d   :  { %8901 = vst [vmem:[#allocation56_spill] sm:$0xff] %v6835_v53  ;;  %v6842_v30 = vsub.f32 %v8902_v36, %v6454_v15  ;;  %v1619_v26 = vmul.f32 %v6835_v53, %v6835_v53  ;;  %v1815_v27 = vsel %vm1125_vm0, %v1618_v2, 0.0 }
 0x36e   :  { %v1808_v51 = vadd.f32 %v1807_v14, %v1806_v40  ;;  %v8904_v14 = vld [vmem:[#allocation59_spill] sm:$0xff] }
 0x36f   :  { %8903 = vst [vmem:[#allocation57_spill] sm:$0xff] %v6842_v30  ;;  %v6849_v34 = vsub.f32 %v8904_v14, %v6454_v15  ;;  %v1620_v63 = vmul.f32 %v6842_v30, %v6842_v30  ;;  %v1817_v8 = vsel %vm1125_vm0, %v1619_v26, 0.0 }
 0x370   :  { %v1810_v10 = vadd.f32 %v1809_v6, %v1808_v51  ;;  %v8906_v6 = vld [vmem:[#allocation60_spill] sm:$0xff] }
 0x371   :  { %8905 = vst [vmem:[#allocation58_spill] sm:$0xff] %v6849_v34  ;;  %v6856_v36 = vsub.f32 %v8906_v6, %v6454_v15  ;;  %v1621_v53 = vmul.f32 %v6849_v34, %v6849_v34  ;;  %v1819_v2 = vsel %vm1125_vm0, %v1620_v63, 0.0 }
 0x372   :  { %v1812_v40 = vadd.f32 %v1811_v29, %v1810_v10  ;;  %v8908_v29 = vld [vmem:[#allocation61_spill] sm:$0xff] }
 0x373   :  { %8907 = vst [vmem:[#allocation59_spill] sm:$0xff] %v6856_v36  ;;  %v6863_v14 = vsub.f32 %v8908_v29, %v6454_v15  ;;  %v1622_v30 = vmul.f32 %v6856_v36, %v6856_v36  ;;  %v1821_v26 = vsel %vm1125_vm0, %v1621_v53, 0.0 }
 0x374   :  { %v1814_v51 = vadd.f32 %v1813_v37, %v1812_v40  ;;  %v8910_v37 = vld [vmem:[#allocation62_spill] sm:$0xff] }
 0x375   :  { %8909 = vst [vmem:[#allocation60_spill] sm:$0xff] %v6863_v14  ;;  %v6870_v6 = vsub.f32 %v8910_v37, %v6454_v15  ;;  %v1623_v34 = vmul.f32 %v6863_v14, %v6863_v14  ;;  %v1823_v63 = vsel %vm1125_vm0, %v1622_v30, 0.0 }
 0x376   :  { %v1816_v10 = vadd.f32 %v1815_v27, %v1814_v51  ;;  %v8912_v27 = vld [vmem:[#allocation63_spill] sm:$0xff] }
 0x377   :  { %8911 = vst [vmem:[#allocation61_spill] sm:$0xff] %v6870_v6  ;;  %v6877_v29 = vsub.f32 %v8912_v27, %v6454_v15  ;;  %v1624_v36 = vmul.f32 %v6870_v6, %v6870_v6  ;;  %v1825_v53 = vsel %vm1125_vm0, %v1623_v34, 0.0 }
 0x378   :  { %v1818_v40 = vadd.f32 %v1817_v8, %v1816_v10  ;;  %v8914_v8 = vld [vmem:[#allocation64_spill] sm:$0xff] }
 0x379   :  { %8913 = vst [vmem:[#allocation62_spill] sm:$0xff] %v6877_v29  ;;  %v6884_v37 = vsub.f32 %v8914_v8, %v6454_v15  ;;  %v1625_v14 = vmul.f32 %v6877_v29, %v6877_v29  ;;  %v1827_v30 = vsel %vm1125_vm0, %v1624_v36, 0.0 }
 0x37a   :  { %v1820_v51 = vadd.f32 %v1819_v2, %v1818_v40  ;;  %v8916_v2 = vld [vmem:[#allocation65_spill] sm:$0xff] }
 0x37b   :  { %8915 = vst [vmem:[#allocation63_spill] sm:$0xff] %v6884_v37  ;;  %v6891_v27 = vsub.f32 %v8916_v2, %v6454_v15  ;;  %v1626_v6 = vmul.f32 %v6884_v37, %v6884_v37  ;;  %v1829_v34 = vsel %vm1125_vm0, %v1625_v14, 0.0 }
 0x37c   :  { %v1822_v10 = vadd.f32 %v1821_v26, %v1820_v51  ;;  %v8918_v26 = vld [vmem:[#allocation66_spill] sm:$0xff] }
 0x37d   :  { %8917 = vst [vmem:[#allocation64_spill] sm:$0xff] %v6891_v27  ;;  %v6898_v8 = vsub.f32 %v8918_v26, %v6454_v15  ;;  %v1627_v29 = vmul.f32 %v6891_v27, %v6891_v27  ;;  %v1831_v36 = vsel %vm1125_vm0, %v1626_v6, 0.0 }
 0x37e   :  { %v1824_v40 = vadd.f32 %v1823_v63, %v1822_v10  ;;  %v8920_v63 = vld [vmem:[#allocation67_spill] sm:$0xff] }
 0x37f   :  { %8919 = vst [vmem:[#allocation65_spill] sm:$0xff] %v6898_v8  ;;  %v6905_v2 = vsub.f32 %v8920_v63, %v6454_v15  ;;  %v1628_v37 = vmul.f32 %v6898_v8, %v6898_v8  ;;  %v1833_v14 = vsel %vm1125_vm0, %v1627_v29, 0.0 }
 0x380   :  { %v1826_v51 = vadd.f32 %v1825_v53, %v1824_v40  ;;  %v8922_v53 = vld [vmem:[#allocation68_spill] sm:$0xff] }
 0x381   :  { %8921 = vst [vmem:[#allocation66_spill] sm:$0xff] %v6905_v2  ;;  %v6912_v26 = vsub.f32 %v8922_v53, %v6454_v15  ;;  %v1629_v27 = vmul.f32 %v6905_v2, %v6905_v2  ;;  %v1835_v6 = vsel %vm1125_vm0, %v1628_v37, 0.0 }
 0x382   :  { %v1828_v10 = vadd.f32 %v1827_v30, %v1826_v51  ;;  %v8924_v30 = vld [vmem:[#allocation69_spill] sm:$0xff] }
 0x383   :  { %8923 = vst [vmem:[#allocation67_spill] sm:$0xff] %v6912_v26  ;;  %v6919_v63 = vsub.f32 %v8924_v30, %v6454_v15  ;;  %v1630_v8 = vmul.f32 %v6912_v26, %v6912_v26  ;;  %v1837_v29 = vsel %vm1125_vm0, %v1629_v27, 0.0 }
 0x384   :  { %v1830_v40 = vadd.f32 %v1829_v34, %v1828_v10  ;;  %v8926_v34 = vld [vmem:[#allocation70_spill] sm:$0xff] }
 0x385   :  { %8925 = vst [vmem:[#allocation68_spill] sm:$0xff] %v6919_v63  ;;  %v6926_v53 = vsub.f32 %v8926_v34, %v6454_v15  ;;  %v1631_v2 = vmul.f32 %v6919_v63, %v6919_v63  ;;  %v1839_v37 = vsel %vm1125_vm0, %v1630_v8, 0.0 }
 0x386   :  { %v1832_v51 = vadd.f32 %v1831_v36, %v1830_v40  ;;  %v8928_v36 = vld [vmem:[#allocation71_spill] sm:$0xff] }
 0x387   :  { %8927 = vst [vmem:[#allocation69_spill] sm:$0xff] %v6926_v53  ;;  %v6933_v30 = vsub.f32 %v8928_v36, %v6454_v15  ;;  %v1632_v26 = vmul.f32 %v6926_v53, %v6926_v53  ;;  %v1841_v27 = vsel %vm1125_vm0, %v1631_v2, 0.0 }
 0x388   :  { %v1834_v10 = vadd.f32 %v1833_v14, %v1832_v51  ;;  %v8930_v14 = vld [vmem:[#allocation72_spill] sm:$0xff] }
 0x389   :  { %8929 = vst [vmem:[#allocation70_spill] sm:$0xff] %v6933_v30  ;;  %v6940_v34 = vsub.f32 %v8930_v14, %v6454_v15  ;;  %v1633_v63 = vmul.f32 %v6933_v30, %v6933_v30  ;;  %v1843_v8 = vsel %vm1125_vm0, %v1632_v26, 0.0 }
 0x38a   :  { %v1836_v40 = vadd.f32 %v1835_v6, %v1834_v10  ;;  %v8932_v6 = vld [vmem:[#allocation73_spill] sm:$0xff] }
 0x38b   :  { %8931 = vst [vmem:[#allocation71_spill] sm:$0xff] %v6940_v34  ;;  %v6947_v36 = vsub.f32 %v8932_v6, %v6454_v15  ;;  %v1634_v53 = vmul.f32 %v6940_v34, %v6940_v34  ;;  %v1845_v2 = vsel %vm1125_vm0, %v1633_v63, 0.0 }
 0x38c   :  { %v1838_v51 = vadd.f32 %v1837_v29, %v1836_v40  ;;  %v8934_v29 = vld [vmem:[#allocation74_spill] sm:$0xff] }
 0x38d   :  { %8933 = vst [vmem:[#allocation72_spill] sm:$0xff] %v6947_v36  ;;  %v6954_v14 = vsub.f32 %v8934_v29, %v6454_v15  ;;  %v1635_v30 = vmul.f32 %v6947_v36, %v6947_v36  ;;  %v1847_v26 = vsel %vm1125_vm0, %v1634_v53, 0.0 }
 0x38e   :  { %v1840_v10 = vadd.f32 %v1839_v37, %v1838_v51  ;;  %v8936_v37 = vld [vmem:[#allocation75_spill] sm:$0xff] }
 0x38f   :  { %8935 = vst [vmem:[#allocation73_spill] sm:$0xff] %v6954_v14  ;;  %v6961_v6 = vsub.f32 %v8936_v37, %v6454_v15  ;;  %v1636_v34 = vmul.f32 %v6954_v14, %v6954_v14  ;;  %v1849_v63 = vsel %vm1125_vm0, %v1635_v30, 0.0 }
 0x390   :  { %v1842_v40 = vadd.f32 %v1841_v27, %v1840_v10  ;;  %v8938_v27 = vld [vmem:[#allocation76_spill] sm:$0xff] }
 0x391   :  { %8937 = vst [vmem:[#allocation74_spill] sm:$0xff] %v6961_v6  ;;  %v6968_v29 = vsub.f32 %v8938_v27, %v6454_v15  ;;  %v1637_v36 = vmul.f32 %v6961_v6, %v6961_v6  ;;  %v1851_v53 = vsel %vm1125_vm0, %v1636_v34, 0.0 }
 0x392   :  { %v1844_v51 = vadd.f32 %v1843_v8, %v1842_v40  ;;  %v8940_v8 = vld [vmem:[#allocation77_spill] sm:$0xff] }
 0x393   :  { %8939 = vst [vmem:[#allocation75_spill] sm:$0xff] %v6968_v29  ;;  %v6975_v37 = vsub.f32 %v8940_v8, %v6454_v15  ;;  %v1638_v14 = vmul.f32 %v6968_v29, %v6968_v29  ;;  %v1853_v30 = vsel %vm1125_vm0, %v1637_v36, 0.0 }
 0x394   :  { %v1846_v10 = vadd.f32 %v1845_v2, %v1844_v51  ;;  %v8942_v2 = vld [vmem:[#allocation78_spill] sm:$0xff] }
 0x395   :  { %8941 = vst [vmem:[#allocation76_spill] sm:$0xff] %v6975_v37  ;;  %v6982_v27 = vsub.f32 %v8942_v2, %v6454_v15  ;;  %v1639_v6 = vmul.f32 %v6975_v37, %v6975_v37  ;;  %v1855_v34 = vsel %vm1125_vm0, %v1638_v14, 0.0 }
 0x396   :  { %v1848_v40 = vadd.f32 %v1847_v26, %v1846_v10  ;;  %v8943_v26 = vld [vmem:[#allocation79_spill] sm:$0xff] }
 0x397   :  { %v6989_v8 = vsub.f32 %v8943_v26, %v6454_v15  ;;  %v1640_v29 = vmul.f32 %v6982_v27, %v6982_v27  ;;  %v1857_v36 = vsel %vm1125_vm0, %v1639_v6, 0.0 }
 0x398   :  { %v1850_v51 = vadd.f32 %v1849_v63, %v1848_v40  ;;  %v8945_v63 = vld [vmem:[#allocation80_spill] sm:$0xff] }
 0x399   :  { %8944 = vst [vmem:[#allocation77_spill] sm:$0xff] %v6989_v8  ;;  %v6996_v2 = vsub.f32 %v8945_v63, %v6454_v15  ;;  %v1641_v37 = vmul.f32 %v6989_v8, %v6989_v8  ;;  %v1859_v14 = vsel %vm1125_vm0, %v1640_v29, 0.0 }
 0x39a   :  { %v1852_v10 = vadd.f32 %v1851_v53, %v1850_v51  ;;  %v8946_v53 = vld [vmem:[#allocation81_spill] sm:$0xff] }
 0x39b   :  { %v7003_v26 = vsub.f32 %v8946_v53, %v6454_v15  ;;  %v1642_v63 = vmul.f32 %v6996_v2, %v6996_v2  ;;  %v1861_v6 = vsel %vm1125_vm0, %v1641_v37, 0.0 }
 0x39c   :  { %v1854_v40 = vadd.f32 %v1853_v30, %v1852_v10  ;;  %v7010_v30 = vsub.f32 %v6192_v59, %v6454_v15  ;;  %v7024_v59 = vsub.f32 %v6208_v57, %v6454_v15  ;;  %v7038_v57 = vsub.f32 %v6224_v56, %v6454_v15 }
 0x39d   :  { %8947 = vst [vmem:[#allocation78_spill] sm:$0xff] %v7003_v26  ;;  %v1643_v8 = vmul.f32 %v7003_v26, %v7003_v26  ;;  %v1863_v29 = vsel %vm1125_vm0, %v1642_v63, 0.0  ;;  %v7052_v56 = vsub.f32 %v6240_v1, %v6454_v15  ;;  %v7066_v1 = vsub.f32 %v6256_v3, %v6454_v15 }
 0x39e   :  { %v1856_v51 = vadd.f32 %v1855_v34, %v1854_v40  ;;  %v8948_v34 = vld [vmem:[#allocation82_spill] sm:$0xff]  ;;  %v7080_v3 = vsub.f32 %v6272_v46, %v6454_v15  ;;  %v7094_v46 = vsub.f32 %v6288_v31, %v6454_v15  ;;  %v7108_v31 = vsub.f32 %v6302_v19, %v6454_v15 }
 0x39f   :  { %v7017_v53 = vsub.f32 %v8948_v34, %v6454_v15  ;;  %v1865_v37 = vsel %vm1125_vm0, %v1643_v8, 0.0  ;;  %v7122_v19 = vsub.f32 %v6314_v35, %v6454_v15  ;;  %v7136_v35 = vsub.f32 %v6326_v33, %v6454_v15 }
 0x3a0   :  { %v1858_v10 = vadd.f32 %v1857_v36, %v1856_v51  ;;  %v1644_v36 = vmul.f32 %v7010_v30, %v7010_v30  ;;  %v7150_v33 = vsub.f32 %v6338_v12, %v6454_v15  ;;  %v7164_v12 = vsub.f32 %v6350_v61, %v6454_v15 }
 0x3a1   :  { %8949 = vst [vmem:[#allocation79_spill] sm:$0xff] %v7017_v53  ;;  %v1645_v26 = vmul.f32 %v7017_v53, %v7017_v53 }
 0x3a2   :  { %v1860_v40 = vadd.f32 %v1859_v14, %v1858_v10  ;;  %v8950_v14 = vld [vmem:[#allocation83_spill] sm:$0xff]  ;;  %v1867_v63 = vsel %vm1125_vm0, %v1644_v36, 0.0 }
 0x3a3   :  { %v7031_v34 = vsub.f32 %v8950_v14, %v6454_v15  ;;  %v1869_v8 = vsel %vm1125_vm0, %v1645_v26, 0.0 }
 0x3a4   :  { %v1862_v51 = vadd.f32 %v1861_v6, %v1860_v40  ;;  %v1646_v6 = vmul.f32 %v7024_v59, %v7024_v59 }
 0x3a5   :  { %8951 = vst [vmem:[#allocation80_spill] sm:$0xff] %v7031_v34  ;;  %v1647_v53 = vmul.f32 %v7031_v34, %v7031_v34 }
 0x3a6   :  { %v1864_v10 = vadd.f32 %v1863_v29, %v1862_v51  ;;  %v8952_v29 = vld [vmem:[#allocation84_spill] sm:$0xff]  ;;  %v1871_v36 = vsel %vm1125_vm0, %v1646_v6, 0.0 }
 0x3a7   :  { %v7045_v14 = vsub.f32 %v8952_v29, %v6454_v15  ;;  %v1873_v26 = vsel %vm1125_vm0, %v1647_v53, 0.0 }
 0x3a8   :  { %v1866_v40 = vadd.f32 %v1865_v37, %v1864_v10  ;;  %v1648_v37 = vmul.f32 %v7038_v57, %v7038_v57 }
 0x3a9   :  { %8953 = vst [vmem:[#allocation81_spill] sm:$0xff] %v7045_v14  ;;  %v1649_v34 = vmul.f32 %v7045_v14, %v7045_v14 }
 0x3aa   :  { %v1868_v51 = vadd.f32 %v1867_v63, %v1866_v40  ;;  %v8954_v63 = vld [vmem:[#allocation85_spill] sm:$0xff]  ;;  %v1875_v6 = vsel %vm1125_vm0, %v1648_v37, 0.0 }
 0x3ab   :  { %v7059_v29 = vsub.f32 %v8954_v63, %v6454_v15  ;;  %v1877_v53 = vsel %vm1125_vm0, %v1649_v34, 0.0 }
 0x3ac   :  { %v1870_v10 = vadd.f32 %v1869_v8, %v1868_v51  ;;  %v1650_v8 = vmul.f32 %v7052_v56, %v7052_v56 }
 0x3ad   :  { %8955 = vst [vmem:[#allocation82_spill] sm:$0xff] %v7059_v29  ;;  %v1651_v14 = vmul.f32 %v7059_v29, %v7059_v29 }
 0x3ae   :  { %v1872_v40 = vadd.f32 %v1871_v36, %v1870_v10  ;;  %v8956_v36 = vld [vmem:[#allocation88_spill] sm:$0xff]  ;;  %v1879_v37 = vsel %vm1125_vm0, %v1650_v8, 0.0 }
 0x3af   :  { %v7073_v63 = vsub.f32 %v8956_v36, %v6454_v15  ;;  %v1881_v34 = vsel %vm1125_vm0, %v1651_v14, 0.0 }
 0x3b0   :  { %v1874_v51 = vadd.f32 %v1873_v26, %v1872_v40  ;;  %v1652_v26 = vmul.f32 %v7066_v1, %v7066_v1 }
 0x3b1   :  { %8957 = vst [vmem:[#allocation83_spill] sm:$0xff] %v7073_v63  ;;  %v1653_v29 = vmul.f32 %v7073_v63, %v7073_v63 }
 0x3b2   :  { %v1876_v10 = vadd.f32 %v1875_v6, %v1874_v51  ;;  %v8958_v6 = vld [vmem:[#allocation90_spill] sm:$0xff]  ;;  %v1883_v8 = vsel %vm1125_vm0, %v1652_v26, 0.0 }
 0x3b3   :  { %v7087_v36 = vsub.f32 %v8958_v6, %v6454_v15  ;;  %v1885_v14 = vsel %vm1125_vm0, %v1653_v29, 0.0 }
 0x3b4   :  { %v1878_v40 = vadd.f32 %v1877_v53, %v1876_v10  ;;  %v1654_v53 = vmul.f32 %v7080_v3, %v7080_v3 }
 0x3b5   :  { %8959 = vst [vmem:[#allocation84_spill] sm:$0xff] %v7087_v36  ;;  %v1655_v63 = vmul.f32 %v7087_v36, %v7087_v36 }
 0x3b6   :  { %v1880_v51 = vadd.f32 %v1879_v37, %v1878_v40  ;;  %v8960_v37 = vld [vmem:[#allocation93_spill] sm:$0xff]  ;;  %v1887_v26 = vsel %vm1125_vm0, %v1654_v53, 0.0 }
 0x3b7   :  { %v7101_v6 = vsub.f32 %v8960_v37, %v6454_v15  ;;  %v1889_v29 = vsel %vm1125_vm0, %v1655_v63, 0.0 }
 0x3b8   :  { %v1882_v10 = vadd.f32 %v1881_v34, %v1880_v51  ;;  %v1656_v34 = vmul.f32 %v7094_v46, %v7094_v46 }
 0x3b9   :  { %8961 = vst [vmem:[#allocation85_spill] sm:$0xff] %v7101_v6  ;;  %v1657_v36 = vmul.f32 %v7101_v6, %v7101_v6 }
 0x3ba   :  { %v1884_v40 = vadd.f32 %v1883_v8, %v1882_v10  ;;  %v8962_v8 = vld [vmem:[#allocation94_spill] sm:$0xff]  ;;  %v1891_v53 = vsel %vm1125_vm0, %v1656_v34, 0.0 }
 0x3bb   :  { %v7115_v37 = vsub.f32 %v8962_v8, %v6454_v15  ;;  %v1893_v63 = vsel %vm1125_vm0, %v1657_v36, 0.0  ;;  %8968 = vst [vmem:[#allocation94_spill] sm:$0xff] %v7150_v33 }
 0x3bc   :  { %v1886_v51 = vadd.f32 %v1885_v14, %v1884_v40  ;;  %v1658_v14 = vmul.f32 %v7108_v31, %v7108_v31 }
 0x3bd   :  { %8963 = vst [vmem:[#allocation88_spill] sm:$0xff] %v7115_v37  ;;  %v1659_v6 = vmul.f32 %v7115_v37, %v7115_v37 }
 0x3be   :  { %v1888_v10 = vadd.f32 %v1887_v26, %v1886_v51  ;;  %v8964_v26 = vld [vmem:[#allocation95_spill] sm:$0xff]  ;;  %v1895_v34 = vsel %vm1125_vm0, %v1658_v14, 0.0 }
 0x3bf   :  { %v7129_v8 = vsub.f32 %v8964_v26, %v6454_v15  ;;  %v1897_v36 = vsel %vm1125_vm0, %v1659_v6, 0.0 }
 0x3c0   :  { %v1890_v40 = vadd.f32 %v1889_v29, %v1888_v10  ;;  %v1660_v29 = vmul.f32 %v7122_v19, %v7122_v19 }
 0x3c1   :  { %8965 = vst [vmem:[#allocation90_spill] sm:$0xff] %v7129_v8  ;;  %v1661_v37 = vmul.f32 %v7129_v8, %v7129_v8 }
 0x3c2   :  { %v1892_v51 = vadd.f32 %v1891_v53, %v1890_v40  ;;  %v8966_v53 = vld [vmem:[#allocation96_spill] sm:$0xff]  ;;  %v1899_v14 = vsel %vm1125_vm0, %v1660_v29, 0.0 }
 0x3c3   :  { %v7143_v26 = vsub.f32 %v8966_v53, %v6454_v15  ;;  %v1901_v6 = vsel %vm1125_vm0, %v1661_v37, 0.0 }
 0x3c4   :  { %v1894_v10 = vadd.f32 %v1893_v63, %v1892_v51  ;;  %v1662_v63 = vmul.f32 %v7136_v35, %v7136_v35 }
 0x3c5   :  { %8967 = vst [vmem:[#allocation93_spill] sm:$0xff] %v7143_v26  ;;  %v1663_v8 = vmul.f32 %v7143_v26, %v7143_v26 }
 0x3c6   :  { %v1896_v40 = vadd.f32 %v1895_v34, %v1894_v10  ;;  %v8969_v34 = vld [vmem:[#allocation97_spill] sm:$0xff]  ;;  %v1903_v29 = vsel %vm1125_vm0, %v1662_v63, 0.0 }
 0x3c7   :  { %v7157_v53 = vsub.f32 %v8969_v34, %v6454_v15  ;;  %v1905_v37 = vsel %vm1125_vm0, %v1663_v8, 0.0 }
 0x3c8   :  { %v1898_v51 = vadd.f32 %v1897_v36, %v1896_v40  ;;  %v1664_v36 = vmul.f32 %v7150_v33, %v7150_v33  ;;  %v1666_v33 = vmul.f32 %v7164_v12, %v7164_v12 }
 0x3c9   :  { %v1665_v26 = vmul.f32 %v7157_v53, %v7157_v53 }
 0x3ca   :  { %v1900_v10 = vadd.f32 %v1899_v14, %v1898_v51  ;;  %v8970_v14 = vld [vmem:[#allocation98_spill] sm:$0xff]  ;;  %v1907_v63 = vsel %vm1125_vm0, %v1664_v36, 0.0  ;;  %v1911_v36 = vsel %vm1125_vm0, %v1666_v33, 0.0 }
 0x3cb   :  { %v7171_v34 = vsub.f32 %v8970_v14, %v6454_v15  ;;  %v1909_v8 = vsel %vm1125_vm0, %v1665_v26, 0.0 }
 0x3cc   :  { %v1902_v40 = vadd.f32 %v1901_v6, %v1900_v10  ;;  %v8971_v6 = vld [vmem:[#allocation99_spill] sm:$0xff] }
 0x3cd   :  { %v7178_v61 = vsub.f32 %v8971_v6, %v6454_v15  ;;  %v1667_v14 = vmul.f32 %v7171_v34, %v7171_v34 }
 0x3ce   :  { %v1904_v51 = vadd.f32 %v1903_v29, %v1902_v40  ;;  %v7185_v29 = vsub.f32 %v6368_v24, %v6454_v15  ;;  %v7199_v24 = vsub.f32 %v6378_v50, %v6454_v15  ;;  %v7213_v50 = vsub.f32 %v6020_v32, %v6454_v15 }
 0x3cf   :  { %v1668_v6 = vmul.f32 %v7178_v61, %v7178_v61  ;;  %v1913_v26 = vsel %vm1125_vm0, %v1667_v14, 0.0  ;;  %v7227_v32 = vsub.f32 %v6036_v55, %v6454_v15  ;;  %v7241_v55 = vsub.f32 %v6052_v58, %v6454_v15 }
 0x3d0   :  { %v1906_v10 = vadd.f32 %v1905_v37, %v1904_v51  ;;  %v7192_v37 = vsub.f32 %v6374_v0, %v6454_v15  ;;  %v7206_v0 = vsub.f32 %v6009_v28, %v6454_v15  ;;  %v7220_v28 = vsub.f32 %v6028_v20, %v6454_v15 }
 0x3d1   :  { %v1915_v33 = vsel %vm1125_vm0, %v1668_v6, 0.0  ;;  %v7234_v20 = vsub.f32 %v6044_v4, %v6454_v15  ;;  %v7248_v4 = vsub.f32 %v6060_v7, %v6454_v15  ;;  %v7255_v58 = vsub.f32 %v6068_v23, %v6454_v15 }
 0x3d2   :  { %v1908_v40 = vadd.f32 %v1907_v63, %v1906_v10  ;;  %v1669_v63 = vmul.f32 %v7185_v29, %v7185_v29  ;;  %v7262_v7 = vsub.f32 %v6076_v39, %v6454_v15  ;;  %v7269_v23 = vsub.f32 %v6084_v54, %v6454_v15 }
 0x3d3   :  { %v7276_v39 = vsub.f32 %v6092_v5, %v6454_v15  ;;  %v7283_v54 = vsub.f32 %v6100_v25, %v6454_v15  ;;  %v7290_v5 = vsub.f32 %v6108_v43, %v6454_v15  ;;  %v7297_v25 = vsub.f32 %v6116_v60, %v6454_v15 }
 0x3d4   :  { %v1910_v51 = vadd.f32 %v1909_v8, %v1908_v40  ;;  %v1670_v8 = vmul.f32 %v7192_v37, %v7192_v37  ;;  %v1917_v14 = vsel %vm1125_vm0, %v1669_v63, 0.0  ;;  %v7304_v43 = vsub.f32 %v6124_v18, %v6454_v15 }
 0x3d5   :  { %8972 = vst [vmem:[#allocation95_spill] sm:$0xff] %v7283_v54  ;;  %8973 = vst [vmem:[#allocation96_spill] sm:$0xff] %v7297_v25  ;;  %v7311_v60 = vsub.f32 %v6132_v41, %v6454_v15 }
 0x3d6   :  { %v1912_v10 = vadd.f32 %v1911_v36, %v1910_v51  ;;  %v1671_v36 = vmul.f32 %v7199_v24, %v7199_v24  ;;  %v1919_v6 = vsel %vm1125_vm0, %v1670_v8, 0.0  ;;  %v1686_v18 = vmul.f32 %v7304_v43, %v7304_v43 }
 0x3d7   :  { %v1687_v41 = vmul.f32 %v7311_v60, %v7311_v60 }
 0x3d8   :  { %v1914_v40 = vadd.f32 %v1913_v26, %v1912_v10  ;;  %v1672_v26 = vmul.f32 %v7206_v0, %v7206_v0  ;;  %v1921_v63 = vsel %vm1125_vm0, %v1671_v36, 0.0 }
 0x3da   :  { %v1916_v51 = vadd.f32 %v1915_v33, %v1914_v40  ;;  %v1673_v33 = vmul.f32 %v7213_v50, %v7213_v50  ;;  %v1923_v8 = vsel %vm1125_vm0, %v1672_v26, 0.0 }
 0x3dc   :  { %v1918_v10 = vadd.f32 %v1917_v14, %v1916_v51  ;;  %v1674_v14 = vmul.f32 %v7220_v28, %v7220_v28  ;;  %v1925_v36 = vsel %vm1125_vm0, %v1673_v33, 0.0 }
 0x3de   :  { %v1920_v40 = vadd.f32 %v1919_v6, %v1918_v10  ;;  %v1675_v6 = vmul.f32 %v7227_v32, %v7227_v32  ;;  %v1927_v26 = vsel %vm1125_vm0, %v1674_v14, 0.0 }
 0x3e0   :  { %v1922_v51 = vadd.f32 %v1921_v63, %v1920_v40  ;;  %v1676_v63 = vmul.f32 %v7234_v20, %v7234_v20  ;;  %v1929_v33 = vsel %vm1125_vm0, %v1675_v6, 0.0 }
 0x3e2   :  { %v1924_v10 = vadd.f32 %v1923_v8, %v1922_v51  ;;  %v1677_v8 = vmul.f32 %v7241_v55, %v7241_v55  ;;  %v1931_v14 = vsel %vm1125_vm0, %v1676_v63, 0.0 }
 0x3e4   :  { %v1926_v40 = vadd.f32 %v1925_v36, %v1924_v10  ;;  %v1678_v36 = vmul.f32 %v7248_v4, %v7248_v4  ;;  %v1933_v6 = vsel %vm1125_vm0, %v1677_v8, 0.0 }
 0x3e6   :  { %v1928_v51 = vadd.f32 %v1927_v26, %v1926_v40  ;;  %v1679_v26 = vmul.f32 %v7255_v58, %v7255_v58  ;;  %v1935_v63 = vsel %vm1125_vm0, %v1678_v36, 0.0 }
 0x3e8   :  { %v1930_v10 = vadd.f32 %v1929_v33, %v1928_v51  ;;  %v1680_v33 = vmul.f32 %v7262_v7, %v7262_v7  ;;  %v1937_v8 = vsel %vm1125_vm0, %v1679_v26, 0.0 }
 0x3ea   :  { %v1932_v40 = vadd.f32 %v1931_v14, %v1930_v10  ;;  %v1681_v14 = vmul.f32 %v7269_v23, %v7269_v23  ;;  %v1939_v36 = vsel %vm1125_vm0, %v1680_v33, 0.0 }
 0x3ec   :  { %v1934_v51 = vadd.f32 %v1933_v6, %v1932_v40  ;;  %v1682_v6 = vmul.f32 %v7276_v39, %v7276_v39  ;;  %v1941_v26 = vsel %vm1125_vm0, %v1681_v14, 0.0 }
 0x3ee   :  { %v1936_v10 = vadd.f32 %v1935_v63, %v1934_v51  ;;  %v1683_v63 = vmul.f32 %v7283_v54, %v7283_v54  ;;  %v1943_v33 = vsel %vm1125_vm0, %v1682_v6, 0.0  ;;  %v7321_v6 = vsub.f32 %v6140_v62, %v6454_v15 }
 0x3f0   :  { %v1938_v40 = vadd.f32 %v1937_v8, %v1936_v10  ;;  %v1684_v8 = vmul.f32 %v7290_v5, %v7290_v5  ;;  %v1945_v14 = vsel %vm1125_vm0, %v1683_v63, 0.0 }
 0x3f2   :  { %v1940_v51 = vadd.f32 %v1939_v36, %v1938_v40  ;;  %v1685_v36 = vmul.f32 %v7297_v25, %v7297_v25  ;;  %v1951_v25 = vsel %vm1125_vm0, %v1686_v18, 0.0 }
 0x3f4   :  { %v1942_v10 = vadd.f32 %v1941_v26, %v1940_v51  ;;  %v1947_v26 = vsel %vm1125_vm0, %v1684_v8, 0.0  ;;  %v1688_v8 = vmul.f32 %v7321_v6, %v7321_v6 }
 0x3f6   :  { %v1944_v40 = vadd.f32 %v1943_v33, %v1942_v10  ;;  %v1949_v10 = vsel %vm1125_vm0, %v1685_v36, 0.0  ;;  %v1955_v36 = vsel %vm1125_vm0, %v1688_v8, 0.0 }
 0x3f8   :  { %v1946_v51 = vadd.f32 %v1945_v14, %v1944_v40  ;;  %v7329_v40 = vsub.f32 %v6148_v22, %v6454_v15  ;;  %v1953_v14 = vsel %vm1125_vm0, %v1687_v41, 0.0  ;;  %v7343_v22 = vsub.f32 %v6164_v13, %v6454_v15 }
 0x3f9   :  { %v7357_v13 = vsub.f32 %v6180_v17, %v6454_v15  ;;  %v7371_v17 = vsub.f32 %v6196_v9, %v6454_v15  ;;  %v7385_v9 = vsub.f32 %v6212_v11, %v6454_v15  ;;  %v7399_v11 = vsub.f32 %v6228_v16, %v6454_v15 }
 0x3fa   :  { %v1948_v54 = vadd.f32 %v1947_v26, %v1946_v51  ;;  %v7336_v51 = vsub.f32 %v6156_v49, %v6454_v15  ;;  %v7350_v49 = vsub.f32 %v6172_v45, %v6454_v15  ;;  %v7364_v45 = vsub.f32 %v6188_v48, %v6454_v15 }
 0x3fb   :  { %v7378_v48 = vsub.f32 %v6204_v42, %v6454_v15  ;;  %v7392_v42 = vsub.f32 %v6220_v52, %v6454_v15  ;;  %8974 = vst [vmem:[#allocation97_spill] sm:$0xff] %v7399_v11  ;;  %v7406_v52 = vsub.f32 %v6236_v44, %v6454_v15  ;;  %v7413_v16 = vsub.f32 %v6244_v21, %v6454_v15 }
 0x3fc   :  { %v1950_v33 = vadd.f32 %v1949_v10, %v1948_v54  ;;  %v1689_v54 = vmul.f32 %v7329_v40, %v7329_v40  ;;  %v1690_v18 = vmul.f32 %v7336_v51, %v7336_v51  ;;  %v1691_v10 = vmul.f32 %v7343_v22, %v7343_v22 }
 0x3fd   :  { %v1692_v8 = vmul.f32 %v7350_v49, %v7350_v49  ;;  %8975 = vst [vmem:[#allocation98_spill] sm:$0xff] %v7406_v52  ;;  %8976 = vst [vmem:[#allocation99_spill] sm:$0xff] %v7413_v16 }
 0x3fe   :  { %v1952_v63 = vadd.f32 %v1951_v25, %v1950_v33  ;;  %v1957_v26 = vsel %vm1125_vm0, %v1689_v54, 0.0  ;;  %v1959_v33 = vsel %vm1125_vm0, %v1690_v18, 0.0  ;;  %v1693_v54 = vmul.f32 %v7357_v13, %v7357_v13 }
 0x3ff   :  { %v1694_v18 = vmul.f32 %v7364_v45, %v7364_v45 }
 0x400   :  { %v1954_v62 = vadd.f32 %v1953_v14, %v1952_v63  ;;  %v1961_v14 = vsel %vm1125_vm0, %v1691_v10, 0.0  ;;  %v1695_v10 = vmul.f32 %v7371_v17, %v7371_v17 }
 0x402   :  { %v1956_v25 = vadd.f32 %v1955_v36, %v1954_v62  ;;  %v1963_v36 = vsel %vm1125_vm0, %v1692_v8, 0.0  ;;  %v1696_v8 = vmul.f32 %v7378_v48, %v7378_v48 }
 0x404   :  { %v1958_v41 = vadd.f32 %v1957_v26, %v1956_v25  ;;  %v1965_v26 = vsel %vm1125_vm0, %v1693_v54, 0.0  ;;  %v1697_v54 = vmul.f32 %v7385_v9, %v7385_v9 }
 0x406   :  { %v1960_v63 = vadd.f32 %v1959_v33, %v1958_v41  ;;  %v1967_v33 = vsel %vm1125_vm0, %v1694_v18, 0.0  ;;  %v1698_v18 = vmul.f32 %v7392_v42, %v7392_v42 }
 0x408   :  { %v1962_v62 = vadd.f32 %v1961_v14, %v1960_v63  ;;  %v1969_v14 = vsel %vm1125_vm0, %v1695_v10, 0.0  ;;  %v1699_v10 = vmul.f32 %v7399_v11, %v7399_v11 }
 0x40a   :  { %v1964_v25 = vadd.f32 %v1963_v36, %v1962_v62  ;;  %v1971_v36 = vsel %vm1125_vm0, %v1696_v8, 0.0  ;;  %v1700_v8 = vmul.f32 %v7406_v52, %v7406_v52 }
 0x40c   :  { %v1966_v41 = vadd.f32 %v1965_v26, %v1964_v25  ;;  %v1973_v26 = vsel %vm1125_vm0, %v1697_v54, 0.0  ;;  %v8977_v54 = vld [vmem:[#allocation86_spill] sm:$0xff] }
 0x40d   :  { %v7420_v44 = vsub.f32 %v8977_v54, %v6454_v15 }
 0x40e   :  { %v1968_v63 = vadd.f32 %v1967_v33, %v1966_v41  ;;  %v1975_v33 = vsel %vm1125_vm0, %v1698_v18, 0.0 }
 0x40f   :  { %8978 = vst [vmem:[#allocation86_spill] sm:$0xff] %v7420_v44 }
 0x410   :  { %v1970_v62 = vadd.f32 %v1969_v14, %v1968_v63  ;;  %v1977_v14 = vsel %vm1125_vm0, %v1699_v10, 0.0 }
 0x412   :  { %v1972_v25 = vadd.f32 %v1971_v36, %v1970_v62  ;;  %v1701_v36 = vmul.f32 %v7413_v16, %v7413_v16 }
 0x414   :  { %v1974_v41 = vadd.f32 %v1973_v26, %v1972_v25  ;;  %v1979_v25 = vsel %vm1125_vm0, %v1700_v8, 0.0  ;;  %v8979_v26 = vld [vmem:[#allocation87_spill] sm:$0xff]  ;;  %v1981_v10 = vsel %vm1125_vm0, %v1701_v36, 0.0  ;;  %v7444_v36 = vsub.f32 %v6276_v47, %v6454_v15 }
 0x415   :  { %v7427_v21 = vsub.f32 %v8979_v26, %v6454_v15 }
 0x416   :  { %v1976_v63 = vadd.f32 %v1975_v33, %v1974_v41  ;;  %v1702_v41 = vmul.f32 %v7420_v44, %v7420_v44  ;;  %v2449_v33 = vld [vmem:[%s8492_s4] sm:$0xff]  ;;  %8983 = vst [vmem:[#allocation100_spill] sm:$0xff] %v7444_v36 }
 0x417   :  { %8980 = vst [vmem:[#allocation87_spill] sm:$0xff] %v7427_v21  ;;  %4249 = vmatprep.subr.mxu1 %v2449_v33 }
 0x418   :  { %v1978_v62 = vadd.f32 %v1977_v14, %v1976_v63  ;;  %4250 = vmatpush3.msra.mxu1 %v2449_v33  ;;  %v8981_v14 = vld [vmem:[#allocation89_spill] sm:$0xff]  ;;  %v1983_v54 = vsel %vm1125_vm0, %v1702_v41, 0.0  ;;  %v8984_v33 = vld [vmem:[#allocation91_spill] sm:$0xff] }
 0x419   :  { %v7437_v8 = vsub.f32 %v8981_v14, %v6454_v15  ;;  %v7451_v14 = vsub.f32 %v8984_v33, %v6454_v15 }
 0x41a   :  { %v1980_v18 = vadd.f32 %v1979_v25, %v1978_v62  ;;  %v1703_v62 = vmul.f32 %v7427_v21, %v7427_v21  ;;  %v1705_v21 = vmul.f32 %v7444_v36, %v7444_v36 }
 0x41b   :  { %8982 = vst [vmem:[#allocation89_spill] sm:$0xff] %v7437_v8  ;;  %v1704_v26 = vmul.f32 %v7437_v8, %v7437_v8  ;;  %8985 = vst [vmem:[#allocation91_spill] sm:$0xff] %v7451_v14  ;;  %v1706_v8 = vmul.f32 %v7451_v14, %v7451_v14 }
 0x41c   :  { %v1982_v63 = vadd.f32 %v1981_v10, %v1980_v18  ;;  %v1985_v18 = vsel %vm1125_vm0, %v1703_v62, 0.0  ;;  %v1989_v62 = vsel %vm1125_vm0, %v1705_v21, 0.0  ;;  %v2006_v21 = vlaneseq }
 0x41d   :  { %v1987_v41 = vsel %vm1125_vm0, %v1704_v26, 0.0  ;;  %v1991_v33 = vsel %vm1125_vm0, %v1706_v8, 0.0  ;;  %v2004_v8 = vld [vmem:[%s8493_s2] sm:$0x1] }
 0x41e   :  { %v1984_v25 = vadd.f32 %v1983_v54, %v1982_v63  ;;  %v8986_v54 = vld [vmem:[#allocation92_spill] sm:$0xff] }
 0x41f   :  { %v7458_v47 = vsub.f32 %v8986_v54, %v6454_v15 }
 0x420   :  { %v1986_v10 = vadd.f32 %v1985_v18, %v1984_v25 }
 0x421   :  { %v1707_v18 = vmul.f32 %v7458_v47, %v7458_v47 }
 0x422   :  { %v1988_v63 = vadd.f32 %v1987_v41, %v1986_v10 }
 0x423   :  { %v1993_v36 = vsel %vm1125_vm0, %v1707_v18, 0.0 }
 0x424   :  { %v1990_v25 = vadd.f32 %v1989_v62, %v1988_v63  ;;  %v2007_v63 = vshrl.u32 %v2006_v21, 7 }
 0x426   :  { %v1992_v44 = vadd.f32 %v1991_v33, %v1990_v25  ;;  %v2008_v33 = vsub.s32 0, %v2007_v63 }
 0x428   :  { %v1994_v26 = vadd.f32 %v1993_v36, %v1992_v44  ;;  %v8987_v44 = vld [vmem:[#allocation2_spill] sm:$0xff] }
 0x42a   :  { %v1995_v10 = vrot.slane %v1994_v26, 4 }
 0x42c   :  { %v1996_v41 = vadd.f32 %v1995_v10, %v1994_v26 }
 0x42e   :  { %v1997_v16 = vrot.slane %v1996_v41, 2 }
 0x430   :  { %v1998_v15 = vadd.f32 %v1997_v16, %v1996_v41  ;;  %v8988_v16 = vld [vmem:[#allocation3_spill] sm:$0xff] }
 0x432   :  { %v1999_v54 = vrot.slane %v1998_v15, 1 }
 0x434   :  { %v2000_v52 = vadd.f32 %v1999_v54, %v1998_v15  ;;  %v8990_v54 = vld [vmem:[#allocation5_spill] sm:$0xff] }
 0x436   :  { %v2001_v11 = vmul.f32 0.00086805556, %v2000_v52  ;;  %v8989_v52 = vld [vmem:[#allocation4_spill] sm:$0xff] }
 0x438   :  { %v2002_v14 = vadd.f32 1e-05, %v2001_v11  ;;  %v7479_v11 = vld [vmem:[%s8494_s3] ss:$0 sm:$0xff] }
 0x43a   :  { %4532 = vrsqrt.f32 %v2002_v14 }
 0x447   :  { %v4533_v62 = vpop.eup %4532 }
 0x448   :  { %v2005_v25 = vmul.f32 %v4533_v62, %v2004_v8 }
 0x44a   :  { %v7470_v18 = vrot.slane %v2005_v25, %v2008_v33  ;;  %v8991_v25 = vld [vmem:[#allocation6_spill] sm:$0xff] }
 0x44c   :  { %v2010_v36 = vmul.f32 %v7470_v18, %v8987_v44  ;;  %v2011_v26 = vmul.f32 %v7470_v18, %v8988_v16  ;;  %v2012_v14 = vmul.f32 %v7470_v18, %v8989_v52  ;;  %v2013_v15 = vmul.f32 %v7470_v18, %v6470_v38  ;;  %v8992_v16 = vld [vmem:[#allocation7_spill] sm:$0xff]  ;;  %v8993_v38 = vld [vmem:[#allocation8_spill] sm:$0xff] }
 0x44d   :  { %v2014_v21 = vmul.f32 %v7470_v18, %v8990_v54  ;;  %v2015_v33 = vmul.f32 %v7470_v18, %v8991_v25  ;;  %v8994_v54 = vld [vmem:[#allocation9_spill] sm:$0xff] }
 0x44e   :  { %v2161_v10 = vadd.f32 %v7479_v11, %v2010_v36  ;;  %v2162_v41 = vadd.f32 %v7479_v11, %v2011_v26  ;;  %v2163_v63 = vadd.f32 %v7479_v11, %v2012_v14  ;;  %v2164_v44 = vadd.f32 %v7479_v11, %v2013_v15 }
 0x44f   :  { %v2016_v36 = vmul.f32 %v7470_v18, %v8992_v16  ;;  %v2165_v26 = vadd.f32 %v7479_v11, %v2014_v21  ;;  %v2017_v14 = vmul.f32 %v7470_v18, %v8993_v38  ;;  %v2018_v15 = vmul.f32 %v7470_v18, %v8994_v54  ;;  %v8995_v21 = vld [vmem:[#allocation10_spill] sm:$0xff] }
 0x450   :  { %v2305_v62 = vmax.f32 %v2161_v10, 0.0  ;;  %v2306_v8 = vmax.f32 %v2162_v41, 0.0  ;;  %v2307_v52 = vmax.f32 %v2163_v63, 0.0  ;;  %v2166_v10 = vadd.f32 %v7479_v11, %v2015_v33 }
 0x451   :  { %v2308_v41 = vmax.f32 %v2164_v44, 0.0  ;;  %v2167_v25 = vadd.f32 %v7479_v11, %v2016_v36  ;;  %v2309_v16 = vmax.f32 %v2165_v26, 0.0  ;;  %v2019_v63 = vmul.f32 %v7470_v18, %v8995_v21  ;;  %v8997_v36 = vld [vmem:[#allocation12_spill] sm:$0xff] }
 0x452   :  { %4251 = vmatprep.mubr.msk.f32.mxu1 %vm1125_vm0, %v2305_v62  ;;  %v2168_v62 = vadd.f32 %v7479_v11, %v2017_v14  ;;  %v2169_v44 = vadd.f32 %v7479_v11, %v2018_v15  ;;  %v2021_v26 = vmul.f32 %v7470_v18, %v8997_v36  ;;  %v8999_v15 = vld [vmem:[#allocation14_spill] sm:$0xff] }
 0x453   :  { %4252 = vmatmul.mubr.msk.f32.vlgmr.msra.gmra.mxu1 %vm1125_vm0, %v2306_v8  ;;  %v2310_v8 = vmax.f32 %v2166_v10, 0.0  ;;  %v2311_v38 = vmax.f32 %v2167_v25, 0.0  ;;  %v2023_v25 = vmul.f32 %v7470_v18, %v8999_v15 }
 0x454   :  { %4254 = vmatprep.mubr.msk.f32.mxu1 %vm1125_vm0, %v2307_v52  ;;  %v8996_v52 = vld [vmem:[#allocation11_spill] sm:$0xff]  ;;  %v2312_v54 = vmax.f32 %v2168_v62, 0.0  ;;  %v2313_v21 = vmax.f32 %v2169_v44, 0.0 }
 0x455   :  { %v2020_v33 = vmul.f32 %v7470_v18, %v8996_v52 }
 0x457   :  { %4255 = vmatmul.mubr.msk.f32.gmra.mxu1 %vm1125_vm0, %v2308_v41  ;;  %v2170_v41 = vadd.f32 %v7479_v11, %v2019_v63  ;;  %v2171_v10 = vadd.f32 %v7479_v11, %v2020_v33  ;;  %v9001_v33 = vld [vmem:[#allocation16_spill] sm:$0xff] }
 0x458   :  { %4257 = vmatprep.mubr.msk.f32.mxu1 %vm1125_vm0, %v2309_v16  ;;  %v8998_v16 = vld [vmem:[#allocation13_spill] sm:$0xff]  ;;  %v2025_v44 = vmul.f32 %v7470_v18, %v9001_v33 }
 0x459   :  { %v2022_v14 = vmul.f32 %v7470_v18, %v8998_v16  ;;  %v2314_v52 = vmax.f32 %v2170_v41, 0.0  ;;  %v2315_v36 = vmax.f32 %v2171_v10, 0.0 }
 0x45b   :  { %4258 = vmatmul.mubr.msk.f32.gmra.mxu1 %vm1125_vm0, %v2310_v8  ;;  %v2172_v8 = vadd.f32 %v7479_v11, %v2021_v26  ;;  %v2173_v62 = vadd.f32 %v7479_v11, %v2022_v14  ;;  %v9003_v14 = vld [vmem:[#allocation18_spill] sm:$0xff] }
 0x45c   :  { %4260 = vmatprep.mubr.msk.f32.mxu1 %vm1125_vm0, %v2311_v38  ;;  %v9000_v38 = vld [vmem:[#allocation15_spill] sm:$0xff]  ;;  %v2027_v10 = vmul.f32 %v7470_v18, %v9003_v14 }
 0x45d   :  { %v2024_v63 = vmul.f32 %v7470_v18, %v9000_v38  ;;  %v2316_v16 = vmax.f32 %v2172_v8, 0.0  ;;  %v2317_v15 = vmax.f32 %v2173_v62, 0.0 }
 0x45f   :  { %4261 = vmatmul.mubr.msk.f32.gmra.mxu1 %vm1125_vm0, %v2312_v54  ;;  %v2174_v54 = vadd.f32 %v7479_v11, %v2023_v25  ;;  %v2175_v41 = vadd.f32 %v7479_v11, %v2024_v63  ;;  %v9005_v63 = vld [vmem:[#allocation20_spill] sm:$0xff] }
 0x460   :  { %4263 = vmatprep.mubr.msk.f32.mxu1 %vm1125_vm0, %v2313_v21  ;;  %v9002_v21 = vld [vmem:[#allocation17_spill] sm:$0xff]  ;;  %v2029_v62 = vmul.f32 %v7470_v18, %v9005_v63 }
 0x461   :  { %v2026_v26 = vmul.f32 %v7470_v18, %v9002_v21  ;;  %v2318_v38 = vmax.f32 %v2174_v54, 0.0  ;;  %v2319_v33 = vmax.f32 %v2175_v41, 0.0 }
 0x463   :  { %4264 = vmatmul.mubr.msk.f32.gmra.mxu1 %vm1125_vm0, %v2314_v52  ;;  %v2176_v52 = vadd.f32 %v7479_v11, %v2025_v44  ;;  %v2177_v8 = vadd.f32 %v7479_v11, %v2026_v26  ;;  %v9007_v26 = vld [vmem:[#allocation22_spill] sm:$0xff] }
 0x464   :  { %4266 = vmatprep.mubr.msk.f32.mxu1 %vm1125_vm0, %v2315_v36  ;;  %v9004_v36 = vld [vmem:[#allocation19_spill] sm:$0xff]  ;;  %v2031_v41 = vmul.f32 %v7470_v18, %v9007_v26 }
 0x465   :  { %v2028_v25 = vmul.f32 %v7470_v18, %v9004_v36  ;;  %v2320_v21 = vmax.f32 %v2176_v52, 0.0  ;;  %v2321_v14 = vmax.f32 %v2177_v8, 0.0 }
 0x467   :  { %4267 = vmatmul.mubr.msk.f32.gmra.mxu1 %vm1125_vm0, %v2316_v16  ;;  %v2178_v16 = vadd.f32 %v7479_v11, %v2027_v10  ;;  %v2179_v54 = vadd.f32 %v7479_v11, %v2028_v25  ;;  %v9009_v25 = vld [vmem:[#allocation24_spill] sm:$0xff] }
 0x468   :  { %4269 = vmatprep.mubr.msk.f32.mxu1 %vm1125_vm0, %v2317_v15  ;;  %v9006_v15 = vld [vmem:[#allocation21_spill] sm:$0xff]  ;;  %v2033_v8 = vmul.f32 %v7470_v18, %v9009_v25 }
 0x469   :  { %v2030_v44 = vmul.f32 %v7470_v18, %v9006_v15  ;;  %v2322_v36 = vmax.f32 %v2178_v16, 0.0  ;;  %v2323_v63 = vmax.f32 %v2179_v54, 0.0 }
 0x46b   :  { %4270 = vmatmul.mubr.msk.f32.gmra.mxu1 %vm1125_vm0, %v2318_v38  ;;  %v2180_v38 = vadd.f32 %v7479_v11, %v2029_v62  ;;  %v2181_v52 = vadd.f32 %v7479_v11, %v2030_v44  ;;  %v9011_v44 = vld [vmem:[#allocation26_spill] sm:$0xff] }
 0x46c   :  { %4272 = vmatprep.mubr.msk.f32.mxu1 %vm1125_vm0, %v2319_v33  ;;  %v9008_v33 = vld [vmem:[#allocation23_spill] sm:$0xff]  ;;  %v2035_v54 = vmul.f32 %v7470_v18, %v9011_v44 }
 0x46d   :  { %v2032_v10 = vmul.f32 %v7470_v18, %v9008_v33  ;;  %v2324_v15 = vmax.f32 %v2180_v38, 0.0  ;;  %v2325_v26 = vmax.f32 %v2181_v52, 0.0 }
 0x46f   :  { %4273 = vmatmul.mubr.msk.f32.gmra.mxu1 %vm1125_vm0, %v2320_v21  ;;  %v2182_v21 = vadd.f32 %v7479_v11, %v2031_v41  ;;  %v2183_v16 = vadd.f32 %v7479_v11, %v2032_v10  ;;  %v9013_v10 = vld [vmem:[#allocation28_spill] sm:$0xff] }
 0x470   :  { %4275 = vmatprep.mubr.msk.f32.mxu1 %vm1125_vm0, %v2321_v14  ;;  %v9010_v14 = vld [vmem:[#allocation25_spill] sm:$0xff]  ;;  %v2037_v52 = vmul.f32 %v7470_v18, %v9013_v10 }
 0x471   :  { %v2034_v62 = vmul.f32 %v7470_v18, %v9010_v14  ;;  %v2326_v33 = vmax.f32 %v2182_v21, 0.0  ;;  %v2327_v25 = vmax.f32 %v2183_v16, 0.0 }
 0x473   :  { %4276 = vmatmul.mubr.msk.f32.gmra.mxu1 %vm1125_vm0, %v2322_v36  ;;  %v2184_v36 = vadd.f32 %v7479_v11, %v2033_v8  ;;  %v2185_v38 = vadd.f32 %v7479_v11, %v2034_v62  ;;  %v9015_v62 = vld [vmem:[#allocation30_spill] sm:$0xff] }
 0x474   :  { %4278 = vmatprep.mubr.msk.f32.mxu1 %vm1125_vm0, %v2323_v63  ;;  %v9012_v63 = vld [vmem:[#allocation27_spill] sm:$0xff]  ;;  %v2039_v16 = vmul.f32 %v7470_v18, %v9015_v62 }
 0x475   :  { %v2036_v41 = vmul.f32 %v7470_v18, %v9012_v63  ;;  %v2328_v14 = vmax.f32 %v2184_v36, 0.0  ;;  %v2329_v44 = vmax.f32 %v2185_v38, 0.0 }
 0x477   :  { %4279 = vmatmul.mubr.msk.f32.gmra.mxu1 %vm1125_vm0, %v2324_v15  ;;  %v2186_v15 = vadd.f32 %v7479_v11, %v2035_v54  ;;  %v2187_v21 = vadd.f32 %v7479_v11, %v2036_v41  ;;  %v9017_v41 = vld [vmem:[#allocation32_spill] sm:$0xff] }
 0x478   :  { %4281 = vmatprep.mubr.msk.f32.mxu1 %vm1125_vm0, %v2325_v26  ;;  %v9014_v26 = vld [vmem:[#allocation29_spill] sm:$0xff]  ;;  %v2041_v38 = vmul.f32 %v7470_v18, %v9017_v41 }
 0x479   :  { %v2038_v8 = vmul.f32 %v7470_v18, %v9014_v26  ;;  %v2330_v63 = vmax.f32 %v2186_v15, 0.0  ;;  %v2331_v10 = vmax.f32 %v2187_v21, 0.0 }
 0x47b   :  { %4282 = vmatmul.mubr.msk.f32.gmra.mxu1 %vm1125_vm0, %v2326_v33  ;;  %v2188_v33 = vadd.f32 %v7479_v11, %v2037_v52  ;;  %v2189_v36 = vadd.f32 %v7479_v11, %v2038_v8  ;;  %v9019_v8 = vld [vmem:[#allocation34_spill] sm:$0xff] }
 0x47c   :  { %4284 = vmatprep.mubr.msk.f32.mxu1 %vm1125_vm0, %v2327_v25  ;;  %v9016_v25 = vld [vmem:[#allocation31_spill] sm:$0xff]  ;;  %v2043_v21 = vmul.f32 %v7470_v18, %v9019_v8 }
 0x47d   :  { %v2040_v54 = vmul.f32 %v7470_v18, %v9016_v25  ;;  %v2332_v26 = vmax.f32 %v2188_v33, 0.0  ;;  %v2333_v62 = vmax.f32 %v2189_v36, 0.0 }
 0x47f   :  { %4285 = vmatmul.mubr.msk.f32.gmra.mxu1 %vm1125_vm0, %v2328_v14  ;;  %v2190_v14 = vadd.f32 %v7479_v11, %v2039_v16  ;;  %v2191_v15 = vadd.f32 %v7479_v11, %v2040_v54  ;;  %v9021_v54 = vld [vmem:[#allocation36_spill] sm:$0xff] }
 0x480   :  { %4287 = vmatprep.mubr.msk.f32.mxu1 %vm1125_vm0, %v2329_v44  ;;  %v9018_v44 = vld [vmem:[#allocation33_spill] sm:$0xff]  ;;  %v2045_v36 = vmul.f32 %v7470_v18, %v9021_v54 }
 0x481   :  { %v2042_v52 = vmul.f32 %v7470_v18, %v9018_v44  ;;  %v2334_v25 = vmax.f32 %v2190_v14, 0.0  ;;  %v2335_v41 = vmax.f32 %v2191_v15, 0.0 }
 0x483   :  { %4288 = vmatmul.mubr.msk.f32.gmra.mxu1 %vm1125_vm0, %v2330_v63  ;;  %v2192_v63 = vadd.f32 %v7479_v11, %v2041_v38  ;;  %v2193_v33 = vadd.f32 %v7479_v11, %v2042_v52  ;;  %v9023_v52 = vld [vmem:[#allocation38_spill] sm:$0xff] }
 0x484   :  { %4290 = vmatprep.mubr.msk.f32.mxu1 %vm1125_vm0, %v2331_v10  ;;  %v9020_v10 = vld [vmem:[#allocation35_spill] sm:$0xff]  ;;  %v2047_v15 = vmul.f32 %v7470_v18, %v9023_v52 }
 0x485   :  { %v2044_v16 = vmul.f32 %v7470_v18, %v9020_v10  ;;  %v2336_v44 = vmax.f32 %v2192_v63, 0.0  ;;  %v2337_v8 = vmax.f32 %v2193_v33, 0.0 }
 0x487   :  { %4291 = vmatmul.mubr.msk.f32.gmra.mxu1 %vm1125_vm0, %v2332_v26  ;;  %v2194_v26 = vadd.f32 %v7479_v11, %v2043_v21  ;;  %v2195_v14 = vadd.f32 %v7479_v11, %v2044_v16  ;;  %v9025_v16 = vld [vmem:[#allocation40_spill] sm:$0xff] }
 0x488   :  { %4293 = vmatprep.mubr.msk.f32.mxu1 %vm1125_vm0, %v2333_v62  ;;  %v9022_v62 = vld [vmem:[#allocation37_spill] sm:$0xff]  ;;  %v2049_v33 = vmul.f32 %v7470_v18, %v9025_v16 }
 0x489   :  { %v2046_v38 = vmul.f32 %v7470_v18, %v9022_v62  ;;  %v2338_v10 = vmax.f32 %v2194_v26, 0.0  ;;  %v2339_v54 = vmax.f32 %v2195_v14, 0.0 }
 0x48b   :  { %4294 = vmatmul.mubr.msk.f32.gmra.mxu1 %vm1125_vm0, %v2334_v25  ;;  %v2196_v25 = vadd.f32 %v7479_v11, %v2045_v36  ;;  %v2197_v63 = vadd.f32 %v7479_v11, %v2046_v38  ;;  %v9027_v38 = vld [vmem:[#allocation42_spill] sm:$0xff] }
 0x48c   :  { %4296 = vmatprep.mubr.msk.f32.mxu1 %vm1125_vm0, %v2335_v41  ;;  %v9024_v41 = vld [vmem:[#allocation39_spill] sm:$0xff]  ;;  %v2051_v14 = vmul.f32 %v7470_v18, %v9027_v38 }
 0x48d   :  { %v2048_v21 = vmul.f32 %v7470_v18, %v9024_v41  ;;  %v2340_v62 = vmax.f32 %v2196_v25, 0.0  ;;  %v2341_v52 = vmax.f32 %v2197_v63, 0.0 }
 0x48f   :  { %4297 = vmatmul.mubr.msk.f32.gmra.mxu1 %vm1125_vm0, %v2336_v44  ;;  %v2198_v44 = vadd.f32 %v7479_v11, %v2047_v15  ;;  %v2199_v26 = vadd.f32 %v7479_v11, %v2048_v21  ;;  %v9029_v21 = vld [vmem:[#allocation44_spill] sm:$0xff] }
 0x490   :  { %4299 = vmatprep.mubr.msk.f32.mxu1 %vm1125_vm0, %v2337_v8  ;;  %v9026_v8 = vld [vmem:[#allocation41_spill] sm:$0xff]  ;;  %v2053_v63 = vmul.f32 %v7470_v18, %v9029_v21 }
 0x491   :  { %v2050_v36 = vmul.f32 %v7470_v18, %v9026_v8  ;;  %v2342_v41 = vmax.f32 %v2198_v44, 0.0  ;;  %v2343_v16 = vmax.f32 %v2199_v26, 0.0 }
 0x493   :  { %4300 = vmatmul.mubr.msk.f32.gmra.mxu1 %vm1125_vm0, %v2338_v10  ;;  %v2200_v10 = vadd.f32 %v7479_v11, %v2049_v33  ;;  %v2201_v25 = vadd.f32 %v7479_v11, %v2050_v36  ;;  %v9031_v36 = vld [vmem:[#allocation46_spill] sm:$0xff] }
 0x494   :  { %4302 = vmatprep.mubr.msk.f32.mxu1 %vm1125_vm0, %v2339_v54  ;;  %v9028_v54 = vld [vmem:[#allocation43_spill] sm:$0xff]  ;;  %v2055_v26 = vmul.f32 %v7470_v18, %v9031_v36 }
 0x495   :  { %v2052_v15 = vmul.f32 %v7470_v18, %v9028_v54  ;;  %v2344_v8 = vmax.f32 %v2200_v10, 0.0  ;;  %v2345_v38 = vmax.f32 %v2201_v25, 0.0 }
 0x497   :  { %4303 = vmatmul.mubr.msk.f32.gmra.mxu1 %vm1125_vm0, %v2340_v62  ;;  %v2202_v62 = vadd.f32 %v7479_v11, %v2051_v14  ;;  %v2203_v44 = vadd.f32 %v7479_v11, %v2052_v15  ;;  %v9033_v15 = vld [vmem:[#allocation48_spill] sm:$0xff] }
 0x498   :  { %4305 = vmatprep.mubr.msk.f32.mxu1 %vm1125_vm0, %v2341_v52  ;;  %v9030_v52 = vld [vmem:[#allocation45_spill] sm:$0xff]  ;;  %v2057_v25 = vmul.f32 %v7470_v18, %v9033_v15 }
 0x499   :  { %v2054_v33 = vmul.f32 %v7470_v18, %v9030_v52  ;;  %v2346_v54 = vmax.f32 %v2202_v62, 0.0  ;;  %v2347_v21 = vmax.f32 %v2203_v44, 0.0 }
 0x49b   :  { %4306 = vmatmul.mubr.msk.f32.gmra.mxu1 %vm1125_vm0, %v2342_v41  ;;  %v2204_v41 = vadd.f32 %v7479_v11, %v2053_v63  ;;  %v2205_v10 = vadd.f32 %v7479_v11, %v2054_v33  ;;  %v9035_v33 = vld [vmem:[#allocation50_spill] sm:$0xff] }
 0x49c   :  { %4308 = vmatprep.mubr.msk.f32.mxu1 %vm1125_vm0, %v2343_v16  ;;  %v9032_v16 = vld [vmem:[#allocation47_spill] sm:$0xff]  ;;  %v2059_v44 = vmul.f32 %v7470_v18, %v9035_v33 }
 0x49d   :  { %v2056_v14 = vmul.f32 %v7470_v18, %v9032_v16  ;;  %v2348_v52 = vmax.f32 %v2204_v41, 0.0  ;;  %v2349_v36 = vmax.f32 %v2205_v10, 0.0 }
 0x49f   :  { %4309 = vmatmul.mubr.msk.f32.gmra.mxu1 %vm1125_vm0, %v2344_v8  ;;  %v2206_v8 = vadd.f32 %v7479_v11, %v2055_v26  ;;  %v2207_v62 = vadd.f32 %v7479_v11, %v2056_v14  ;;  %v9037_v14 = vld [vmem:[#allocation52_spill] sm:$0xff] }
 0x4a0   :  { %4311 = vmatprep.mubr.msk.f32.mxu1 %vm1125_vm0, %v2345_v38  ;;  %v9034_v38 = vld [vmem:[#allocation49_spill] sm:$0xff]  ;;  %v2061_v10 = vmul.f32 %v7470_v18, %v9037_v14 }
 0x4a1   :  { %v2058_v63 = vmul.f32 %v7470_v18, %v9034_v38  ;;  %v2350_v16 = vmax.f32 %v2206_v8, 0.0  ;;  %v2351_v15 = vmax.f32 %v2207_v62, 0.0 }
 0x4a3   :  { %4312 = vmatmul.mubr.msk.f32.gmra.mxu1 %vm1125_vm0, %v2346_v54  ;;  %v2208_v54 = vadd.f32 %v7479_v11, %v2057_v25  ;;  %v2209_v41 = vadd.f32 %v7479_v11, %v2058_v63  ;;  %v9039_v63 = vld [vmem:[#allocation54_spill] sm:$0xff] }
 0x4a4   :  { %4314 = vmatprep.mubr.msk.f32.mxu1 %vm1125_vm0, %v2347_v21  ;;  %v9036_v21 = vld [vmem:[#allocation51_spill] sm:$0xff]  ;;  %v2063_v62 = vmul.f32 %v7470_v18, %v9039_v63 }
 0x4a5   :  { %v2060_v26 = vmul.f32 %v7470_v18, %v9036_v21  ;;  %v2352_v38 = vmax.f32 %v2208_v54, 0.0  ;;  %v2353_v33 = vmax.f32 %v2209_v41, 0.0 }
 0x4a7   :  { %4315 = vmatmul.mubr.msk.f32.gmra.mxu1 %vm1125_vm0, %v2348_v52  ;;  %v2210_v52 = vadd.f32 %v7479_v11, %v2059_v44  ;;  %v2211_v8 = vadd.f32 %v7479_v11, %v2060_v26  ;;  %v9041_v26 = vld [vmem:[#allocation56_spill] sm:$0xff] }
 0x4a8   :  { %4317 = vmatprep.mubr.msk.f32.mxu1 %vm1125_vm0, %v2349_v36  ;;  %v9038_v36 = vld [vmem:[#allocation53_spill] sm:$0xff]  ;;  %v2065_v41 = vmul.f32 %v7470_v18, %v9041_v26 }
 0x4a9   :  { %v2062_v25 = vmul.f32 %v7470_v18, %v9038_v36  ;;  %v2354_v21 = vmax.f32 %v2210_v52, 0.0  ;;  %v2355_v14 = vmax.f32 %v2211_v8, 0.0 }
 0x4ab   :  { %4318 = vmatmul.mubr.msk.f32.gmra.mxu1 %vm1125_vm0, %v2350_v16  ;;  %v2212_v16 = vadd.f32 %v7479_v11, %v2061_v10  ;;  %v2213_v54 = vadd.f32 %v7479_v11, %v2062_v25  ;;  %v9043_v25 = vld [vmem:[#allocation58_spill] sm:$0xff] }
 0x4ac   :  { %4320 = vmatprep.mubr.msk.f32.mxu1 %vm1125_vm0, %v2351_v15  ;;  %v9040_v15 = vld [vmem:[#allocation55_spill] sm:$0xff]  ;;  %v2067_v8 = vmul.f32 %v7470_v18, %v9043_v25 }
 0x4ad   :  { %v2064_v44 = vmul.f32 %v7470_v18, %v9040_v15  ;;  %v2356_v36 = vmax.f32 %v2212_v16, 0.0  ;;  %v2357_v63 = vmax.f32 %v2213_v54, 0.0 }
 0x4af   :  { %4321 = vmatmul.mubr.msk.f32.gmra.mxu1 %vm1125_vm0, %v2352_v38  ;;  %v2214_v38 = vadd.f32 %v7479_v11, %v2063_v62  ;;  %v2215_v52 = vadd.f32 %v7479_v11, %v2064_v44  ;;  %v9045_v44 = vld [vmem:[#allocation60_spill] sm:$0xff] }
 0x4b0   :  { %4323 = vmatprep.mubr.msk.f32.mxu1 %vm1125_vm0, %v2353_v33  ;;  %v9042_v33 = vld [vmem:[#allocation57_spill] sm:$0xff]  ;;  %v2069_v54 = vmul.f32 %v7470_v18, %v9045_v44 }
 0x4b1   :  { %v2066_v10 = vmul.f32 %v7470_v18, %v9042_v33  ;;  %v2358_v15 = vmax.f32 %v2214_v38, 0.0  ;;  %v2359_v26 = vmax.f32 %v2215_v52, 0.0 }
 0x4b3   :  { %4324 = vmatmul.mubr.msk.f32.gmra.mxu1 %vm1125_vm0, %v2354_v21  ;;  %v2216_v21 = vadd.f32 %v7479_v11, %v2065_v41  ;;  %v2217_v16 = vadd.f32 %v7479_v11, %v2066_v10  ;;  %v9047_v10 = vld [vmem:[#allocation62_spill] sm:$0xff] }
 0x4b4   :  { %4326 = vmatprep.mubr.msk.f32.mxu1 %vm1125_vm0, %v2355_v14  ;;  %v9044_v14 = vld [vmem:[#allocation59_spill] sm:$0xff]  ;;  %v2071_v52 = vmul.f32 %v7470_v18, %v9047_v10 }
 0x4b5   :  { %v2068_v62 = vmul.f32 %v7470_v18, %v9044_v14  ;;  %v2360_v33 = vmax.f32 %v2216_v21, 0.0  ;;  %v2361_v25 = vmax.f32 %v2217_v16, 0.0 }
 0x4b7   :  { %4327 = vmatmul.mubr.msk.f32.gmra.mxu1 %vm1125_vm0, %v2356_v36  ;;  %v2218_v36 = vadd.f32 %v7479_v11, %v2067_v8  ;;  %v2219_v38 = vadd.f32 %v7479_v11, %v2068_v62  ;;  %v9049_v62 = vld [vmem:[#allocation64_spill] sm:$0xff] }
 0x4b8   :  { %4329 = vmatprep.mubr.msk.f32.mxu1 %vm1125_vm0, %v2357_v63  ;;  %v9046_v63 = vld [vmem:[#allocation61_spill] sm:$0xff]  ;;  %v2073_v16 = vmul.f32 %v7470_v18, %v9049_v62 }
 0x4b9   :  { %v2070_v41 = vmul.f32 %v7470_v18, %v9046_v63  ;;  %v2362_v14 = vmax.f32 %v2218_v36, 0.0  ;;  %v2363_v44 = vmax.f32 %v2219_v38, 0.0 }
 0x4bb   :  { %4330 = vmatmul.mubr.msk.f32.gmra.mxu1 %vm1125_vm0, %v2358_v15  ;;  %v2220_v15 = vadd.f32 %v7479_v11, %v2069_v54  ;;  %v2221_v21 = vadd.f32 %v7479_v11, %v2070_v41  ;;  %v9051_v41 = vld [vmem:[#allocation66_spill] sm:$0xff] }
 0x4bc   :  { %4332 = vmatprep.mubr.msk.f32.mxu1 %vm1125_vm0, %v2359_v26  ;;  %v9048_v26 = vld [vmem:[#allocation63_spill] sm:$0xff]  ;;  %v2075_v38 = vmul.f32 %v7470_v18, %v9051_v41 }
 0x4bd   :  { %v2072_v8 = vmul.f32 %v7470_v18, %v9048_v26  ;;  %v2364_v63 = vmax.f32 %v2220_v15, 0.0  ;;  %v2365_v10 = vmax.f32 %v2221_v21, 0.0 }
 0x4bf   :  { %4333 = vmatmul.mubr.msk.f32.gmra.mxu1 %vm1125_vm0, %v2360_v33  ;;  %v2222_v33 = vadd.f32 %v7479_v11, %v2071_v52  ;;  %v2223_v36 = vadd.f32 %v7479_v11, %v2072_v8  ;;  %v9053_v8 = vld [vmem:[#allocation68_spill] sm:$0xff] }
 0x4c0   :  { %4335 = vmatprep.mubr.msk.f32.mxu1 %vm1125_vm0, %v2361_v25  ;;  %v9050_v25 = vld [vmem:[#allocation65_spill] sm:$0xff]  ;;  %v2077_v21 = vmul.f32 %v7470_v18, %v9053_v8 }
 0x4c1   :  { %v2074_v54 = vmul.f32 %v7470_v18, %v9050_v25  ;;  %v2366_v26 = vmax.f32 %v2222_v33, 0.0  ;;  %v2367_v62 = vmax.f32 %v2223_v36, 0.0 }
 0x4c3   :  { %4336 = vmatmul.mubr.msk.f32.gmra.mxu1 %vm1125_vm0, %v2362_v14  ;;  %v2224_v14 = vadd.f32 %v7479_v11, %v2073_v16  ;;  %v2225_v15 = vadd.f32 %v7479_v11, %v2074_v54  ;;  %v9055_v54 = vld [vmem:[#allocation70_spill] sm:$0xff] }
 0x4c4   :  { %4338 = vmatprep.mubr.msk.f32.mxu1 %vm1125_vm0, %v2363_v44  ;;  %v9052_v44 = vld [vmem:[#allocation67_spill] sm:$0xff]  ;;  %v2079_v36 = vmul.f32 %v7470_v18, %v9055_v54 }
 0x4c5   :  { %v2076_v52 = vmul.f32 %v7470_v18, %v9052_v44  ;;  %v2368_v25 = vmax.f32 %v2224_v14, 0.0  ;;  %v2369_v41 = vmax.f32 %v2225_v15, 0.0 }
 0x4c7   :  { %4339 = vmatmul.mubr.msk.f32.gmra.mxu1 %vm1125_vm0, %v2364_v63  ;;  %v2226_v63 = vadd.f32 %v7479_v11, %v2075_v38  ;;  %v2227_v33 = vadd.f32 %v7479_v11, %v2076_v52  ;;  %v9057_v52 = vld [vmem:[#allocation72_spill] sm:$0xff] }
 0x4c8   :  { %4341 = vmatprep.mubr.msk.f32.mxu1 %vm1125_vm0, %v2365_v10  ;;  %v9054_v10 = vld [vmem:[#allocation69_spill] sm:$0xff]  ;;  %v2081_v15 = vmul.f32 %v7470_v18, %v9057_v52 }
 0x4c9   :  { %v2078_v16 = vmul.f32 %v7470_v18, %v9054_v10  ;;  %v2370_v44 = vmax.f32 %v2226_v63, 0.0  ;;  %v2371_v8 = vmax.f32 %v2227_v33, 0.0 }
 0x4cb   :  { %4342 = vmatmul.mubr.msk.f32.gmra.mxu1 %vm1125_vm0, %v2366_v26  ;;  %v2228_v26 = vadd.f32 %v7479_v11, %v2077_v21  ;;  %v2229_v14 = vadd.f32 %v7479_v11, %v2078_v16  ;;  %v9059_v16 = vld [vmem:[#allocation74_spill] sm:$0xff] }
 0x4cc   :  { %4344 = vmatprep.mubr.msk.f32.mxu1 %vm1125_vm0, %v2367_v62  ;;  %v9056_v62 = vld [vmem:[#allocation71_spill] sm:$0xff]  ;;  %v2083_v33 = vmul.f32 %v7470_v18, %v9059_v16 }
 0x4cd   :  { %v2080_v38 = vmul.f32 %v7470_v18, %v9056_v62  ;;  %v2372_v10 = vmax.f32 %v2228_v26, 0.0  ;;  %v2373_v54 = vmax.f32 %v2229_v14, 0.0 }
 0x4cf   :  { %4345 = vmatmul.mubr.msk.f32.gmra.mxu1 %vm1125_vm0, %v2368_v25  ;;  %v2230_v25 = vadd.f32 %v7479_v11, %v2079_v36  ;;  %v2231_v63 = vadd.f32 %v7479_v11, %v2080_v38  ;;  %v9061_v38 = vld [vmem:[#allocation76_spill] sm:$0xff] }
 0x4d0   :  { %4347 = vmatprep.mubr.msk.f32.mxu1 %vm1125_vm0, %v2369_v41  ;;  %v9058_v41 = vld [vmem:[#allocation73_spill] sm:$0xff]  ;;  %v2085_v14 = vmul.f32 %v7470_v18, %v9061_v38  ;;  %v2090_v38 = vmul.f32 %v7470_v18, %v7010_v30  ;;  %v9065_v30 = vld [vmem:[#allocation80_spill] sm:$0xff] }
 0x4d1   :  { %v2082_v21 = vmul.f32 %v7470_v18, %v9058_v41  ;;  %v2374_v62 = vmax.f32 %v2230_v25, 0.0  ;;  %v2375_v52 = vmax.f32 %v2231_v63, 0.0 }
 0x4d2   :  { %v2236_v16 = vadd.f32 %v7479_v11, %v2085_v14 }
 0x4d3   :  { %4348 = vmatmul.mubr.msk.f32.gmra.mxu1 %vm1125_vm0, %v2370_v44  ;;  %v2232_v44 = vadd.f32 %v7479_v11, %v2081_v15  ;;  %v2233_v26 = vadd.f32 %v7479_v11, %v2082_v21  ;;  %v2086_v15 = vmul.f32 %v7470_v18, %v6982_v27  ;;  %v9062_v21 = vld [vmem:[#allocation77_spill] sm:$0xff]  ;;  %v9063_v27 = vld [vmem:[#allocation78_spill] sm:$0xff] }
 0x4d4   :  { %4350 = vmatprep.mubr.msk.f32.mxu1 %vm1125_vm0, %v2371_v8  ;;  %v9060_v8 = vld [vmem:[#allocation75_spill] sm:$0xff]  ;;  %v2087_v63 = vmul.f32 %v7470_v18, %v9062_v21  ;;  %v2241_v21 = vadd.f32 %v7479_v11, %v2090_v38  ;;  %v2096_v38 = vmul.f32 %v7470_v18, %v7052_v56 }
 0x4d5   :  { %v2084_v36 = vmul.f32 %v7470_v18, %v9060_v8  ;;  %v2376_v41 = vmax.f32 %v2232_v44, 0.0  ;;  %v2237_v44 = vadd.f32 %v7479_v11, %v2086_v15  ;;  %v9068_v56 = vld [vmem:[#allocation83_spill] sm:$0xff] }
 0x4d7   :  { %4351 = vmatmul.mubr.msk.f32.gmra.mxu1 %vm1125_vm0, %v2372_v10  ;;  %v2234_v10 = vadd.f32 %v7479_v11, %v2083_v33  ;;  %v2235_v25 = vadd.f32 %v7479_v11, %v2084_v36  ;;  %v2088_v33 = vmul.f32 %v7470_v18, %v6996_v2  ;;  %v2089_v36 = vmul.f32 %v7470_v18, %v9063_v27  ;;  %v9064_v2 = vld [vmem:[#allocation79_spill] sm:$0xff] }
 0x4d8   :  { %4353 = vmatprep.mubr.msk.f32.mxu1 %vm1125_vm0, %v2373_v54  ;;  %v2377_v54 = vmax.f32 %v2233_v26, 0.0  ;;  %v2238_v26 = vadd.f32 %v7479_v11, %v2087_v63  ;;  %v2385_v27 = vmax.f32 %v2241_v21, 0.0 }
 0x4d9   :  { %v2379_v8 = vmax.f32 %v2235_v25, 0.0  ;;  %v2239_v14 = vadd.f32 %v7479_v11, %v2088_v33  ;;  %v2240_v15 = vadd.f32 %v7479_v11, %v2089_v36 }
 0x4da   :  { %v2382_v25 = vmax.f32 %v2238_v26, 0.0 }
 0x4db   :  { %4354 = vmatmul.mubr.msk.f32.gmra.mxu1 %vm1125_vm0, %v2374_v62  ;;  %v2378_v62 = vmax.f32 %v2234_v10, 0.0  ;;  %v2381_v10 = vmax.f32 %v2237_v44, 0.0  ;;  %v2383_v63 = vmax.f32 %v2239_v14, 0.0  ;;  %v2384_v33 = vmax.f32 %v2240_v15, 0.0 }
 0x4dc   :  { %4356 = vmatprep.mubr.msk.f32.mxu1 %vm1125_vm0, %v2375_v52  ;;  %v2380_v52 = vmax.f32 %v2236_v16, 0.0  ;;  %v2093_v16 = vmul.f32 %v7470_v18, %v9065_v30  ;;  %v2094_v44 = vmul.f32 %v7470_v18, %v7038_v57  ;;  %v9067_v57 = vld [vmem:[#allocation82_spill] sm:$0xff] }
 0x4de   :  { %v2244_v26 = vadd.f32 %v7479_v11, %v2093_v16  ;;  %v2245_v14 = vadd.f32 %v7479_v11, %v2094_v44 }
 0x4df   :  { %4357 = vmatmul.mubr.msk.f32.gmra.mxu1 %vm1125_vm0, %v2376_v41  ;;  %v2091_v41 = vmul.f32 %v7470_v18, %v9064_v2  ;;  %v2097_v2 = vmul.f32 %v7470_v18, %v9067_v57  ;;  %v2104_v57 = vmul.f32 %v7470_v18, %v7108_v31  ;;  %v9072_v31 = vld [vmem:[#allocation90_spill] sm:$0xff] }
 0x4e0   :  { %4359 = vmatprep.mubr.msk.f32.mxu1 %vm1125_vm0, %v2377_v54  ;;  %v2092_v54 = vmul.f32 %v7470_v18, %v7024_v59  ;;  %v9066_v59 = vld [vmem:[#allocation81_spill] sm:$0xff]  ;;  %v2388_v15 = vmax.f32 %v2244_v26, 0.0  ;;  %v2389_v21 = vmax.f32 %v2245_v14, 0.0 }
 0x4e1   :  { %v2095_v36 = vmul.f32 %v7470_v18, %v9066_v59  ;;  %v2248_v30 = vadd.f32 %v7479_v11, %v2097_v2 }
 0x4e3   :  { %4360 = vmatmul.mubr.msk.f32.gmra.mxu1 %vm1125_vm0, %v2378_v62  ;;  %v2242_v62 = vadd.f32 %v7479_v11, %v2091_v41  ;;  %v2246_v41 = vadd.f32 %v7479_v11, %v2095_v36  ;;  %v2392_v59 = vmax.f32 %v2248_v30, 0.0  ;;  %v2102_v36 = vmul.f32 %v7470_v18, %v7094_v46  ;;  %v9071_v46 = vld [vmem:[#allocation88_spill] sm:$0xff] }
 0x4e4   :  { %4362 = vmatprep.mubr.msk.f32.mxu1 %vm1125_vm0, %v2379_v8  ;;  %v2243_v8 = vadd.f32 %v7479_v11, %v2092_v54  ;;  %v2247_v54 = vadd.f32 %v7479_v11, %v2096_v38  ;;  %v2107_v30 = vmul.f32 %v7470_v18, %v9072_v31 }
 0x4e5   :  { %v2390_v16 = vmax.f32 %v2246_v41, 0.0  ;;  %v2253_v2 = vadd.f32 %v7479_v11, %v2102_v36  ;;  %v9074_v36 = vld [vmem:[#allocation94_spill] sm:$0xff] }
 0x4e6   :  { %v2391_v44 = vmax.f32 %v2247_v54, 0.0 }
 0x4e7   :  { %4363 = vmatmul.mubr.msk.f32.gmra.mxu1 %vm1125_vm0, %v2380_v52  ;;  %v2386_v52 = vmax.f32 %v2242_v62, 0.0  ;;  %v2100_v62 = vmul.f32 %v7470_v18, %v7080_v3  ;;  %v9070_v3 = vld [vmem:[#allocation85_spill] sm:$0xff] }
 0x4e8   :  { %4365 = vmatprep.mubr.msk.f32.mxu1 %vm1125_vm0, %v2381_v10  ;;  %v2387_v10 = vmax.f32 %v2243_v8, 0.0  ;;  %v2103_v38 = vmul.f32 %v7470_v18, %v9070_v3 }
 0x4e9   :  { %v2251_v26 = vadd.f32 %v7479_v11, %v2100_v62 }
 0x4eb   :  { %4366 = vmatmul.mubr.msk.f32.gmra.mxu1 %vm1125_vm0, %v2382_v25  ;;  %v2098_v25 = vmul.f32 %v7470_v18, %v7066_v1  ;;  %v9069_v1 = vld [vmem:[#allocation84_spill] sm:$0xff]  ;;  %v2395_v41 = vmax.f32 %v2251_v26, 0.0  ;;  %v2110_v26 = vmul.f32 %v7470_v18, %v9074_v36 }
 0x4ec   :  { %4368 = vmatprep.mubr.msk.f32.mxu1 %vm1125_vm0, %v2383_v63  ;;  %v2099_v63 = vmul.f32 %v7470_v18, %v9068_v56  ;;  %v2101_v8 = vmul.f32 %v7470_v18, %v9069_v1  ;;  %v2255_v56 = vadd.f32 %v7479_v11, %v2104_v57 }
 0x4ed   :  { %v2261_v57 = vadd.f32 %v7479_v11, %v2110_v26 }
 0x4ee   :  { %v2252_v14 = vadd.f32 %v7479_v11, %v2101_v8  ;;  %v2399_v1 = vmax.f32 %v2255_v56, 0.0 }
 0x4ef   :  { %4369 = vmatmul.mubr.msk.f32.gmra.mxu1 %vm1125_vm0, %v2384_v33  ;;  %v2249_v33 = vadd.f32 %v7479_v11, %v2098_v25  ;;  %v2254_v25 = vadd.f32 %v7479_v11, %v2103_v38 }
 0x4f0   :  { %4371 = vmatprep.mubr.msk.f32.mxu1 %vm1125_vm0, %v2385_v27  ;;  %v2250_v27 = vadd.f32 %v7479_v11, %v2099_v63  ;;  %v2396_v54 = vmax.f32 %v2252_v14, 0.0  ;;  %v2397_v63 = vmax.f32 %v2253_v2, 0.0 }
 0x4f1   :  { %v2398_v62 = vmax.f32 %v2254_v25, 0.0 }
 0x4f3   :  { %4372 = vmatmul.mubr.msk.f32.gmra.mxu1 %vm1125_vm0, %v2386_v52  ;;  %v2393_v52 = vmax.f32 %v2249_v33, 0.0  ;;  %v2108_v33 = vmul.f32 %v7470_v18, %v7136_v35  ;;  %v2111_v35 = vmul.f32 %v7470_v18, %v7157_v53 }
 0x4f4   :  { %4374 = vmatprep.mubr.msk.f32.mxu1 %vm1125_vm0, %v2387_v10  ;;  %v2394_v10 = vmax.f32 %v2250_v27, 0.0  ;;  %v2258_v27 = vadd.f32 %v7479_v11, %v2107_v30 }
 0x4f5   :  { %v2262_v53 = vadd.f32 %v7479_v11, %v2111_v35 }
 0x4f6   :  { %v2402_v14 = vmax.f32 %v2258_v27, 0.0 }
 0x4f7   :  { %4375 = vmatmul.mubr.msk.f32.gmra.mxu1 %vm1125_vm0, %v2388_v15  ;;  %v2105_v15 = vmul.f32 %v7470_v18, %v9071_v46  ;;  %v2113_v46 = vmul.f32 %v7470_v18, %v7171_v34  ;;  %v2115_v34 = vmul.f32 %v7470_v18, %v7185_v29  ;;  %v2406_v31 = vmax.f32 %v2262_v53, 0.0 }
 0x4f8   :  { %4377 = vmatprep.mubr.msk.f32.mxu1 %vm1125_vm0, %v2389_v21  ;;  %v2106_v21 = vmul.f32 %v7470_v18, %v7122_v19  ;;  %v9073_v19 = vld [vmem:[#allocation93_spill] sm:$0xff]  ;;  %v2117_v29 = vmul.f32 %v7470_v18, %v7199_v24  ;;  %v2119_v24 = vmul.f32 %v7470_v18, %v7213_v50 }
 0x4f9   :  { %v2109_v8 = vmul.f32 %v7470_v18, %v9073_v19 }
 0x4fa   :  { %v2268_v26 = vadd.f32 %v7479_v11, %v2117_v29  ;;  %v2126_v29 = vmul.f32 %v7470_v18, %v7262_v7  ;;  %v2127_v7 = vmul.f32 %v7470_v18, %v7269_v23 }
 0x4fb   :  { %4378 = vmatmul.mubr.msk.f32.gmra.mxu1 %vm1125_vm0, %v2390_v16  ;;  %v2256_v16 = vadd.f32 %v7479_v11, %v2105_v15  ;;  %v2260_v38 = vadd.f32 %v7479_v11, %v2109_v8 }
 0x4fc   :  { %4380 = vmatprep.mubr.msk.f32.mxu1 %vm1125_vm0, %v2391_v44  ;;  %v2257_v44 = vadd.f32 %v7479_v11, %v2106_v21  ;;  %v2405_v21 = vmax.f32 %v2261_v57, 0.0  ;;  %v2270_v57 = vadd.f32 %v7479_v11, %v2119_v24  ;;  %v2277_v24 = vadd.f32 %v7479_v11, %v2126_v29 }
 0x4fd   :  { %v2404_v15 = vmax.f32 %v2260_v38, 0.0 }
 0x4fe   :  { %v2401_v3 = vmax.f32 %v2257_v44, 0.0  ;;  %v2266_v44 = vadd.f32 %v7479_v11, %v2115_v34  ;;  %v2124_v34 = vmul.f32 %v7470_v18, %v7248_v4  ;;  %v2125_v4 = vmul.f32 %v7470_v18, %v7255_v58 }
 0x4ff   :  { %4381 = vmatmul.mubr.msk.f32.gmra.mxu1 %vm1125_vm0, %v2392_v59  ;;  %v2400_v59 = vmax.f32 %v2256_v16, 0.0 }
 0x500   :  { %4383 = vmatprep.mubr.msk.f32.mxu1 %vm1125_vm0, %v2393_v52  ;;  %v2259_v52 = vadd.f32 %v7479_v11, %v2108_v33 }
 0x502   :  { %v2403_v2 = vmax.f32 %v2259_v52, 0.0  ;;  %v2410_v52 = vmax.f32 %v2266_v44, 0.0  ;;  %v2275_v44 = vadd.f32 %v7479_v11, %v2124_v34 }
 0x503   :  { %4384 = vmatmul.mubr.msk.f32.gmra.mxu1 %vm1125_vm0, %v2394_v10  ;;  %v2112_v10 = vmul.f32 %v7470_v18, %v7164_v12 }
 0x504   :  { %4386 = vmatprep.mubr.msk.f32.mxu1 %vm1125_vm0, %v2395_v41 }
 0x505   :  { %v2263_v12 = vadd.f32 %v7479_v11, %v2112_v10 }
 0x507   :  { %4387 = vmatmul.mubr.msk.f32.gmra.mxu1 %vm1125_vm0, %v2396_v54  ;;  %v2114_v54 = vmul.f32 %v7470_v18, %v7178_v61  ;;  %v2116_v61 = vmul.f32 %v7470_v18, %v7192_v37  ;;  %v2118_v37 = vmul.f32 %v7470_v18, %v7206_v0  ;;  %v2120_v0 = vmul.f32 %v7470_v18, %v7220_v28 }
 0x508   :  { %4389 = vmatprep.mubr.msk.f32.mxu1 %vm1125_vm0, %v2397_v63  ;;  %v2264_v63 = vadd.f32 %v7479_v11, %v2113_v46  ;;  %v2121_v28 = vmul.f32 %v7470_v18, %v7227_v32  ;;  %v2122_v46 = vmul.f32 %v7470_v18, %v7234_v20  ;;  %v2123_v20 = vmul.f32 %v7470_v18, %v7241_v55 }
 0x509   :  { %v2265_v16 = vadd.f32 %v7479_v11, %v2114_v54  ;;  %v2267_v8 = vadd.f32 %v7479_v11, %v2116_v61  ;;  %v2269_v35 = vadd.f32 %v7479_v11, %v2118_v37  ;;  %v2271_v53 = vadd.f32 %v7479_v11, %v2120_v0  ;;  %v7982_v0 = vld [vmem:[%s8494_s3] ss:$0 sm:$0xff] }
 0x50b   :  { %4390 = vmatmul.mubr.msk.f32.gmra.mxu1 %vm1125_vm0, %v2398_v62  ;;  %v2407_v62 = vmax.f32 %v2263_v12, 0.0  ;;  %v2409_v27 = vmax.f32 %v2265_v16, 0.0  ;;  %v2411_v38 = vmax.f32 %v2267_v8, 0.0  ;;  %v2272_v12 = vadd.f32 %v7479_v11, %v2121_v28 }
 0x50c   :  { %4392 = vmatprep.mubr.msk.f32.mxu1 %vm1125_vm0, %v2399_v1  ;;  %v2408_v1 = vmax.f32 %v2264_v63, 0.0  ;;  %v2273_v63 = vadd.f32 %v7479_v11, %v2122_v46  ;;  %v2274_v16 = vadd.f32 %v7479_v11, %v2123_v20  ;;  %v2276_v8 = vadd.f32 %v7479_v11, %v2125_v4 }
 0x50d   :  { %v2421_v28 = vmax.f32 %v2277_v24, 0.0 }
 0x50f   :  { %4393 = vmatmul.mubr.msk.f32.gmra.mxu1 %vm1125_vm0, %v2400_v59 }
 0x510   :  { %4395 = vmatprep.mubr.msk.f32.mxu1 %vm1125_vm0, %v2401_v3 }
 0x513   :  { %v4253_v41 = vpop.f32.mrf.mxu1  ;;  %4396 = vmatmul.mubr.msk.f32.gmra.mxu1 %vm1125_vm0, %v2402_v14 }
 0x514   :  { %4534 = vtanh.f32 %v4253_v41  ;;  %4398 = vmatprep.mubr.msk.f32.mxu1 %vm1125_vm0, %v2403_v2  ;;  %v2412_v2 = vmax.f32 %v2268_v26, 0.0  ;;  %v2419_v26 = vmax.f32 %v2275_v44, 0.0  ;;  %v2136_v44 = vmul.f32 %v7470_v18, %v7336_v51 }
 0x515   :  { %v2948_v25 = vpop.f32.mrf.mxu1  ;;  %v2137_v51 = vmul.f32 %v7470_v18, %v7343_v22 }
 0x516   :  { %4536 = vtanh.f32 %v2948_v25 }
 0x517   :  { %v4256_v56 = vpop.f32.mrf.mxu1  ;;  %4399 = vmatmul.mubr.msk.f32.gmra.mxu1 %vm1125_vm0, %v2404_v15  ;;  %v2413_v15 = vmax.f32 %v2269_v35, 0.0  ;;  %v2278_v35 = vadd.f32 %v7982_v0, %v2127_v7 }
 0x518   :  { %4538 = vtanh.f32 %v4256_v56  ;;  %4401 = vmatprep.mubr.msk.f32.mxu1 %vm1125_vm0, %v2405_v21  ;;  %v2414_v21 = vmax.f32 %v2270_v57, 0.0 }
 0x519   :  { %v2958_v30 = vpop.f32.mrf.mxu1 }
 0x51a   :  { %4540 = vtanh.f32 %v2958_v30 }
 0x51b   :  { %v4259_v33 = vpop.f32.mrf.mxu1  ;;  %4402 = vmatmul.mubr.msk.f32.gmra.mxu1 %vm1125_vm0, %v2406_v31  ;;  %v2415_v31 = vmax.f32 %v2271_v53, 0.0 }
 0x51c   :  { %4542 = vtanh.f32 %v4259_v33  ;;  %4404 = vmatprep.mubr.msk.f32.mxu1 %vm1125_vm0, %v2407_v62  ;;  %v2416_v62 = vmax.f32 %v2272_v12, 0.0 }
 0x51d   :  { %v2968_v19 = vpop.f32.mrf.mxu1 }
 0x51e   :  { %4544 = vtanh.f32 %v2968_v19 }
 0x51f   :  { %v4262_v59 = vpop.f32.mrf.mxu1  ;;  %4405 = vmatmul.mubr.msk.f32.gmra.mxu1 %vm1125_vm0, %v2408_v1  ;;  %v2417_v1 = vmax.f32 %v2273_v63, 0.0 }
 0x520   :  { %4546 = vtanh.f32 %v4262_v59  ;;  %4407 = vmatprep.mubr.msk.f32.mxu1 %vm1125_vm0, %v2409_v27  ;;  %v2418_v27 = vmax.f32 %v2274_v16, 0.0 }
 0x521   :  { %v4535_v36 = vpop.eup %4534  ;;  %v2978_v3 = vpop.f32.mrf.mxu1 }
 0x522   :  { %3812 = vst [vmem:[%s8495_s5 + $0x8] sm:$0xff] %v4535_v36  ;;  %4548 = vtanh.f32 %v2978_v3  ;;  %v2128_v36 = vmul.f32 %v7470_v18, %v7276_v39  ;;  %v9075_v39 = vld [vmem:[#allocation95_spill] sm:$0xff] }
 0x523   :  { %v4537_v14 = vpop.eup %4536  ;;  %v4265_v10 = vpop.f32.mrf.mxu1  ;;  %4408 = vmatmul.mubr.msk.f32.gmra.mxu1 %vm1125_vm0, %v2410_v52  ;;  %v2129_v11 = vmul.f32 %v7470_v18, %v9075_v39 }
 0x524   :  { %3811 = vst [vmem:[%s8495_s5] sm:$0xff] %v4537_v14  ;;  %4550 = vtanh.f32 %v4265_v10  ;;  %4410 = vmatprep.mubr.msk.f32.mxu1 %vm1125_vm0, %v2411_v38  ;;  %v2420_v38 = vmax.f32 %v2276_v8, 0.0  ;;  %v2130_v10 = vmul.f32 %v7470_v18, %v7290_v5 }
 0x525   :  { %v4539_v50 = vpop.eup %4538  ;;  %v2988_v41 = vpop.f32.mrf.mxu1  ;;  %v2280_v53 = vadd.f32 %v7982_v0, %v2129_v11  ;;  %v2140_v11 = vmul.f32 %v7470_v18, %v7364_v45  ;;  %v2141_v45 = vmul.f32 %v7470_v18, %v7371_v17 }
 0x526   :  { %3814 = vst [vmem:[%s8495_s5 + $0x18] sm:$0xff] %v4539_v50  ;;  %4552 = vtanh.f32 %v2988_v41  ;;  %v2279_v50 = vadd.f32 %v7982_v0, %v2128_v36  ;;  %v9076_v41 = vld [vmem:[#allocation96_spill] sm:$0xff]  ;;  %v2287_v36 = vadd.f32 %v7982_v0, %v2136_v44 }
 0x527   :  { %v4541_v25 = vpop.eup %4540  ;;  %v4268_v54 = vpop.f32.mrf.mxu1  ;;  %4411 = vmatmul.mubr.msk.f32.gmra.mxu1 %vm1125_vm0, %v2412_v2  ;;  %v2131_v46 = vmul.f32 %v7470_v18, %v9076_v41  ;;  %v2424_v63 = vmax.f32 %v2280_v53, 0.0 }
 0x528   :  { %3813 = vst [vmem:[%s8495_s5 + $0x10] sm:$0xff] %v4541_v25  ;;  %4554 = vtanh.f32 %v4268_v54  ;;  %4413 = vmatprep.mubr.msk.f32.mxu1 %vm1125_vm0, %v2413_v15  ;;  %v2422_v15 = vmax.f32 %v2278_v35, 0.0  ;;  %v2132_v54 = vmul.f32 %v7470_v18, %v7304_v43  ;;  %v2423_v20 = vmax.f32 %v2279_v50, 0.0 }
 0x529   :  { %v4543_v32 = vpop.eup %4542  ;;  %v2998_v56 = vpop.f32.mrf.mxu1  ;;  %v2282_v34 = vadd.f32 %v7982_v0, %v2131_v46 }
 0x52a   :  { %3816 = vst [vmem:[%s8495_s5 + $0x28] sm:$0xff] %v4543_v32  ;;  %4556 = vtanh.f32 %v2998_v56  ;;  %v2281_v32 = vadd.f32 %v7982_v0, %v2130_v10  ;;  %v2133_v56 = vmul.f32 %v7470_v18, %v7311_v60 }
 0x52b   :  { %v4545_v30 = vpop.eup %4544  ;;  %v4271_v61 = vpop.f32.mrf.mxu1  ;;  %4414 = vmatmul.mubr.msk.f32.gmra.mxu1 %vm1125_vm0, %v2414_v21 }
 0x52c   :  { %3815 = vst [vmem:[%s8495_s5 + $0x20] sm:$0xff] %v4545_v30  ;;  %4558 = vtanh.f32 %v4271_v61  ;;  %4416 = vmatprep.mubr.msk.f32.mxu1 %vm1125_vm0, %v2415_v31  ;;  %v2134_v30 = vmul.f32 %v7470_v18, %v7321_v6  ;;  %v2283_v61 = vadd.f32 %v7982_v0, %v2132_v54  ;;  %v2135_v6 = vmul.f32 %v7470_v18, %v7329_v40 }
 0x52d   :  { %v4547_v55 = vpop.eup %4546  ;;  %v3008_v33 = vpop.f32.mrf.mxu1 }
 0x52e   :  { %3818 = vst [vmem:[%s8495_s5 + $0x38] sm:$0xff] %v4547_v55  ;;  %4560 = vtanh.f32 %v3008_v33  ;;  %v2425_v55 = vmax.f32 %v2281_v32, 0.0  ;;  %v2426_v33 = vmax.f32 %v2282_v34, 0.0  ;;  %v2286_v7 = vadd.f32 %v7982_v0, %v2135_v6 }
 0x52f   :  { %v4549_v19 = vpop.eup %4548  ;;  %v4274_v37 = vpop.f32.mrf.mxu1  ;;  %4417 = vmatmul.mubr.msk.f32.gmra.mxu1 %vm1125_vm0, %v2416_v62  ;;  %v2284_v62 = vadd.f32 %v7982_v0, %v2133_v56  ;;  %v2144_v32 = vmul.f32 %v7470_v18, %v7392_v42  ;;  %v9077_v42 = vld [vmem:[#allocation97_spill] sm:$0xff] }
 0x530   :  { %3817 = vst [vmem:[%s8495_s5 + $0x30] sm:$0xff] %v4549_v19  ;;  %4562 = vtanh.f32 %v4274_v37  ;;  %4419 = vmatprep.mubr.msk.f32.mxu1 %vm1125_vm0, %v2417_v1  ;;  %v2285_v1 = vadd.f32 %v7982_v0, %v2134_v30  ;;  %v2427_v19 = vmax.f32 %v2283_v61, 0.0  ;;  %v2145_v56 = vmul.f32 %v7470_v18, %v9077_v42  ;;  %v9078_v30 = vld [vmem:[#allocation98_spill] sm:$0xff] }
 0x531   :  { %v4551_v58 = vpop.eup %4550  ;;  %v3018_v59 = vpop.f32.mrf.mxu1  ;;  %v2428_v8 = vmax.f32 %v2284_v62, 0.0  ;;  %v2146_v61 = vmul.f32 %v7470_v18, %v9078_v30  ;;  %v9079_v62 = vld [vmem:[#allocation99_spill] sm:$0xff] }
 0x532   :  { %3820 = vst [vmem:[%s8495_s5 + $0x48] sm:$0xff] %v4551_v58  ;;  %4564 = vtanh.f32 %v3018_v59  ;;  %v2138_v59 = vmul.f32 %v7470_v18, %v7350_v49  ;;  %v2429_v24 = vmax.f32 %v2285_v1, 0.0  ;;  %v2139_v49 = vmul.f32 %v7470_v18, %v7357_v13 }
 0x533   :  { %v4553_v52 = vpop.eup %4552  ;;  %v4277_v3 = vpop.f32.mrf.mxu1  ;;  %4420 = vmatmul.mubr.msk.f32.gmra.mxu1 %vm1125_vm0, %v2418_v27 }
 0x534   :  { %3819 = vst [vmem:[%s8495_s5 + $0x40] sm:$0xff] %v4553_v52  ;;  %4566 = vtanh.f32 %v4277_v3  ;;  %4422 = vmatprep.mubr.msk.f32.mxu1 %vm1125_vm0, %v2419_v26  ;;  %v2288_v3 = vadd.f32 %v7982_v0, %v2137_v51  ;;  %v2289_v35 = vadd.f32 %v7982_v0, %v2138_v59  ;;  %v2290_v50 = vadd.f32 %v7982_v0, %v2139_v49 }
 0x535   :  { %v4555_v23 = vpop.eup %4554  ;;  %v3028_v14 = vpop.f32.mrf.mxu1 }
 0x536   :  { %3822 = vst [vmem:[%s8495_s5 + $0x58] sm:$0xff] %v4555_v23  ;;  %4568 = vtanh.f32 %v3028_v14  ;;  %v2430_v23 = vmax.f32 %v2286_v7, 0.0  ;;  %v2433_v41 = vmax.f32 %v2289_v35, 0.0  ;;  %v9083_v35 = vld [vmem:[#allocation100_spill] sm:$0xff] }
 0x537   :  { %v4557_v57 = vpop.eup %4556  ;;  %v4280_v2 = vpop.f32.mrf.mxu1  ;;  %4423 = vmatmul.mubr.msk.f32.gmra.mxu1 %vm1125_vm0, %v2420_v38  ;;  %v2431_v38 = vmax.f32 %v2287_v36, 0.0 }
 0x538   :  { %3821 = vst [vmem:[%s8495_s5 + $0x50] sm:$0xff] %v4557_v57  ;;  %4570 = vtanh.f32 %v4280_v2  ;;  %4425 = vmatprep.mubr.msk.f32.mxu1 %vm1125_vm0, %v2421_v28  ;;  %v2432_v28 = vmax.f32 %v2288_v3, 0.0  ;;  %v2142_v2 = vmul.f32 %v7470_v18, %v7378_v48  ;;  %v2143_v48 = vmul.f32 %v7470_v18, %v7385_v9 }
 0x539   :  { %v4559_v5 = vpop.eup %4558  ;;  %v3038_v25 = vpop.f32.mrf.mxu1 }
 0x53a   :  { %3824 = vst [vmem:[%s8495_s5 + $0x68] sm:$0xff] %v4559_v5  ;;  %4572 = vtanh.f32 %v3038_v25  ;;  %v2291_v5 = vadd.f32 %v7982_v0, %v2140_v11  ;;  %v2434_v25 = vmax.f32 %v2290_v50, 0.0  ;;  %v2294_v34 = vadd.f32 %v7982_v0, %v2143_v48 }
 0x53b   :  { %v4561_v12 = vpop.eup %4560  ;;  %v4283_v21 = vpop.f32.mrf.mxu1  ;;  %4426 = vmatmul.mubr.msk.f32.gmra.mxu1 %vm1125_vm0, %v2422_v15  ;;  %v2292_v15 = vadd.f32 %v7982_v0, %v2141_v45  ;;  %v9084_v45 = vld [vmem:[#allocation91_spill] sm:$0xff] }
 0x53c   :  { %3823 = vst [vmem:[%s8495_s5 + $0x60] sm:$0xff] %v4561_v12  ;;  %4574 = vtanh.f32 %v4283_v21  ;;  %4428 = vmatprep.mubr.msk.f32.mxu1 %vm1125_vm0, %v2423_v20  ;;  %v2293_v20 = vadd.f32 %v7982_v0, %v2142_v2  ;;  %v2435_v12 = vmax.f32 %v2291_v5, 0.0  ;;  %v2438_v44 = vmax.f32 %v2294_v34, 0.0 }
 0x53d   :  { %v4563_v43 = vpop.eup %4562  ;;  %v3048_v31 = vpop.f32.mrf.mxu1  ;;  %v2152_v50 = vmul.f32 %v7470_v18, %v9084_v45 }
 0x53e   :  { %3826 = vst [vmem:[%s8495_s5 + $0x78] sm:$0xff] %v4563_v43  ;;  %4576 = vtanh.f32 %v3048_v31 }
 0x53f   :  { %v4565_v4 = vpop.eup %4564  ;;  %v4286_v16 = vpop.f32.mrf.mxu1  ;;  %4429 = vmatmul.mubr.msk.f32.gmra.mxu1 %vm1125_vm0, %v2424_v63  ;;  %v2436_v63 = vmax.f32 %v2292_v15, 0.0  ;;  %v2303_v15 = vadd.f32 %v7982_v0, %v2152_v50 }
 0x540   :  { %3825 = vst [vmem:[%s8495_s5 + $0x70] sm:$0xff] %v4565_v4  ;;  %4578 = vtanh.f32 %v4286_v16  ;;  %4431 = vmatprep.mubr.msk.f32.mxu1 %vm1125_vm0, %v2425_v55  ;;  %v2295_v55 = vadd.f32 %v7982_v0, %v2144_v32  ;;  %v2437_v4 = vmax.f32 %v2293_v20, 0.0 }
 0x541   :  { %v4567_v60 = vpop.eup %4566  ;;  %v3058_v29 = vpop.f32.mrf.mxu1 }
 0x542   :  { %3828 = vst [vmem:[%s8495_s5 + $0x88] sm:$0xff] %v4567_v60  ;;  %4580 = vtanh.f32 %v3058_v29  ;;  %v2296_v29 = vadd.f32 %v7982_v0, %v2145_v56 }
 0x543   :  { %v4569_v37 = vpop.eup %4568  ;;  %v4289_v58 = vpop.f32.mrf.mxu1  ;;  %4432 = vmatmul.mubr.msk.f32.gmra.mxu1 %vm1125_vm0, %v2426_v33  ;;  %v2147_v33 = vmul.f32 %v7470_v18, %v9079_v62 }
 0x544   :  { %3827 = vst [vmem:[%s8495_s5 + $0x80] sm:$0xff] %v4569_v37  ;;  %4582 = vtanh.f32 %v4289_v58  ;;  %4434 = vmatprep.mubr.msk.f32.mxu1 %vm1125_vm0, %v2427_v19  ;;  %v9080_v19 = vld [vmem:[#allocation86_spill] sm:$0xff]  ;;  %v2297_v58 = vadd.f32 %v7982_v0, %v2146_v61 }
 0x545   :  { %v4571_v40 = vpop.eup %4570  ;;  %v3068_v27 = vpop.f32.mrf.mxu1  ;;  %v2148_v37 = vmul.f32 %v7470_v18, %v9080_v19  ;;  %v2298_v36 = vadd.f32 %v7982_v0, %v2147_v33 }
 0x546   :  { %3830 = vst [vmem:[%s8495_s5 + $0x98] sm:$0xff] %v4571_v40  ;;  %4584 = vtanh.f32 %v3068_v27  ;;  %v2439_v40 = vmax.f32 %v2295_v55, 0.0  ;;  %v9081_v27 = vld [vmem:[#allocation87_spill] sm:$0xff]  ;;  %v2441_v3 = vmax.f32 %v2297_v58, 0.0 }
 0x547   :  { %v4573_v26 = vpop.eup %4572  ;;  %v4292_v52 = vpop.f32.mrf.mxu1  ;;  %4435 = vmatmul.mubr.msk.f32.gmra.mxu1 %vm1125_vm0, %v2428_v8  ;;  %v2149_v59 = vmul.f32 %v7470_v18, %v9081_v27  ;;  %v2299_v49 = vadd.f32 %v7982_v0, %v2148_v37 }
 0x548   :  { %3829 = vst [vmem:[%s8495_s5 + $0x90] sm:$0xff] %v4573_v26  ;;  %4586 = vtanh.f32 %v4292_v52  ;;  %4437 = vmatprep.mubr.msk.f32.mxu1 %vm1125_vm0, %v2429_v24  ;;  %v2440_v24 = vmax.f32 %v2296_v29, 0.0  ;;  %v9082_v52 = vld [vmem:[#allocation89_spill] sm:$0xff] }
 0x549   :  { %v4575_v22 = vpop.eup %4574  ;;  %v3078_v39 = vpop.f32.mrf.mxu1 }
 0x54a   :  { %3832 = vst [vmem:[%s8495_s5 + $0xa8] sm:$0xff] %v4575_v22  ;;  %4588 = vtanh.f32 %v3078_v39  ;;  %v2150_v22 = vmul.f32 %v7470_v18, %v9082_v52 }
 0x54b   :  { %v4577_v14 = vpop.eup %4576  ;;  %v4295_v10 = vpop.f32.mrf.mxu1  ;;  %4438 = vmatmul.mubr.msk.f32.gmra.mxu1 %vm1125_vm0, %v2430_v23 }
 0x54c   :  { %3831 = vst [vmem:[%s8495_s5 + $0xa0] sm:$0xff] %v4577_v14  ;;  %4590 = vtanh.f32 %v4295_v10  ;;  %4440 = vmatprep.mubr.msk.f32.mxu1 %vm1125_vm0, %v2431_v38  ;;  %v2151_v38 = vmul.f32 %v7470_v18, %v9083_v35  ;;  %v2300_v14 = vadd.f32 %v7982_v0, %v2149_v59  ;;  %v2442_v10 = vmax.f32 %v2298_v36, 0.0 }
 0x54d   :  { %v4579_v13 = vpop.eup %4578  ;;  %v3088_v57 = vpop.f32.mrf.mxu1 }
 0x54e   :  { %3834 = vst [vmem:[%s8495_s5 + $0xb8] sm:$0xff] %v4579_v13  ;;  %4592 = vtanh.f32 %v3088_v57  ;;  %v2443_v57 = vmax.f32 %v2299_v49, 0.0 }
 0x54f   :  { %v4581_v46 = vpop.eup %4580  ;;  %v4298_v53 = vpop.f32.mrf.mxu1  ;;  %4441 = vmatmul.mubr.msk.f32.gmra.mxu1 %vm1125_vm0, %v2432_v28  ;;  %v2301_v28 = vadd.f32 %v7982_v0, %v2150_v22 }
 0x550   :  { %3833 = vst [vmem:[%s8495_s5 + $0xb0] sm:$0xff] %v4581_v46  ;;  %4594 = vtanh.f32 %v4298_v53  ;;  %4443 = vmatprep.mubr.msk.f32.mxu1 %vm1125_vm0, %v2433_v41  ;;  %v2153_v46 = vmul.f32 %v7470_v18, %v7458_v47  ;;  %v2302_v53 = vadd.f32 %v7982_v0, %v2151_v38 }
 0x551   :  { %v4583_v17 = vpop.eup %4582  ;;  %v3098_v54 = vpop.f32.mrf.mxu1 }
 0x552   :  { %3836 = vst [vmem:[%s8495_s5 + $0xc8] sm:$0xff] %v4583_v17  ;;  %4596 = vtanh.f32 %v3098_v54  ;;  %v2444_v17 = vmax.f32 %v2300_v14, 0.0  ;;  %v2304_v18 = vadd.f32 %v7982_v0, %v2153_v46  ;;  %v2446_v20 = vmax.f32 %v2302_v53, 0.0 }
 0x553   :  { %v4585_v21 = vpop.eup %4584  ;;  %v4301_v43 = vpop.f32.mrf.mxu1  ;;  %4444 = vmatmul.mubr.msk.f32.gmra.mxu1 %vm1125_vm0, %v2434_v25  ;;  %v2445_v25 = vmax.f32 %v2301_v28, 0.0 }
 0x554   :  { %3835 = vst [vmem:[%s8495_s5 + $0xc0] sm:$0xff] %v4585_v21  ;;  %4598 = vtanh.f32 %v4301_v43  ;;  %4446 = vmatprep.mubr.msk.f32.mxu1 %vm1125_vm0, %v2435_v12  ;;  %v2447_v21 = vmax.f32 %v2303_v15, 0.0  ;;  %v2448_v42 = vmax.f32 %v2304_v18, 0.0 }
 0x555   :  { %v4587_v9 = vpop.eup %4586  ;;  %v3108_v31 = vpop.f32.mrf.mxu1 }
 0x556   :  { %3838 = vst [vmem:[%s8495_s5 + $0xd8] sm:$0xff] %v4587_v9  ;;  %4600 = vtanh.f32 %v3108_v31 }
 0x557   :  { %v4589_v16 = vpop.eup %4588  ;;  %v4304_v60 = vpop.f32.mrf.mxu1  ;;  %4447 = vmatmul.mubr.msk.f32.gmra.mxu1 %vm1125_vm0, %v2436_v63 }
 0x558   :  { %3837 = vst [vmem:[%s8495_s5 + $0xd0] sm:$0xff] %v4589_v16  ;;  %4602 = vtanh.f32 %v4304_v60  ;;  %4449 = vmatprep.mubr.msk.f32.mxu1 %vm1125_vm0, %v2437_v4 }
 0x559   :  { %v4591_v6 = vpop.eup %4590  ;;  %v3118_v1 = vpop.f32.mrf.mxu1 }
 0x55a   :  { %3840 = vst [vmem:[%s8495_s5 + $0xe8] sm:$0xff] %v4591_v6  ;;  %4604 = vtanh.f32 %v3118_v1 }
 0x55b   :  { %v4593_v51 = vpop.eup %4592  ;;  %v4307_v7 = vpop.f32.mrf.mxu1  ;;  %4450 = vmatmul.mubr.msk.f32.gmra.mxu1 %vm1125_vm0, %v2438_v44 }
 0x55c   :  { %3839 = vst [vmem:[%s8495_s5 + $0xe0] sm:$0xff] %v4593_v51  ;;  %4606 = vtanh.f32 %v4307_v7  ;;  %4452 = vmatprep.mubr.msk.f32.mxu1 %vm1125_vm0, %v2439_v40 }
 0x55d   :  { %v4595_v8 = vpop.eup %4594  ;;  %v3128_v26 = vpop.f32.mrf.mxu1 }
 0x55e   :  { %3842 = vst [vmem:[%s8495_s5 + $0xf8] sm:$0xff] %v4595_v8  ;;  %4608 = vtanh.f32 %v3128_v26 }
 0x55f   :  { %v4597_v23 = vpop.eup %4596  ;;  %v4310_v39 = vpop.f32.mrf.mxu1  ;;  %4453 = vmatmul.mubr.msk.f32.gmra.mxu1 %vm1125_vm0, %v2440_v24 }
 0x560   :  { %3841 = vst [vmem:[%s8495_s5 + $0xf0] sm:$0xff] %v4597_v23  ;;  %4610 = vtanh.f32 %v4310_v39  ;;  %4455 = vmatprep.mubr.msk.f32.mxu1 %vm1125_vm0, %v2441_v3 }
 0x561   :  { %v4599_v11 = vpop.eup %4598  ;;  %v3138_v13 = vpop.f32.mrf.mxu1 }
 0x562   :  { %3844 = vst [vmem:[%s8495_s5 + $0x108] sm:$0xff] %v4599_v11  ;;  %4612 = vtanh.f32 %v3138_v13 }
 0x563   :  { %v4601_v2 = vpop.eup %4600  ;;  %v4313_v5 = vpop.f32.mrf.mxu1  ;;  %4456 = vmatmul.mubr.msk.f32.gmra.mxu1 %vm1125_vm0, %v2442_v10 }
 0x564   :  { %3843 = vst [vmem:[%s8495_s5 + $0x100] sm:$0xff] %v4601_v2  ;;  %4614 = vtanh.f32 %v4313_v5  ;;  %4458 = vmatprep.mubr.msk.f32.mxu1 %vm1125_vm0, %v2443_v57 }
 0x565   :  { %v4603_v41 = vpop.eup %4602  ;;  %v3148_v48 = vpop.f32.mrf.mxu1 }
 0x566   :  { %3846 = vst [vmem:[%s8495_s5 + $0x118] sm:$0xff] %v4603_v41  ;;  %4616 = vtanh.f32 %v3148_v48 }
 0x567   :  { %v4605_v54 = vpop.eup %4604  ;;  %v4316_v32 = vpop.f32.mrf.mxu1  ;;  %4459 = vmatmul.mubr.msk.f32.gmra.mxu1 %vm1125_vm0, %v2444_v17 }
 0x568   :  { %3845 = vst [vmem:[%s8495_s5 + $0x110] sm:$0xff] %v4605_v54  ;;  %4618 = vtanh.f32 %v4316_v32  ;;  %4461 = vmatprep.mubr.msk.f32.mxu1 %vm1125_vm0, %v2445_v25 }
 0x569   :  { %v4607_v47 = vpop.eup %4606  ;;  %v3158_v12 = vpop.f32.mrf.mxu1 }
 0x56a   :  { %3848 = vst [vmem:[%s8495_s5 + $0x128] sm:$0xff] %v4607_v47  ;;  %4620 = vtanh.f32 %v3158_v12 }
 0x56b   :  { %v4609_v43 = vpop.eup %4608  ;;  %v4319_v9 = vpop.f32.mrf.mxu1  ;;  %4462 = vmatmul.mubr.msk.f32.gmra.mxu1 %vm1125_vm0, %v2446_v20 }
 0x56c   :  { %3847 = vst [vmem:[%s8495_s5 + $0x120] sm:$0xff] %v4609_v43  ;;  %4622 = vtanh.f32 %v4319_v9  ;;  %4464 = vmatprep.mubr.msk.f32.mxu1 %vm1125_vm0, %v2447_v21 }
 0x56d   :  { %v4611_v0 = vpop.eup %4610  ;;  %v3168_v56 = vpop.f32.mrf.mxu1 }
 0x56e   :  { %3850 = vst [vmem:[%s8495_s5 + $0x138] sm:$0xff] %v4611_v0  ;;  %4624 = vtanh.f32 %v3168_v56 }
 0x56f   :  { %v4613_v34 = vpop.eup %4612  ;;  %v4322_v63 = vpop.f32.mrf.mxu1  ;;  %4465 = vmatmul.mubr.msk.f32.gmra.mxu1 %vm1125_vm0, %v2448_v42 }
 0x570   :  { %3849 = vst [vmem:[%s8495_s5 + $0x130] sm:$0xff] %v4613_v34  ;;  %4626 = vtanh.f32 %v4322_v63 }
 0x571   :  { %v4615_v31 = vpop.eup %4614  ;;  %v3178_v30 = vpop.f32.mrf.mxu1 }
 0x572   :  { %3852 = vst [vmem:[%s8495_s5 + $0x148] sm:$0xff] %v4615_v31  ;;  %4628 = vtanh.f32 %v3178_v30 }
 0x573   :  { %v4617_v61 = vpop.eup %4616  ;;  %v4325_v55 = vpop.f32.mrf.mxu1 }
 0x574   :  { %3851 = vst [vmem:[%s8495_s5 + $0x140] sm:$0xff] %v4617_v61  ;;  %4630 = vtanh.f32 %v4325_v55 }
 0x575   :  { %v4619_v4 = vpop.eup %4618  ;;  %v3188_v16 = vpop.f32.mrf.mxu1 }
 0x576   :  { %3854 = vst [vmem:[%s8495_s5 + $0x158] sm:$0xff] %v4619_v4  ;;  %4632 = vtanh.f32 %v3188_v16 }
 0x577   :  { %v4621_v60 = vpop.eup %4620  ;;  %v4328_v6 = vpop.f32.mrf.mxu1 }
 0x578   :  { %3853 = vst [vmem:[%s8495_s5 + $0x150] sm:$0xff] %v4621_v60  ;;  %4634 = vtanh.f32 %v4328_v6 }
 0x579   :  { %v4623_v62 = vpop.eup %4622  ;;  %v3198_v33 = vpop.f32.mrf.mxu1 }
 0x57a   :  { %3856 = vst [vmem:[%s8495_s5 + $0x168] sm:$0xff] %v4623_v62  ;;  %4636 = vtanh.f32 %v3198_v33 }
 0x57b   :  { %v4625_v29 = vpop.eup %4624  ;;  %v4331_v44 = vpop.f32.mrf.mxu1 }
 0x57c   :  { %3855 = vst [vmem:[%s8495_s5 + $0x160] sm:$0xff] %v4625_v29  ;;  %4638 = vtanh.f32 %v4331_v44 }
 0x57d   :  { %v4627_v1 = vpop.eup %4626  ;;  %v3208_v19 = vpop.f32.mrf.mxu1 }
 0x57e   :  { %3858 = vst [vmem:[%s8495_s5 + $0x178] sm:$0xff] %v4627_v1  ;;  %4640 = vtanh.f32 %v3208_v19 }
 0x57f   :  { %v4629_v37 = vpop.eup %4628  ;;  %v4334_v58 = vpop.f32.mrf.mxu1 }
 0x580   :  { %3857 = vst [vmem:[%s8495_s5 + $0x170] sm:$0xff] %v4629_v37  ;;  %4642 = vtanh.f32 %v4334_v58 }
 0x581   :  { %v4631_v40 = vpop.eup %4630  ;;  %v3218_v51 = vpop.f32.mrf.mxu1 }
 0x582   :  { %3860 = vst [vmem:[%s8495_s5 + $0x188] sm:$0xff] %v4631_v40  ;;  %4644 = vtanh.f32 %v3218_v51 }
 0x583   :  { %v4633_v7 = vpop.eup %4632  ;;  %v4337_v8 = vpop.f32.mrf.mxu1 }
 0x584   :  { %3859 = vst [vmem:[%s8495_s5 + $0x180] sm:$0xff] %v4633_v7  ;;  %4646 = vtanh.f32 %v4337_v8 }
 0x585   :  { %v4635_v27 = vpop.eup %4634  ;;  %v3228_v59 = vpop.f32.mrf.mxu1 }
 0x586   :  { %3862 = vst [vmem:[%s8495_s5 + $0x198] sm:$0xff] %v4635_v27  ;;  %4648 = vtanh.f32 %v3228_v59 }
 0x587   :  { %v4637_v36 = vpop.eup %4636  ;;  %v4340_v24 = vpop.f32.mrf.mxu1 }
 0x588   :  { %3861 = vst [vmem:[%s8495_s5 + $0x190] sm:$0xff] %v4637_v36  ;;  %4650 = vtanh.f32 %v4340_v24 }
 0x589   :  { %v4639_v26 = vpop.eup %4638  ;;  %v3238_v52 = vpop.f32.mrf.mxu1 }
 0x58a   :  { %3864 = vst [vmem:[%s8495_s5 + $0x1a8] sm:$0xff] %v4639_v26  ;;  %4652 = vtanh.f32 %v3238_v52 }
 0x58b   :  { %v4641_v22 = vpop.eup %4640  ;;  %v4343_v49 = vpop.f32.mrf.mxu1 }
 0x58c   :  { %3863 = vst [vmem:[%s8495_s5 + $0x1a0] sm:$0xff] %v4641_v22  ;;  %4654 = vtanh.f32 %v4343_v49 }
 0x58d   :  { %v4643_v3 = vpop.eup %4642  ;;  %v3248_v23 = vpop.f32.mrf.mxu1 }
 0x58e   :  { %3866 = vst [vmem:[%s8495_s5 + $0x1b8] sm:$0xff] %v4643_v3  ;;  %4656 = vtanh.f32 %v3248_v23 }
 0x58f   :  { %v4645_v39 = vpop.eup %4644  ;;  %v4346_v11 = vpop.f32.mrf.mxu1 }
 0x590   :  { %3865 = vst [vmem:[%s8495_s5 + $0x1b0] sm:$0xff] %v4645_v39  ;;  %4658 = vtanh.f32 %v4346_v11 }
 0x591   :  { %v4647_v35 = vpop.eup %4646  ;;  %v3258_v38 = vpop.f32.mrf.mxu1 }
 0x592   :  { %3868 = vst [vmem:[%s8495_s5 + $0x1c8] sm:$0xff] %v4647_v35  ;;  %4660 = vtanh.f32 %v3258_v38 }
 0x593   :  { %v4649_v14 = vpop.eup %4648  ;;  %v4349_v10 = vpop.f32.mrf.mxu1 }
 0x594   :  { %3867 = vst [vmem:[%s8495_s5 + $0x1c0] sm:$0xff] %v4649_v14  ;;  %4662 = vtanh.f32 %v4349_v10 }
 0x595   :  { %v4651_v13 = vpop.eup %4650  ;;  %v3268_v45 = vpop.f32.mrf.mxu1 }
 0x596   :  { %3870 = vst [vmem:[%s8495_s5 + $0x1d8] sm:$0xff] %v4651_v13  ;;  %4664 = vtanh.f32 %v3268_v45 }
 0x597   :  { %v4653_v50 = vpop.eup %4652  ;;  %v4352_v28 = vpop.f32.mrf.mxu1 }
 0x598   :  { %3869 = vst [vmem:[%s8495_s5 + $0x1d0] sm:$0xff] %v4653_v50  ;;  %4666 = vtanh.f32 %v4352_v28 }
 0x599   :  { %v4655_v57 = vpop.eup %4654  ;;  %v3278_v2 = vpop.f32.mrf.mxu1 }
 0x59a   :  { %3872 = vst [vmem:[%s8495_s5 + $0x1e8] sm:$0xff] %v4655_v57  ;;  %4668 = vtanh.f32 %v3278_v2 }
 0x59b   :  { %v4657_v5 = vpop.eup %4656  ;;  %v4355_v41 = vpop.f32.mrf.mxu1 }
 0x59c   :  { %3871 = vst [vmem:[%s8495_s5 + $0x1e0] sm:$0xff] %v4657_v5  ;;  %4670 = vtanh.f32 %v4355_v41 }
 0x59d   :  { %v4659_v46 = vpop.eup %4658  ;;  %v3288_v53 = vpop.f32.mrf.mxu1 }
 0x59e   :  { %3874 = vst [vmem:[%s8495_s5 + $0x1f8] sm:$0xff] %v4659_v46  ;;  %4672 = vtanh.f32 %v3288_v53 }
 0x59f   :  { %v4661_v17 = vpop.eup %4660  ;;  %v4358_v48 = vpop.f32.mrf.mxu1 }
 0x5a0   :  { %3873 = vst [vmem:[%s8495_s5 + $0x1f0] sm:$0xff] %v4661_v17  ;;  %4674 = vtanh.f32 %v4358_v48 }
 0x5a1   :  { %v4663_v15 = vpop.eup %4662  ;;  %v3298_v25 = vpop.f32.mrf.mxu1 }
 0x5a2   :  { %3876 = vst [vmem:[%s8495_s5 + $0x208] sm:$0xff] %v4663_v15  ;;  %4676 = vtanh.f32 %v3298_v25 }
 0x5a3   :  { %v4665_v54 = vpop.eup %4664  ;;  %v4361_v32 = vpop.f32.mrf.mxu1 }
 0x5a4   :  { %3875 = vst [vmem:[%s8495_s5 + $0x200] sm:$0xff] %v4665_v54  ;;  %4678 = vtanh.f32 %v4361_v32 }
 0x5a5   :  { %v4667_v47 = vpop.eup %4666  ;;  %v3308_v18 = vpop.f32.mrf.mxu1 }
 0x5a6   :  { %3878 = vst [vmem:[%s8495_s5 + $0x218] sm:$0xff] %v4667_v47  ;;  %4680 = vtanh.f32 %v3308_v18 }
 0x5a7   :  { %v4669_v20 = vpop.eup %4668  ;;  %v4364_v12 = vpop.f32.mrf.mxu1 }
 0x5a8   :  { %3877 = vst [vmem:[%s8495_s5 + $0x210] sm:$0xff] %v4669_v20  ;;  %4682 = vtanh.f32 %v4364_v12 }
 0x5a9   :  { %v4671_v21 = vpop.eup %4670  ;;  %v3318_v43 = vpop.f32.mrf.mxu1 }
 0x5aa   :  { %3880 = vst [vmem:[%s8495_s5 + $0x228] sm:$0xff] %v4671_v21  ;;  %4684 = vtanh.f32 %v3318_v43 }
 0x5ab   :  { %v4673_v9 = vpop.eup %4672  ;;  %v4367_v0 = vpop.f32.mrf.mxu1 }
 0x5ac   :  { %3879 = vst [vmem:[%s8495_s5 + $0x220] sm:$0xff] %v4673_v9  ;;  %4686 = vtanh.f32 %v4367_v0 }
 0x5ad   :  { %v4675_v42 = vpop.eup %4674  ;;  %v3328_v56 = vpop.f32.mrf.mxu1 }
 0x5ae   :  { %3882 = vst [vmem:[%s8495_s5 + $0x238] sm:$0xff] %v4675_v42  ;;  %4688 = vtanh.f32 %v3328_v56 }
 0x5af   :  { %v4677_v34 = vpop.eup %4676  ;;  %v4370_v63 = vpop.f32.mrf.mxu1 }
 0x5b0   :  { %3881 = vst [vmem:[%s8495_s5 + $0x230] sm:$0xff] %v4677_v34  ;;  %4690 = vtanh.f32 %v4370_v63 }
 0x5b1   :  { %v4679_v31 = vpop.eup %4678  ;;  %v3338_v30 = vpop.f32.mrf.mxu1 }
 0x5b2   :  { %3884 = vst [vmem:[%s8495_s5 + $0x248] sm:$0xff] %v4679_v31  ;;  %4692 = vtanh.f32 %v3338_v30 }
 0x5b3   :  { %v4681_v61 = vpop.eup %4680  ;;  %v4373_v55 = vpop.f32.mrf.mxu1 }
 0x5b4   :  { %3883 = vst [vmem:[%s8495_s5 + $0x240] sm:$0xff] %v4681_v61  ;;  %4694 = vtanh.f32 %v4373_v55 }
 0x5b5   :  { %v4683_v4 = vpop.eup %4682  ;;  %v3348_v16 = vpop.f32.mrf.mxu1 }
 0x5b6   :  { %3886 = vst [vmem:[%s8495_s5 + $0x258] sm:$0xff] %v4683_v4  ;;  %4696 = vtanh.f32 %v3348_v16 }
 0x5b7   :  { %v4685_v60 = vpop.eup %4684  ;;  %v4376_v6 = vpop.f32.mrf.mxu1 }
 0x5b8   :  { %3885 = vst [vmem:[%s8495_s5 + $0x250] sm:$0xff] %v4685_v60  ;;  %4698 = vtanh.f32 %v4376_v6 }
 0x5b9   :  { %v4687_v62 = vpop.eup %4686  ;;  %v3358_v33 = vpop.f32.mrf.mxu1 }
 0x5ba   :  { %3888 = vst [vmem:[%s8495_s5 + $0x268] sm:$0xff] %v4687_v62  ;;  %4700 = vtanh.f32 %v3358_v33 }
 0x5bb   :  { %v4689_v29 = vpop.eup %4688  ;;  %v4379_v44 = vpop.f32.mrf.mxu1 }
 0x5bc   :  { %3887 = vst [vmem:[%s8495_s5 + $0x260] sm:$0xff] %v4689_v29  ;;  %4702 = vtanh.f32 %v4379_v44 }
 0x5bd   :  { %v4691_v1 = vpop.eup %4690  ;;  %v3368_v19 = vpop.f32.mrf.mxu1 }
 0x5be   :  { %3890 = vst [vmem:[%s8495_s5 + $0x278] sm:$0xff] %v4691_v1  ;;  %4704 = vtanh.f32 %v3368_v19 }
 0x5bf   :  { %v4693_v37 = vpop.eup %4692  ;;  %v4382_v58 = vpop.f32.mrf.mxu1 }
 0x5c0   :  { %3889 = vst [vmem:[%s8495_s5 + $0x270] sm:$0xff] %v4693_v37  ;;  %4706 = vtanh.f32 %v4382_v58 }
 0x5c1   :  { %v4695_v40 = vpop.eup %4694  ;;  %v3378_v51 = vpop.f32.mrf.mxu1 }
 0x5c2   :  { %3892 = vst [vmem:[%s8495_s5 + $0x288] sm:$0xff] %v4695_v40  ;;  %4708 = vtanh.f32 %v3378_v51 }
 0x5c3   :  { %v4697_v7 = vpop.eup %4696  ;;  %v4385_v8 = vpop.f32.mrf.mxu1 }
 0x5c4   :  { %3891 = vst [vmem:[%s8495_s5 + $0x280] sm:$0xff] %v4697_v7  ;;  %4710 = vtanh.f32 %v4385_v8 }
 0x5c5   :  { %v4699_v27 = vpop.eup %4698  ;;  %v3388_v59 = vpop.f32.mrf.mxu1 }
 0x5c6   :  { %3894 = vst [vmem:[%s8495_s5 + $0x298] sm:$0xff] %v4699_v27  ;;  %4712 = vtanh.f32 %v3388_v59 }
 0x5c7   :  { %v4701_v36 = vpop.eup %4700  ;;  %v4388_v24 = vpop.f32.mrf.mxu1 }
 0x5c8   :  { %3893 = vst [vmem:[%s8495_s5 + $0x290] sm:$0xff] %v4701_v36  ;;  %4714 = vtanh.f32 %v4388_v24 }
 0x5c9   :  { %v4703_v26 = vpop.eup %4702  ;;  %v3398_v52 = vpop.f32.mrf.mxu1 }
 0x5ca   :  { %3896 = vst [vmem:[%s8495_s5 + $0x2a8] sm:$0xff] %v4703_v26  ;;  %4716 = vtanh.f32 %v3398_v52 }
 0x5cb   :  { %v4705_v22 = vpop.eup %4704  ;;  %v4391_v49 = vpop.f32.mrf.mxu1 }
 0x5cc   :  { %3895 = vst [vmem:[%s8495_s5 + $0x2a0] sm:$0xff] %v4705_v22  ;;  %4718 = vtanh.f32 %v4391_v49 }
 0x5cd   :  { %v4707_v3 = vpop.eup %4706  ;;  %v3408_v23 = vpop.f32.mrf.mxu1 }
 0x5ce   :  { %3898 = vst [vmem:[%s8495_s5 + $0x2b8] sm:$0xff] %v4707_v3  ;;  %4720 = vtanh.f32 %v3408_v23 }
 0x5cf   :  { %v4709_v39 = vpop.eup %4708  ;;  %v4394_v11 = vpop.f32.mrf.mxu1 }
 0x5d0   :  { %3897 = vst [vmem:[%s8495_s5 + $0x2b0] sm:$0xff] %v4709_v39  ;;  %4722 = vtanh.f32 %v4394_v11 }
 0x5d1   :  { %v4711_v35 = vpop.eup %4710  ;;  %v3418_v38 = vpop.f32.mrf.mxu1 }
 0x5d2   :  { %3900 = vst [vmem:[%s8495_s5 + $0x2c8] sm:$0xff] %v4711_v35  ;;  %4724 = vtanh.f32 %v3418_v38 }
 0x5d3   :  { %v4713_v14 = vpop.eup %4712  ;;  %v4397_v10 = vpop.f32.mrf.mxu1 }
 0x5d4   :  { %3899 = vst [vmem:[%s8495_s5 + $0x2c0] sm:$0xff] %v4713_v14  ;;  %4726 = vtanh.f32 %v4397_v10 }
 0x5d5   :  { %v4715_v13 = vpop.eup %4714  ;;  %v3428_v45 = vpop.f32.mrf.mxu1 }
 0x5d6   :  { %3902 = vst [vmem:[%s8495_s5 + $0x2d8] sm:$0xff] %v4715_v13  ;;  %4728 = vtanh.f32 %v3428_v45 }
 0x5d7   :  { %v4717_v50 = vpop.eup %4716  ;;  %v4400_v28 = vpop.f32.mrf.mxu1 }
 0x5d8   :  { %3901 = vst [vmem:[%s8495_s5 + $0x2d0] sm:$0xff] %v4717_v50  ;;  %4730 = vtanh.f32 %v4400_v28 }
 0x5d9   :  { %v4719_v57 = vpop.eup %4718  ;;  %v3438_v2 = vpop.f32.mrf.mxu1 }
 0x5da   :  { %3904 = vst [vmem:[%s8495_s5 + $0x2e8] sm:$0xff] %v4719_v57  ;;  %4732 = vtanh.f32 %v3438_v2 }
 0x5db   :  { %v4721_v5 = vpop.eup %4720  ;;  %v4403_v41 = vpop.f32.mrf.mxu1 }
 0x5dc   :  { %3903 = vst [vmem:[%s8495_s5 + $0x2e0] sm:$0xff] %v4721_v5  ;;  %4734 = vtanh.f32 %v4403_v41 }
 0x5dd   :  { %v4723_v46 = vpop.eup %4722  ;;  %v3448_v53 = vpop.f32.mrf.mxu1 }
 0x5de   :  { %3906 = vst [vmem:[%s8495_s5 + $0x2f8] sm:$0xff] %v4723_v46  ;;  %4736 = vtanh.f32 %v3448_v53 }
 0x5df   :  { %v4725_v17 = vpop.eup %4724  ;;  %v4406_v48 = vpop.f32.mrf.mxu1 }
 0x5e0   :  { %3905 = vst [vmem:[%s8495_s5 + $0x2f0] sm:$0xff] %v4725_v17  ;;  %4738 = vtanh.f32 %v4406_v48 }
 0x5e1   :  { %v4727_v15 = vpop.eup %4726  ;;  %v3458_v25 = vpop.f32.mrf.mxu1 }
 0x5e2   :  { %3908 = vst [vmem:[%s8495_s5 + $0x308] sm:$0xff] %v4727_v15  ;;  %4740 = vtanh.f32 %v3458_v25 }
 0x5e3   :  { %v4729_v54 = vpop.eup %4728  ;;  %v4409_v32 = vpop.f32.mrf.mxu1 }
 0x5e4   :  { %3907 = vst [vmem:[%s8495_s5 + $0x300] sm:$0xff] %v4729_v54  ;;  %4742 = vtanh.f32 %v4409_v32 }
 0x5e5   :  { %v4731_v47 = vpop.eup %4730  ;;  %v3468_v18 = vpop.f32.mrf.mxu1 }
 0x5e6   :  { %3910 = vst [vmem:[%s8495_s5 + $0x318] sm:$0xff] %v4731_v47  ;;  %4744 = vtanh.f32 %v3468_v18 }
 0x5e7   :  { %v4733_v20 = vpop.eup %4732  ;;  %v4412_v12 = vpop.f32.mrf.mxu1 }
 0x5e8   :  { %3909 = vst [vmem:[%s8495_s5 + $0x310] sm:$0xff] %v4733_v20  ;;  %4746 = vtanh.f32 %v4412_v12 }
 0x5e9   :  { %v4735_v21 = vpop.eup %4734  ;;  %v3478_v43 = vpop.f32.mrf.mxu1 }
 0x5ea   :  { %3912 = vst [vmem:[%s8495_s5 + $0x328] sm:$0xff] %v4735_v21  ;;  %4748 = vtanh.f32 %v3478_v43 }
 0x5eb   :  { %v4737_v9 = vpop.eup %4736  ;;  %v4415_v0 = vpop.f32.mrf.mxu1 }
 0x5ec   :  { %3911 = vst [vmem:[%s8495_s5 + $0x320] sm:$0xff] %v4737_v9  ;;  %4750 = vtanh.f32 %v4415_v0 }
 0x5ed   :  { %v4739_v42 = vpop.eup %4738  ;;  %v3488_v56 = vpop.f32.mrf.mxu1 }
 0x5ee   :  { %3914 = vst [vmem:[%s8495_s5 + $0x338] sm:$0xff] %v4739_v42  ;;  %4752 = vtanh.f32 %v3488_v56 }
 0x5ef   :  { %v4741_v34 = vpop.eup %4740  ;;  %v4418_v63 = vpop.f32.mrf.mxu1 }
 0x5f0   :  { %3913 = vst [vmem:[%s8495_s5 + $0x330] sm:$0xff] %v4741_v34  ;;  %4754 = vtanh.f32 %v4418_v63 }
 0x5f1   :  { %v4743_v31 = vpop.eup %4742  ;;  %v3498_v30 = vpop.f32.mrf.mxu1 }
 0x5f2   :  { %3916 = vst [vmem:[%s8495_s5 + $0x348] sm:$0xff] %v4743_v31  ;;  %4756 = vtanh.f32 %v3498_v30 }
 0x5f3   :  { %v4745_v61 = vpop.eup %4744  ;;  %v4421_v55 = vpop.f32.mrf.mxu1 }
 0x5f4   :  { %3915 = vst [vmem:[%s8495_s5 + $0x340] sm:$0xff] %v4745_v61  ;;  %4758 = vtanh.f32 %v4421_v55 }
 0x5f5   :  { %v4747_v4 = vpop.eup %4746  ;;  %v3508_v16 = vpop.f32.mrf.mxu1 }
 0x5f6   :  { %3918 = vst [vmem:[%s8495_s5 + $0x358] sm:$0xff] %v4747_v4  ;;  %4760 = vtanh.f32 %v3508_v16 }
 0x5f7   :  { %v4749_v60 = vpop.eup %4748  ;;  %v4424_v6 = vpop.f32.mrf.mxu1 }
 0x5f8   :  { %3917 = vst [vmem:[%s8495_s5 + $0x350] sm:$0xff] %v4749_v60  ;;  %4762 = vtanh.f32 %v4424_v6 }
 0x5f9   :  { %v4751_v62 = vpop.eup %4750  ;;  %v3518_v33 = vpop.f32.mrf.mxu1 }
 0x5fa   :  { %3920 = vst [vmem:[%s8495_s5 + $0x368] sm:$0xff] %v4751_v62  ;;  %4764 = vtanh.f32 %v3518_v33 }
 0x5fb   :  { %v4753_v29 = vpop.eup %4752  ;;  %v4427_v44 = vpop.f32.mrf.mxu1 }
 0x5fc   :  { %3919 = vst [vmem:[%s8495_s5 + $0x360] sm:$0xff] %v4753_v29  ;;  %4766 = vtanh.f32 %v4427_v44 }
 0x5fd   :  { %v4755_v1 = vpop.eup %4754  ;;  %v3528_v19 = vpop.f32.mrf.mxu1 }
 0x5fe   :  { %3922 = vst [vmem:[%s8495_s5 + $0x378] sm:$0xff] %v4755_v1  ;;  %4768 = vtanh.f32 %v3528_v19 }
 0x5ff   :  { %v4757_v37 = vpop.eup %4756  ;;  %v4430_v58 = vpop.f32.mrf.mxu1 }
 0x600   :  { %3921 = vst [vmem:[%s8495_s5 + $0x370] sm:$0xff] %v4757_v37  ;;  %4770 = vtanh.f32 %v4430_v58 }
 0x601   :  { %v4759_v40 = vpop.eup %4758  ;;  %v3538_v51 = vpop.f32.mrf.mxu1 }
 0x602   :  { %3924 = vst [vmem:[%s8495_s5 + $0x388] sm:$0xff] %v4759_v40  ;;  %4772 = vtanh.f32 %v3538_v51 }
 0x603   :  { %v4761_v7 = vpop.eup %4760  ;;  %v4433_v8 = vpop.f32.mrf.mxu1 }
 0x604   :  { %3923 = vst [vmem:[%s8495_s5 + $0x380] sm:$0xff] %v4761_v7  ;;  %4774 = vtanh.f32 %v4433_v8 }
 0x605   :  { %v4763_v27 = vpop.eup %4762  ;;  %v3548_v59 = vpop.f32.mrf.mxu1 }
 0x606   :  { %3926 = vst [vmem:[%s8495_s5 + $0x398] sm:$0xff] %v4763_v27  ;;  %4776 = vtanh.f32 %v3548_v59 }
 0x607   :  { %v4765_v36 = vpop.eup %4764  ;;  %v4436_v24 = vpop.f32.mrf.mxu1 }
 0x608   :  { %3925 = vst [vmem:[%s8495_s5 + $0x390] sm:$0xff] %v4765_v36  ;;  %4778 = vtanh.f32 %v4436_v24 }
 0x609   :  { %v4767_v26 = vpop.eup %4766  ;;  %v3558_v52 = vpop.f32.mrf.mxu1 }
 0x60a   :  { %3928 = vst [vmem:[%s8495_s5 + $0x3a8] sm:$0xff] %v4767_v26  ;;  %4780 = vtanh.f32 %v3558_v52 }
 0x60b   :  { %v4769_v22 = vpop.eup %4768  ;;  %v4439_v49 = vpop.f32.mrf.mxu1 }
 0x60c   :  { %3927 = vst [vmem:[%s8495_s5 + $0x3a0] sm:$0xff] %v4769_v22  ;;  %4782 = vtanh.f32 %v4439_v49 }
 0x60d   :  { %v4771_v3 = vpop.eup %4770  ;;  %v3568_v23 = vpop.f32.mrf.mxu1 }
 0x60e   :  { %3930 = vst [vmem:[%s8495_s5 + $0x3b8] sm:$0xff] %v4771_v3  ;;  %4784 = vtanh.f32 %v3568_v23 }
 0x60f   :  { %v4773_v39 = vpop.eup %4772  ;;  %v4442_v11 = vpop.f32.mrf.mxu1 }
 0x610   :  { %3929 = vst [vmem:[%s8495_s5 + $0x3b0] sm:$0xff] %v4773_v39  ;;  %4786 = vtanh.f32 %v4442_v11 }
 0x611   :  { %v4775_v35 = vpop.eup %4774  ;;  %v3578_v38 = vpop.f32.mrf.mxu1 }
 0x612   :  { %3932 = vst [vmem:[%s8495_s5 + $0x3c8] sm:$0xff] %v4775_v35  ;;  %4788 = vtanh.f32 %v3578_v38 }
 0x613   :  { %v4777_v14 = vpop.eup %4776  ;;  %v4445_v10 = vpop.f32.mrf.mxu1 }
 0x614   :  { %3931 = vst [vmem:[%s8495_s5 + $0x3c0] sm:$0xff] %v4777_v14  ;;  %4790 = vtanh.f32 %v4445_v10 }
 0x615   :  { %v4779_v13 = vpop.eup %4778  ;;  %v3588_v45 = vpop.f32.mrf.mxu1 }
 0x616   :  { %3934 = vst [vmem:[%s8495_s5 + $0x3d8] sm:$0xff] %v4779_v13  ;;  %4792 = vtanh.f32 %v3588_v45 }
 0x617   :  { %v4781_v50 = vpop.eup %4780  ;;  %v4448_v28 = vpop.f32.mrf.mxu1 }
 0x618   :  { %3933 = vst [vmem:[%s8495_s5 + $0x3d0] sm:$0xff] %v4781_v50  ;;  %4794 = vtanh.f32 %v4448_v28 }
 0x619   :  { %v4783_v57 = vpop.eup %4782  ;;  %v3598_v2 = vpop.f32.mrf.mxu1 }
 0x61a   :  { %3936 = vst [vmem:[%s8495_s5 + $0x3e8] sm:$0xff] %v4783_v57  ;;  %4796 = vtanh.f32 %v3598_v2 }
 0x61b   :  { %v4785_v5 = vpop.eup %4784  ;;  %v4451_v41 = vpop.f32.mrf.mxu1 }
 0x61c   :  { %3935 = vst [vmem:[%s8495_s5 + $0x3e0] sm:$0xff] %v4785_v5  ;;  %4798 = vtanh.f32 %v4451_v41 }
 0x61d   :  { %v4787_v46 = vpop.eup %4786  ;;  %v3608_v53 = vpop.f32.mrf.mxu1 }
 0x61e   :  { %3938 = vst [vmem:[%s8495_s5 + $0x3f8] sm:$0xff] %v4787_v46  ;;  %4800 = vtanh.f32 %v3608_v53 }
 0x61f   :  { %v4789_v17 = vpop.eup %4788  ;;  %v4454_v48 = vpop.f32.mrf.mxu1 }
 0x620   :  { %3937 = vst [vmem:[%s8495_s5 + $0x3f0] sm:$0xff] %v4789_v17  ;;  %4802 = vtanh.f32 %v4454_v48 }
 0x621   :  { %v4791_v15 = vpop.eup %4790  ;;  %v3618_v25 = vpop.f32.mrf.mxu1 }
 0x622   :  { %3940 = vst [vmem:[%s8495_s5 + $0x408] sm:$0xff] %v4791_v15  ;;  %4804 = vtanh.f32 %v3618_v25 }
 0x623   :  { %v4793_v54 = vpop.eup %4792  ;;  %v4457_v32 = vpop.f32.mrf.mxu1 }
 0x624   :  { %3939 = vst [vmem:[%s8495_s5 + $0x400] sm:$0xff] %v4793_v54  ;;  %4806 = vtanh.f32 %v4457_v32 }
 0x625   :  { %v4795_v47 = vpop.eup %4794  ;;  %v3628_v18 = vpop.f32.mrf.mxu1 }
 0x626   :  { %3942 = vst [vmem:[%s8495_s5 + $0x418] sm:$0xff] %v4795_v47  ;;  %4808 = vtanh.f32 %v3628_v18 }
 0x627   :  { %v4797_v20 = vpop.eup %4796  ;;  %v4460_v12 = vpop.f32.mrf.mxu1 }
 0x628   :  { %3941 = vst [vmem:[%s8495_s5 + $0x410] sm:$0xff] %v4797_v20  ;;  %4810 = vtanh.f32 %v4460_v12 }
 0x629   :  { %v4799_v21 = vpop.eup %4798  ;;  %v3638_v43 = vpop.f32.mrf.mxu1 }
 0x62a   :  { %3944 = vst [vmem:[%s8495_s5 + $0x428] sm:$0xff] %v4799_v21  ;;  %4812 = vtanh.f32 %v3638_v43 }
 0x62b   :  { %v4801_v9 = vpop.eup %4800  ;;  %v4463_v0 = vpop.f32.mrf.mxu1 }
 0x62c   :  { %3943 = vst [vmem:[%s8495_s5 + $0x420] sm:$0xff] %v4801_v9  ;;  %4814 = vtanh.f32 %v4463_v0 }
 0x62d   :  { %v4803_v42 = vpop.eup %4802  ;;  %v3648_v56 = vpop.f32.mrf.mxu1 }
 0x62e   :  { %3946 = vst [vmem:[%s8495_s5 + $0x438] sm:$0xff] %v4803_v42  ;;  %4816 = vtanh.f32 %v3648_v56 }
 0x62f   :  { %v4805_v34 = vpop.eup %4804  ;;  %v4466_v63 = vpop.f32.mrf.mxu1 }
 0x630   :  { %3945 = vst [vmem:[%s8495_s5 + $0x430] sm:$0xff] %v4805_v34  ;;  %4818 = vtanh.f32 %v4466_v63 }
 0x631   :  { %v4807_v31 = vpop.eup %4806  ;;  %v3658_v30 = vpop.f32.mrf.mxu1 }
 0x632   :  { %3948 = vst [vmem:[%s8495_s5 + $0x448] sm:$0xff] %v4807_v31  ;;  %4820 = vtanh.f32 %v3658_v30 }
 0x633   :  { %v4809_v61 = vpop.eup %4808 }
 0x634   :  { %3947 = vst [vmem:[%s8495_s5 + $0x440] sm:$0xff] %v4809_v61 }
 0x635   :  { %v4811_v55 = vpop.eup %4810 }
 0x636   :  { %3950 = vst [vmem:[%s8495_s5 + $0x458] sm:$0xff] %v4811_v55 }
 0x637   :  { %v4813_v4 = vpop.eup %4812 }
 0x638   :  { %3949 = vst [vmem:[%s8495_s5 + $0x450] sm:$0xff] %v4813_v4 }
 0x639   :  { %v4815_v16 = vpop.eup %4814 }
 0x63a   :  { %3952 = vst [vmem:[%s8495_s5 + $0x468] sm:$0xff] %v4815_v16 }
 0x63b   :  { %v4817_v60 = vpop.eup %4816 }
 0x63c   :  { %3951 = vst [vmem:[%s8495_s5 + $0x460] sm:$0xff] %v4817_v60 }
 0x63d   :  { %v4819_v6 = vpop.eup %4818 }
 0x63e   :  { %3954 = vst [vmem:[%s8495_s5 + $0x478] sm:$0xff] %v4819_v6 }
 0x63f   :  { %v4821_v62 = vpop.eup %4820 }
 0x640   :  { %3953 = vst [vmem:[%s8495_s5 + $0x470] sm:$0xff] %v4821_v62 }

</bundles_post_ra>
